<compile_context>
chip_gen: v5e
topology: v5e:2x2
jax: 0.10.0
libtpu: 0.0.40
codegen_flags: <defaults>
</compile_context>

<pallas_src>
import jax
import jax.numpy as jnp
from jax.experimental import pallas as pl
from jax.experimental.pallas import tpu as pltpu

HIDDEN_ENC = 768   # CodeBERT hidden_size
HIDDEN_MLP = 512
BN_EPS = 1e-5


def _ranker_kernel(len_ref, hs_ref, w1_ref, b1_ref, w2_ref, b2_ref, out_ref, acc_ref):
    # grid = (seq_tiles,); the single axis is a sequence reduction ("arbitrary").
    s = pl.program_id(0)
    B, tS, _ = hs_ref.shape

    @pl.when(s == 0)
    def _():
        acc_ref[...] = jnp.zeros_like(acc_ref)

    # Rebuild this tile's padding mask from the per-row lengths (tokenizer
    # attention masks are a contiguous prefix of ones).
    pos = jax.lax.broadcasted_iota(jnp.int32, (B, 1, tS), 2) + s * tS
    m = (pos < len_ref[...]).astype(hs_ref.dtype)                    # [B, 1, tS]

    # Masked sum over the tile on the MXU (batched mat-vec, f32 accumulation).
    acc_ref[...] += jnp.einsum("bqs,bsh->bqh", m, hs_ref[...],
                               preferred_element_type=jnp.float32)   # [B, 1, H]

    # --- BN + MLP tail only on the last sequence step ---
    @pl.when(s == pl.num_programs(0) - 1)
    def _():
        # Masked mean pooling; exact integer length as denominator (clamped so
        # an all-padding row doesn't NaN).
        denom = jnp.maximum(len_ref[...].astype(jnp.float32), 1.0)   # [B, 1, 1]
        emb = (acc_ref[...] / denom)[:, 0, :]                        # [B, H]

        # BatchNorm1d(H): fresh module -> training-mode batch statistics,
        # affine params at init (gamma=1, beta=0), biased variance.
        mu = jnp.mean(emb, axis=0, keepdims=True)
        var = jnp.mean((emb - mu) ** 2, axis=0, keepdims=True)
        x = (emb - mu) * jax.lax.rsqrt(var + BN_EPS)
        x = jnp.maximum(x, 0.0)                                      # ReLU

        # Linear(H, 512): bf16 x bf16 on the MXU, f32 accumulation.
        x = jnp.dot(x.astype(w1_ref.dtype), w1_ref[...],
                    preferred_element_type=jnp.float32) + b1_ref[...]

        # BatchNorm1d(512)
        mu2 = jnp.mean(x, axis=0, keepdims=True)
        var2 = jnp.mean((x - mu2) ** 2, axis=0, keepdims=True)
        x = (x - mu2) * jax.lax.rsqrt(var2 + BN_EPS)
        x = jnp.maximum(x, 0.0)                                      # ReLU

        # TODO(synk): Dropout(p=0.4) left as identity (eval semantics); torch's
        # train-mode RNG stream is not reproducible here anyway.

        # Linear(512, 1): N=1 matmul wastes the MXU -> VPU multiply + lane reduce.
        score = jnp.sum(x * w2_ref[...].astype(jnp.float32), axis=-1,
                        keepdims=True) + b2_ref[...]
        out_ref[...] = score                                         # [B, 1]


def _vmem_capacity_bytes():
    try:
        return int(pltpu.get_tpu_info().vmem_capacity_bytes)
    except Exception:
        return 64 << 20          # v7x-sized fallback (smallest of the target gens)


def _pick_seq_tile(B, S, elem_bytes, tile_budget):
    """Largest divisor of S that is a multiple of 8 (sublane-legal block) whose
    hidden-state tile fits `tile_budget`; falls back to the smallest legal tile."""
    cands = [d for d in range(S, 0, -1) if S % d == 0 and (d % 8 == 0 or d == S)]
    for tS in cands:
        if B * tS * HIDDEN_ENC * elem_bytes <= tile_budget:
            return tS
    # Only reachable when S has no small multiple-of-8 divisor (ragged S).
    return cands[-1]


def _ranker_scores(hidden_states, lengths, params):
    """hidden_states: [B, S, H] (read as-is, no cast pass), lengths: [B] int32
    -> scores [B, 1] f32."""
    B, S, H = hidden_states.shape
    assert H == HIDDEN_ENC
    elem = jnp.dtype(hidden_states.dtype).itemsize

    # Generation-aware VMEM budget (v5e/v6e: 128 MiB, v7x: 64 MiB physical).
    vmem_cap = _vmem_capacity_bytes()
    usable = min(vmem_cap - (8 << 20), 96 << 20)
    tile_budget = min((usable - (6 << 20)) // 3, 12 << 20)  # 2x double-buffer + 1x live value
    tS = _pick_seq_tile(B, S, elem, tile_budget)
    n_s = S // tS
    tile_bytes = B * tS * H * elem
    vmem_limit = int(min(vmem_cap - (4 << 20), max(3 * tile_bytes + (6 << 20), 16 << 20)))

    lengths = lengths.reshape(B, 1, 1).astype(jnp.int32)
    w1, b1, w2, b2 = params["w1"], params["b1"], params["w2"], params["b2"]

    weight_bytes = sum(int(a.size) * jnp.dtype(a.dtype).itemsize for a in (w1, b1, w2, b2))
    cost = pl.CostEstimate(
        flops=2 * B * S * H + 2 * B * H * HIDDEN_MLP + 2 * B * HIDDEN_MLP,
        transcendentals=H + HIDDEN_MLP,                      # the two BN rsqrts
        bytes_accessed=int(hidden_states.size) * elem + weight_bytes + B * 4 + B * 4)

    grid_spec = pltpu.PrefetchScalarGridSpec(
        num_scalar_prefetch=0,
        grid=(n_s,),
        in_specs=[
            pl.BlockSpec((B, 1, 1), lambda s: (0, 0, 0)),        # lengths (resident)
            pl.BlockSpec((B, tS, H), lambda s: (0, s, 0)),       # hidden states (streamed)
            pl.BlockSpec((H, HIDDEN_MLP), lambda s: (0, 0)),     # w1 (bf16, resident)
            pl.BlockSpec((1, HIDDEN_MLP), lambda s: (0, 0)),     # b1
            pl.BlockSpec((1, HIDDEN_MLP), lambda s: (0, 0)),     # w2 (bf16 row)
            pl.BlockSpec((1, 1), lambda s: (0, 0)),              # b2
        ],
        out_specs=pl.BlockSpec((B, 1), lambda s: (0, 0)),
        scratch_shapes=[pltpu.VMEM((B, 1, HIDDEN_ENC), jnp.float32)],  # masked-sum acc
    )
    # TODO(synk): on v7x the single "arbitrary" grid axis leaves one TensorCore
    # idle; a core_map split of the sequence accumulation would recover ~2x there.
    return pl.pallas_call(
        _ranker_kernel,
        out_shape=jax.ShapeDtypeStruct((B, 1), jnp.float32),
        grid_spec=grid_spec,
        cost_estimate=cost,
        compiler_params=pltpu.CompilerParams(
            dimension_semantics=("arbitrary",),
            vmem_limit_bytes=vmem_limit),
    )(lengths, hidden_states, w1, b1, w2, b2)


def compute_rank_score(hidden_states, attention_mask, params):
    """Pallas-backed equivalent of PairwiseRanker.compute_rank_score.

    hidden_states:  [B, S, H] float (encoder last_hidden_state, synthetic)
    attention_mask: [B, S]    0/1   (tokenizer padding mask: contiguous prefix)
    returns scores: [B, 1]    float32
    """
    # Only the per-row valid length is needed (padding masks are prefix masks);
    # this removes the dense-mask DMA stream and its double buffer from the kernel.
    lengths = jnp.sum(attention_mask.astype(jnp.int32), axis=1)        # [B]
    return _ranker_scores(hidden_states, lengths, params)


def pairwise_ranker_forward(vuln_inputs, benign_inputs, params):
    """forward(): returns (score_vuln [B,1], score_benign [B,1]).

    Two pallas_calls on the ORIGINAL arrays (no stack / cast pre-passes);
    BatchNorm statistics remain per input, matching the torch forward."""
    score_vuln = compute_rank_score(*vuln_inputs, params)
    score_benign = compute_rank_score(*benign_inputs, params)
    return score_vuln, score_benign


def init_params(key):
    """Deterministic init matching PairwiseRanker._initialize_weights:
    Linear weights ~ kaiming_normal_(nonlinearity='relu', fan_in), biases zero.
    w1 is stored transposed ([in, out]); w1/w2 are kept in bf16 (halves the
    weight DMA / VMEM; the MXU still accumulates in f32)."""
    k1, k2 = jax.random.split(key)
    std1 = (2.0 / HIDDEN_ENC) ** 0.5
    std2 = (2.0 / HIDDEN_MLP) ** 0.5
    w1 = (std1 * jax.random.normal(k1, (HIDDEN_ENC, HIDDEN_MLP), jnp.float32)).astype(jnp.bfloat16)
    w2 = (std2 * jax.random.normal(k2, (1, HIDDEN_MLP), jnp.float32)).astype(jnp.bfloat16)
    b1 = jnp.zeros((1, HIDDEN_MLP), jnp.float32)
    b2 = jnp.zeros((1, 1), jnp.float32)
    return {"w1": w1, "b1": b1, "w2": w2, "b2": b2}


def make_inputs(key, B, S):
    """Synthetic encoder outputs + attention mask (variable-length padding)."""
    hidden_states = jax.random.normal(key, (B, S, HIDDEN_ENC), jnp.float32)
    lengths = jnp.array([S, S - 3, S // 2, 5, S - 1, 7, S, S - 5][:B], jnp.int32)
    pos = jnp.arange(S, dtype=jnp.int32)[None, :]
    attention_mask = (pos < lengths[:, None]).astype(jnp.float32)      # [B, S]
    return hidden_states, attention_mask


def _reference_scores(hidden_states, attention_mask, params):
    """Pure-JAX (XLA) reference of the post-encoder forward, for verification."""
    mask = attention_mask.astype(jnp.float32)
    emb = jnp.sum(hidden_states * mask[:, :, None], axis=1)
    emb = emb / jnp.maximum(jnp.sum(mask, axis=1, keepdims=True), 1.0)
    mu, var = emb.mean(0, keepdims=True), emb.var(0, keepdims=True)
    x = jnp.maximum((emb - mu) * jax.lax.rsqrt(var + BN_EPS), 0.0)
    x = x @ params["w1"].astype(jnp.float32) + params["b1"]
    mu2, var2 = x.mean(0, keepdims=True), x.var(0, keepdims=True)
    x = jnp.maximum((x - mu2) * jax.lax.rsqrt(var2 + BN_EPS), 0.0)
    return jnp.sum(x * params["w2"].astype(jnp.float32), axis=-1, keepdims=True) + params["b2"]


if __name__ == "__main__":
    B, S = 4, 384
    root = jax.random.PRNGKey(0)
    k_params, k_vuln, k_benign = jax.random.split(root, 3)

    params = init_params(k_params)
    vuln_inputs = make_inputs(k_vuln, B, S)
    benign_inputs = make_inputs(k_benign, B, S)

    score_vuln, score_benign = pairwise_ranker_forward(vuln_inputs, benign_inputs, params)
    jax.block_until_ready((score_vuln, score_benign))

    assert score_vuln.shape == (B, 1) and score_benign.shape == (B, 1)
    assert bool(jnp.all(jnp.isfinite(score_vuln)))
    assert bool(jnp.all(jnp.isfinite(score_benign)))

    ref_vuln = _reference_scores(*vuln_inputs, params)
    ref_benign = _reference_scores(*benign_inputs, params)
    assert bool(jnp.allclose(score_vuln, ref_vuln, rtol=5e-2, atol=5e-2))
    assert bool(jnp.allclose(score_benign, ref_benign, rtol=5e-2, atol=5e-2))
    print("KERNEL_OK")
</pallas_src>

<mosaic_0001>
module attributes {stable_mosaic.version = 11 : i64} {
  func.func @_ranker_kernel(%arg0: i32, %arg1: memref<4x1x1xi32, #tpu.memory_space<vmem>>, %arg2: memref<4x384x768xf32, #tpu.memory_space<vmem>>, %arg3: memref<768x512xbf16, #tpu.memory_space<vmem>>, %arg4: memref<1x512xf32, #tpu.memory_space<vmem>>, %arg5: memref<1x512xbf16, #tpu.memory_space<vmem>>, %arg6: memref<1x1xf32, #tpu.memory_space<vmem>>, %arg7: memref<4x1xf32, #tpu.memory_space<vmem>>, %arg8: memref<4x1x768xf32, #tpu.memory_space<vmem>>) attributes {dimension_semantics = [#tpu.dimension_semantics<arbitrary>], iteration_bounds = array<i64: 1>, scalar_prefetch = 0 : i64, scratch_operands = 1 : i64, tpu.core_type = #tpu.core_type<tc>, window_params = [{pipeline_mode = #tpu.pipeline_mode<synchronous>, transform_indices = @transform_0, window_bounds = array<i64: 4, 1, 1>}, {transform_indices = @transform_1, window_bounds = array<i64: 4, 384, 768>}, {pipeline_mode = #tpu.pipeline_mode<synchronous>, transform_indices = @transform_2, window_bounds = array<i64: 768, 512>}, {pipeline_mode = #tpu.pipeline_mode<synchronous>, transform_indices = @transform_3, window_bounds = array<i64: 1, 512>}, {pipeline_mode = #tpu.pipeline_mode<synchronous>, transform_indices = @transform_4, window_bounds = array<i64: 1, 512>}, {pipeline_mode = #tpu.pipeline_mode<synchronous>, transform_indices = @transform_5, window_bounds = array<i64: 1, 1>}, {pipeline_mode = #tpu.pipeline_mode<synchronous>, transform_indices = @transform_6, window_bounds = array<i64: 4, 1>}]} {
    %c0_i32 = arith.constant 0 : i32
    %0 = arith.cmpi eq, %arg0, %c0_i32 : i32
    %1 = arith.extui %0 : i1 to i32
    %c0_i32_0 = arith.constant 0 : i32
    %2 = arith.cmpi ne, %1, %c0_i32_0 : i32
    scf.if %2 {
      %cst_14 = arith.constant 0.000000e+00 : f32
      %20 = vector.broadcast %cst_14 : f32 to vector<4x1x768xf32>
      %c0_15 = arith.constant 0 : index
      %c0_16 = arith.constant 0 : index
      %c0_17 = arith.constant 0 : index
      %21 = vector.load %arg8[%c0_15, %c0_16, %c0_17] : memref<4x1x768xf32, #tpu.memory_space<vmem>>, vector<4x1x768xf32>
      tpu.vector_store %arg8[%c0_15, %c0_16, %c0_17], %20 {strides = array<i32>} : memref<4x1x768xf32, #tpu.memory_space<vmem>>, vector<4x1x768xf32>,
    } else {
    }
    %3 = tpu.iota {dimensions = array<i32: 2>} : vector<4x1x384xi32>
    %c384_i32 = arith.constant 384 : i32
    %4 = arith.muli %arg0, %c384_i32 : i32
    %5 = vector.broadcast %4 : i32 to vector<4x1x384xi32>
    %6 = arith.addi %3, %5 : vector<4x1x384xi32>
    %c0 = arith.constant 0 : index
    %c0_1 = arith.constant 0 : index
    %c0_2 = arith.constant 0 : index
    %7 = vector.load %arg1[%c0, %c0_1, %c0_2] : memref<4x1x1xi32, #tpu.memory_space<vmem>>, vector<4x1x1xi32>
    %8 = vector.broadcast %7 : vector<4x1x1xi32> to vector<4x1x384xi32>
    %9 = arith.cmpi slt, %6, %8 : vector<4x1x384xi32>
    %10 = arith.extui %9 : vector<4x1x384xi1> to vector<4x1x384xi32>
    %11 = arith.sitofp %10 : vector<4x1x384xi32> to vector<4x1x384xf32>
    %c0_3 = arith.constant 0 : index
    %c0_4 = arith.constant 0 : index
    %c0_5 = arith.constant 0 : index
    %12 = vector.load %arg8[%c0_3, %c0_4, %c0_5] : memref<4x1x768xf32, #tpu.memory_space<vmem>>, vector<4x1x768xf32>
    %c0_6 = arith.constant 0 : index
    %c0_7 = arith.constant 0 : index
    %c0_8 = arith.constant 0 : index
    %13 = vector.load %arg2[%c0_6, %c0_7, %c0_8] : memref<4x384x768xf32, #tpu.memory_space<vmem>>, vector<4x384x768xf32>
    "tpu.trace_start"() <{level = 10 : i32, message = "bqs,bsh->bqh"}> : () -> ()
    %cst = arith.constant dense<0.000000e+00> : vector<4x1x768xf32>
    %14 = tpu.matmul %11, %13, %cst {dimension_numbers = #tpu.dot_dimension_numbers<[2], [1], [1], [2], [0, 0, 0, 1, 1, 2], [0], [0]>} : vector<4x1x384xf32>, vector<4x384x768xf32>, vector<4x1x768xf32> -> vector<4x1x768xf32>
    "tpu.trace_stop"() : () -> ()
    %15 = arith.addf %12, %14 : vector<4x1x768xf32>
    %c0_9 = arith.constant 0 : index
    %c0_10 = arith.constant 0 : index
    %c0_11 = arith.constant 0 : index
    %16 = vector.load %arg8[%c0_9, %c0_10, %c0_11] : memref<4x1x768xf32, #tpu.memory_space<vmem>>, vector<4x1x768xf32>
    tpu.vector_store %arg8[%c0_9, %c0_10, %c0_11], %15 {strides = array<i32>} : memref<4x1x768xf32, #tpu.memory_space<vmem>>, vector<4x1x768xf32>,
    %c0_i32_12 = arith.constant 0 : i32
    %17 = arith.cmpi eq, %arg0, %c0_i32_12 : i32
    %18 = arith.extui %17 : i1 to i32
    %c0_i32_13 = arith.constant 0 : i32
    %19 = arith.cmpi ne, %18, %c0_i32_13 : i32
    scf.if %19 {
      %c0_14 = arith.constant 0 : index
      %c0_15 = arith.constant 0 : index
      %c0_16 = arith.constant 0 : index
      %20 = vector.load %arg1[%c0_14, %c0_15, %c0_16] : memref<4x1x1xi32, #tpu.memory_space<vmem>>, vector<4x1x1xi32>
      %21 = arith.sitofp %20 : vector<4x1x1xi32> to vector<4x1x1xf32>
      %cst_17 = arith.constant 1.000000e+00 : f32
      %22 = vector.broadcast %cst_17 : f32 to vector<4x1x1xf32>
      %23 = arith.maximumf %21, %22 : vector<4x1x1xf32>
      %c0_18 = arith.constant 0 : index
      %c0_19 = arith.constant 0 : index
      %c0_20 = arith.constant 0 : index
      %24 = vector.load %arg8[%c0_18, %c0_19, %c0_20] : memref<4x1x768xf32, #tpu.memory_space<vmem>>, vector<4x1x768xf32>
      %25 = vector.broadcast %23 : vector<4x1x1xf32> to vector<4x1x768xf32>
      %26 = arith.divf %24, %25 : vector<4x1x768xf32>
      %27 = vector.shape_cast %26 : vector<4x1x768xf32> to vector<4x768xf32>
      %cst_21 = arith.constant dense<0.000000e+00> : vector<768xf32>
      %28 = vector.multi_reduction <add>, %27, %cst_21 [0] : vector<4x768xf32> to vector<768xf32>
      %29 = vector.shape_cast %28 : vector<768xf32> to vector<1x768xf32>
      %cst_22 = arith.constant 4.000000e+00 : f32
      %30 = vector.broadcast %cst_22 : f32 to vector<1x768xf32>
      %31 = arith.divf %29, %30 : vector<1x768xf32>
      %32 = vector.broadcast %31 : vector<1x768xf32> to vector<4x768xf32>
      %33 = arith.subf %27, %32 : vector<4x768xf32>
      %34 = arith.mulf %33, %33 : vector<4x768xf32>
      %cst_23 = arith.constant dense<0.000000e+00> : vector<768xf32>
      %35 = vector.multi_reduction <add>, %34, %cst_23 [0] : vector<4x768xf32> to vector<768xf32>
      %36 = vector.shape_cast %35 : vector<768xf32> to vector<1x768xf32>
      %cst_24 = arith.constant 4.000000e+00 : f32
      %37 = vector.broadcast %cst_24 : f32 to vector<1x768xf32>
      %38 = arith.divf %36, %37 : vector<1x768xf32>
      %39 = vector.broadcast %31 : vector<1x768xf32> to vector<4x768xf32>
      %40 = arith.subf %27, %39 : vector<4x768xf32>
      %cst_25 = arith.constant 9.99999974E-6 : f32
      %41 = vector.broadcast %cst_25 : f32 to vector<1x768xf32>
      %42 = arith.addf %38, %41 : vector<1x768xf32>
      %43 = math.rsqrt %42 : vector<1x768xf32>
      %44 = vector.broadcast %43 : vector<1x768xf32> to vector<4x768xf32>
      %45 = arith.mulf %40, %44 : vector<4x768xf32>
      %cst_26 = arith.constant 0.000000e+00 : f32
      %46 = vector.broadcast %cst_26 : f32 to vector<4x768xf32>
      %47 = arith.maximumf %45, %46 : vector<4x768xf32>
      %48 = arith.truncf %47 : vector<4x768xf32> to vector<4x768xbf16>
      %c0_27 = arith.constant 0 : index
      %c0_28 = arith.constant 0 : index
      %49 = vector.load %arg3[%c0_27, %c0_28] : memref<768x512xbf16, #tpu.memory_space<vmem>>, vector<768x512xbf16>
      %cst_29 = arith.constant dense<0.000000e+00> : vector<4x512xf32>
      %50 = tpu.matmul %48, %49, %cst_29 {dimension_numbers = #tpu.dot_dimension_numbers<[1], [0], [0], [1], [0, 0, 1, 1], [], []>} : vector<4x768xbf16>, vector<768x512xbf16>, vector<4x512xf32> -> vector<4x512xf32>
      %c0_30 = arith.constant 0 : index
      %c0_31 = arith.constant 0 : index
      %51 = vector.load %arg4[%c0_30, %c0_31] : memref<1x512xf32, #tpu.memory_space<vmem>>, vector<1x512xf32>
      %52 = vector.broadcast %51 : vector<1x512xf32> to vector<4x512xf32>
      %53 = arith.addf %50, %52 : vector<4x512xf32>
      %cst_32 = arith.constant dense<0.000000e+00> : vector<512xf32>
      %54 = vector.multi_reduction <add>, %53, %cst_32 [0] : vector<4x512xf32> to vector<512xf32>
      %55 = vector.shape_cast %54 : vector<512xf32> to vector<1x512xf32>
      %cst_33 = arith.constant 4.000000e+00 : f32
      %56 = vector.broadcast %cst_33 : f32 to vector<1x512xf32>
      %57 = arith.divf %55, %56 : vector<1x512xf32>
      %58 = vector.broadcast %57 : vector<1x512xf32> to vector<4x512xf32>
      %59 = arith.subf %53, %58 : vector<4x512xf32>
      %60 = arith.mulf %59, %59 : vector<4x512xf32>
      %cst_34 = arith.constant dense<0.000000e+00> : vector<512xf32>
      %61 = vector.multi_reduction <add>, %60, %cst_34 [0] : vector<4x512xf32> to vector<512xf32>
      %62 = vector.shape_cast %61 : vector<512xf32> to vector<1x512xf32>
      %cst_35 = arith.constant 4.000000e+00 : f32
      %63 = vector.broadcast %cst_35 : f32 to vector<1x512xf32>
      %64 = arith.divf %62, %63 : vector<1x512xf32>
      %65 = vector.broadcast %57 : vector<1x512xf32> to vector<4x512xf32>
      %66 = arith.subf %53, %65 : vector<4x512xf32>
      %cst_36 = arith.constant 9.99999974E-6 : f32
      %67 = vector.broadcast %cst_36 : f32 to vector<1x512xf32>
      %68 = arith.addf %64, %67 : vector<1x512xf32>
      %69 = math.rsqrt %68 : vector<1x512xf32>
      %70 = vector.broadcast %69 : vector<1x512xf32> to vector<4x512xf32>
      %71 = arith.mulf %66, %70 : vector<4x512xf32>
      %cst_37 = arith.constant 0.000000e+00 : f32
      %72 = vector.broadcast %cst_37 : f32 to vector<4x512xf32>
      %73 = arith.maximumf %71, %72 : vector<4x512xf32>
      %c0_38 = arith.constant 0 : index
      %c0_39 = arith.constant 0 : index
      %74 = vector.load %arg5[%c0_38, %c0_39] : memref<1x512xbf16, #tpu.memory_space<vmem>>, vector<1x512xbf16>
      %75 = arith.extf %74 : vector<1x512xbf16> to vector<1x512xf32>
      %76 = vector.broadcast %75 : vector<1x512xf32> to vector<4x512xf32>
      %77 = arith.mulf %73, %76 : vector<4x512xf32>
      %cst_40 = arith.constant dense<0.000000e+00> : vector<4xf32>
      %78 = vector.multi_reduction <add>, %77, %cst_40 [1] : vector<4x512xf32> to vector<4xf32>
      %79 = vector.shape_cast %78 : vector<4xf32> to vector<4x1xf32>
      %c0_41 = arith.constant 0 : index
      %c0_42 = arith.constant 0 : index
      %80 = vector.load %arg6[%c0_41, %c0_42] : memref<1x1xf32, #tpu.memory_space<vmem>>, vector<1x1xf32>
      %81 = vector.broadcast %80 : vector<1x1xf32> to vector<4x1xf32>
      %82 = arith.addf %79, %81 : vector<4x1xf32>
      %c0_43 = arith.constant 0 : index
      %c0_44 = arith.constant 0 : index
      %83 = vector.load %arg7[%c0_43, %c0_44] : memref<4x1xf32, #tpu.memory_space<vmem>>, vector<4x1xf32>
      tpu.vector_store %arg7[%c0_43, %c0_44], %82 {strides = array<i32>} : memref<4x1xf32, #tpu.memory_space<vmem>>, vector<4x1xf32>,
    } else {
    }
    return
  }
  func.func @transform_0(%arg0: i32) -> (i32, i32, i32) {
    %c0_i32 = arith.constant 0 : i32
    %c0_i32_0 = arith.constant 0 : i32
    %c0_i32_1 = arith.constant 0 : i32
    %c0_i32_2 = arith.constant 0 : i32
    return %c0_i32, %c0_i32_0, %c0_i32_1 : i32, i32, i32
  }
  func.func @transform_1(%arg0: i32) -> (i32, i32, i32) {
    %c0_i32 = arith.constant 0 : i32
    %c0_i32_0 = arith.constant 0 : i32
    %c0_i32_1 = arith.constant 0 : i32
    return %c0_i32, %arg0, %c0_i32_0 : i32, i32, i32
  }
  func.func @transform_2(%arg0: i32) -> (i32, i32) {
    %c0_i32 = arith.constant 0 : i32
    %c0_i32_0 = arith.constant 0 : i32
    %c0_i32_1 = arith.constant 0 : i32
    return %c0_i32, %c0_i32_0 : i32, i32
  }
  func.func @transform_3(%arg0: i32) -> (i32, i32) {
    %c0_i32 = arith.constant 0 : i32
    %c0_i32_0 = arith.constant 0 : i32
    %c0_i32_1 = arith.constant 0 : i32
    return %c0_i32, %c0_i32_0 : i32, i32
  }
  func.func @transform_4(%arg0: i32) -> (i32, i32) {
    %c0_i32 = arith.constant 0 : i32
    %c0_i32_0 = arith.constant 0 : i32
    %c0_i32_1 = arith.constant 0 : i32
    return %c0_i32, %c0_i32_0 : i32, i32
  }
  func.func @transform_5(%arg0: i32) -> (i32, i32) {
    %c0_i32 = arith.constant 0 : i32
    %c0_i32_0 = arith.constant 0 : i32
    %c0_i32_1 = arith.constant 0 : i32
    return %c0_i32, %c0_i32_0 : i32, i32
  }
  func.func @transform_6(%arg0: i32) -> (i32, i32) {
    %c0_i32 = arith.constant 0 : i32
    %c0_i32_0 = arith.constant 0 : i32
    %c0_i32_1 = arith.constant 0 : i32
    return %c0_i32, %c0_i32_0 : i32, i32
  }
}

</mosaic_0001>

<bundles_post_ra>
// kernel: tpu_custom_call.1
= control target key start
LH: loop header
LB: loop body
LE: loop exit
PB: predicated region body
PF: predicated region fallthrough
CT: control target
= control target key end

     0   :  { %s7219_s0 = inlined_call_operand.vmem [shape: s32[4,1,1], index: 0, kind: input, shape index: {}]   ;;  %s7220_s1 = inlined_call_operand.hbm [shape: f32[4,384,768], index: 1, kind: input, shape index: {}]   ;;  %s7221_s2 = inlined_call_operand.hbm [shape: bf16[768,512], index: 2, kind: input, shape index: {}]   ;;  %s7222_s3 = inlined_call_operand.hbm [shape: f32[1,512], index: 3, kind: input, shape index: {}]   ;;  %s7223_s4 = inlined_call_operand.hbm [shape: bf16[1,512], index: 4, kind: input, shape index: {}]   ;;  %s7224_s5 = inlined_call_operand.<no memory space> [shape: f32[1,1], index: 5, kind: input, shape index: {}]   ;;  %s7225_s6 = inlined_call_operand.vmem [shape: f32[4,1], index: 6, kind: output, shape index: {}]  }
   0x1   :  { %v11_v0 = vstv %s7224_s5 }
   0x2   :  { %12 = vst [vmem:[#allocation3] sm:$0x1] %v11_v0 }
   0x3   :  { %13 = vsyncpa [#allocation5], 0 }
   0x4   :  { %14 = vsyncpa [#allocation7], 0  ;;  %s35_s25 = sshll.u32 %s7221_s2, 4  ;;  %s36_s25 = int_to_ptr.hbm [resolvable:$true] %s35_s25 }
   0x5   :  { %15 = vsyncpa [#allocation10], 0  ;;  %s6282_s26 = smov [#allocation6]   ;;  %s22_s30 = sshll.u32 %s7220_s1, 4  ;;  %s23_s30 = int_to_ptr.hbm [resolvable:$true] %s22_s30 }
   0x6   :  { %s37_s27 = sshll.u32 %s6282_s26, 4  ;;  %s6283_s7 = smov 256   ;;  %s38_s27 = int_to_ptr.vmem [resolvable:$true] %s37_s27 }
   0x7   :  { %s6284_s8 = smov 16   ;;  %s6285_s5 = smov [#allocation4]  }
   0x8   :  { %43 = dma.hbm_to_vmem [thread:$0]  %s36_s25, 24576, %s38_s27, [#allocation7], %s6283_s7, %s6283_s7, %s6284_s8  }
   0x9   :  { %s24_s9 = sshll.u32 %s6285_s5, 4  ;;  %s6286_s10 = smov 768   ;;  %s25_s9 = int_to_ptr.vmem [resolvable:$true] %s24_s9 }
   0xa   :  { %s6287_s11 = smov 48   ;;  %s49_s13 = sshll.u32 %s7222_s3, 4  ;;  %s50_s13 = int_to_ptr.hbm [resolvable:$true] %s49_s13 }
   0xb   :  { %30 = dma.hbm_to_vmem [thread:$0]  %s23_s30, 147456, %s25_s9, [#allocation5], %s6286_s10, %s6286_s10, %s6287_s11  }
   0xc   :  { %s6288_s14 = smov [#allocation8]   ;;  %s60_s17 = sshll.u32 %s7223_s4, 4  ;;  %s61_s17 = int_to_ptr.hbm [resolvable:$true] %s60_s17 }
   0xd   :  { %s51_s15 = sshll.u32 %s6288_s14, 4  ;;  %s6289_s18 = smov [#allocation9]   ;;  %s52_s15 = int_to_ptr.vmem [resolvable:$true] %s51_s15 }
   0xe   :  { %54 = dma.hbm_to_vmem [thread:$0]  %s50_s13, 64, %s52_s15, [#allocation7]  }
   0xf   :  { %s62_s19 = sshll.u32 %s6289_s18, 4  ;;  %s63_s19 = int_to_ptr.vmem [resolvable:$true] %s62_s19 }
  0x10   :  { %65 = dma.hbm_to_vmem [thread:$0]  %s61_s17, 64, %s63_s19, [#allocation10]  }
  0x11   :  { %6276 = dma.done.wait [#allocation5], 147456  }
  0x12   :  { %6277 = vsyncadd [#allocation5], 4294819840 }
  0x13   :  { %6278 = dma.done.wait [#allocation7], 24640  }
  0x14   :  { %6279 = vsyncadd [#allocation7], 4294942656 }
  0x15   :  { %6280 = dma.done.wait [#allocation10], 64  }
  0x16   :  { %6281 = vsyncadd [#allocation10], 4294967232  ;;  %v6290_v1 = vmov 0   ;;  %v105_v2 = vld [vmem:[%s7219_s0] sm:$0x1]  ;;  %v255_v3 = vld [vmem:[#allocation4 + $0x2d0] sm:$0xff] }
  0x17   :  { %6146 = vset.pattern.permute.xlu0 %v6290_v1  ;;  %6148 = vset.pattern.permute.xlu2 %v6290_v1  ;;  %v351_v4 = vld [vmem:[#allocation4 + $0x5d0] sm:$0xff]  ;;  %v256_v6 = vld [vmem:[#allocation4 + $0x2d8] sm:$0xff]  ;;  %v249_v7 = vld [vmem:[#allocation4 + $0x2a0] sm:$0xff]  ;;  %vm7239_vm7 = vcmask 1043459   ;;  %vm2801_vm8 = vcmask 1040384   ;;  %vm7236_vm9 = vcmask 1044483  }
  0x18   :  { %6147 = vset.pattern.permute.xlu1 %v6290_v1  ;;  %110 = vperm.xlu0 %6146, %v105_v2   ;;  %v447_v5 = vld [vmem:[#allocation4 + $0x8d0] sm:$0xff]  ;;  %v345_v8 = vld [vmem:[#allocation4 + $0x5a0] sm:$0xff]  ;;  %v250_v10 = vld [vmem:[#allocation4 + $0x2a8] sm:$0xff]  ;;  %vm2803_vm10 = vcmask 1041408   ;;  %vm7227_vm11 = vcmask 1042432  }
  0x19   :  { %1317 = vmatpush.msra.mxu0 %v255_v3  ;;  %1337 = vmatpush.msra.mxu1 %v351_v4  ;;  %v441_v9 = vld [vmem:[#allocation4 + $0x8a0] sm:$0xff]  ;;  %v243_v11 = vld [vmem:[#allocation4 + $0x270] sm:$0xff]  ;;  %v244_v14 = vld [vmem:[#allocation4 + $0x278] sm:$0xff] }
  0x1a   :  { %1357 = vmatpush.msra.mxu2 %v447_v5  ;;  %1377 = vmatpush.msra.mxu3 %v256_v6  ;;  %v339_v12 = vld [vmem:[#allocation4 + $0x570] sm:$0xff]  ;;  %v237_v15 = vld [vmem:[#allocation4 + $0x240] sm:$0xff]  ;;  %v238_v20 = vld [vmem:[#allocation4 + $0x248] sm:$0xff] }
  0x1b   :  { %1318 = vmatpush.msra.mxu0 %v249_v7  ;;  %1338 = vmatpush.msra.mxu1 %v345_v8  ;;  %v435_v13 = vld [vmem:[#allocation4 + $0x870] sm:$0xff]  ;;  %v333_v16 = vld [vmem:[#allocation4 + $0x540] sm:$0xff]  ;;  %v232_v25 = vld [vmem:[#allocation4 + $0x218] sm:$0xff] }
  0x1c   :  { %1358 = vmatpush.msra.mxu2 %v441_v9  ;;  %1378 = vmatpush.msra.mxu3 %v250_v10  ;;  %v106_v17 = vld [vmem:[%s7219_s0 + $0x1] sm:$0x1]  ;;  %v2847_v18 = vld [vmem:[%s7219_s0 + $0x2] sm:$0x1]  ;;  %v231_v21 = vld [vmem:[#allocation4 + $0x210] sm:$0xff] }
  0x1d   :  { %1319 = vmatpush.msra.mxu0 %v243_v11  ;;  %1339 = vmatpush.msra.mxu1 %v339_v12  ;;  %v429_v19 = vld [vmem:[#allocation4 + $0x840] sm:$0xff]  ;;  %v327_v22 = vld [vmem:[#allocation4 + $0x510] sm:$0xff]  ;;  %v2851_v24 = vcvt.s32.f32 %v2847_v18  ;;  %v226_v29 = vld [vmem:[#allocation4 + $0x1e8] sm:$0xff] }
  0x1e   :  { %1359 = vmatpush.msra.mxu2 %v435_v13  ;;  %1379 = vmatpush.msra.mxu3 %v244_v14  ;;  %v423_v23 = vld [vmem:[#allocation4 + $0x810] sm:$0xff]  ;;  %v225_v26 = vld [vmem:[#allocation4 + $0x1e0] sm:$0xff]  ;;  %v220_v34 = vld [vmem:[#allocation4 + $0x1b8] sm:$0xff] }
  0x1f   :  { %1320 = vmatpush.msra.mxu0 %v237_v15  ;;  %1340 = vmatpush.msra.mxu1 %v333_v16  ;;  %v321_v27 = vld [vmem:[#allocation4 + $0x4e0] sm:$0xff]  ;;  %v219_v30 = vld [vmem:[#allocation4 + $0x1b0] sm:$0xff]  ;;  %v2855_v33 = vmax.f32 %v2851_v24, 1.0  ;;  %v214_v38 = vld [vmem:[#allocation4 + $0x188] sm:$0xff] }
  0x20   :  { %114 = vperm.xlu0 %6146, %v106_v17   ;;  %1360 = vmatpush.msra.mxu2 %v429_v19  ;;  %v417_v28 = vld [vmem:[#allocation4 + $0x7e0] sm:$0xff]  ;;  %v315_v31 = vld [vmem:[#allocation4 + $0x4b0] sm:$0xff]  ;;  %v208_v42 = vld [vmem:[#allocation4 + $0x158] sm:$0xff] }
  0x21   :  { %1380 = vmatpush.msra.mxu3 %v238_v20  ;;  %1321 = vmatpush.msra.mxu0 %v231_v21  ;;  %v411_v32 = vld [vmem:[#allocation4 + $0x7b0] sm:$0xff]  ;;  %v213_v35 = vld [vmem:[#allocation4 + $0x180] sm:$0xff]  ;;  %v202_v46 = vld [vmem:[#allocation4 + $0x128] sm:$0xff] }
  0x22   :  { %1341 = vmatpush.msra.mxu1 %v327_v22  ;;  %1361 = vmatpush.msra.mxu2 %v423_v23  ;;  %v309_v36 = vld [vmem:[#allocation4 + $0x480] sm:$0xff]  ;;  %v207_v39 = vld [vmem:[#allocation4 + $0x150] sm:$0xff]  ;;  %v196_v50 = vld [vmem:[#allocation4 + $0xf8] sm:$0xff] }
  0x23   :  { %1381 = vmatpush.msra.mxu3 %v232_v25  ;;  %1322 = vmatpush.msra.mxu0 %v225_v26  ;;  %v405_v37 = vld [vmem:[#allocation4 + $0x780] sm:$0xff]  ;;  %v303_v40 = vld [vmem:[#allocation4 + $0x450] sm:$0xff]  ;;  %v190_v54 = vld [vmem:[#allocation4 + $0xc8] sm:$0xff] }
  0x24   :  { %1342 = vmatpush.msra.mxu1 %v321_v27  ;;  %1362 = vmatpush.msra.mxu2 %v417_v28  ;;  %v399_v41 = vld [vmem:[#allocation4 + $0x750] sm:$0xff]  ;;  %v201_v43 = vld [vmem:[#allocation4 + $0x120] sm:$0xff]  ;;  %v184_v58 = vld [vmem:[#allocation4 + $0x98] sm:$0xff] }
  0x25   :  { %1382 = vmatpush.msra.mxu3 %v226_v29  ;;  %1323 = vmatpush.msra.mxu0 %v219_v30  ;;  %v297_v44 = vld [vmem:[#allocation4 + $0x420] sm:$0xff]  ;;  %v195_v47 = vld [vmem:[#allocation4 + $0xf0] sm:$0xff]  ;;  %v178_v62 = vld [vmem:[#allocation4 + $0x68] sm:$0xff] }
  0x26   :  { %1343 = vmatpush.msra.mxu1 %v315_v31  ;;  %1363 = vmatpush.msra.mxu2 %v411_v32  ;;  %v393_v45 = vld [vmem:[#allocation4 + $0x720] sm:$0xff]  ;;  %v291_v48 = vld [vmem:[#allocation4 + $0x3f0] sm:$0xff]  ;;  %v172_v2 = vld [vmem:[#allocation4 + $0x38] sm:$0xff] }
  0x27   :  { %1383 = vmatpush.msra.mxu3 %v220_v34  ;;  %1324 = vmatpush.msra.mxu0 %v213_v35  ;;  %v387_v49 = vld [vmem:[#allocation4 + $0x6f0] sm:$0xff]  ;;  %v189_v51 = vld [vmem:[#allocation4 + $0xc0] sm:$0xff]  ;;  %v166_v6 = vld [vmem:[#allocation4 + $0x8] sm:$0xff] }
  0x28   :  { %2875 = vperm.xlu0 %6146, %v2855_v33   ;;  %1344 = vmatpush.msra.mxu1 %v309_v36  ;;  %v285_v52 = vld [vmem:[#allocation4 + $0x3c0] sm:$0xff]  ;;  %v183_v55 = vld [vmem:[#allocation4 + $0x90] sm:$0xff]  ;;  %v352_v7 = vld [vmem:[#allocation4 + $0x5d8] sm:$0xff] }
  0x29   :  { %1364 = vmatpush.msra.mxu2 %v405_v37  ;;  %1384 = vmatpush.msra.mxu3 %v214_v38  ;;  %v381_v53 = vld [vmem:[#allocation4 + $0x6c0] sm:$0xff]  ;;  %v279_v56 = vld [vmem:[#allocation4 + $0x390] sm:$0xff]  ;;  %v448_v8 = vld [vmem:[#allocation4 + $0x8d8] sm:$0xff] }
  0x2a   :  { %1325 = vmatpush.msra.mxu0 %v207_v39  ;;  %1345 = vmatpush.msra.mxu1 %v303_v40  ;;  %v375_v57 = vld [vmem:[#allocation4 + $0x690] sm:$0xff]  ;;  %v177_v59 = vld [vmem:[#allocation4 + $0x60] sm:$0xff]  ;;  %v346_v11 = vld [vmem:[#allocation4 + $0x5a8] sm:$0xff] }
  0x2b   :  { %1365 = vmatpush.msra.mxu2 %v399_v41  ;;  %1385 = vmatpush.msra.mxu3 %v208_v42  ;;  %v273_v60 = vld [vmem:[#allocation4 + $0x360] sm:$0xff]  ;;  %v171_v63 = vld [vmem:[#allocation4 + $0x30] sm:$0xff]  ;;  %v442_v12 = vld [vmem:[#allocation4 + $0x8a8] sm:$0xff] }
  0x2c   :  { %1326 = vmatpush.msra.mxu0 %v201_v43  ;;  %1346 = vmatpush.msra.mxu1 %v297_v44  ;;  %v369_v61 = vld [vmem:[#allocation4 + $0x660] sm:$0xff]  ;;  %v267_v0 = vld [vmem:[#allocation4 + $0x330] sm:$0xff]  ;;  %v340_v15 = vld [vmem:[#allocation4 + $0x578] sm:$0xff] }
  0x2d   :  { %1366 = vmatpush.msra.mxu2 %v393_v45  ;;  %1386 = vmatpush.msra.mxu3 %v202_v46  ;;  %v363_v1 = vld [vmem:[#allocation4 + $0x630] sm:$0xff]  ;;  %v165_v3 = vld [vmem:[#allocation4] sm:$0xff]  ;;  %v436_v16 = vld [vmem:[#allocation4 + $0x878] sm:$0xff] }
  0x2e   :  { %1327 = vmatpush.msra.mxu0 %v195_v47  ;;  %1347 = vmatpush.msra.mxu1 %v291_v48  ;;  %v261_v4 = vld [vmem:[#allocation4 + $0x300] sm:$0xff]  ;;  %v251_v13 = vld [vmem:[#allocation4 + $0x2b0] sm:$0xff]  ;;  %v334_v19 = vld [vmem:[#allocation4 + $0x548] sm:$0xff] }
  0x2f   :  { %1367 = vmatpush.msra.mxu2 %v387_v49  ;;  %1387 = vmatpush.msra.mxu3 %v196_v50  ;;  %v357_v5 = vld [vmem:[#allocation4 + $0x600] sm:$0xff]  ;;  %v347_v14 = vld [vmem:[#allocation4 + $0x5b0] sm:$0xff]  ;;  %v430_v20 = vld [vmem:[#allocation4 + $0x848] sm:$0xff] }
  0x30   :  { %1328 = vmatpush.msra.mxu0 %v189_v51  ;;  %1348 = vmatpush.msra.mxu1 %v285_v52  ;;  %v257_v9 = vld [vmem:[#allocation4 + $0x2e0] sm:$0xff]  ;;  %v239_v21 = vld [vmem:[#allocation4 + $0x250] sm:$0xff]  ;;  %v328_v23 = vld [vmem:[#allocation4 + $0x518] sm:$0xff] }
  0x31   :  { %1368 = vmatpush.msra.mxu2 %v381_v53  ;;  %1388 = vmatpush.msra.mxu3 %v190_v54  ;;  %v353_v10 = vld [vmem:[#allocation4 + $0x5e0] sm:$0xff]  ;;  %v335_v22 = vld [vmem:[#allocation4 + $0x550] sm:$0xff]  ;;  %v424_v24 = vld [vmem:[#allocation4 + $0x818] sm:$0xff] }
  0x32   :  { %1329 = vmatpush.msra.mxu0 %v183_v55  ;;  %1349 = vmatpush.msra.mxu1 %v279_v56  ;;  %v245_v17 = vld [vmem:[#allocation4 + $0x280] sm:$0xff]  ;;  %v322_v27 = vld [vmem:[#allocation4 + $0x4e8] sm:$0xff]  ;;  %v227_v29 = vld [vmem:[#allocation4 + $0x1f0] sm:$0xff] }
  0x33   :  { %1369 = vmatpush.msra.mxu2 %v375_v57  ;;  %1389 = vmatpush.msra.mxu3 %v184_v58  ;;  %v341_v18 = vld [vmem:[#allocation4 + $0x580] sm:$0xff]  ;;  %v418_v28 = vld [vmem:[#allocation4 + $0x7e8] sm:$0xff]  ;;  %v323_v30 = vld [vmem:[#allocation4 + $0x4f0] sm:$0xff] }
  0x34   :  { %1330 = vmatpush.msra.mxu0 %v177_v59  ;;  %1350 = vmatpush.msra.mxu1 %v273_v60  ;;  %v233_v25 = vld [vmem:[#allocation4 + $0x220] sm:$0xff]  ;;  %v316_v31 = vld [vmem:[#allocation4 + $0x4b8] sm:$0xff]  ;;  %v310_v35 = vld [vmem:[#allocation4 + $0x488] sm:$0xff] }
  0x35   :  { %1370 = vmatpush.msra.mxu2 %v369_v61  ;;  %1390 = vmatpush.msra.mxu3 %v178_v62  ;;  %v329_v26 = vld [vmem:[#allocation4 + $0x520] sm:$0xff]  ;;  %v412_v32 = vld [vmem:[#allocation4 + $0x7b8] sm:$0xff]  ;;  %v406_v36 = vld [vmem:[#allocation4 + $0x788] sm:$0xff] }
  0x36   :  { %1331 = vmatpush.msra.mxu0 %v171_v63  ;;  %1351 = vmatpush.msra.mxu1 %v267_v0  ;;  %v221_v33 = vld [vmem:[#allocation4 + $0x1c0] sm:$0xff]  ;;  %v215_v37 = vld [vmem:[#allocation4 + $0x190] sm:$0xff]  ;;  %v304_v39 = vld [vmem:[#allocation4 + $0x458] sm:$0xff] }
  0x37   :  { %1371 = vmatpush.msra.mxu2 %v363_v1  ;;  %1391 = vmatpush.msra.mxu3 %v172_v2  ;;  %v317_v34 = vld [vmem:[#allocation4 + $0x4c0] sm:$0xff]  ;;  %v311_v38 = vld [vmem:[#allocation4 + $0x490] sm:$0xff]  ;;  %v400_v40 = vld [vmem:[#allocation4 + $0x758] sm:$0xff] }
  0x38   :  { %1332 = vmatpush.msra.mxu0 %v165_v3  ;;  %1352 = vmatpush.msra.mxu1 %v261_v4  ;;  %v209_v41 = vld [vmem:[#allocation4 + $0x160] sm:$0xff]  ;;  %v298_v43 = vld [vmem:[#allocation4 + $0x428] sm:$0xff]  ;;  %v203_v45 = vld [vmem:[#allocation4 + $0x130] sm:$0xff] }
  0x39   :  { %1372 = vmatpush.msra.mxu2 %v357_v5  ;;  %1392 = vmatpush.msra.mxu3 %v166_v6  ;;  %v305_v42 = vld [vmem:[#allocation4 + $0x460] sm:$0xff]  ;;  %v394_v44 = vld [vmem:[#allocation4 + $0x728] sm:$0xff]  ;;  %v299_v46 = vld [vmem:[#allocation4 + $0x430] sm:$0xff] }
  0x3a   :  { %1397 = vmatpush.msrb.mxu0 %v352_v7  ;;  %1417 = vmatpush.msrb.mxu1 %v448_v8  ;;  %v292_v47 = vld [vmem:[#allocation4 + $0x3f8] sm:$0xff]  ;;  %v197_v49 = vld [vmem:[#allocation4 + $0x100] sm:$0xff]  ;;  %v286_v51 = vld [vmem:[#allocation4 + $0x3c8] sm:$0xff]  ;;  %v88_v7 = vlaneseq }
  0x3b   :  { %1437 = vmatpush.msrb.mxu2 %v257_v9  ;;  %1457 = vmatpush.msrb.mxu3 %v353_v10  ;;  %v388_v48 = vld [vmem:[#allocation4 + $0x6f8] sm:$0xff]  ;;  %v293_v50 = vld [vmem:[#allocation4 + $0x400] sm:$0xff]  ;;  %v382_v52 = vld [vmem:[#allocation4 + $0x6c8] sm:$0xff] }
  0x3c   :  { %1398 = vmatpush.msrb.mxu0 %v346_v11  ;;  %1418 = vmatpush.msrb.mxu1 %v442_v12  ;;  %v191_v53 = vld [vmem:[#allocation4 + $0xd0] sm:$0xff]  ;;  %v280_v55 = vld [vmem:[#allocation4 + $0x398] sm:$0xff]  ;;  %v185_v57 = vld [vmem:[#allocation4 + $0xa0] sm:$0xff]  ;;  %v6354_v8 = vand.u32 127, %v88_v7  ;;  %vm6520_vm6 = vcmp.lt.s32.totalorder %v88_v7, 768 }
  0x3d   :  { %1438 = vmatpush.msrb.mxu2 %v251_v13  ;;  %1458 = vmatpush.msrb.mxu3 %v347_v14  ;;  %v287_v54 = vld [vmem:[#allocation4 + $0x3d0] sm:$0xff]  ;;  %v376_v56 = vld [vmem:[#allocation4 + $0x698] sm:$0xff]  ;;  %v281_v58 = vld [vmem:[#allocation4 + $0x3a0] sm:$0xff] }
  0x3e   :  { %1399 = vmatpush.msrb.mxu0 %v340_v15  ;;  %1419 = vmatpush.msrb.mxu1 %v436_v16  ;;  %v274_v59 = vld [vmem:[#allocation4 + $0x368] sm:$0xff]  ;;  %v179_v61 = vld [vmem:[#allocation4 + $0x70] sm:$0xff]  ;;  %v268_v63 = vld [vmem:[#allocation4 + $0x338] sm:$0xff]  ;;  %v6357_v9 = vadd.s32 128, %v6354_v8  ;;  %v6360_v10 = vadd.s32 256, %v6354_v8 }
  0x3f   :  { %1439 = vmatpush.msrb.mxu2 %v245_v17  ;;  %1459 = vmatpush.msrb.mxu3 %v341_v18  ;;  %v370_v60 = vld [vmem:[#allocation4 + $0x668] sm:$0xff]  ;;  %v275_v62 = vld [vmem:[#allocation4 + $0x370] sm:$0xff]  ;;  %v364_v0 = vld [vmem:[#allocation4 + $0x638] sm:$0xff]  ;;  %v6291_v18 = vmov 1.0  }
  0x40   :  { %1400 = vmatpush.msrb.mxu0 %v334_v19  ;;  %1420 = vmatpush.msrb.mxu1 %v430_v20  ;;  %v173_v1 = vld [vmem:[#allocation4 + $0x40] sm:$0xff]  ;;  %v262_v3 = vld [vmem:[#allocation4 + $0x308] sm:$0xff]  ;;  %v167_v5 = vld [vmem:[#allocation4 + $0x10] sm:$0xff] }
  0x41   :  { %1440 = vmatpush.msrb.mxu2 %v239_v21  ;;  %1460 = vmatpush.msrb.mxu3 %v335_v22  ;;  %v269_v2 = vld [vmem:[#allocation4 + $0x340] sm:$0xff]  ;;  %v358_v4 = vld [vmem:[#allocation4 + $0x608] sm:$0xff]  ;;  %v263_v6 = vld [vmem:[#allocation4 + $0x310] sm:$0xff] }
  0x42   :  { %1401 = vmatpush.msrb.mxu0 %v328_v23  ;;  %1421 = vmatpush.msrb.mxu1 %v424_v24  ;;  %v449_v16 = vld [vmem:[#allocation4 + $0x8e0] sm:$0xff]  ;;  %v258_v17 = vld [vmem:[#allocation4 + $0x2e8] sm:$0xff]  ;;  %v443_v21 = vld [vmem:[#allocation4 + $0x8b0] sm:$0xff] }
  0x43   :  { %1441 = vmatpush.msrb.mxu2 %v233_v25  ;;  %1461 = vmatpush.msrb.mxu3 %v329_v26  ;;  %v354_v19 = vld [vmem:[#allocation4 + $0x5e8] sm:$0xff]  ;;  %v252_v22 = vld [vmem:[#allocation4 + $0x2b8] sm:$0xff]  ;;  %v437_v25 = vld [vmem:[#allocation4 + $0x880] sm:$0xff] }
  0x44   :  { %1402 = vmatpush.msrb.mxu0 %v322_v27  ;;  %1422 = vmatpush.msrb.mxu1 %v418_v28  ;;  %v450_v20 = vld [vmem:[#allocation4 + $0x8e8] sm:$0xff]  ;;  %v348_v23 = vld [vmem:[#allocation4 + $0x5b8] sm:$0xff]  ;;  %v525_v13 = vld [vmem:[#allocation4 + $0xb40] sm:$0xff] }
  0x45   :  { %1442 = vmatpush.msrb.mxu2 %v227_v29  ;;  %1462 = vmatpush.msrb.mxu3 %v323_v30  ;;  %v444_v24 = vld [vmem:[#allocation4 + $0x8b8] sm:$0xff]  ;;  %v246_v26 = vld [vmem:[#allocation4 + $0x288] sm:$0xff]  ;;  %v431_v29 = vld [vmem:[#allocation4 + $0x850] sm:$0xff] }
  0x46   :  { %1403 = vmatpush.msrb.mxu0 %v316_v31  ;;  %1423 = vmatpush.msrb.mxu1 %v412_v32  ;;  %v342_v27 = vld [vmem:[#allocation4 + $0x588] sm:$0xff]  ;;  %v240_v30 = vld [vmem:[#allocation4 + $0x258] sm:$0xff]  ;;  %v723_v15 = vld [vmem:[#allocation4 + $0x1170] sm:$0xff] }
  0x47   :  { %1443 = vmatpush.msrb.mxu2 %v221_v33  ;;  %1463 = vmatpush.msrb.mxu3 %v317_v34  ;;  %v438_v28 = vld [vmem:[#allocation4 + $0x888] sm:$0xff]  ;;  %v336_v31 = vld [vmem:[#allocation4 + $0x558] sm:$0xff]  ;;  %v425_v33 = vld [vmem:[#allocation4 + $0x820] sm:$0xff] }
  0x48   :  { %1404 = vmatpush.msrb.mxu0 %v310_v35  ;;  %1424 = vmatpush.msrb.mxu1 %v406_v36  ;;  %v432_v32 = vld [vmem:[#allocation4 + $0x858] sm:$0xff]  ;;  %v234_v34 = vld [vmem:[#allocation4 + $0x228] sm:$0xff] }
  0x49   :  { %1444 = vmatpush.msrb.mxu2 %v215_v37  ;;  %1464 = vmatpush.msrb.mxu3 %v311_v38  ;;  %v330_v35 = vld [vmem:[#allocation4 + $0x528] sm:$0xff]  ;;  %v419_v37 = vld [vmem:[#allocation4 + $0x7f0] sm:$0xff]  ;;  %v228_v38 = vld [vmem:[#allocation4 + $0x1f8] sm:$0xff] }
  0x4a   :  { %1405 = vmatpush.msrb.mxu0 %v304_v39  ;;  %1425 = vmatpush.msrb.mxu1 %v400_v40  ;;  %v426_v36 = vld [vmem:[#allocation4 + $0x828] sm:$0xff]  ;;  %v324_v39 = vld [vmem:[#allocation4 + $0x4f8] sm:$0xff] }
  0x4b   :  { %1445 = vmatpush.msrb.mxu2 %v209_v41  ;;  %1465 = vmatpush.msrb.mxu3 %v305_v42  ;;  %v420_v40 = vld [vmem:[#allocation4 + $0x7f8] sm:$0xff]  ;;  %v413_v41 = vld [vmem:[#allocation4 + $0x7c0] sm:$0xff]  ;;  %v222_v42 = vld [vmem:[#allocation4 + $0x1c8] sm:$0xff] }
  0x4c   :  { %1406 = vmatpush.msrb.mxu0 %v298_v43  ;;  %1426 = vmatpush.msrb.mxu1 %v394_v44  ;;  %v318_v43 = vld [vmem:[#allocation4 + $0x4c8] sm:$0xff] }
  0x4d   :  { %1446 = vmatpush.msrb.mxu2 %v203_v45  ;;  %1466 = vmatpush.msrb.mxu3 %v299_v46  ;;  %v414_v44 = vld [vmem:[#allocation4 + $0x7c8] sm:$0xff]  ;;  %v407_v45 = vld [vmem:[#allocation4 + $0x790] sm:$0xff]  ;;  %v216_v46 = vld [vmem:[#allocation4 + $0x198] sm:$0xff] }
  0x4e   :  { %1407 = vmatpush.msrb.mxu0 %v292_v47  ;;  %1427 = vmatpush.msrb.mxu1 %v388_v48  ;;  %v312_v47 = vld [vmem:[#allocation4 + $0x498] sm:$0xff]  ;;  %v634_v14 = vld [vmem:[#allocation4 + $0xea8] sm:$0xff] }
  0x4f   :  { %1447 = vmatpush.msrb.mxu2 %v197_v49  ;;  %1467 = vmatpush.msrb.mxu3 %v293_v50  ;;  %v408_v48 = vld [vmem:[#allocation4 + $0x798] sm:$0xff]  ;;  %v401_v49 = vld [vmem:[#allocation4 + $0x760] sm:$0xff]  ;;  %v210_v50 = vld [vmem:[#allocation4 + $0x168] sm:$0xff] }
  0x50   :  { %1408 = vmatpush.msrb.mxu0 %v286_v51  ;;  %1428 = vmatpush.msrb.mxu1 %v382_v52  ;;  %v306_v51 = vld [vmem:[#allocation4 + $0x468] sm:$0xff] }
  0x51   :  { %1448 = vmatpush.msrb.mxu2 %v191_v53  ;;  %1468 = vmatpush.msrb.mxu3 %v287_v54  ;;  %v402_v52 = vld [vmem:[#allocation4 + $0x768] sm:$0xff]  ;;  %v395_v53 = vld [vmem:[#allocation4 + $0x730] sm:$0xff]  ;;  %v204_v54 = vld [vmem:[#allocation4 + $0x138] sm:$0xff] }
  0x52   :  { %1409 = vmatpush.msrb.mxu0 %v280_v55  ;;  %1429 = vmatpush.msrb.mxu1 %v376_v56  ;;  %v300_v55 = vld [vmem:[#allocation4 + $0x438] sm:$0xff]  ;;  %v722_v7 = vld [vmem:[#allocation4 + $0x1168] sm:$0xff] }
  0x53   :  { %1449 = vmatpush.msrb.mxu2 %v185_v57  ;;  %1469 = vmatpush.msrb.mxu3 %v281_v58  ;;  %v396_v56 = vld [vmem:[#allocation4 + $0x738] sm:$0xff]  ;;  %v389_v57 = vld [vmem:[#allocation4 + $0x700] sm:$0xff]  ;;  %v198_v58 = vld [vmem:[#allocation4 + $0x108] sm:$0xff] }
  0x54   :  { %1410 = vmatpush.msrb.mxu0 %v274_v59  ;;  %1430 = vmatpush.msrb.mxu1 %v370_v60  ;;  %v294_v59 = vld [vmem:[#allocation4 + $0x408] sm:$0xff] }
  0x55   :  { %1450 = vmatpush.msrb.mxu2 %v179_v61  ;;  %1470 = vmatpush.msrb.mxu3 %v275_v62  ;;  %v390_v60 = vld [vmem:[#allocation4 + $0x708] sm:$0xff]  ;;  %v383_v61 = vld [vmem:[#allocation4 + $0x6d0] sm:$0xff]  ;;  %v192_v62 = vld [vmem:[#allocation4 + $0xd8] sm:$0xff] }
  0x56   :  { %1411 = vmatpush.msrb.mxu0 %v268_v63  ;;  %1431 = vmatpush.msrb.mxu1 %v364_v0  ;;  %v288_v63 = vld [vmem:[#allocation4 + $0x3d8] sm:$0xff] }
  0x57   :  { %1451 = vmatpush.msrb.mxu2 %v173_v1  ;;  %1471 = vmatpush.msrb.mxu3 %v269_v2  ;;  %v384_v0 = vld [vmem:[#allocation4 + $0x6d8] sm:$0xff]  ;;  %v377_v1 = vld [vmem:[#allocation4 + $0x6a0] sm:$0xff]  ;;  %v186_v2 = vld [vmem:[#allocation4 + $0xa8] sm:$0xff] }
  0x58   :  { %1412 = vmatpush.msrb.mxu0 %v262_v3  ;;  %1432 = vmatpush.msrb.mxu1 %v358_v4  ;;  %v282_v3 = vld [vmem:[#allocation4 + $0x3a8] sm:$0xff] }
  0x59   :  { %1452 = vmatpush.msrb.mxu2 %v167_v5  ;;  %1472 = vmatpush.msrb.mxu3 %v263_v6  ;;  %v378_v4 = vld [vmem:[#allocation4 + $0x6a8] sm:$0xff]  ;;  %v371_v5 = vld [vmem:[#allocation4 + $0x670] sm:$0xff]  ;;  %v180_v6 = vld [vmem:[#allocation4 + $0x78] sm:$0xff] }
  0x8a   :  { %v111_v11 = vpop.permute.xlu0 %110 }
  0x8b   :  { %v112_v12 = vperm.slane %v111_v11, 0  ;;  %v276_v11 = vld [vmem:[#allocation4 + $0x378] sm:$0xff] }
  0x8d   :  { %vm6363_vm0 = vcmp.lt.s32.totalorder %v6354_v8, %v112_v12  ;;  %vm6368_vm1 = vcmp.lt.s32.totalorder %v6357_v9, %v112_v12  ;;  %vm6373_vm2 = vcmp.lt.s32.totalorder %v6360_v10, %v112_v12  ;;  %v372_v12 = vld [vmem:[#allocation4 + $0x678] sm:$0xff] }
  0x8e   :  { %5102 = vmatmul.msk.f32.vlgmr.msra.gmra.mxu0 %vm6363_vm0, %v6291_v18  ;;  %5103 = vmatmul.msk.f32.vlgmr.msra.gmra.mxu1 %vm6368_vm1, %v6291_v18 }
  0x8f   :  { %5104 = vmatmul.msk.f32.vlgmr.msra.gmra.mxu2 %vm6373_vm2, %v6291_v18  ;;  %5105 = vmatmul.msk.f32.vlgmr.msra.gmra.mxu3 %vm6363_vm0, %v6291_v18 }
  0x90   :  { %1477 = vmatpush.msra.mxu0 %v449_v16  ;;  %1497 = vmatpush.msra.mxu1 %v258_v17  ;;  %v365_v16 = vld [vmem:[#allocation4 + $0x640] sm:$0xff]  ;;  %v174_v17 = vld [vmem:[#allocation4 + $0x48] sm:$0xff] }
  0x91   :  { %1517 = vmatpush.msra.mxu2 %v354_v19  ;;  %1537 = vmatpush.msra.mxu3 %v450_v20  ;;  %v270_v19 = vld [vmem:[#allocation4 + $0x348] sm:$0xff] }
  0x92   :  { %1478 = vmatpush.msra.mxu0 %v443_v21  ;;  %1498 = vmatpush.msra.mxu1 %v252_v22  ;;  %v366_v20 = vld [vmem:[#allocation4 + $0x648] sm:$0xff]  ;;  %v359_v21 = vld [vmem:[#allocation4 + $0x610] sm:$0xff]  ;;  %v168_v22 = vld [vmem:[#allocation4 + $0x18] sm:$0xff] }
  0x93   :  { %1518 = vmatpush.msra.mxu2 %v348_v23  ;;  %1538 = vmatpush.msra.mxu3 %v444_v24  ;;  %v264_v23 = vld [vmem:[#allocation4 + $0x318] sm:$0xff] }
  0x94   :  { %1479 = vmatpush.msra.mxu0 %v437_v25  ;;  %1499 = vmatpush.msra.mxu1 %v246_v26  ;;  %v360_v24 = vld [vmem:[#allocation4 + $0x618] sm:$0xff]  ;;  %v259_v25 = vld [vmem:[#allocation4 + $0x2f0] sm:$0xff] }
  0x95   :  { %1519 = vmatpush.msra.mxu2 %v342_v27  ;;  %1539 = vmatpush.msra.mxu3 %v438_v28  ;;  %v355_v26 = vld [vmem:[#allocation4 + $0x5f0] sm:$0xff]  ;;  %v260_v28 = vld [vmem:[#allocation4 + $0x2f8] sm:$0xff] }
  0x96   :  { %1480 = vmatpush.msra.mxu0 %v431_v29  ;;  %1500 = vmatpush.msra.mxu1 %v240_v30  ;;  %v451_v27 = vld [vmem:[#allocation4 + $0x8f0] sm:$0xff]  ;;  %v253_v29 = vld [vmem:[#allocation4 + $0x2c0] sm:$0xff] }
  0x97   :  { %1520 = vmatpush.msra.mxu2 %v336_v31  ;;  %1540 = vmatpush.msra.mxu3 %v432_v32  ;;  %v349_v30 = vld [vmem:[#allocation4 + $0x5c0] sm:$0xff]  ;;  %v254_v32 = vld [vmem:[#allocation4 + $0x2c8] sm:$0xff] }
  0x98   :  { %5106 = vmatmul.msk.f32.vlgmr.msrb.gmra.mxu0 %vm6368_vm1, %v6291_v18  ;;  %5107 = vmatmul.msk.f32.vlgmr.msrb.gmra.mxu1 %vm6373_vm2, %v6291_v18  ;;  %v445_v31 = vld [vmem:[#allocation4 + $0x8c0] sm:$0xff] }
  0x99   :  { %5108 = vmatmul.msk.f32.vlgmr.msrb.gmra.mxu2 %vm6363_vm0, %v6291_v18  ;;  %5109 = vmatmul.msk.f32.vlgmr.msrb.gmra.mxu3 %vm6368_vm1, %v6291_v18 }
  0x9a   :  { %1481 = vmatpush.msra.mxu0 %v425_v33  ;;  %1501 = vmatpush.msra.mxu1 %v234_v34  ;;  %v247_v33 = vld [vmem:[#allocation4 + $0x290] sm:$0xff] }
  0x9b   :  { %1521 = vmatpush.msra.mxu2 %v330_v35  ;;  %1541 = vmatpush.msra.mxu3 %v426_v36  ;;  %v343_v34 = vld [vmem:[#allocation4 + $0x590] sm:$0xff]  ;;  %v248_v36 = vld [vmem:[#allocation4 + $0x298] sm:$0xff] }
  0x9c   :  { %1482 = vmatpush.msra.mxu0 %v419_v37  ;;  %1502 = vmatpush.msra.mxu1 %v228_v38  ;;  %v439_v35 = vld [vmem:[#allocation4 + $0x890] sm:$0xff]  ;;  %v241_v37 = vld [vmem:[#allocation4 + $0x260] sm:$0xff] }
  0x9d   :  { %1522 = vmatpush.msra.mxu2 %v324_v39  ;;  %1542 = vmatpush.msra.mxu3 %v420_v40  ;;  %v337_v38 = vld [vmem:[#allocation4 + $0x560] sm:$0xff]  ;;  %v242_v40 = vld [vmem:[#allocation4 + $0x268] sm:$0xff] }
  0x9e   :  { %1483 = vmatpush.msra.mxu0 %v413_v41  ;;  %1503 = vmatpush.msra.mxu1 %v222_v42  ;;  %v433_v39 = vld [vmem:[#allocation4 + $0x860] sm:$0xff]  ;;  %v235_v41 = vld [vmem:[#allocation4 + $0x230] sm:$0xff] }
  0x9f   :  { %1523 = vmatpush.msra.mxu2 %v318_v43  ;;  %1543 = vmatpush.msra.mxu3 %v414_v44  ;;  %v331_v42 = vld [vmem:[#allocation4 + $0x530] sm:$0xff]  ;;  %v236_v44 = vld [vmem:[#allocation4 + $0x238] sm:$0xff] }
  0xa0   :  { %1484 = vmatpush.msra.mxu0 %v407_v45  ;;  %1504 = vmatpush.msra.mxu1 %v216_v46  ;;  %v427_v43 = vld [vmem:[#allocation4 + $0x830] sm:$0xff]  ;;  %v229_v45 = vld [vmem:[#allocation4 + $0x200] sm:$0xff] }
  0xa1   :  { %1524 = vmatpush.msra.mxu2 %v312_v47  ;;  %1544 = vmatpush.msra.mxu3 %v408_v48  ;;  %v325_v46 = vld [vmem:[#allocation4 + $0x500] sm:$0xff]  ;;  %v230_v48 = vld [vmem:[#allocation4 + $0x208] sm:$0xff] }
  0xa2   :  { %1485 = vmatpush.msra.mxu0 %v401_v49  ;;  %1505 = vmatpush.msra.mxu1 %v210_v50  ;;  %v421_v47 = vld [vmem:[#allocation4 + $0x800] sm:$0xff]  ;;  %v223_v49 = vld [vmem:[#allocation4 + $0x1d0] sm:$0xff] }
  0xa3   :  { %1525 = vmatpush.msra.mxu2 %v306_v51  ;;  %1545 = vmatpush.msra.mxu3 %v402_v52  ;;  %v319_v50 = vld [vmem:[#allocation4 + $0x4d0] sm:$0xff]  ;;  %v224_v52 = vld [vmem:[#allocation4 + $0x1d8] sm:$0xff] }
  0xa4   :  { %1486 = vmatpush.msra.mxu0 %v395_v53  ;;  %1506 = vmatpush.msra.mxu1 %v204_v54  ;;  %v415_v51 = vld [vmem:[#allocation4 + $0x7d0] sm:$0xff]  ;;  %v217_v53 = vld [vmem:[#allocation4 + $0x1a0] sm:$0xff] }
  0xa5   :  { %1526 = vmatpush.msra.mxu2 %v300_v55  ;;  %1546 = vmatpush.msra.mxu3 %v396_v56  ;;  %v313_v54 = vld [vmem:[#allocation4 + $0x4a0] sm:$0xff]  ;;  %v218_v56 = vld [vmem:[#allocation4 + $0x1a8] sm:$0xff] }
  0xa6   :  { %1487 = vmatpush.msra.mxu0 %v389_v57  ;;  %1507 = vmatpush.msra.mxu1 %v198_v58  ;;  %v409_v55 = vld [vmem:[#allocation4 + $0x7a0] sm:$0xff]  ;;  %v211_v57 = vld [vmem:[#allocation4 + $0x170] sm:$0xff] }
  0xa7   :  { %1527 = vmatpush.msra.mxu2 %v294_v59  ;;  %1547 = vmatpush.msra.mxu3 %v390_v60  ;;  %v307_v58 = vld [vmem:[#allocation4 + $0x470] sm:$0xff]  ;;  %v212_v60 = vld [vmem:[#allocation4 + $0x178] sm:$0xff] }
  0xa8   :  { %1488 = vmatpush.msra.mxu0 %v383_v61  ;;  %1508 = vmatpush.msra.mxu1 %v192_v62  ;;  %v403_v59 = vld [vmem:[#allocation4 + $0x770] sm:$0xff]  ;;  %v205_v61 = vld [vmem:[#allocation4 + $0x140] sm:$0xff] }
  0xa9   :  { %1528 = vmatpush.msra.mxu2 %v288_v63  ;;  %1548 = vmatpush.msra.mxu3 %v384_v0  ;;  %v301_v62 = vld [vmem:[#allocation4 + $0x440] sm:$0xff]  ;;  %v206_v0 = vld [vmem:[#allocation4 + $0x148] sm:$0xff] }
  0xaa   :  { %1489 = vmatpush.msra.mxu0 %v377_v1  ;;  %1509 = vmatpush.msra.mxu1 %v186_v2  ;;  %v397_v63 = vld [vmem:[#allocation4 + $0x740] sm:$0xff]  ;;  %v199_v1 = vld [vmem:[#allocation4 + $0x110] sm:$0xff] }
  0xab   :  { %1529 = vmatpush.msra.mxu2 %v282_v3  ;;  %1549 = vmatpush.msra.mxu3 %v378_v4  ;;  %v295_v2 = vld [vmem:[#allocation4 + $0x410] sm:$0xff]  ;;  %v200_v4 = vld [vmem:[#allocation4 + $0x118] sm:$0xff] }
  0xac   :  { %1490 = vmatpush.msra.mxu0 %v371_v5  ;;  %1510 = vmatpush.msra.mxu1 %v180_v6  ;;  %v391_v3 = vld [vmem:[#allocation4 + $0x710] sm:$0xff]  ;;  %v193_v5 = vld [vmem:[#allocation4 + $0xe0] sm:$0xff] }
  0xad   :  { %1530 = vmatpush.msra.mxu2 %v276_v11  ;;  %1550 = vmatpush.msra.mxu3 %v372_v12  ;;  %v289_v6 = vld [vmem:[#allocation4 + $0x3e0] sm:$0xff]  ;;  %v194_v12 = vld [vmem:[#allocation4 + $0xe8] sm:$0xff] }
  0xae   :  { %1491 = vmatpush.msra.mxu0 %v365_v16  ;;  %1511 = vmatpush.msra.mxu1 %v174_v17  ;;  %v385_v11 = vld [vmem:[#allocation4 + $0x6e0] sm:$0xff]  ;;  %v187_v16 = vld [vmem:[#allocation4 + $0xb0] sm:$0xff] }
  0xaf   :  { %1531 = vmatpush.msra.mxu2 %v270_v19  ;;  %1551 = vmatpush.msra.mxu3 %v366_v20  ;;  %v283_v17 = vld [vmem:[#allocation4 + $0x3b0] sm:$0xff]  ;;  %v188_v20 = vld [vmem:[#allocation4 + $0xb8] sm:$0xff] }
  0xb0   :  { %1492 = vmatpush.msra.mxu0 %v359_v21  ;;  %1512 = vmatpush.msra.mxu1 %v168_v22  ;;  %v379_v19 = vld [vmem:[#allocation4 + $0x6b0] sm:$0xff]  ;;  %v181_v21 = vld [vmem:[#allocation4 + $0x80] sm:$0xff] }
  0xb1   :  { %1532 = vmatpush.msra.mxu2 %v264_v23  ;;  %1552 = vmatpush.msra.mxu3 %v360_v24  ;;  %v277_v22 = vld [vmem:[#allocation4 + $0x380] sm:$0xff]  ;;  %v182_v24 = vld [vmem:[#allocation4 + $0x88] sm:$0xff] }
  0xb2   :  { %5110 = vmatmul.msk.f32.vlgmr.msra.gmra.mxu0 %vm6373_vm2, %v6291_v18  ;;  %5111 = vmatmul.msk.f32.vlgmr.msra.gmra.mxu1 %vm6363_vm0, %v6291_v18  ;;  %v373_v23 = vld [vmem:[#allocation4 + $0x680] sm:$0xff] }
  0xb3   :  { %5112 = vmatmul.msk.f32.vlgmr.msra.gmra.mxu2 %vm6368_vm1, %v6291_v18  ;;  %5113 = vmatmul.msk.f32.vlgmr.msra.gmra.mxu3 %vm6373_vm2, %v6291_v18 }
  0xb4   :  { %1557 = vmatpush.msrb.mxu0 %v259_v25  ;;  %1577 = vmatpush.msrb.mxu1 %v355_v26  ;;  %v175_v25 = vld [vmem:[#allocation4 + $0x50] sm:$0xff] }
  0xb5   :  { %1597 = vmatpush.msrb.mxu2 %v451_v27  ;;  %1617 = vmatpush.msrb.mxu3 %v260_v28  ;;  %v271_v26 = vld [vmem:[#allocation4 + $0x350] sm:$0xff]  ;;  %v176_v28 = vld [vmem:[#allocation4 + $0x58] sm:$0xff] }
  0xb6   :  { %1558 = vmatpush.msrb.mxu0 %v253_v29  ;;  %1578 = vmatpush.msrb.mxu1 %v349_v30  ;;  %v367_v27 = vld [vmem:[#allocation4 + $0x650] sm:$0xff]  ;;  %v169_v29 = vld [vmem:[#allocation4 + $0x20] sm:$0xff] }
  0xb7   :  { %1598 = vmatpush.msrb.mxu2 %v445_v31  ;;  %1618 = vmatpush.msrb.mxu3 %v254_v32  ;;  %v265_v30 = vld [vmem:[#allocation4 + $0x320] sm:$0xff]  ;;  %v170_v32 = vld [vmem:[#allocation4 + $0x28] sm:$0xff] }
  0xb8   :  { %1559 = vmatpush.msrb.mxu0 %v247_v33  ;;  %1579 = vmatpush.msrb.mxu1 %v343_v34  ;;  %v361_v31 = vld [vmem:[#allocation4 + $0x620] sm:$0xff]  ;;  %v356_v33 = vld [vmem:[#allocation4 + $0x5f8] sm:$0xff] }
  0xb9   :  { %1599 = vmatpush.msrb.mxu2 %v439_v35  ;;  %1619 = vmatpush.msrb.mxu3 %v248_v36  ;;  %v452_v34 = vld [vmem:[#allocation4 + $0x8f8] sm:$0xff]  ;;  %v543_v35 = vld [vmem:[#allocation4 + $0xbd0] sm:$0xff] }
  0xba   :  { %1560 = vmatpush.msrb.mxu0 %v241_v37  ;;  %1580 = vmatpush.msrb.mxu1 %v337_v38  ;;  %v639_v36 = vld [vmem:[#allocation4 + $0xed0] sm:$0xff]  ;;  %v350_v37 = vld [vmem:[#allocation4 + $0x5c8] sm:$0xff] }
  0xbb   :  { %1600 = vmatpush.msrb.mxu2 %v433_v39  ;;  %1620 = vmatpush.msrb.mxu3 %v242_v40  ;;  %v446_v38 = vld [vmem:[#allocation4 + $0x8c8] sm:$0xff]  ;;  %v537_v39 = vld [vmem:[#allocation4 + $0xba0] sm:$0xff] }
  0xbc   :  { %1561 = vmatpush.msrb.mxu0 %v235_v41  ;;  %1581 = vmatpush.msrb.mxu1 %v331_v42  ;;  %v633_v40 = vld [vmem:[#allocation4 + $0xea0] sm:$0xff]  ;;  %v344_v41 = vld [vmem:[#allocation4 + $0x598] sm:$0xff] }
  0xbd   :  { %1601 = vmatpush.msrb.mxu2 %v427_v43  ;;  %1621 = vmatpush.msrb.mxu3 %v236_v44  ;;  %v440_v42 = vld [vmem:[#allocation4 + $0x898] sm:$0xff]  ;;  %v531_v43 = vld [vmem:[#allocation4 + $0xb70] sm:$0xff] }
  0xbe   :  { %1562 = vmatpush.msrb.mxu0 %v229_v45  ;;  %1582 = vmatpush.msrb.mxu1 %v325_v46  ;;  %v627_v44 = vld [vmem:[#allocation4 + $0xe70] sm:$0xff]  ;;  %v338_v45 = vld [vmem:[#allocation4 + $0x568] sm:$0xff] }
  0xbf   :  { %1602 = vmatpush.msrb.mxu2 %v421_v47  ;;  %1622 = vmatpush.msrb.mxu3 %v230_v48  ;;  %v434_v46 = vld [vmem:[#allocation4 + $0x868] sm:$0xff]  ;;  %v621_v47 = vld [vmem:[#allocation4 + $0xe40] sm:$0xff]  ;;  %v332_v48 = vld [vmem:[#allocation4 + $0x538] sm:$0xff] }
  0xc0   :  { %1563 = vmatpush.msrb.mxu0 %v223_v49  ;;  %1583 = vmatpush.msrb.mxu1 %v319_v50  ;;  %v428_v49 = vld [vmem:[#allocation4 + $0x838] sm:$0xff]  ;;  %v519_v50 = vld [vmem:[#allocation4 + $0xb10] sm:$0xff] }
  0xc1   :  { %1603 = vmatpush.msrb.mxu2 %v415_v51  ;;  %1623 = vmatpush.msrb.mxu3 %v224_v52  ;;  %v615_v51 = vld [vmem:[#allocation4 + $0xe10] sm:$0xff]  ;;  %v326_v52 = vld [vmem:[#allocation4 + $0x508] sm:$0xff] }
  0xc2   :  { %1564 = vmatpush.msrb.mxu0 %v217_v53  ;;  %1584 = vmatpush.msrb.mxu1 %v313_v54  ;;  %v422_v53 = vld [vmem:[#allocation4 + $0x808] sm:$0xff]  ;;  %v513_v54 = vld [vmem:[#allocation4 + $0xae0] sm:$0xff] }
  0xc3   :  { %1604 = vmatpush.msrb.mxu2 %v409_v55  ;;  %1624 = vmatpush.msrb.mxu3 %v218_v56  ;;  %v609_v55 = vld [vmem:[#allocation4 + $0xde0] sm:$0xff]  ;;  %v320_v56 = vld [vmem:[#allocation4 + $0x4d8] sm:$0xff] }
  0xc4   :  { %1565 = vmatpush.msrb.mxu0 %v211_v57  ;;  %1585 = vmatpush.msrb.mxu1 %v307_v58  ;;  %v416_v57 = vld [vmem:[#allocation4 + $0x7d8] sm:$0xff]  ;;  %v507_v58 = vld [vmem:[#allocation4 + $0xab0] sm:$0xff] }
  0xc5   :  { %1605 = vmatpush.msrb.mxu2 %v403_v59  ;;  %1625 = vmatpush.msrb.mxu3 %v212_v60  ;;  %v603_v59 = vld [vmem:[#allocation4 + $0xdb0] sm:$0xff]  ;;  %v314_v60 = vld [vmem:[#allocation4 + $0x4a8] sm:$0xff] }
  0xc6   :  { %1566 = vmatpush.msrb.mxu0 %v205_v61  ;;  %1586 = vmatpush.msrb.mxu1 %v301_v62  ;;  %v410_v61 = vld [vmem:[#allocation4 + $0x7a8] sm:$0xff]  ;;  %v501_v62 = vld [vmem:[#allocation4 + $0xa80] sm:$0xff] }
  0xc7   :  { %1606 = vmatpush.msrb.mxu2 %v397_v63  ;;  %1626 = vmatpush.msrb.mxu3 %v206_v0  ;;  %v597_v63 = vld [vmem:[#allocation4 + $0xd80] sm:$0xff]  ;;  %v308_v0 = vld [vmem:[#allocation4 + $0x478] sm:$0xff] }
  0xc8   :  { %1567 = vmatpush.msrb.mxu0 %v199_v1  ;;  %1587 = vmatpush.msrb.mxu1 %v295_v2  ;;  %v404_v1 = vld [vmem:[#allocation4 + $0x778] sm:$0xff]  ;;  %v495_v2 = vld [vmem:[#allocation4 + $0xa50] sm:$0xff] }
  0xc9   :  { %1607 = vmatpush.msrb.mxu2 %v391_v3  ;;  %1627 = vmatpush.msrb.mxu3 %v200_v4  ;;  %v591_v3 = vld [vmem:[#allocation4 + $0xd50] sm:$0xff]  ;;  %v302_v4 = vld [vmem:[#allocation4 + $0x448] sm:$0xff] }
  0xca   :  { %1568 = vmatpush.msrb.mxu0 %v193_v5  ;;  %1588 = vmatpush.msrb.mxu1 %v289_v6  ;;  %v398_v5 = vld [vmem:[#allocation4 + $0x748] sm:$0xff]  ;;  %v489_v6 = vld [vmem:[#allocation4 + $0xa20] sm:$0xff] }
  0xcb   :  { %1608 = vmatpush.msrb.mxu2 %v385_v11  ;;  %1628 = vmatpush.msrb.mxu3 %v194_v12  ;;  %v585_v11 = vld [vmem:[#allocation4 + $0xd20] sm:$0xff]  ;;  %v296_v12 = vld [vmem:[#allocation4 + $0x418] sm:$0xff] }
  0xcc   :  { %1569 = vmatpush.msrb.mxu0 %v187_v16  ;;  %1589 = vmatpush.msrb.mxu1 %v283_v17  ;;  %v392_v16 = vld [vmem:[#allocation4 + $0x718] sm:$0xff]  ;;  %v483_v17 = vld [vmem:[#allocation4 + $0x9f0] sm:$0xff] }
  0xcd   :  { %1609 = vmatpush.msrb.mxu2 %v379_v19  ;;  %1629 = vmatpush.msrb.mxu3 %v188_v20  ;;  %v579_v19 = vld [vmem:[#allocation4 + $0xcf0] sm:$0xff]  ;;  %v290_v20 = vld [vmem:[#allocation4 + $0x3e8] sm:$0xff] }
  0xce   :  { %1570 = vmatpush.msrb.mxu0 %v181_v21  ;;  %1590 = vmatpush.msrb.mxu1 %v277_v22  ;;  %v386_v21 = vld [vmem:[#allocation4 + $0x6e8] sm:$0xff]  ;;  %v477_v22 = vld [vmem:[#allocation4 + $0x9c0] sm:$0xff] }
  0xcf   :  { %1610 = vmatpush.msrb.mxu2 %v373_v23  ;;  %1630 = vmatpush.msrb.mxu3 %v182_v24  ;;  %v573_v23 = vld [vmem:[#allocation4 + $0xcc0] sm:$0xff]  ;;  %v284_v24 = vld [vmem:[#allocation4 + $0x3b8] sm:$0xff] }
  0xd0   :  { %1571 = vmatpush.msrb.mxu0 %v175_v25  ;;  %1591 = vmatpush.msrb.mxu1 %v271_v26  ;;  %v380_v25 = vld [vmem:[#allocation4 + $0x6b8] sm:$0xff]  ;;  %v471_v26 = vld [vmem:[#allocation4 + $0x990] sm:$0xff] }
  0xd1   :  { %1611 = vmatpush.msrb.mxu2 %v367_v27  ;;  %1631 = vmatpush.msrb.mxu3 %v176_v28  ;;  %v567_v27 = vld [vmem:[#allocation4 + $0xc90] sm:$0xff]  ;;  %v278_v28 = vld [vmem:[#allocation4 + $0x388] sm:$0xff] }
  0xd2   :  { %1572 = vmatpush.msrb.mxu0 %v169_v29  ;;  %1592 = vmatpush.msrb.mxu1 %v265_v30  ;;  %v374_v29 = vld [vmem:[#allocation4 + $0x688] sm:$0xff]  ;;  %v465_v30 = vld [vmem:[#allocation4 + $0x960] sm:$0xff] }
  0xd3   :  { %1612 = vmatpush.msrb.mxu2 %v361_v31  ;;  %1632 = vmatpush.msrb.mxu3 %v170_v32  ;;  %v561_v31 = vld [vmem:[#allocation4 + $0xc60] sm:$0xff]  ;;  %v115_v32 = vpop.permute.xlu0 %114 }
  0xd4   :  { %5114 = vmatmul.msk.f32.vlgmr.msrb.gmra.mxu0 %vm6363_vm0, %v6291_v18  ;;  %5115 = vmatmul.msk.f32.vlgmr.msrb.gmra.mxu1 %vm6368_vm1, %v6291_v18 }
  0xd5   :  { %5116 = vmatmul.msk.f32.vlgmr.msrb.gmra.mxu2 %vm6373_vm2, %v6291_v18  ;;  %5117 = vmatmul.msk.f32.vlgmr.msrb.gmra.mxu3 %vm6363_vm0, %v6291_v18 }
  0xd6   :  { %1637 = vmatpush.msra.mxu0 %v356_v33  ;;  %1657 = vmatpush.msra.mxu1 %v452_v34  ;;  %v272_v33 = vld [vmem:[#allocation4 + $0x358] sm:$0xff] }
  0xd7   :  { %1677 = vmatpush.msra.mxu2 %v543_v35  ;;  %1697 = vmatpush.msra.mxu3 %v639_v36  ;;  %v368_v34 = vld [vmem:[#allocation4 + $0x658] sm:$0xff]  ;;  %v459_v35 = vld [vmem:[#allocation4 + $0x930] sm:$0xff] }
  0xd8   :  { %1638 = vmatpush.msra.mxu0 %v350_v37  ;;  %1658 = vmatpush.msra.mxu1 %v446_v38  ;;  %v555_v36 = vld [vmem:[#allocation4 + $0xc30] sm:$0xff]  ;;  %v266_v37 = vld [vmem:[#allocation4 + $0x328] sm:$0xff] }
  0xd9   :  { %1678 = vmatpush.msra.mxu2 %v537_v39  ;;  %1698 = vmatpush.msra.mxu3 %v633_v40  ;;  %v362_v38 = vld [vmem:[#allocation4 + $0x628] sm:$0xff]  ;;  %v6425_v39 = vperm.slane %v115_v32, 0  ;;  %v453_v40 = vld [vmem:[#allocation4 + $0x900] sm:$0xff] }
  0xda   :  { %1639 = vmatpush.msra.mxu0 %v344_v41  ;;  %1659 = vmatpush.msra.mxu1 %v440_v42  ;;  %v549_v41 = vld [vmem:[#allocation4 + $0xc00] sm:$0xff]  ;;  %v735_v42 = vld [vmem:[#allocation4 + $0x11d0] sm:$0xff]  ;;  %v670_v32 = vld [vmem:[#allocation4 + $0xfc8] sm:$0xff] }
  0xdb   :  { %1679 = vmatpush.msra.mxu2 %v531_v43  ;;  %1699 = vmatpush.msra.mxu3 %v627_v44  ;;  %v544_v43 = vld [vmem:[#allocation4 + $0xbd8] sm:$0xff]  ;;  %vm6429_vm3 = vcmp.lt.s32.totalorder %v6354_v8, %v6425_v39  ;;  %vm6435_vm4 = vcmp.lt.s32.totalorder %v6357_v9, %v6425_v39  ;;  %vm6456_vm5 = vcmp.lt.s32.totalorder %v6360_v10, %v6425_v39  ;;  %v539_v39 = vld [vmem:[#allocation4 + $0xbb0] sm:$0xff]  ;;  %v1017_v44 = vld [vmem:[#allocation4 + $0x1aa0] sm:$0xff] }
  0xdc   :  { %1640 = vmatpush.msra.mxu0 %v338_v45  ;;  %1660 = vmatpush.msra.mxu1 %v434_v46  ;;  %v640_v46 = vld [vmem:[#allocation4 + $0xed8] sm:$0xff]  ;;  %v1011_v45 = vld [vmem:[#allocation4 + $0x1a70] sm:$0xff] }
  0xdd   :  { %1680 = vmatpush.msra.mxu2 %v525_v13  ;;  %1700 = vmatpush.msra.mxu3 %v621_v47  ;;  %v736_v13 = vld [vmem:[#allocation4 + $0x11d8] sm:$0xff]  ;;  %v729_v47 = vld [vmem:[#allocation4 + $0x11a0] sm:$0xff] }
  0xde   :  { %1641 = vmatpush.msra.mxu0 %v332_v48  ;;  %1661 = vmatpush.msra.mxu1 %v428_v49  ;;  %v538_v48 = vld [vmem:[#allocation4 + $0xba8] sm:$0xff] }
  0xdf   :  { %1681 = vmatpush.msra.mxu2 %v519_v50  ;;  %1701 = vmatpush.msra.mxu3 %v615_v51  ;;  %v730_v49 = vld [vmem:[#allocation4 + $0x11a8] sm:$0xff]  ;;  %v532_v50 = vld [vmem:[#allocation4 + $0xb78] sm:$0xff] }
  0xe0   :  { %1642 = vmatpush.msra.mxu0 %v326_v52  ;;  %1662 = vmatpush.msra.mxu1 %v422_v53  ;;  %v628_v51 = vld [vmem:[#allocation4 + $0xe78] sm:$0xff]  ;;  %v717_v53 = vld [vmem:[#allocation4 + $0x1140] sm:$0xff] }
  0xe1   :  { %1682 = vmatpush.msra.mxu2 %v513_v54  ;;  %1702 = vmatpush.msra.mxu3 %v609_v55  ;;  %v724_v52 = vld [vmem:[#allocation4 + $0x1178] sm:$0xff]  ;;  %v526_v54 = vld [vmem:[#allocation4 + $0xb48] sm:$0xff] }
  0xe2   :  { %1643 = vmatpush.msra.mxu0 %v320_v56  ;;  %1663 = vmatpush.msra.mxu1 %v416_v57  ;;  %v622_v55 = vld [vmem:[#allocation4 + $0xe48] sm:$0xff]  ;;  %v711_v57 = vld [vmem:[#allocation4 + $0x1110] sm:$0xff] }
  0xe3   :  { %1683 = vmatpush.msra.mxu2 %v507_v58  ;;  %1703 = vmatpush.msra.mxu3 %v603_v59  ;;  %v718_v56 = vld [vmem:[#allocation4 + $0x1148] sm:$0xff]  ;;  %v520_v58 = vld [vmem:[#allocation4 + $0xb18] sm:$0xff] }
  0xe4   :  { %1644 = vmatpush.msra.mxu0 %v314_v60  ;;  %1664 = vmatpush.msra.mxu1 %v410_v61  ;;  %v616_v59 = vld [vmem:[#allocation4 + $0xe18] sm:$0xff]  ;;  %v705_v61 = vld [vmem:[#allocation4 + $0x10e0] sm:$0xff] }
  0xe5   :  { %1684 = vmatpush.msra.mxu2 %v501_v62  ;;  %1704 = vmatpush.msra.mxu3 %v597_v63  ;;  %v712_v60 = vld [vmem:[#allocation4 + $0x1118] sm:$0xff]  ;;  %v514_v62 = vld [vmem:[#allocation4 + $0xae8] sm:$0xff] }
  0xe6   :  { %1645 = vmatpush.msra.mxu0 %v308_v0  ;;  %1665 = vmatpush.msra.mxu1 %v404_v1  ;;  %v610_v63 = vld [vmem:[#allocation4 + $0xde8] sm:$0xff]  ;;  %v699_v1 = vld [vmem:[#allocation4 + $0x10b0] sm:$0xff] }
  0xe7   :  { %1685 = vmatpush.msra.mxu2 %v495_v2  ;;  %1705 = vmatpush.msra.mxu3 %v591_v3  ;;  %v706_v0 = vld [vmem:[#allocation4 + $0x10e8] sm:$0xff]  ;;  %v508_v2 = vld [vmem:[#allocation4 + $0xab8] sm:$0xff] }
  0xe8   :  { %1646 = vmatpush.msra.mxu0 %v302_v4  ;;  %1666 = vmatpush.msra.mxu1 %v398_v5  ;;  %v604_v3 = vld [vmem:[#allocation4 + $0xdb8] sm:$0xff]  ;;  %v693_v5 = vld [vmem:[#allocation4 + $0x1080] sm:$0xff] }
  0xe9   :  { %1686 = vmatpush.msra.mxu2 %v489_v6  ;;  %1706 = vmatpush.msra.mxu3 %v585_v11  ;;  %v700_v4 = vld [vmem:[#allocation4 + $0x10b8] sm:$0xff]  ;;  %v502_v6 = vld [vmem:[#allocation4 + $0xa88] sm:$0xff] }
  0xea   :  { %1647 = vmatpush.msra.mxu0 %v296_v12  ;;  %1667 = vmatpush.msra.mxu1 %v392_v16  ;;  %v598_v11 = vld [vmem:[#allocation4 + $0xd88] sm:$0xff]  ;;  %v687_v16 = vld [vmem:[#allocation4 + $0x1050] sm:$0xff] }
  0xeb   :  { %1687 = vmatpush.msra.mxu2 %v483_v17  ;;  %1707 = vmatpush.msra.mxu3 %v579_v19  ;;  %v694_v12 = vld [vmem:[#allocation4 + $0x1088] sm:$0xff]  ;;  %v496_v17 = vld [vmem:[#allocation4 + $0xa58] sm:$0xff] }
  0xec   :  { %1648 = vmatpush.msra.mxu0 %v290_v20  ;;  %1668 = vmatpush.msra.mxu1 %v386_v21  ;;  %v592_v19 = vld [vmem:[#allocation4 + $0xd58] sm:$0xff]  ;;  %v681_v21 = vld [vmem:[#allocation4 + $0x1020] sm:$0xff] }
  0xed   :  { %1688 = vmatpush.msra.mxu2 %v477_v22  ;;  %1708 = vmatpush.msra.mxu3 %v573_v23  ;;  %v688_v20 = vld [vmem:[#allocation4 + $0x1058] sm:$0xff]  ;;  %v490_v22 = vld [vmem:[#allocation4 + $0xa28] sm:$0xff] }
  0xee   :  { %1649 = vmatpush.msra.mxu0 %v284_v24  ;;  %1669 = vmatpush.msra.mxu1 %v380_v25  ;;  %v586_v23 = vld [vmem:[#allocation4 + $0xd28] sm:$0xff]  ;;  %v675_v25 = vld [vmem:[#allocation4 + $0xff0] sm:$0xff] }
  0xef   :  { %1689 = vmatpush.msra.mxu2 %v471_v26  ;;  %1709 = vmatpush.msra.mxu3 %v567_v27  ;;  %v682_v24 = vld [vmem:[#allocation4 + $0x1028] sm:$0xff]  ;;  %v484_v26 = vld [vmem:[#allocation4 + $0x9f8] sm:$0xff] }
  0xf0   :  { %1650 = vmatpush.msra.mxu0 %v278_v28  ;;  %1670 = vmatpush.msra.mxu1 %v374_v29  ;;  %v580_v27 = vld [vmem:[#allocation4 + $0xcf8] sm:$0xff]  ;;  %v669_v29 = vld [vmem:[#allocation4 + $0xfc0] sm:$0xff] }
  0xf1   :  { %1690 = vmatpush.msra.mxu2 %v465_v30  ;;  %1710 = vmatpush.msra.mxu3 %v561_v31  ;;  %v676_v28 = vld [vmem:[#allocation4 + $0xff8] sm:$0xff]  ;;  %v478_v30 = vld [vmem:[#allocation4 + $0x9c8] sm:$0xff] }
  0xf2   :  { %1651 = vmatpush.msra.mxu0 %v272_v33  ;;  %1671 = vmatpush.msra.mxu1 %v368_v34  ;;  %v574_v31 = vld [vmem:[#allocation4 + $0xcc8] sm:$0xff]  ;;  %v663_v33 = vld [vmem:[#allocation4 + $0xf90] sm:$0xff]  ;;  %v472_v34 = vld [vmem:[#allocation4 + $0x998] sm:$0xff] }
  0xf3   :  { %1691 = vmatpush.msra.mxu2 %v459_v35  ;;  %1711 = vmatpush.msra.mxu3 %v555_v36  ;;  %v568_v35 = vld [vmem:[#allocation4 + $0xc98] sm:$0xff] }
  0xf4   :  { %1652 = vmatpush.msra.mxu0 %v266_v37  ;;  %1672 = vmatpush.msra.mxu1 %v362_v38  ;;  %v664_v36 = vld [vmem:[#allocation4 + $0xf98] sm:$0xff]  ;;  %v657_v37 = vld [vmem:[#allocation4 + $0xf60] sm:$0xff]  ;;  %v466_v38 = vld [vmem:[#allocation4 + $0x968] sm:$0xff] }
  0xf5   :  { %1692 = vmatpush.msra.mxu2 %v453_v40  ;;  %1712 = vmatpush.msra.mxu3 %v549_v41  ;;  %v562_v40 = vld [vmem:[#allocation4 + $0xc68] sm:$0xff] }
  0xf6   :  { %5118 = vmatmul.msk.f32.vlgmr.msra.gmra.mxu0 %vm6368_vm1, %v6291_v18  ;;  %5119 = vmatmul.msk.f32.vlgmr.msra.gmra.mxu1 %vm6373_vm2, %v6291_v18  ;;  %v658_v41 = vld [vmem:[#allocation4 + $0xf68] sm:$0xff] }
  0xf7   :  { %5120 = vmatmul.msk.f32.vlgmr.msra.gmra.mxu2 %vm6429_vm3, %v6291_v18  ;;  %5121 = vmatmul.msk.f32.vlgmr.msra.gmra.mxu3 %vm6435_vm4, %v6291_v18 }
  0xf8   :  { %1717 = vmatpush.msrb.mxu0 %v735_v42  ;;  %1737 = vmatpush.msrb.mxu1 %v544_v43  ;;  %v651_v42 = vld [vmem:[#allocation4 + $0xf30] sm:$0xff]  ;;  %v460_v43 = vld [vmem:[#allocation4 + $0x938] sm:$0xff] }
  0xf9   :  { %1757 = vmatpush.msrb.mxu2 %v640_v46  ;;  %1777 = vmatpush.msrb.mxu3 %v736_v13  ;;  %v556_v46 = vld [vmem:[#allocation4 + $0xc38] sm:$0xff] }
  0xfa   :  { %1718 = vmatpush.msrb.mxu0 %v729_v47  ;;  %1738 = vmatpush.msrb.mxu1 %v538_v48  ;;  %v652_v13 = vld [vmem:[#allocation4 + $0xf38] sm:$0xff]  ;;  %v645_v47 = vld [vmem:[#allocation4 + $0xf00] sm:$0xff]  ;;  %v454_v48 = vld [vmem:[#allocation4 + $0x908] sm:$0xff] }
  0xfb   :  { %1758 = vmatpush.msrb.mxu2 %v634_v14  ;;  %1778 = vmatpush.msrb.mxu3 %v730_v49  ;;  %v2845_v14 = vld [vmem:[%s7219_s0] sm:$0x1]  ;;  %v550_v49 = vld [vmem:[#allocation4 + $0xc08] sm:$0xff] }
  0xfc   :  { %1719 = vmatpush.msrb.mxu0 %v723_v15  ;;  %1739 = vmatpush.msrb.mxu1 %v532_v50  ;;  %v646_v15 = vld [vmem:[#allocation4 + $0xf08] sm:$0xff]  ;;  %v2849_v50 = vcvt.s32.f32 %v2845_v14 }
  0xfd   :  { %1759 = vmatpush.msrb.mxu2 %v628_v51  ;;  %1779 = vmatpush.msrb.mxu3 %v724_v52  ;;  %v545_v52 = vld [vmem:[#allocation4 + $0xbe0] sm:$0xff] }
  0xfe   :  { %1720 = vmatpush.msrb.mxu0 %v717_v53  ;;  %1740 = vmatpush.msrb.mxu1 %v526_v54  ;;  %v641_v53 = vld [vmem:[#allocation4 + $0xee0] sm:$0xff] }
  0xff   :  { %1760 = vmatpush.msrb.mxu2 %v622_v55  ;;  %1780 = vmatpush.msrb.mxu3 %v718_v56  ;;  %v737_v54 = vld [vmem:[#allocation4 + $0x11e0] sm:$0xff]  ;;  %v546_v55 = vld [vmem:[#allocation4 + $0xbe8] sm:$0xff]  ;;  %v635_v56 = vld [vmem:[#allocation4 + $0xeb0] sm:$0xff] }
 0x100   :  { %1721 = vmatpush.msrb.mxu0 %v711_v57  ;;  %1741 = vmatpush.msrb.mxu1 %v520_v58  ;;  %v731_v57 = vld [vmem:[#allocation4 + $0x11b0] sm:$0xff]  ;;  %v540_v58 = vld [vmem:[#allocation4 + $0xbb8] sm:$0xff]  ;;  %v813_v51 = vld [vmem:[#allocation4 + $0x1440] sm:$0xff] }
 0x101   :  { %1761 = vmatpush.msrb.mxu2 %v616_v59  ;;  %1781 = vmatpush.msrb.mxu3 %v712_v60  ;;  %v2853_v59 = vmax.f32 %v2849_v50, 1.0  ;;  %v533_v60 = vld [vmem:[#allocation4 + $0xb80] sm:$0xff] }
 0x102   :  { %1722 = vmatpush.msrb.mxu0 %v705_v61  ;;  %1742 = vmatpush.msrb.mxu1 %v514_v62  ;;  %v629_v61 = vld [vmem:[#allocation4 + $0xe80] sm:$0xff] }
 0x103   :  { %1762 = vmatpush.msrb.mxu2 %v610_v63  ;;  %1782 = vmatpush.msrb.mxu3 %v706_v0  ;;  %v725_v62 = vld [vmem:[#allocation4 + $0x1180] sm:$0xff]  ;;  %v534_v63 = vld [vmem:[#allocation4 + $0xb88] sm:$0xff]  ;;  %v527_v0 = vld [vmem:[#allocation4 + $0xb50] sm:$0xff] }
 0x104   :  { %1723 = vmatpush.msrb.mxu0 %v699_v1  ;;  %1743 = vmatpush.msrb.mxu1 %v508_v2  ;;  %v623_v1 = vld [vmem:[#allocation4 + $0xe50] sm:$0xff]  ;;  %v569_v50 = vld [vmem:[#allocation4 + $0xca0] sm:$0xff] }
 0x105   :  { %1763 = vmatpush.msrb.mxu2 %v604_v3  ;;  %1783 = vmatpush.msrb.mxu3 %v700_v4  ;;  %v719_v2 = vld [vmem:[#allocation4 + $0x1150] sm:$0xff]  ;;  %v528_v3 = vld [vmem:[#allocation4 + $0xb58] sm:$0xff]  ;;  %v107_v4 = vld [vmem:[%s7219_s0 + $0x2] sm:$0x1] }
 0x106   :  { %1724 = vmatpush.msrb.mxu0 %v693_v5  ;;  %1744 = vmatpush.msrb.mxu1 %v502_v6  ;;  %v521_v5 = vld [vmem:[#allocation4 + $0xb20] sm:$0xff] }
 0x107   :  { %1764 = vmatpush.msrb.mxu2 %v598_v11  ;;  %1784 = vmatpush.msrb.mxu3 %v694_v12  ;;  %v617_v6 = vld [vmem:[#allocation4 + $0xe20] sm:$0xff]  ;;  %v522_v12 = vld [vmem:[#allocation4 + $0xb28] sm:$0xff] }
 0x108   :  { %1725 = vmatpush.msrb.mxu0 %v687_v16  ;;  %1745 = vmatpush.msrb.mxu1 %v496_v17  ;;  %v713_v11 = vld [vmem:[#allocation4 + $0x1120] sm:$0xff]  ;;  %v515_v16 = vld [vmem:[#allocation4 + $0xaf0] sm:$0xff] }
 0x109   :  { %1765 = vmatpush.msrb.mxu2 %v592_v19  ;;  %1785 = vmatpush.msrb.mxu3 %v688_v20  ;;  %v611_v17 = vld [vmem:[#allocation4 + $0xdf0] sm:$0xff]  ;;  %v516_v20 = vld [vmem:[#allocation4 + $0xaf8] sm:$0xff] }
 0x10a   :  { %1726 = vmatpush.msrb.mxu0 %v681_v21  ;;  %1746 = vmatpush.msrb.mxu1 %v490_v22  ;;  %v707_v19 = vld [vmem:[#allocation4 + $0x10f0] sm:$0xff]  ;;  %v509_v21 = vld [vmem:[#allocation4 + $0xac0] sm:$0xff] }
 0x10b   :  { %1766 = vmatpush.msrb.mxu2 %v586_v23  ;;  %1786 = vmatpush.msrb.mxu3 %v682_v24  ;;  %v605_v22 = vld [vmem:[#allocation4 + $0xdc0] sm:$0xff]  ;;  %v510_v24 = vld [vmem:[#allocation4 + $0xac8] sm:$0xff] }
 0x10c   :  { %1727 = vmatpush.msrb.mxu0 %v675_v25  ;;  %1747 = vmatpush.msrb.mxu1 %v484_v26  ;;  %v701_v23 = vld [vmem:[#allocation4 + $0x10c0] sm:$0xff]  ;;  %v503_v25 = vld [vmem:[#allocation4 + $0xa90] sm:$0xff] }
 0x10d   :  { %1767 = vmatpush.msrb.mxu2 %v580_v27  ;;  %1787 = vmatpush.msrb.mxu3 %v676_v28  ;;  %v599_v26 = vld [vmem:[#allocation4 + $0xd90] sm:$0xff]  ;;  %v504_v28 = vld [vmem:[#allocation4 + $0xa98] sm:$0xff] }
 0x10e   :  { %1728 = vmatpush.msrb.mxu0 %v669_v29  ;;  %1748 = vmatpush.msrb.mxu1 %v478_v30  ;;  %v695_v27 = vld [vmem:[#allocation4 + $0x1090] sm:$0xff]  ;;  %v108_v29 = vld [vmem:[%s7219_s0 + $0x3] sm:$0x1] }
 0x10f   :  { %1768 = vmatpush.msrb.mxu2 %v574_v31  ;;  %1788 = vmatpush.msrb.mxu3 %v670_v32  ;;  %v497_v30 = vld [vmem:[#allocation4 + $0xa60] sm:$0xff] }
 0x110   :  { %1729 = vmatpush.msrb.mxu0 %v663_v33  ;;  %1749 = vmatpush.msrb.mxu1 %v472_v34  ;;  %v2848_v31 = vld [vmem:[%s7219_s0 + $0x3] sm:$0x1]  ;;  %v498_v34 = vld [vmem:[#allocation4 + $0xa68] sm:$0xff] }
 0x111   :  { %1769 = vmatpush.msrb.mxu2 %v568_v35  ;;  %1789 = vmatpush.msrb.mxu3 %v664_v36  ;;  %v593_v32 = vld [vmem:[#allocation4 + $0xd60] sm:$0xff]  ;;  %v491_v35 = vld [vmem:[#allocation4 + $0xa30] sm:$0xff] }
 0x112   :  { %1730 = vmatpush.msrb.mxu0 %v657_v37  ;;  %1750 = vmatpush.msrb.mxu1 %v466_v38  ;;  %v689_v33 = vld [vmem:[#allocation4 + $0x1060] sm:$0xff]  ;;  %v587_v36 = vld [vmem:[#allocation4 + $0xd30] sm:$0xff]  ;;  %v2852_v38 = vcvt.s32.f32 %v2848_v31 }
 0x113   :  { %1770 = vmatpush.msrb.mxu2 %v562_v40  ;;  %1790 = vmatpush.msrb.mxu3 %v658_v41  ;;  %v683_v37 = vld [vmem:[#allocation4 + $0x1030] sm:$0xff]  ;;  %v492_v40 = vld [vmem:[#allocation4 + $0xa38] sm:$0xff]  ;;  %v485_v41 = vld [vmem:[#allocation4 + $0xa00] sm:$0xff] }
 0x114   :  { %1731 = vmatpush.msrb.mxu0 %v651_v42  ;;  %1751 = vmatpush.msrb.mxu1 %v460_v43  ;;  %v581_v42 = vld [vmem:[#allocation4 + $0xd00] sm:$0xff]  ;;  %v2856_v14 = vmax.f32 %v2852_v38, 1.0  ;;  %v696_v38 = vld [vmem:[#allocation4 + $0x1098] sm:$0xff] }
 0x115   :  { %1771 = vmatpush.msrb.mxu2 %v556_v46  ;;  %1791 = vmatpush.msrb.mxu3 %v652_v13  ;;  %v677_v43 = vld [vmem:[#allocation4 + $0x1000] sm:$0xff]  ;;  %v486_v46 = vld [vmem:[#allocation4 + $0xa08] sm:$0xff]  ;;  %v479_v13 = vld [vmem:[#allocation4 + $0x9d0] sm:$0xff] }
 0x116   :  { %1732 = vmatpush.msrb.mxu0 %v645_v47  ;;  %1752 = vmatpush.msrb.mxu1 %v454_v48  ;;  %v575_v47 = vld [vmem:[#allocation4 + $0xcd0] sm:$0xff]  ;;  %v517_v31 = vld [vmem:[#allocation4 + $0xb00] sm:$0xff] }
 0x117   :  { %1772 = vmatpush.msrb.mxu2 %v550_v49  ;;  %1792 = vmatpush.msrb.mxu3 %v646_v15  ;;  %v671_v48 = vld [vmem:[#allocation4 + $0xfd0] sm:$0xff]  ;;  %v480_v49 = vld [vmem:[#allocation4 + $0x9d8] sm:$0xff]  ;;  %v473_v15 = vld [vmem:[#allocation4 + $0x9a0] sm:$0xff] }
 0x118   :  { %5122 = vmatmul.msk.f32.vlgmr.msrb.gmra.mxu0 %vm6456_vm5, %v6291_v18  ;;  %5123 = vmatmul.msk.f32.vlgmr.msrb.gmra.mxu1 %vm6429_vm3, %v6291_v18 }
 0x119   :  { %5124 = vmatmul.msk.f32.vlgmr.msrb.gmra.mxu2 %vm6435_vm4, %v6291_v18  ;;  %5125 = vmatmul.msk.f32.vlgmr.msrb.gmra.mxu3 %vm6456_vm5, %v6291_v18 }
 0x11a   :  { %1797 = vmatpush.msra.mxu0 %v545_v52  ;;  %1817 = vmatpush.msra.mxu1 %v641_v53  ;;  %v665_v52 = vld [vmem:[#allocation4 + $0xfa0] sm:$0xff]  ;;  %v474_v53 = vld [vmem:[#allocation4 + $0x9a8] sm:$0xff] }
 0x11b   :  { %1837 = vmatpush.msra.mxu2 %v737_v54  ;;  %1857 = vmatpush.msra.mxu3 %v546_v55  ;;  %v467_v54 = vld [vmem:[#allocation4 + $0x970] sm:$0xff] }
 0x11c   :  { %1798 = vmatpush.msra.mxu0 %v539_v39  ;;  %1818 = vmatpush.msra.mxu1 %v635_v56  ;;  %v563_v55 = vld [vmem:[#allocation4 + $0xc70] sm:$0xff]  ;;  %v468_v56 = vld [vmem:[#allocation4 + $0x978] sm:$0xff] }
 0x11d   :  { %1838 = vmatpush.msra.mxu2 %v731_v57  ;;  %1858 = vmatpush.msra.mxu3 %v540_v58  ;;  %v659_v39 = vld [vmem:[#allocation4 + $0xf70] sm:$0xff]  ;;  %v461_v57 = vld [vmem:[#allocation4 + $0x940] sm:$0xff] }
 0x11e   :  { %2863 = vperm.xlu2 %6148, %v2853_v59   ;;  %1799 = vmatpush.msra.mxu0 %v533_v60  ;;  %v557_v58 = vld [vmem:[#allocation4 + $0xc40] sm:$0xff]  ;;  %v462_v60 = vld [vmem:[#allocation4 + $0x948] sm:$0xff] }
 0x11f   :  { %1819 = vmatpush.msra.mxu1 %v629_v61  ;;  %1839 = vmatpush.msra.mxu2 %v725_v62  ;;  %v653_v59 = vld [vmem:[#allocation4 + $0xf40] sm:$0xff]  ;;  %v455_v61 = vld [vmem:[#allocation4 + $0x910] sm:$0xff] }
 0x120   :  { %1859 = vmatpush.msra.mxu3 %v534_v63  ;;  %1800 = vmatpush.msra.mxu0 %v527_v0  ;;  %v551_v62 = vld [vmem:[#allocation4 + $0xc10] sm:$0xff]  ;;  %v456_v0 = vld [vmem:[#allocation4 + $0x918] sm:$0xff] }
 0x121   :  { %1820 = vmatpush.msra.mxu1 %v623_v1  ;;  %1840 = vmatpush.msra.mxu2 %v719_v2  ;;  %v647_v63 = vld [vmem:[#allocation4 + $0xf10] sm:$0xff]  ;;  %v642_v1 = vld [vmem:[#allocation4 + $0xee8] sm:$0xff] }
 0x122   :  { %1860 = vmatpush.msra.mxu3 %v528_v3  ;;  %118 = vperm.xlu1 %6147, %v107_v4   ;;  %v738_v2 = vld [vmem:[#allocation4 + $0x11e8] sm:$0xff]  ;;  %v547_v3 = vld [vmem:[#allocation4 + $0xbf0] sm:$0xff] }
 0x123   :  { %1801 = vmatpush.msra.mxu0 %v521_v5  ;;  %1821 = vmatpush.msra.mxu1 %v617_v6  ;;  %v643_v4 = vld [vmem:[#allocation4 + $0xef0] sm:$0xff]  ;;  %v636_v5 = vld [vmem:[#allocation4 + $0xeb8] sm:$0xff] }
 0x124   :  { %1841 = vmatpush.msra.mxu2 %v713_v11  ;;  %1861 = vmatpush.msra.mxu3 %v522_v12  ;;  %v732_v6 = vld [vmem:[#allocation4 + $0x11b8] sm:$0xff]  ;;  %v541_v11 = vld [vmem:[#allocation4 + $0xbc0] sm:$0xff] }
 0x125   :  { %1802 = vmatpush.msra.mxu0 %v515_v16  ;;  %1822 = vmatpush.msra.mxu1 %v611_v17  ;;  %v637_v12 = vld [vmem:[#allocation4 + $0xec0] sm:$0xff]  ;;  %v630_v16 = vld [vmem:[#allocation4 + $0xe88] sm:$0xff] }
 0x126   :  { %1842 = vmatpush.msra.mxu2 %v707_v19  ;;  %1862 = vmatpush.msra.mxu3 %v516_v20  ;;  %v726_v17 = vld [vmem:[#allocation4 + $0x1188] sm:$0xff]  ;;  %v535_v19 = vld [vmem:[#allocation4 + $0xb90] sm:$0xff] }
 0x127   :  { %1803 = vmatpush.msra.mxu0 %v509_v21  ;;  %1823 = vmatpush.msra.mxu1 %v605_v22  ;;  %v631_v20 = vld [vmem:[#allocation4 + $0xe90] sm:$0xff]  ;;  %v624_v21 = vld [vmem:[#allocation4 + $0xe58] sm:$0xff] }
 0x128   :  { %1843 = vmatpush.msra.mxu2 %v701_v23  ;;  %1863 = vmatpush.msra.mxu3 %v510_v24  ;;  %v720_v22 = vld [vmem:[#allocation4 + $0x1158] sm:$0xff]  ;;  %v529_v23 = vld [vmem:[#allocation4 + $0xb60] sm:$0xff] }
 0x129   :  { %1804 = vmatpush.msra.mxu0 %v503_v25  ;;  %1824 = vmatpush.msra.mxu1 %v599_v26  ;;  %v625_v24 = vld [vmem:[#allocation4 + $0xe60] sm:$0xff]  ;;  %v618_v25 = vld [vmem:[#allocation4 + $0xe28] sm:$0xff] }
 0x12a   :  { %1844 = vmatpush.msra.mxu2 %v695_v27  ;;  %1864 = vmatpush.msra.mxu3 %v504_v28  ;;  %v714_v26 = vld [vmem:[#allocation4 + $0x1128] sm:$0xff]  ;;  %v523_v27 = vld [vmem:[#allocation4 + $0xb30] sm:$0xff] }
 0x12b   :  { %122 = vperm.xlu1 %6147, %v108_v29   ;;  %1805 = vmatpush.msra.mxu0 %v497_v30  ;;  %v619_v28 = vld [vmem:[#allocation4 + $0xe30] sm:$0xff]  ;;  %v612_v29 = vld [vmem:[#allocation4 + $0xdf8] sm:$0xff] }
 0x12c   :  { %1825 = vmatpush.msra.mxu1 %v593_v32  ;;  %1845 = vmatpush.msra.mxu2 %v689_v33  ;;  %v708_v30 = vld [vmem:[#allocation4 + $0x10f8] sm:$0xff]  ;;  %v613_v32 = vld [vmem:[#allocation4 + $0xe00] sm:$0xff]  ;;  %v606_v33 = vld [vmem:[#allocation4 + $0xdc8] sm:$0xff] }
 0x12d   :  { %1865 = vmatpush.msra.mxu3 %v498_v34  ;;  %1806 = vmatpush.msra.mxu0 %v491_v35  ;;  %v702_v34 = vld [vmem:[#allocation4 + $0x10c8] sm:$0xff]  ;;  %v511_v35 = vld [vmem:[#allocation4 + $0xad0] sm:$0xff] }
 0x12e   :  { %1826 = vmatpush.msra.mxu1 %v587_v36  ;;  %1846 = vmatpush.msra.mxu2 %v683_v37  ;;  %v607_v36 = vld [vmem:[#allocation4 + $0xdd0] sm:$0xff]  ;;  %v600_v37 = vld [vmem:[#allocation4 + $0xd98] sm:$0xff] }
 0x12f   :  { %1866 = vmatpush.msra.mxu3 %v492_v40  ;;  %1807 = vmatpush.msra.mxu0 %v485_v41  ;;  %v505_v40 = vld [vmem:[#allocation4 + $0xaa0] sm:$0xff] }
 0x130   :  { %1827 = vmatpush.msra.mxu1 %v581_v42  ;;  %1847 = vmatpush.msra.mxu2 %v677_v43  ;;  %v601_v41 = vld [vmem:[#allocation4 + $0xda0] sm:$0xff]  ;;  %v594_v42 = vld [vmem:[#allocation4 + $0xd68] sm:$0xff] }
 0x131   :  { %1867 = vmatpush.msra.mxu3 %v486_v46  ;;  %1808 = vmatpush.msra.mxu0 %v479_v13  ;;  %v690_v43 = vld [vmem:[#allocation4 + $0x1068] sm:$0xff]  ;;  %v499_v46 = vld [vmem:[#allocation4 + $0xa70] sm:$0xff] }
 0x132   :  { %1828 = vmatpush.msra.mxu1 %v575_v47  ;;  %1848 = vmatpush.msra.mxu2 %v671_v48  ;;  %v595_v13 = vld [vmem:[#allocation4 + $0xd70] sm:$0xff]  ;;  %v588_v47 = vld [vmem:[#allocation4 + $0xd38] sm:$0xff] }
 0x133   :  { %1868 = vmatpush.msra.mxu3 %v480_v49  ;;  %2881 = vperm.xlu1 %6147, %v2856_v14   ;;  %v684_v48 = vld [vmem:[#allocation4 + $0x1038] sm:$0xff]  ;;  %v493_v14 = vld [vmem:[#allocation4 + $0xa40] sm:$0xff] }
 0x134   :  { %1809 = vmatpush.msra.mxu0 %v473_v15  ;;  %1829 = vmatpush.msra.mxu1 %v569_v50  ;;  %v589_v49 = vld [vmem:[#allocation4 + $0xd40] sm:$0xff]  ;;  %v582_v15 = vld [vmem:[#allocation4 + $0xd08] sm:$0xff] }
 0x135   :  { %1849 = vmatpush.msra.mxu2 %v665_v52  ;;  %1869 = vmatpush.msra.mxu3 %v474_v53  ;;  %v678_v50 = vld [vmem:[#allocation4 + $0x1008] sm:$0xff]  ;;  %v487_v52 = vld [vmem:[#allocation4 + $0xa10] sm:$0xff] }
 0x136   :  { %1810 = vmatpush.msra.mxu0 %v467_v54  ;;  %1830 = vmatpush.msra.mxu1 %v563_v55  ;;  %v583_v53 = vld [vmem:[#allocation4 + $0xd10] sm:$0xff]  ;;  %v6493_v54 = vpop.f32.mrf.mxu0  ;;  %v576_v55 = vld [vmem:[#allocation4 + $0xcd8] sm:$0xff] }
 0x137   :  { %1850 = vmatpush.msra.mxu2 %v659_v39  ;;  %1870 = vmatpush.msra.mxu3 %v468_v56  ;;  %v672_v39 = vld [vmem:[#allocation4 + $0xfd8] sm:$0xff]  ;;  %v6495_v56 = vpop.f32.mrf.mxu1 }
 0x138   :  { %1811 = vmatpush.msra.mxu0 %v461_v57  ;;  %1831 = vmatpush.msra.mxu1 %v557_v58  ;;  %v481_v57 = vld [vmem:[#allocation4 + $0x9e0] sm:$0xff] }
 0x139   :  { %1851 = vmatpush.msra.mxu2 %v653_v59  ;;  %1871 = vmatpush.msra.mxu3 %v462_v60  ;;  %v577_v58 = vld [vmem:[#allocation4 + $0xce0] sm:$0xff]  ;;  %v570_v59 = vld [vmem:[#allocation4 + $0xca8] sm:$0xff] }
 0x13a   :  { %1812 = vmatpush.msra.mxu0 %v455_v61  ;;  %1832 = vmatpush.msra.mxu1 %v551_v62  ;;  %v666_v60 = vld [vmem:[#allocation4 + $0xfa8] sm:$0xff]  ;;  %v6497_v61 = vpop.f32.mrf.mxu2  ;;  %v475_v62 = vld [vmem:[#allocation4 + $0x9b0] sm:$0xff] }
 0x13b   :  { %1852 = vmatpush.msra.mxu2 %v647_v63  ;;  %1872 = vmatpush.msra.mxu3 %v456_v0  ;;  %v571_v63 = vld [vmem:[#allocation4 + $0xcb0] sm:$0xff]  ;;  %v564_v0 = vld [vmem:[#allocation4 + $0xc78] sm:$0xff] }
 0x13c   :  { %5126 = vmatmul.msk.f32.vlgmr.msra.gmra.mxu0 %vm6429_vm3, %v6291_v18  ;;  %5127 = vmatmul.msk.f32.vlgmr.msra.gmra.mxu1 %vm6435_vm4, %v6291_v18 }
 0x13d   :  { %5128 = vmatmul.msk.f32.vlgmr.msra.gmra.mxu2 %vm6456_vm5, %v6291_v18  ;;  %5129 = vmatmul.msk.f32.vlgmr.msra.gmra.mxu3 %vm6429_vm3, %v6291_v18 }
 0x13e   :  { %1877 = vmatpush.msrb.mxu0 %v642_v1  ;;  %1897 = vmatpush.msrb.mxu1 %v738_v2  ;;  %v660_v1 = vld [vmem:[#allocation4 + $0xf78] sm:$0xff]  ;;  %v469_v2 = vld [vmem:[#allocation4 + $0x980] sm:$0xff] }
 0x13f   :  { %1917 = vmatpush.msrb.mxu2 %v547_v3  ;;  %1937 = vmatpush.msrb.mxu3 %v643_v4  ;;  %v565_v3 = vld [vmem:[#allocation4 + $0xc80] sm:$0xff]  ;;  %v558_v4 = vld [vmem:[#allocation4 + $0xc48] sm:$0xff] }
 0x140   :  { %1878 = vmatpush.msrb.mxu0 %v636_v5  ;;  %1898 = vmatpush.msrb.mxu1 %v732_v6  ;;  %v654_v5 = vld [vmem:[#allocation4 + $0xf48] sm:$0xff]  ;;  %v463_v6 = vld [vmem:[#allocation4 + $0x950] sm:$0xff] }
 0x141   :  { %1918 = vmatpush.msrb.mxu2 %v541_v11  ;;  %1938 = vmatpush.msrb.mxu3 %v637_v12  ;;  %v559_v11 = vld [vmem:[#allocation4 + $0xc50] sm:$0xff]  ;;  %v6499_v12 = vpop.f32.mrf.mxu3 }
 0x142   :  { %1879 = vmatpush.msrb.mxu0 %v630_v16  ;;  %1899 = vmatpush.msrb.mxu1 %v726_v17  ;;  %v552_v16 = vld [vmem:[#allocation4 + $0xc18] sm:$0xff] }
 0x143   :  { %1919 = vmatpush.msrb.mxu2 %v535_v19  ;;  %1939 = vmatpush.msrb.mxu3 %v631_v20  ;;  %v648_v17 = vld [vmem:[#allocation4 + $0xf18] sm:$0xff]  ;;  %v457_v19 = vld [vmem:[#allocation4 + $0x920] sm:$0xff] }
 0x144   :  { %1880 = vmatpush.msrb.mxu0 %v624_v21  ;;  %1900 = vmatpush.msrb.mxu1 %v720_v22  ;;  %v553_v20 = vld [vmem:[#allocation4 + $0xc20] sm:$0xff]  ;;  %v6501_v21 = vpop.f32.mrf.mxu0  ;;  %v6503_v22 = vpop.f32.mrf.mxu1 }
 0x145   :  { %1920 = vmatpush.msrb.mxu2 %v529_v23  ;;  %1940 = vmatpush.msrb.mxu3 %v625_v24  ;;  %v739_v23 = vld [vmem:[#allocation4 + $0x11f0] sm:$0xff]  ;;  %v548_v24 = vld [vmem:[#allocation4 + $0xbf8] sm:$0xff] }
 0x146   :  { %1881 = vmatpush.msrb.mxu0 %v618_v25  ;;  %1901 = vmatpush.msrb.mxu1 %v714_v26  ;;  %v6505_v25 = vpop.f32.mrf.mxu2  ;;  %v644_v26 = vld [vmem:[#allocation4 + $0xef8] sm:$0xff] }
 0x147   :  { %1921 = vmatpush.msrb.mxu2 %v523_v27  ;;  %1941 = vmatpush.msrb.mxu3 %v619_v28  ;;  %v740_v27 = vld [vmem:[#allocation4 + $0x11f8] sm:$0xff]  ;;  %v733_v28 = vld [vmem:[#allocation4 + $0x11c0] sm:$0xff] }
 0x148   :  { %1882 = vmatpush.msrb.mxu0 %v612_v29  ;;  %1902 = vmatpush.msrb.mxu1 %v708_v30  ;;  %v542_v29 = vld [vmem:[#allocation4 + $0xbc8] sm:$0xff] }
 0x149   :  { %1922 = vmatpush.msrb.mxu2 %v517_v31  ;;  %1942 = vmatpush.msrb.mxu3 %v613_v32  ;;  %v638_v30 = vld [vmem:[#allocation4 + $0xec8] sm:$0xff]  ;;  %v727_v32 = vld [vmem:[#allocation4 + $0x1190] sm:$0xff] }
 0x14a   :  { %1883 = vmatpush.msrb.mxu0 %v606_v33  ;;  %1903 = vmatpush.msrb.mxu1 %v702_v34  ;;  %v734_v31 = vld [vmem:[#allocation4 + $0x11c8] sm:$0xff]  ;;  %v536_v33 = vld [vmem:[#allocation4 + $0xb98] sm:$0xff]  ;;  %v6092_v34 = vld [vmem:[#allocation6 + $0x4ac] sm:$0xf0] }
 0x14b   :  { %1923 = vmatpush.msrb.mxu2 %v511_v35  ;;  %1943 = vmatpush.msrb.mxu3 %v607_v36  ;;  %v632_v35 = vld [vmem:[#allocation4 + $0xe98] sm:$0xff] }
 0x14c   :  { %1884 = vmatpush.msrb.mxu0 %v600_v37  ;;  %1904 = vmatpush.msrb.mxu1 %v696_v38  ;;  %v728_v36 = vld [vmem:[#allocation4 + $0x1198] sm:$0xff]  ;;  %v6524_v37 = vpop.f32.mrf.mxu3  ;;  %v6526_v38 = vpop.f32.mrf.mxu0 }
 0x14d   :  { %1924 = vmatpush.msrb.mxu2 %v505_v40  ;;  %1944 = vmatpush.msrb.mxu3 %v601_v41  ;;  %v721_v40 = vld [vmem:[#allocation4 + $0x1160] sm:$0xff]  ;;  %v530_v41 = vld [vmem:[#allocation4 + $0xb68] sm:$0xff] }
 0x14e   :  { %1885 = vmatpush.msrb.mxu0 %v594_v42  ;;  %1905 = vmatpush.msrb.mxu1 %v690_v43  ;;  %v1514_v42 = vpop.f32.mrf.mxu1  ;;  %v626_v43 = vld [vmem:[#allocation4 + $0xe68] sm:$0xff] }
 0x14f   :  { %1925 = vmatpush.msrb.mxu2 %v499_v46  ;;  %1945 = vmatpush.msrb.mxu3 %v595_v13  ;;  %v715_v46 = vld [vmem:[#allocation4 + $0x1130] sm:$0xff]  ;;  %v524_v13 = vld [vmem:[#allocation4 + $0xb38] sm:$0xff] }
 0x150   :  { %1886 = vmatpush.msrb.mxu0 %v588_v47  ;;  %1906 = vmatpush.msrb.mxu1 %v684_v48  ;;  %v6292_v47 = vmov 0.0   ;;  %v1534_v48 = vpop.f32.mrf.mxu2 }
 0x151   :  { %1926 = vmatpush.msrb.mxu2 %v493_v14  ;;  %1946 = vmatpush.msrb.mxu3 %v589_v49  ;;  %92 = vst.msk [vmem:[#allocation2] sm:$0x3f] %vm6520_vm6, %v6292_v47  ;;  %v620_v14 = vld [vmem:[#allocation4 + $0xe38] sm:$0xff] }
 0x152   :  { %1887 = vmatpush.msrb.mxu0 %v582_v15  ;;  %1907 = vmatpush.msrb.mxu1 %v678_v50  ;;  %v716_v49 = vld [vmem:[#allocation4 + $0x1138] sm:$0xff]  ;;  %93 = vst.msk [vmem:[#allocation2 + $0x6] sm:$0x3f] %vm6520_vm6, %v6292_v47  ;;  %v709_v15 = vld [vmem:[#allocation4 + $0x1100] sm:$0xff]  ;;  %v518_v50 = vld [vmem:[#allocation4 + $0xb08] sm:$0xff] }
 0x153   :  { %1927 = vmatpush.msrb.mxu2 %v487_v52  ;;  %1947 = vmatpush.msrb.mxu3 %v583_v53  ;;  %94 = vst.msk [vmem:[#allocation2 + $0xc] sm:$0x3f] %vm6520_vm6, %v6292_v47  ;;  %v614_v52 = vld [vmem:[#allocation4 + $0xe08] sm:$0xff] }
 0x154   :  { %1888 = vmatpush.msrb.mxu0 %v576_v55  ;;  %1908 = vmatpush.msrb.mxu1 %v672_v39  ;;  %v710_v53 = vld [vmem:[#allocation4 + $0x1108] sm:$0xff]  ;;  %95 = vst.msk [vmem:[#allocation2 + $0x12] sm:$0x3f] %vm6520_vm6, %v6292_v47  ;;  %v703_v55 = vld [vmem:[#allocation4 + $0x10d0] sm:$0xff]  ;;  %v512_v39 = vld [vmem:[#allocation4 + $0xad8] sm:$0xff] }
 0x155   :  { %1928 = vmatpush.msrb.mxu2 %v481_v57  ;;  %1948 = vmatpush.msrb.mxu3 %v577_v58  ;;  %v608_v57 = vld [vmem:[#allocation4 + $0xdd8] sm:$0xff] }
 0x156   :  { %1889 = vmatpush.msrb.mxu0 %v570_v59  ;;  %1909 = vmatpush.msrb.mxu1 %v666_v60  ;;  %v704_v58 = vld [vmem:[#allocation4 + $0x10d8] sm:$0xff]  ;;  %v1554_v59 = vpop.f32.mrf.mxu3  ;;  %v1574_v60 = vpop.f32.mrf.mxu0 }
 0x157   :  { %1929 = vmatpush.msrb.mxu2 %v475_v62  ;;  %1949 = vmatpush.msrb.mxu3 %v571_v63  ;;  %v697_v62 = vld [vmem:[#allocation4 + $0x10a0] sm:$0xff]  ;;  %v506_v63 = vld [vmem:[#allocation4 + $0xaa8] sm:$0xff]  ;;  %v572_v47 = vld [vmem:[#allocation4 + $0xcb8] sm:$0xff] }
 0x158   :  { %1890 = vmatpush.msrb.mxu0 %v564_v0  ;;  %1910 = vmatpush.msrb.mxu1 %v660_v1  ;;  %v1594_v0 = vpop.f32.mrf.mxu1  ;;  %v602_v1 = vld [vmem:[#allocation4 + $0xda8] sm:$0xff] }
 0x159   :  { %1930 = vmatpush.msrb.mxu2 %v469_v2  ;;  %1950 = vmatpush.msrb.mxu3 %v565_v3  ;;  %v698_v2 = vld [vmem:[#allocation4 + $0x10a8] sm:$0xff]  ;;  %v691_v3 = vld [vmem:[#allocation4 + $0x1070] sm:$0xff] }
 0x15a   :  { %1891 = vmatpush.msrb.mxu0 %v558_v4  ;;  %1911 = vmatpush.msrb.mxu1 %v654_v5  ;;  %v500_v4 = vld [vmem:[#allocation4 + $0xa78] sm:$0xff]  ;;  %v1415_v5 = vadd.f32 %v6501_v21, %v6499_v12  ;;  %v679_v12 = vld [vmem:[#allocation4 + $0x1010] sm:$0xff] }
 0x15b   :  { %1931 = vmatpush.msrb.mxu2 %v463_v6  ;;  %1951 = vmatpush.msrb.mxu3 %v559_v11  ;;  %v1614_v6 = vpop.f32.mrf.mxu2  ;;  %v596_v11 = vld [vmem:[#allocation4 + $0xd78] sm:$0xff] }
 0x15c   :  { %1892 = vmatpush.msrb.mxu0 %v552_v16  ;;  %1912 = vmatpush.msrb.mxu1 %v648_v17  ;;  %v692_v16 = vld [vmem:[#allocation4 + $0x1078] sm:$0xff]  ;;  %v1535_v17 = vadd.f32 %v1534_v48, %v1514_v42 }
 0x15d   :  { %1932 = vmatpush.msrb.mxu2 %v457_v19  ;;  %1952 = vmatpush.msrb.mxu3 %v553_v20  ;;  %v1595_v19 = vadd.f32 %v1594_v0, %v1574_v60  ;;  %v685_v20 = vld [vmem:[#allocation4 + $0x1040] sm:$0xff]  ;;  %v488_v21 = vld [vmem:[#allocation4 + $0xa18] sm:$0xff] }
 0x15e   :  { %5130 = vmatmul.msk.f32.vlgmr.msrb.gmra.mxu0 %vm6435_vm4, %v6291_v18  ;;  %5131 = vmatmul.msk.f32.vlgmr.msrb.gmra.mxu1 %vm6456_vm5, %v6291_v18  ;;  %v668_v48 = vld [vmem:[#allocation4 + $0xfb8] sm:$0xff]  ;;  %v161_v0 = vld [vmem:[#allocation2] sm:$0x3f] }
 0x15f   :  { %5132 = vmatmul.msk.f32.vlgmr.msrb.gmra.mxu2 %vm6429_vm3, %v6291_v18  ;;  %5133 = vmatmul.msk.f32.vlgmr.msrb.gmra.mxu3 %vm6435_vm4, %v6291_v18 }
 0x160   :  { %1957 = vmatpush.msra.mxu0 %v739_v23  ;;  %1977 = vmatpush.msra.mxu1 %v548_v24  ;;  %v494_v23 = vld [vmem:[#allocation4 + $0xa48] sm:$0xff] }
 0x161   :  { %1997 = vmatpush.msra.mxu2 %v644_v26  ;;  %2017 = vmatpush.msra.mxu3 %v740_v27  ;;  %v590_v24 = vld [vmem:[#allocation4 + $0xd48] sm:$0xff]  ;;  %v1475_v27 = vadd.f32 %v6524_v37, %v6505_v25 }
 0x162   :  { %1958 = vmatpush.msra.mxu0 %v733_v28  ;;  %1978 = vmatpush.msra.mxu1 %v542_v29  ;;  %v686_v26 = vld [vmem:[#allocation4 + $0x1048] sm:$0xff]  ;;  %v1615_v28 = vadd.f32 %v1614_v6, %v1595_v19  ;;  %v1435_v29 = vadd.f32 %v6503_v22, %v1415_v5  ;;  %v667_v22 = vld [vmem:[#allocation4 + $0xfb0] sm:$0xff] }
 0x163   :  { %1998 = vmatpush.msra.mxu2 %v638_v30  ;;  %2018 = vmatpush.msra.mxu3 %v734_v31  ;;  %v584_v30 = vld [vmem:[#allocation4 + $0xd18] sm:$0xff]  ;;  %v578_v37 = vld [vmem:[#allocation4 + $0xce8] sm:$0xff]  ;;  %v927_v19 = vld [vmem:[#allocation4 + $0x17d0] sm:$0xff] }
 0x164   :  { %1959 = vmatpush.msra.mxu0 %v727_v32  ;;  %1979 = vmatpush.msra.mxu1 %v536_v33  ;;  %v680_v31 = vld [vmem:[#allocation4 + $0x1018] sm:$0xff]  ;;  %v1495_v32 = vadd.f32 %v6526_v38, %v1475_v27  ;;  %v1555_v33 = vadd.f32 %v1554_v59, %v1535_v17  ;;  %v1355_v38 = vadd.f32 %v6495_v56, %v6493_v54  ;;  %v566_v54 = vld [vmem:[#allocation4 + $0xc88] sm:$0xff]  ;;  %v831_v17 = vld [vmem:[#allocation4 + $0x14d0] sm:$0xff] }
 0x165   :  { %1999 = vmatpush.msra.mxu2 %v632_v35  ;;  %2019 = vmatpush.msra.mxu3 %v728_v36  ;;  %v1634_v35 = vpop.f32.mrf.mxu3  ;;  %v673_v36 = vld [vmem:[#allocation4 + $0xfe0] sm:$0xff]  ;;  %v662_v56 = vld [vmem:[#allocation4 + $0xf88] sm:$0xff]  ;;  %v464_v59 = vld [vmem:[#allocation4 + $0x958] sm:$0xff] }
 0x166   :  { %1960 = vmatpush.msra.mxu0 %v721_v40  ;;  %1980 = vmatpush.msra.mxu1 %v530_v41  ;;  %v482_v40 = vld [vmem:[#allocation4 + $0x9e8] sm:$0xff]  ;;  %v921_v27 = vld [vmem:[#allocation4 + $0x17a0] sm:$0xff] }
 0x167   :  { %2000 = vmatpush.msra.mxu2 %v626_v43  ;;  %2020 = vmatpush.msra.mxu3 %v722_v7  ;;  %v674_v41 = vld [vmem:[#allocation4 + $0xfe8] sm:$0xff]  ;;  %v2784_v43 = vrot.slane %v1615_v28, 4  ;;  %v476_v7 = vld [vmem:[#allocation4 + $0x9b8] sm:$0xff] }
 0x168   :  { %1961 = vmatpush.msra.mxu0 %v715_v46  ;;  %1981 = vmatpush.msra.mxu1 %v524_v13  ;;  %v2781_v13 = vrot.slane %v1435_v29, 7  ;;  %v554_v5 = vld [vmem:[#allocation4 + $0xc28] sm:$0xff]  ;;  %v915_v29 = vld [vmem:[#allocation4 + $0x1770] sm:$0xff] }
 0x169   :  { %2001 = vmatpush.msra.mxu2 %v620_v14  ;;  %2021 = vmatpush.msra.mxu3 %v716_v49  ;;  %v2782_v49 = vrot.slane %v1495_v32, 6  ;;  %v650_v6 = vld [vmem:[#allocation4 + $0xf28] sm:$0xff]  ;;  %v909_v32 = vld [vmem:[#allocation4 + $0x1740] sm:$0xff] }
 0x16a   :  { %1962 = vmatpush.msra.mxu0 %v709_v15  ;;  %1982 = vmatpush.msra.mxu1 %v518_v50  ;;  %v2783_v15 = vrot.slane %v1555_v33, 5  ;;  %v661_v50 = vld [vmem:[#allocation4 + $0xf80] sm:$0xff] }
 0x16b   :  { %2002 = vmatpush.msra.mxu2 %v614_v52  ;;  %2022 = vmatpush.msra.mxu3 %v710_v53  ;;  %v470_v52 = vld [vmem:[#allocation4 + $0x988] sm:$0xff]  ;;  %v1375_v53 = vadd.f32 %v6497_v61, %v1355_v38  ;;  %v560_v61 = vld [vmem:[#allocation4 + $0xc58] sm:$0xff]  ;;  %v993_v38 = vld [vmem:[#allocation4 + $0x19e0] sm:$0xff] }
 0x16c   :  { %1963 = vmatpush.msra.mxu0 %v703_v55  ;;  %1983 = vmatpush.msra.mxu1 %v512_v39 }
 0x16d   :  { %2003 = vmatpush.msra.mxu2 %v608_v57  ;;  %2023 = vmatpush.msra.mxu3 %v704_v58  ;;  %v2806_v57 = vsel %vm7239_vm7, %v2783_v15, %v2784_v43  ;;  %v655_v58 = vld [vmem:[#allocation4 + $0xf50] sm:$0xff]  ;;  %v801_v43 = vld [vmem:[#allocation4 + $0x13e0] sm:$0xff]  ;;  %v796_v15 = vld [vmem:[#allocation4 + $0x13b8] sm:$0xff] }
 0x16e   :  { %1964 = vmatpush.msra.mxu0 %v697_v62  ;;  %1984 = vmatpush.msra.mxu1 %v506_v63  ;;  %v2802_v62 = vsel %vm2801_vm8, %v1375_v53, %v2781_v13  ;;  %v656_v63 = vld [vmem:[#allocation4 + $0xf58] sm:$0xff]  ;;  %v802_v13 = vld [vmem:[#allocation4 + $0x13e8] sm:$0xff]  ;;  %v885_v53 = vld [vmem:[#allocation4 + $0x1680] sm:$0xff] }
 0x16f   :  { %2004 = vmatpush.msra.mxu2 %v602_v1  ;;  %2024 = vmatpush.msra.mxu3 %v698_v2  ;;  %v2804_v2 = vsel %vm2803_vm10, %v2802_v62, %v2782_v49  ;;  %v987_v49 = vld [vmem:[#allocation4 + $0x19b0] sm:$0xff]  ;;  %v777_v62 = vld [vmem:[#allocation4 + $0x1320] sm:$0xff] }
 0x170   :  { %1965 = vmatpush.msra.mxu0 %v691_v3  ;;  %1985 = vmatpush.msra.mxu1 %v500_v4  ;;  %v649_v3 = vld [vmem:[#allocation4 + $0xf20] sm:$0xff]  ;;  %v458_v4 = vld [vmem:[#allocation4 + $0x928] sm:$0xff] }
 0x171   :  { %2005 = vmatpush.msra.mxu2 %v596_v11  ;;  %2025 = vmatpush.msra.mxu3 %v692_v16 }
 0x172   :  { %1966 = vmatpush.msra.mxu0 %v685_v20  ;;  %1986 = vmatpush.msra.mxu1 %v494_v23  ;;  %v1023_v20 = vld [vmem:[#allocation4 + $0x1ad0] sm:$0xff]  ;;  %v832_v23 = vld [vmem:[#allocation4 + $0x14d8] sm:$0xff] }
 0x173   :  { %2006 = vmatpush.msra.mxu2 %v590_v24  ;;  %2026 = vmatpush.msra.mxu3 %v686_v26  ;;  %v1654_v25 = vpop.f32.mrf.mxu0  ;;  %v1674_v46 = vpop.f32.mrf.mxu1  ;;  %v825_v26 = vld [vmem:[#allocation4 + $0x14a0] sm:$0xff] }
 0x174   :  { %1967 = vmatpush.msra.mxu0 %v679_v12  ;;  %1987 = vmatpush.msra.mxu1 %v488_v21  ;;  %v1655_v42 = vadd.f32 %v1654_v25, %v1634_v35  ;;  %v826_v12 = vld [vmem:[#allocation4 + $0x14a8] sm:$0xff]  ;;  %v819_v21 = vld [vmem:[#allocation4 + $0x1470] sm:$0xff]  ;;  %v1005_v35 = vld [vmem:[#allocation4 + $0x1a40] sm:$0xff] }
 0x175   :  { %2007 = vmatpush.msra.mxu2 %v584_v30  ;;  %2027 = vmatpush.msra.mxu3 %v680_v31  ;;  %v820_v31 = vld [vmem:[#allocation4 + $0x1478] sm:$0xff]  ;;  %v903_v25 = vld [vmem:[#allocation4 + $0x1710] sm:$0xff] }
 0x176   :  { %1968 = vmatpush.msra.mxu0 %v673_v36  ;;  %1988 = vmatpush.msra.mxu1 %v482_v40  ;;  %v1675_v14 = vadd.f32 %v1674_v46, %v1655_v42  ;;  %v814_v36 = vld [vmem:[#allocation4 + $0x1448] sm:$0xff]  ;;  %v807_v40 = vld [vmem:[#allocation4 + $0x1410] sm:$0xff] }
 0x177   :  { %2008 = vmatpush.msra.mxu2 %v578_v37  ;;  %2028 = vmatpush.msra.mxu3 %v674_v41  ;;  %v999_v37 = vld [vmem:[#allocation4 + $0x1a10] sm:$0xff]  ;;  %v808_v41 = vld [vmem:[#allocation4 + $0x1418] sm:$0xff] }
 0x178   :  { %1969 = vmatpush.msra.mxu0 %v667_v22  ;;  %1989 = vmatpush.msra.mxu1 %v476_v7  ;;  %v2864_v55 = vpop.permute.xlu2 %2863  ;;  %v2785_v39 = vrot.slane %v1675_v14, 3  ;;  %v897_v22 = vld [vmem:[#allocation4 + $0x16e0] sm:$0xff]  ;;  %v891_v14 = vld [vmem:[#allocation4 + $0x16b0] sm:$0xff] }
 0x179   :  { %2009 = vmatpush.msra.mxu2 %v572_v47  ;;  %2029 = vmatpush.msra.mxu3 %v668_v48  ;;  %v6546_v60 = vperm.slane %v2864_v55, 0  ;;  %v795_v48 = vld [vmem:[#allocation4 + $0x13b0] sm:$0xff]  ;;  %v790_v55 = vld [vmem:[#allocation4 + $0x1388] sm:$0xff] }
 0x17a   :  { %1970 = vmatpush.msra.mxu0 %v661_v50  ;;  %1990 = vmatpush.msra.mxu1 %v470_v52  ;;  %v2808_v1 = vsel %vm7236_vm9, %v2806_v57, %v2785_v39  ;;  %v789_v52 = vld [vmem:[#allocation4 + $0x1380] sm:$0xff]  ;;  %v783_v39 = vld [vmem:[#allocation4 + $0x1350] sm:$0xff] }
 0x17b   :  { %2010 = vmatpush.msra.mxu2 %v566_v54  ;;  %2030 = vmatpush.msra.mxu3 %v662_v56  ;;  %6150 = vrcp.f32 %v6546_v60  ;;  %v2810_v11 = vsel %vm7227_vm11, %v2804_v2, %v2808_v1  ;;  %vm2890_vm12 = vweird.f32 %v6546_v60  ;;  %v2896_v42 = vand.u32 2147483648, %v6546_v60  ;;  %v981_v56 = vld [vmem:[#allocation4 + $0x1980] sm:$0xff]  ;;  %v879_v57 = vld [vmem:[#allocation4 + $0x1650] sm:$0xff]  ;;  %v778_v1 = vld [vmem:[#allocation4 + $0x1328] sm:$0xff] }
 0x17c   :  { %1971 = vmatpush.msra.mxu0 %v655_v58  ;;  %1991 = vmatpush.msra.mxu1 %v464_v59  ;;  %v2830_v16 = vadd.f32 %v2810_v11, %v161_v0  ;;  %v2894_v46 = vand.u32 2147483647, %v6546_v60  ;;  %v975_v58 = vld [vmem:[#allocation4 + $0x1950] sm:$0xff]  ;;  %v784_v59 = vld [vmem:[#allocation4 + $0x1358] sm:$0xff]  ;;  %v969_v0 = vld [vmem:[#allocation4 + $0x1920] sm:$0xff] }
 0x17d   :  { %2011 = vmatpush.msra.mxu2 %v560_v61  ;;  %2031 = vmatpush.msra.mxu3 %v656_v63  ;;  %v2897_v50 = vor.u32 1.1754944e-38, %v2896_v42  ;;  %v873_v61 = vld [vmem:[#allocation4 + $0x1620] sm:$0xff]  ;;  %v771_v2 = vld [vmem:[#allocation4 + $0x12f0] sm:$0xff] }
 0x17e   :  { %1972 = vmatpush.msra.mxu0 %v649_v3  ;;  %1992 = vmatpush.msra.mxu1 %v458_v4  ;;  %2838 = vst.msk [vmem:[#allocation2] sm:$0x3f] %vm6520_vm6, %v2830_v16  ;;  %vm2895_vm15 = vcmp.eq.f32.partialorder %v2894_v46, 8.507059e+37  ;;  %v867_v3 = vld [vmem:[#allocation4 + $0x15f0] sm:$0xff]  ;;  %v765_v11 = vld [vmem:[#allocation4 + $0x12c0] sm:$0xff]  ;;  %v1012_v46 = vld [vmem:[#allocation4 + $0x1a78] sm:$0xff] }
 0x17f   :  { %2012 = vmatpush.msra.mxu2 %v554_v5  ;;  %2032 = vmatpush.msra.mxu3 %v650_v6  ;;  %v963_v4 = vld [vmem:[#allocation4 + $0x18f0] sm:$0xff]  ;;  %v772_v5 = vld [vmem:[#allocation4 + $0x12f8] sm:$0xff]  ;;  %v861_v16 = vld [vmem:[#allocation4 + $0x15c0] sm:$0xff] }
 0x180   :  { %5134 = vmatmul.msk.f32.vlgmr.msra.gmra.mxu0 %vm6456_vm5, %v6291_v18  ;;  %5135 = vmatmul.msk.f32.vlgmr.msra.gmra.mxu1 %vm6429_vm3, %v6291_v18  ;;  %v2846_v42 = vld [vmem:[%s7219_s0 + $0x1] sm:$0x1] }
 0x181   :  { %v6561_v24 = vpop.eup %6150  ;;  %5136 = vmatmul.msk.f32.vlgmr.msra.gmra.mxu2 %vm6435_vm4, %v6291_v18  ;;  %5137 = vmatmul.msk.f32.vlgmr.msra.gmra.mxu3 %vm6456_vm5, %v6291_v18  ;;  %v2850_v47 = vcvt.s32.f32 %v2846_v42  ;;  %v844_v42 = vld [vmem:[#allocation4 + $0x1538] sm:$0xff] }
 0x182   :  { %v2886_v28 = vmul.f32 %v6561_v24, %v6546_v60  ;;  %2037 = vmatpush.msrb.mxu0 %v831_v17  ;;  %2057 = vmatpush.msrb.mxu1 %v927_v19  ;;  %vm2891_vm13 = vweird.f32 %v6561_v24  ;;  %v957_v17 = vld [vmem:[#allocation4 + $0x18c0] sm:$0xff]  ;;  %v766_v19 = vld [vmem:[#allocation4 + $0x12c8] sm:$0xff] }
 0x183   :  { %2077 = vmatpush.msrb.mxu2 %v1023_v20  ;;  %2097 = vmatpush.msrb.mxu3 %v832_v23  ;;  %vm6581_vm14 = vmor %vm2890_vm12, %vm2891_vm13  ;;  %v759_v20 = vld [vmem:[#allocation4 + $0x1290] sm:$0xff] }
 0x184   :  { %v2887_v30 = vsub.f32 1.0, %v2886_v28  ;;  %2038 = vmatpush.msrb.mxu0 %v825_v26  ;;  %2058 = vmatpush.msrb.mxu1 %v921_v27  ;;  %v855_v23 = vld [vmem:[#allocation4 + $0x1590] sm:$0xff]  ;;  %v760_v26 = vld [vmem:[#allocation4 + $0x1298] sm:$0xff]  ;;  %v753_v27 = vld [vmem:[#allocation4 + $0x1260] sm:$0xff] }
 0x185   :  { %2078 = vmatpush.msrb.mxu2 %v1017_v44  ;;  %2098 = vmatpush.msrb.mxu3 %v826_v12  ;;  %v2857_v63 = vld [vmem:[#allocation2] sm:$0x3f] }
 0x186   :  { %v2888_v33 = vmul.f32 %v6561_v24, %v2887_v30  ;;  %2039 = vmatpush.msrb.mxu0 %v819_v21  ;;  %2059 = vmatpush.msrb.mxu1 %v915_v29  ;;  %v849_v28 = vld [vmem:[#allocation4 + $0x1560] sm:$0xff]  ;;  %v754_v12 = vld [vmem:[#allocation4 + $0x1268] sm:$0xff]  ;;  %v747_v21 = vld [vmem:[#allocation4 + $0x1230] sm:$0xff] }
 0x187   :  { %2079 = vmatpush.msrb.mxu2 %v1011_v45  ;;  %2099 = vmatpush.msrb.mxu3 %v820_v31  ;;  %v945_v44 = vld [vmem:[#allocation4 + $0x1860] sm:$0xff]  ;;  %v843_v29 = vld [vmem:[#allocation4 + $0x1530] sm:$0xff]  ;;  %v748_v45 = vld [vmem:[#allocation4 + $0x1238] sm:$0xff] }
 0x188   :  { %2040 = vmatpush.msrb.mxu0 %v813_v51  ;;  %2060 = vmatpush.msrb.mxu1 %v909_v32  ;;  %v2889_v7 = vadd.f32 %v6561_v24, %v2888_v33  ;;  %v939_v30 = vld [vmem:[#allocation4 + $0x1830] sm:$0xff]  ;;  %v741_v31 = vld [vmem:[#allocation4 + $0x1200] sm:$0xff]  ;;  %v742_v33 = vld [vmem:[#allocation4 + $0x1208] sm:$0xff] }
 0x189   :  { %2080 = vmatpush.msrb.mxu2 %v1005_v35  ;;  %2100 = vmatpush.msrb.mxu3 %v814_v36  ;;  %v837_v51 = vld [vmem:[#allocation4 + $0x1500] sm:$0xff]  ;;  %v928_v35 = vld [vmem:[#allocation4 + $0x17d8] sm:$0xff] }
 0x18a   :  { %2041 = vmatpush.msrb.mxu0 %v807_v40  ;;  %2061 = vmatpush.msrb.mxu1 %v903_v25  ;;  %v2893_v54 = vsel %vm6581_vm14, %v6561_v24, %v2889_v7  ;;  %v951_v24 = vld [vmem:[#allocation4 + $0x1890] sm:$0xff]  ;;  %v933_v32 = vld [vmem:[#allocation4 + $0x1800] sm:$0xff]  ;;  %v1024_v36 = vld [vmem:[#allocation4 + $0x1ad8] sm:$0xff] }
 0x18b   :  { %2081 = vmatpush.msrb.mxu2 %v999_v37  ;;  %2101 = vmatpush.msrb.mxu3 %v808_v41  ;;  %v2898_v60 = vsel %vm2895_vm15, %v2897_v50, %v2893_v54  ;;  %v833_v40 = vld [vmem:[#allocation4 + $0x14e0] sm:$0xff]  ;;  %v922_v37 = vld [vmem:[#allocation4 + $0x17a8] sm:$0xff]  ;;  %v916_v7 = vld [vmem:[#allocation4 + $0x1778] sm:$0xff] }
 0x18c   :  { %2042 = vmatpush.msrb.mxu0 %v801_v43  ;;  %2062 = vmatpush.msrb.mxu1 %v897_v22  ;;  %v6588_v6 = vmul.f32 %v2898_v60, %v2857_v63  ;;  %v929_v25 = vld [vmem:[#allocation4 + $0x17e0] sm:$0xff]  ;;  %v1018_v41 = vld [vmem:[#allocation4 + $0x1aa8] sm:$0xff]  ;;  %v827_v43 = vld [vmem:[#allocation4 + $0x14b0] sm:$0xff] }
 0x18d   :  { %2082 = vmatpush.msrb.mxu2 %v993_v38  ;;  %2102 = vmatpush.msrb.mxu3 %v802_v13  ;;  %v923_v22 = vld [vmem:[#allocation4 + $0x17b0] sm:$0xff]  ;;  %v821_v38 = vld [vmem:[#allocation4 + $0x1480] sm:$0xff]  ;;  %v904_v50 = vld [vmem:[#allocation4 + $0x1718] sm:$0xff] }
 0x18e   :  { %2043 = vmatpush.msrb.mxu0 %v795_v48  ;;  %2063 = vmatpush.msrb.mxu1 %v891_v14  ;;  %2949 = vst [vmem:[#allocation1] ss:$9 sm:$0xff] %v6588_v6  ;;  %v917_v13 = vld [vmem:[#allocation4 + $0x1780] sm:$0xff]  ;;  %v910_v48 = vld [vmem:[#allocation4 + $0x1748] sm:$0xff]  ;;  %v988_v60 = vld [vmem:[#allocation4 + $0x19b8] sm:$0xff] }
 0x18f   :  { %2083 = vmatpush.msrb.mxu2 %v987_v49  ;;  %2103 = vmatpush.msrb.mxu3 %v796_v15  ;;  %v1006_v14 = vld [vmem:[#allocation4 + $0x1a48] sm:$0xff]  ;;  %v815_v49 = vld [vmem:[#allocation4 + $0x1450] sm:$0xff]  ;;  %v905_v54 = vld [vmem:[#allocation4 + $0x1720] sm:$0xff] }
 0x190   :  { %2044 = vmatpush.msrb.mxu0 %v789_v52  ;;  %2064 = vmatpush.msrb.mxu1 %v885_v53  ;;  %v911_v15 = vld [vmem:[#allocation4 + $0x1750] sm:$0xff]  ;;  %v1000_v52 = vld [vmem:[#allocation4 + $0x1a18] sm:$0xff]  ;;  %v809_v53 = vld [vmem:[#allocation4 + $0x1420] sm:$0xff] }
 0x191   :  { %2084 = vmatpush.msrb.mxu2 %v981_v56  ;;  %2104 = vmatpush.msrb.mxu3 %v790_v55  ;;  %v2854_v56 = vmax.f32 %v2850_v47, 1.0  ;;  %v898_v55 = vld [vmem:[#allocation4 + $0x16e8] sm:$0xff]  ;;  %v839_v47 = vld [vmem:[#allocation4 + $0x1510] sm:$0xff] }
 0x192   :  { %2045 = vmatpush.msrb.mxu0 %v783_v39  ;;  %2065 = vmatpush.msrb.mxu1 %v879_v57  ;;  %v994_v39 = vld [vmem:[#allocation4 + $0x19e8] sm:$0xff]  ;;  %v803_v57 = vld [vmem:[#allocation4 + $0x13f0] sm:$0xff] }
 0x193   :  { %2085 = vmatpush.msrb.mxu2 %v975_v58  ;;  %2105 = vmatpush.msrb.mxu3 %v784_v59  ;;  %v899_v58 = vld [vmem:[#allocation4 + $0x16f0] sm:$0xff]  ;;  %v892_v59 = vld [vmem:[#allocation4 + $0x16b8] sm:$0xff]  ;;  %v886_v63 = vld [vmem:[#allocation4 + $0x1688] sm:$0xff] }
 0x194   :  { %2046 = vmatpush.msrb.mxu0 %v777_v62  ;;  %2066 = vmatpush.msrb.mxu1 %v873_v61  ;;  %v797_v62 = vld [vmem:[#allocation4 + $0x13c0] sm:$0xff] }
 0x195   :  { %2086 = vmatpush.msrb.mxu2 %v969_v0  ;;  %2106 = vmatpush.msrb.mxu3 %v778_v1  ;;  %v893_v61 = vld [vmem:[#allocation4 + $0x16c0] sm:$0xff]  ;;  %v982_v0 = vld [vmem:[#allocation4 + $0x1988] sm:$0xff]  ;;  %v791_v1 = vld [vmem:[#allocation4 + $0x1390] sm:$0xff] }
 0x196   :  { %2047 = vmatpush.msrb.mxu0 %v771_v2  ;;  %2067 = vmatpush.msrb.mxu1 %v867_v3  ;;  %v887_v2 = vld [vmem:[#allocation4 + $0x1690] sm:$0xff]  ;;  %v880_v3 = vld [vmem:[#allocation4 + $0x1658] sm:$0xff] }
 0x197   :  { %2087 = vmatpush.msrb.mxu2 %v963_v4  ;;  %2107 = vmatpush.msrb.mxu3 %v772_v5  ;;  %v976_v4 = vld [vmem:[#allocation4 + $0x1958] sm:$0xff]  ;;  %v785_v5 = vld [vmem:[#allocation4 + $0x1360] sm:$0xff] }
 0x198   :  { %2048 = vmatpush.msrb.mxu0 %v765_v11  ;;  %2068 = vmatpush.msrb.mxu1 %v861_v16  ;;  %v881_v11 = vld [vmem:[#allocation4 + $0x1660] sm:$0xff]  ;;  %v874_v16 = vld [vmem:[#allocation4 + $0x1628] sm:$0xff] }
 0x199   :  { %2088 = vmatpush.msrb.mxu2 %v957_v17  ;;  %2108 = vmatpush.msrb.mxu3 %v766_v19  ;;  %v119_v17 = vpop.permute.xlu1 %118  ;;  %v970_v19 = vld [vmem:[#allocation4 + $0x1928] sm:$0xff] }
 0x19a   :  { %2049 = vmatpush.msrb.mxu0 %v759_v20  ;;  %2069 = vmatpush.msrb.mxu1 %v855_v23  ;;  %v779_v20 = vld [vmem:[#allocation4 + $0x1330] sm:$0xff]  ;;  %v120_v23 = vperm.slane %v119_v17, 0  ;;  %v894_v17 = vld [vmem:[#allocation4 + $0x16c8] sm:$0xff] }
 0x19b   :  { %2089 = vmatpush.msrb.mxu2 %v951_v24  ;;  %2109 = vmatpush.msrb.mxu3 %v760_v26  ;;  %v875_v24 = vld [vmem:[#allocation4 + $0x1630] sm:$0xff]  ;;  %v868_v26 = vld [vmem:[#allocation4 + $0x15f8] sm:$0xff] }
 0x19c   :  { %2050 = vmatpush.msrb.mxu0 %v753_v27  ;;  %2070 = vmatpush.msrb.mxu1 %v849_v28  ;;  %v964_v27 = vld [vmem:[#allocation4 + $0x18f8] sm:$0xff]  ;;  %v773_v28 = vld [vmem:[#allocation4 + $0x1300] sm:$0xff]  ;;  %vm6595_vm0 = vcmp.lt.s32.totalorder %v6354_v8, %v120_v23  ;;  %vm6600_vm1 = vcmp.lt.s32.totalorder %v6357_v9, %v120_v23  ;;  %vm6605_vm2 = vcmp.lt.s32.totalorder %v6360_v10, %v120_v23 }
 0x19d   :  { %2090 = vmatpush.msrb.mxu2 %v945_v44  ;;  %2110 = vmatpush.msrb.mxu3 %v754_v12  ;;  %v869_v44 = vld [vmem:[#allocation4 + $0x1600] sm:$0xff]  ;;  %v862_v12 = vld [vmem:[#allocation4 + $0x15c8] sm:$0xff]  ;;  %v792_v23 = vld [vmem:[#allocation4 + $0x1398] sm:$0xff] }
 0x19e   :  { %2051 = vmatpush.msrb.mxu0 %v747_v21  ;;  %2071 = vmatpush.msrb.mxu1 %v843_v29  ;;  %v958_v21 = vld [vmem:[#allocation4 + $0x18c8] sm:$0xff]  ;;  %v767_v29 = vld [vmem:[#allocation4 + $0x12d0] sm:$0xff] }
 0x19f   :  { %2091 = vmatpush.msrb.mxu2 %v939_v30  ;;  %2111 = vmatpush.msrb.mxu3 %v748_v45  ;;  %v863_v45 = vld [vmem:[#allocation4 + $0x15d0] sm:$0xff] }
 0x1a0   :  { %2052 = vmatpush.msrb.mxu0 %v741_v31  ;;  %2072 = vmatpush.msrb.mxu1 %v837_v51  ;;  %v1107_v30 = vld [vmem:[#allocation4 + $0x1d70] sm:$0xff]  ;;  %v1114_v31 = vld [vmem:[#allocation4 + $0x1da8] sm:$0xff]  ;;  %v1108_v51 = vld [vmem:[#allocation4 + $0x1d78] sm:$0xff] }
 0x1a1   :  { %2092 = vmatpush.msrb.mxu2 %v933_v32  ;;  %2112 = vmatpush.msrb.mxu3 %v742_v33  ;;  %v856_v32 = vld [vmem:[#allocation4 + $0x1598] sm:$0xff] }
 0x1a2   :  { %2117 = vmatpush.msra.mxu0 %v928_v35  ;;  %2137 = vmatpush.msra.mxu1 %v1024_v36  ;;  %v952_v33 = vld [vmem:[#allocation4 + $0x1898] sm:$0xff]  ;;  %v761_v35 = vld [vmem:[#allocation4 + $0x12a0] sm:$0xff] }
 0x1a3   :  { %2157 = vmatpush.msra.mxu2 %v833_v40  ;;  %2177 = vmatpush.msra.mxu3 %v929_v25  ;;  %v857_v36 = vld [vmem:[#allocation4 + $0x15a0] sm:$0xff]  ;;  %v850_v40 = vld [vmem:[#allocation4 + $0x1568] sm:$0xff] }
 0x1a4   :  { %2118 = vmatpush.msra.mxu0 %v922_v37  ;;  %2138 = vmatpush.msra.mxu1 %v1018_v41  ;;  %v946_v25 = vld [vmem:[#allocation4 + $0x1868] sm:$0xff]  ;;  %v755_v37 = vld [vmem:[#allocation4 + $0x1270] sm:$0xff] }
 0x1a5   :  { %2158 = vmatpush.msra.mxu2 %v827_v43  ;;  %2178 = vmatpush.msra.mxu3 %v923_v22  ;;  %v851_v41 = vld [vmem:[#allocation4 + $0x1570] sm:$0xff]  ;;  %v940_v43 = vld [vmem:[#allocation4 + $0x1838] sm:$0xff]  ;;  %v749_v22 = vld [vmem:[#allocation4 + $0x1240] sm:$0xff] }
 0x1a6   :  { %2119 = vmatpush.msra.mxu0 %v916_v7  ;;  %2139 = vmatpush.msra.mxu1 %v1012_v46  ;;  %v845_v7 = vld [vmem:[#allocation4 + $0x1540] sm:$0xff]  ;;  %v838_v46 = vld [vmem:[#allocation4 + $0x1508] sm:$0xff] }
 0x1a7   :  { %2159 = vmatpush.msra.mxu2 %v821_v38  ;;  %2179 = vmatpush.msra.mxu3 %v917_v13  ;;  %v934_v38 = vld [vmem:[#allocation4 + $0x1808] sm:$0xff]  ;;  %v743_v13 = vld [vmem:[#allocation4 + $0x1210] sm:$0xff] }
 0x1a8   :  { %2120 = vmatpush.msra.mxu0 %v910_v48  ;;  %2140 = vmatpush.msra.mxu1 %v1006_v14  ;;  %v1025_v48 = vld [vmem:[#allocation4 + $0x1ae0] sm:$0xff]  ;;  %v834_v14 = vld [vmem:[#allocation4 + $0x14e8] sm:$0xff] }
 0x1a9   :  { %2160 = vmatpush.msra.mxu2 %v815_v49  ;;  %2180 = vmatpush.msra.mxu3 %v911_v15  ;;  %v930_v49 = vld [vmem:[#allocation4 + $0x17e8] sm:$0xff] }
 0x1aa   :  { %2121 = vmatpush.msra.mxu0 %v904_v50  ;;  %2141 = vmatpush.msra.mxu1 %v1000_v52  ;;  %v1026_v15 = vld [vmem:[#allocation4 + $0x1ae8] sm:$0xff]  ;;  %v1019_v50 = vld [vmem:[#allocation4 + $0x1ab0] sm:$0xff]  ;;  %v828_v52 = vld [vmem:[#allocation4 + $0x14b8] sm:$0xff] }
 0x1ab   :  { %2161 = vmatpush.msra.mxu2 %v809_v53  ;;  %2181 = vmatpush.msra.mxu3 %v905_v54  ;;  %v924_v53 = vld [vmem:[#allocation4 + $0x17b8] sm:$0xff] }
 0x1ac   :  { %2869 = vperm.xlu2 %6148, %v2854_v56   ;;  %2122 = vmatpush.msra.mxu0 %v898_v55  ;;  %v1020_v54 = vld [vmem:[#allocation4 + $0x1ab8] sm:$0xff]  ;;  %v1013_v56 = vld [vmem:[#allocation4 + $0x1a80] sm:$0xff]  ;;  %v822_v55 = vld [vmem:[#allocation4 + $0x1488] sm:$0xff] }
 0x1ad   :  { %2142 = vmatpush.msra.mxu1 %v994_v39  ;;  %2162 = vmatpush.msra.mxu2 %v803_v57  ;;  %v918_v39 = vld [vmem:[#allocation4 + $0x1788] sm:$0xff] }
 0x1ae   :  { %2182 = vmatpush.msra.mxu3 %v899_v58  ;;  %2123 = vmatpush.msra.mxu0 %v892_v59  ;;  %v1014_v57 = vld [vmem:[#allocation4 + $0x1a88] sm:$0xff]  ;;  %v1007_v58 = vld [vmem:[#allocation4 + $0x1a50] sm:$0xff]  ;;  %v816_v59 = vld [vmem:[#allocation4 + $0x1458] sm:$0xff] }
 0x1af   :  { %2143 = vmatpush.msra.mxu1 %v988_v60  ;;  %2163 = vmatpush.msra.mxu2 %v797_v62  ;;  %v912_v60 = vld [vmem:[#allocation4 + $0x1758] sm:$0xff] }
 0x1b0   :  { %2183 = vmatpush.msra.mxu3 %v893_v61  ;;  %2124 = vmatpush.msra.mxu0 %v886_v63  ;;  %v1008_v62 = vld [vmem:[#allocation4 + $0x1a58] sm:$0xff]  ;;  %v1001_v61 = vld [vmem:[#allocation4 + $0x1a20] sm:$0xff]  ;;  %v810_v63 = vld [vmem:[#allocation4 + $0x1428] sm:$0xff] }
 0x1b1   :  { %2144 = vmatpush.msra.mxu1 %v982_v0  ;;  %2164 = vmatpush.msra.mxu2 %v791_v1  ;;  %v906_v0 = vld [vmem:[#allocation4 + $0x1728] sm:$0xff] }
 0x1b2   :  { %2184 = vmatpush.msra.mxu3 %v887_v2  ;;  %2125 = vmatpush.msra.mxu0 %v880_v3  ;;  %v1002_v1 = vld [vmem:[#allocation4 + $0x1a28] sm:$0xff]  ;;  %v995_v2 = vld [vmem:[#allocation4 + $0x19f0] sm:$0xff]  ;;  %v804_v3 = vld [vmem:[#allocation4 + $0x13f8] sm:$0xff] }
 0x1b3   :  { %2145 = vmatpush.msra.mxu1 %v976_v4  ;;  %2165 = vmatpush.msra.mxu2 %v785_v5  ;;  %v900_v4 = vld [vmem:[#allocation4 + $0x16f8] sm:$0xff] }
 0x1b4   :  { %2185 = vmatpush.msra.mxu3 %v881_v11  ;;  %2126 = vmatpush.msra.mxu0 %v874_v16  ;;  %v996_v5 = vld [vmem:[#allocation4 + $0x19f8] sm:$0xff]  ;;  %v989_v11 = vld [vmem:[#allocation4 + $0x19c0] sm:$0xff]  ;;  %v798_v16 = vld [vmem:[#allocation4 + $0x13c8] sm:$0xff] }
 0x1b5   :  { %2146 = vmatpush.msra.mxu1 %v970_v19  ;;  %2166 = vmatpush.msra.mxu2 %v779_v20  ;;  %v990_v19 = vld [vmem:[#allocation4 + $0x19c8] sm:$0xff]  ;;  %v983_v20 = vld [vmem:[#allocation4 + $0x1990] sm:$0xff] }
 0x1b6   :  { %2186 = vmatpush.msra.mxu3 %v875_v24  ;;  %2127 = vmatpush.msra.mxu0 %v868_v26  ;;  %v888_v24 = vld [vmem:[#allocation4 + $0x1698] sm:$0xff] }
 0x1b7   :  { %2147 = vmatpush.msra.mxu1 %v964_v27  ;;  %2167 = vmatpush.msra.mxu2 %v773_v28  ;;  %v984_v26 = vld [vmem:[#allocation4 + $0x1998] sm:$0xff]  ;;  %v977_v27 = vld [vmem:[#allocation4 + $0x1960] sm:$0xff]  ;;  %v786_v28 = vld [vmem:[#allocation4 + $0x1368] sm:$0xff] }
 0x1b8   :  { %2187 = vmatpush.msra.mxu3 %v869_v44  ;;  %2128 = vmatpush.msra.mxu0 %v862_v12  ;;  %v882_v44 = vld [vmem:[#allocation4 + $0x1668] sm:$0xff] }
 0x1b9   :  { %2148 = vmatpush.msra.mxu1 %v958_v21  ;;  %2168 = vmatpush.msra.mxu2 %v767_v29  ;;  %v978_v12 = vld [vmem:[#allocation4 + $0x1968] sm:$0xff]  ;;  %v971_v21 = vld [vmem:[#allocation4 + $0x1930] sm:$0xff]  ;;  %v780_v29 = vld [vmem:[#allocation4 + $0x1338] sm:$0xff] }
 0x1ba   :  { %2188 = vmatpush.msra.mxu3 %v863_v45  ;;  %5138 = vmatmul.msk.f32.vlgmr.msrb.gmra.mxu0 %vm6595_vm0, %v6291_v18  ;;  %v876_v45 = vld [vmem:[#allocation4 + $0x1638] sm:$0xff] }
 0x1bb   :  { %5139 = vmatmul.msk.f32.vlgmr.msrb.gmra.mxu1 %vm6600_vm1, %v6291_v18  ;;  %5140 = vmatmul.msk.f32.vlgmr.msrb.gmra.mxu2 %vm6605_vm2, %v6291_v18 }
 0x1bc   :  { %5141 = vmatmul.msk.f32.vlgmr.msrb.gmra.mxu3 %vm6595_vm0, %v6291_v18  ;;  %2129 = vmatpush.msra.mxu0 %v856_v32  ;;  %v972_v32 = vld [vmem:[#allocation4 + $0x1938] sm:$0xff] }
 0x1bd   :  { %2149 = vmatpush.msra.mxu1 %v952_v33  ;;  %2169 = vmatpush.msra.mxu2 %v761_v35  ;;  %v965_v33 = vld [vmem:[#allocation4 + $0x1900] sm:$0xff]  ;;  %v774_v35 = vld [vmem:[#allocation4 + $0x1308] sm:$0xff] }
 0x1be   :  { %2189 = vmatpush.msra.mxu3 %v857_v36  ;;  %2130 = vmatpush.msra.mxu0 %v850_v40  ;;  %v870_v36 = vld [vmem:[#allocation4 + $0x1608] sm:$0xff] }
 0x1bf   :  { %2150 = vmatpush.msra.mxu1 %v946_v25  ;;  %2170 = vmatpush.msra.mxu2 %v755_v37  ;;  %v966_v40 = vld [vmem:[#allocation4 + $0x1908] sm:$0xff]  ;;  %v959_v25 = vld [vmem:[#allocation4 + $0x18d0] sm:$0xff]  ;;  %v768_v37 = vld [vmem:[#allocation4 + $0x12d8] sm:$0xff] }
 0x1c0   :  { %2190 = vmatpush.msra.mxu3 %v851_v41  ;;  %2131 = vmatpush.msra.mxu0 %v844_v42  ;;  %v864_v41 = vld [vmem:[#allocation4 + $0x15d8] sm:$0xff] }
 0x1c1   :  { %2151 = vmatpush.msra.mxu1 %v940_v43  ;;  %2171 = vmatpush.msra.mxu2 %v749_v22  ;;  %v960_v42 = vld [vmem:[#allocation4 + $0x18d8] sm:$0xff]  ;;  %v953_v43 = vld [vmem:[#allocation4 + $0x18a0] sm:$0xff]  ;;  %v762_v22 = vld [vmem:[#allocation4 + $0x12a8] sm:$0xff] }
 0x1c2   :  { %2191 = vmatpush.msra.mxu3 %v845_v7  ;;  %2132 = vmatpush.msra.mxu0 %v838_v46  ;;  %v858_v7 = vld [vmem:[#allocation4 + $0x15a8] sm:$0xff] }
 0x1c3   :  { %2152 = vmatpush.msra.mxu1 %v934_v38  ;;  %2172 = vmatpush.msra.mxu2 %v743_v13  ;;  %v954_v46 = vld [vmem:[#allocation4 + $0x18a8] sm:$0xff]  ;;  %v947_v38 = vld [vmem:[#allocation4 + $0x1870] sm:$0xff]  ;;  %v756_v13 = vld [vmem:[#allocation4 + $0x1278] sm:$0xff] }
 0x1c4   :  { %2192 = vmatpush.msra.mxu3 %v839_v47  ;;  %5142 = vmatmul.msk.f32.vlgmr.msra.gmra.mxu0 %vm6600_vm1, %v6291_v18  ;;  %v852_v47 = vld [vmem:[#allocation4 + $0x1578] sm:$0xff] }
 0x1c5   :  { %5143 = vmatmul.msk.f32.vlgmr.msra.gmra.mxu1 %vm6605_vm2, %v6291_v18  ;;  %5144 = vmatmul.msk.f32.vlgmr.msra.gmra.mxu2 %vm6595_vm0, %v6291_v18 }
 0x1c6   :  { %5145 = vmatmul.msk.f32.vlgmr.msra.gmra.mxu3 %vm6600_vm1, %v6291_v18  ;;  %2197 = vmatpush.msrb.mxu0 %v1025_v48  ;;  %v948_v48 = vld [vmem:[#allocation4 + $0x1878] sm:$0xff] }
 0x1c7   :  { %2217 = vmatpush.msrb.mxu1 %v834_v14  ;;  %2237 = vmatpush.msrb.mxu2 %v930_v49  ;;  %v941_v14 = vld [vmem:[#allocation4 + $0x1840] sm:$0xff]  ;;  %v750_v49 = vld [vmem:[#allocation4 + $0x1248] sm:$0xff] }
 0x1c8   :  { %2257 = vmatpush.msrb.mxu3 %v1026_v15  ;;  %2198 = vmatpush.msrb.mxu0 %v1019_v50  ;;  %v846_v15 = vld [vmem:[#allocation4 + $0x1548] sm:$0xff] }
 0x1c9   :  { %2218 = vmatpush.msrb.mxu1 %v828_v52  ;;  %2238 = vmatpush.msrb.mxu2 %v924_v53  ;;  %v942_v50 = vld [vmem:[#allocation4 + $0x1848] sm:$0xff]  ;;  %v935_v52 = vld [vmem:[#allocation4 + $0x1810] sm:$0xff]  ;;  %v744_v53 = vld [vmem:[#allocation4 + $0x1218] sm:$0xff] }
 0x1ca   :  { %2258 = vmatpush.msrb.mxu3 %v1020_v54  ;;  %2199 = vmatpush.msrb.mxu0 %v1013_v56  ;;  %v840_v54 = vld [vmem:[#allocation4 + $0x1518] sm:$0xff] }
 0x1cb   :  { %2219 = vmatpush.msrb.mxu1 %v822_v55  ;;  %2239 = vmatpush.msrb.mxu2 %v918_v39  ;;  %v936_v56 = vld [vmem:[#allocation4 + $0x1818] sm:$0xff]  ;;  %v6633_v55 = vpop.f32.mrf.mxu2  ;;  %v835_v39 = vld [vmem:[#allocation4 + $0x14f0] sm:$0xff] }
 0x1cc   :  { %2259 = vmatpush.msrb.mxu3 %v1014_v57  ;;  %2200 = vmatpush.msrb.mxu0 %v1007_v58  ;;  %v6635_v57 = vpop.f32.mrf.mxu3  ;;  %v931_v58 = vld [vmem:[#allocation4 + $0x17f0] sm:$0xff] }
 0x1cd   :  { %2220 = vmatpush.msrb.mxu1 %v816_v59  ;;  %2240 = vmatpush.msrb.mxu2 %v912_v60  ;;  %v1027_v59 = vld [vmem:[#allocation4 + $0x1af0] sm:$0xff]  ;;  %v836_v60 = vld [vmem:[#allocation4 + $0x14f8] sm:$0xff] }
 0x1ce   :  { %2260 = vmatpush.msrb.mxu3 %v1008_v62  ;;  %2201 = vmatpush.msrb.mxu0 %v1001_v61  ;;  %v829_v62 = vld [vmem:[#allocation4 + $0x14c0] sm:$0xff]  ;;  %v6646_v61 = vpop.f32.mrf.mxu0 }
 0x1cf   :  { %2221 = vmatpush.msrb.mxu1 %v810_v63  ;;  %2241 = vmatpush.msrb.mxu2 %v906_v0  ;;  %v925_v63 = vld [vmem:[#allocation4 + $0x17c0] sm:$0xff] }
 0x1d0   :  { %2261 = vmatpush.msrb.mxu3 %v1002_v1  ;;  %2202 = vmatpush.msrb.mxu0 %v995_v2  ;;  %v1021_v0 = vld [vmem:[#allocation4 + $0x1ac0] sm:$0xff]  ;;  %v830_v1 = vld [vmem:[#allocation4 + $0x14c8] sm:$0xff]  ;;  %v823_v2 = vld [vmem:[#allocation4 + $0x1490] sm:$0xff] }
 0x1d1   :  { %2222 = vmatpush.msrb.mxu1 %v804_v3  ;;  %2242 = vmatpush.msrb.mxu2 %v900_v4  ;;  %v919_v3 = vld [vmem:[#allocation4 + $0x1790] sm:$0xff] }
 0x1d2   :  { %2262 = vmatpush.msrb.mxu3 %v996_v5  ;;  %2203 = vmatpush.msrb.mxu0 %v989_v11  ;;  %v1015_v4 = vld [vmem:[#allocation4 + $0x1a90] sm:$0xff]  ;;  %v824_v5 = vld [vmem:[#allocation4 + $0x1498] sm:$0xff]  ;;  %v817_v11 = vld [vmem:[#allocation4 + $0x1460] sm:$0xff] }
 0x1d3   :  { %2223 = vmatpush.msrb.mxu1 %v798_v16  ;;  %2243 = vmatpush.msrb.mxu2 %v894_v17  ;;  %v6651_v16 = vpop.f32.mrf.mxu1  ;;  %v6653_v17 = vpop.f32.mrf.mxu2 }
 0x1d4   :  { %2263 = vmatpush.msrb.mxu3 %v990_v19  ;;  %2204 = vmatpush.msrb.mxu0 %v983_v20  ;;  %v913_v19 = vld [vmem:[#allocation4 + $0x1760] sm:$0xff] }
 0x1d5   :  { %2224 = vmatpush.msrb.mxu1 %v792_v23  ;;  %2244 = vmatpush.msrb.mxu2 %v888_v24  ;;  %v1009_v20 = vld [vmem:[#allocation4 + $0x1a60] sm:$0xff]  ;;  %v818_v23 = vld [vmem:[#allocation4 + $0x1468] sm:$0xff]  ;;  %v811_v24 = vld [vmem:[#allocation4 + $0x1430] sm:$0xff] }
 0x1d6   :  { %2264 = vmatpush.msrb.mxu3 %v984_v26  ;;  %2205 = vmatpush.msrb.mxu0 %v977_v27  ;;  %v6655_v26 = vpop.f32.mrf.mxu3  ;;  %v907_v27 = vld [vmem:[#allocation4 + $0x1730] sm:$0xff] }
 0x1d7   :  { %2225 = vmatpush.msrb.mxu1 %v786_v28  ;;  %2245 = vmatpush.msrb.mxu2 %v882_v44  ;;  %v1003_v28 = vld [vmem:[#allocation4 + $0x1a30] sm:$0xff]  ;;  %v812_v44 = vld [vmem:[#allocation4 + $0x1438] sm:$0xff] }
 0x1d8   :  { %2265 = vmatpush.msrb.mxu3 %v978_v12  ;;  %2206 = vmatpush.msrb.mxu0 %v971_v21  ;;  %v805_v12 = vld [vmem:[#allocation4 + $0x1400] sm:$0xff]  ;;  %v6657_v21 = vpop.f32.mrf.mxu0 }
 0x1d9   :  { %2226 = vmatpush.msrb.mxu1 %v780_v29  ;;  %2246 = vmatpush.msrb.mxu2 %v876_v45  ;;  %v901_v29 = vld [vmem:[#allocation4 + $0x1700] sm:$0xff] }
 0x1da   :  { %2266 = vmatpush.msrb.mxu3 %v972_v32  ;;  %2207 = vmatpush.msrb.mxu0 %v965_v33  ;;  %v997_v45 = vld [vmem:[#allocation4 + $0x1a00] sm:$0xff]  ;;  %v806_v32 = vld [vmem:[#allocation4 + $0x1408] sm:$0xff]  ;;  %v799_v33 = vld [vmem:[#allocation4 + $0x13d0] sm:$0xff] }
 0x1db   :  { %2227 = vmatpush.msrb.mxu1 %v774_v35  ;;  %2247 = vmatpush.msrb.mxu2 %v870_v36  ;;  %v895_v35 = vld [vmem:[#allocation4 + $0x16d0] sm:$0xff] }
 0x1dc   :  { %2267 = vmatpush.msrb.mxu3 %v966_v40  ;;  %2208 = vmatpush.msrb.mxu0 %v959_v25  ;;  %v991_v36 = vld [vmem:[#allocation4 + $0x19d0] sm:$0xff]  ;;  %v800_v40 = vld [vmem:[#allocation4 + $0x13d8] sm:$0xff]  ;;  %v793_v25 = vld [vmem:[#allocation4 + $0x13a0] sm:$0xff] }
 0x1dd   :  { %2228 = vmatpush.msrb.mxu1 %v768_v37  ;;  %2248 = vmatpush.msrb.mxu2 %v864_v41  ;;  %v6659_v37 = vpop.f32.mrf.mxu1  ;;  %v6661_v41 = vpop.f32.mrf.mxu2 }
 0x1de   :  { %2268 = vmatpush.msrb.mxu3 %v960_v42  ;;  %2209 = vmatpush.msrb.mxu0 %v953_v43  ;;  %v889_v42 = vld [vmem:[#allocation4 + $0x16a0] sm:$0xff] }
 0x1df   :  { %2229 = vmatpush.msrb.mxu1 %v762_v22  ;;  %2249 = vmatpush.msrb.mxu2 %v858_v7  ;;  %v985_v43 = vld [vmem:[#allocation4 + $0x19a0] sm:$0xff]  ;;  %v794_v22 = vld [vmem:[#allocation4 + $0x13a8] sm:$0xff]  ;;  %v787_v7 = vld [vmem:[#allocation4 + $0x1370] sm:$0xff] }
 0x1e0   :  { %2269 = vmatpush.msrb.mxu3 %v954_v46  ;;  %2210 = vmatpush.msrb.mxu0 %v947_v38  ;;  %v1874_v46 = vpop.f32.mrf.mxu3  ;;  %v883_v38 = vld [vmem:[#allocation4 + $0x1670] sm:$0xff] }
 0x1e1   :  { %2230 = vmatpush.msrb.mxu1 %v756_v13  ;;  %2250 = vmatpush.msrb.mxu2 %v852_v47  ;;  %v979_v13 = vld [vmem:[#allocation4 + $0x1970] sm:$0xff]  ;;  %v788_v47 = vld [vmem:[#allocation4 + $0x1378] sm:$0xff] }
 0x1e2   :  { %2270 = vmatpush.msrb.mxu3 %v948_v48  ;;  %2211 = vmatpush.msrb.mxu0 %v941_v14  ;;  %v781_v48 = vld [vmem:[#allocation4 + $0x1340] sm:$0xff]  ;;  %v1894_v14 = vpop.f32.mrf.mxu0 }
 0x1e3   :  { %2231 = vmatpush.msrb.mxu1 %v750_v49  ;;  %2251 = vmatpush.msrb.mxu2 %v846_v15  ;;  %v877_v49 = vld [vmem:[#allocation4 + $0x1640] sm:$0xff] }
 0x1e4   :  { %2271 = vmatpush.msrb.mxu3 %v942_v50  ;;  %2212 = vmatpush.msrb.mxu0 %v935_v52  ;;  %v973_v15 = vld [vmem:[#allocation4 + $0x1940] sm:$0xff]  ;;  %v782_v50 = vld [vmem:[#allocation4 + $0x1348] sm:$0xff]  ;;  %v775_v52 = vld [vmem:[#allocation4 + $0x1310] sm:$0xff] }
 0x1e5   :  { %2232 = vmatpush.msrb.mxu1 %v744_v53  ;;  %2252 = vmatpush.msrb.mxu2 %v840_v54  ;;  %v871_v53 = vld [vmem:[#allocation4 + $0x1610] sm:$0xff] }
 0x1e6   :  { %2272 = vmatpush.msrb.mxu3 %v936_v56  ;;  %5146 = vmatmul.msk.f32.vlgmr.msrb.gmra.mxu0 %vm6605_vm2, %v6291_v18  ;;  %v967_v54 = vld [vmem:[#allocation4 + $0x1910] sm:$0xff]  ;;  %v776_v56 = vld [vmem:[#allocation4 + $0x1318] sm:$0xff] }
 0x1e7   :  { %5147 = vmatmul.msk.f32.vlgmr.msrb.gmra.mxu1 %vm6595_vm0, %v6291_v18  ;;  %5148 = vmatmul.msk.f32.vlgmr.msrb.gmra.mxu2 %vm6600_vm1, %v6291_v18 }
 0x1e8   :  { %5149 = vmatmul.msk.f32.vlgmr.msrb.gmra.mxu3 %vm6605_vm2, %v6291_v18  ;;  %2277 = vmatpush.msra.mxu0 %v835_v39  ;;  %v769_v39 = vld [vmem:[#allocation4 + $0x12e0] sm:$0xff] }
 0x1e9   :  { %2297 = vmatpush.msra.mxu1 %v931_v58  ;;  %2317 = vmatpush.msra.mxu2 %v1027_v59  ;;  %v1914_v58 = vpop.f32.mrf.mxu1  ;;  %v1934_v59 = vpop.f32.mrf.mxu2 }
 0x1ea   :  { %2337 = vmatpush.msra.mxu3 %v836_v60  ;;  %2278 = vmatpush.msra.mxu0 %v829_v62  ;;  %v865_v60 = vld [vmem:[#allocation4 + $0x15e0] sm:$0xff] }
 0x1eb   :  { %2298 = vmatpush.msra.mxu1 %v925_v63  ;;  %2318 = vmatpush.msra.mxu2 %v1021_v0  ;;  %v961_v62 = vld [vmem:[#allocation4 + $0x18e0] sm:$0xff]  ;;  %v770_v63 = vld [vmem:[#allocation4 + $0x12e8] sm:$0xff]  ;;  %v763_v0 = vld [vmem:[#allocation4 + $0x12b0] sm:$0xff] }
 0x1ec   :  { %2338 = vmatpush.msra.mxu3 %v830_v1  ;;  %2279 = vmatpush.msra.mxu0 %v823_v2  ;;  %v1954_v1 = vpop.f32.mrf.mxu3  ;;  %v859_v2 = vld [vmem:[#allocation4 + $0x15b0] sm:$0xff] }
 0x1ed   :  { %2299 = vmatpush.msra.mxu1 %v919_v3  ;;  %2319 = vmatpush.msra.mxu2 %v1015_v4  ;;  %v955_v3 = vld [vmem:[#allocation4 + $0x18b0] sm:$0xff]  ;;  %v1775_v4 = vadd.f32 %v6653_v17, %v6651_v16 }
 0x1ee   :  { %2339 = vmatpush.msra.mxu3 %v824_v5  ;;  %2280 = vmatpush.msra.mxu0 %v817_v11  ;;  %v764_v5 = vld [vmem:[#allocation4 + $0x12b8] sm:$0xff]  ;;  %v757_v11 = vld [vmem:[#allocation4 + $0x1280] sm:$0xff]  ;;  %v847_v16 = vld [vmem:[#allocation4 + $0x1550] sm:$0xff] }
 0x1ef   :  { %2300 = vmatpush.msra.mxu1 %v913_v19  ;;  %2320 = vmatpush.msra.mxu2 %v1009_v20  ;;  %v853_v19 = vld [vmem:[#allocation4 + $0x1580] sm:$0xff]  ;;  %v943_v17 = vld [vmem:[#allocation4 + $0x1850] sm:$0xff] }
 0x1f0   :  { %2340 = vmatpush.msra.mxu3 %v818_v23  ;;  %2281 = vmatpush.msra.mxu0 %v811_v24  ;;  %v949_v20 = vld [vmem:[#allocation4 + $0x1880] sm:$0xff]  ;;  %v1895_v24 = vadd.f32 %v1894_v14, %v1874_v46  ;;  %v1028_v14 = vld [vmem:[#allocation4 + $0x1af8] sm:$0xff] }
 0x1f1   :  { %2301 = vmatpush.msra.mxu1 %v907_v27  ;;  %2321 = vmatpush.msra.mxu2 %v1003_v28  ;;  %v1955_v27 = vadd.f32 %v1954_v1, %v1934_v59  ;;  %v758_v28 = vld [vmem:[#allocation4 + $0x1288] sm:$0xff] }
 0x1f2   :  { %2341 = vmatpush.msra.mxu3 %v812_v44  ;;  %2282 = vmatpush.msra.mxu0 %v805_v12  ;;  %v751_v44 = vld [vmem:[#allocation4 + $0x1250] sm:$0xff]  ;;  %v1835_v12 = vadd.f32 %v6659_v37, %v6657_v21  ;;  %v1915_v21 = vadd.f32 %v1914_v58, %v1895_v24  ;;  %v746_v37 = vld [vmem:[#allocation4 + $0x1228] sm:$0xff]  ;;  %v920_v58 = vld [vmem:[#allocation4 + $0x1798] sm:$0xff] }
 0x1f3   :  { %2302 = vmatpush.msra.mxu1 %v901_v29  ;;  %2322 = vmatpush.msra.mxu2 %v997_v45  ;;  %v1795_v29 = vadd.f32 %v6655_v26, %v1775_v4  ;;  %v752_v45 = vld [vmem:[#allocation4 + $0x1258] sm:$0xff]  ;;  %v1715_v26 = vadd.f32 %v6635_v57, %v6633_v55  ;;  %v1119_v55 = vld [vmem:[#allocation4 + $0x1dd0] sm:$0xff]  ;;  %v914_v1 = vld [vmem:[#allocation4 + $0x1768] sm:$0xff] }
 0x1f4   :  { %2342 = vmatpush.msra.mxu3 %v806_v32  ;;  %2283 = vmatpush.msra.mxu0 %v799_v33  ;;  %v745_v32 = vld [vmem:[#allocation4 + $0x1220] sm:$0xff]  ;;  %v162_v59 = vld [vmem:[#allocation2 + $0x6] sm:$0x3f]  ;;  %v1004_v24 = vld [vmem:[#allocation4 + $0x1a38] sm:$0xff] }
 0x1f5   :  { %2303 = vmatpush.msra.mxu1 %v895_v35  ;;  %2323 = vmatpush.msra.mxu2 %v991_v36  ;;  %v1855_v35 = vadd.f32 %v6661_v41, %v1835_v12  ;;  %v841_v36 = vld [vmem:[#allocation4 + $0x1520] sm:$0xff]  ;;  %v2786_v46 = vrot.slane %v1795_v29, 7  ;;  %v932_v41 = vld [vmem:[#allocation4 + $0x17f8] sm:$0xff]  ;;  %v1735_v57 = vadd.f32 %v6646_v61, %v1715_v26  ;;  %v902_v12 = vld [vmem:[#allocation4 + $0x1708] sm:$0xff] }
 0x1f6   :  { %2343 = vmatpush.msra.mxu3 %v800_v40  ;;  %2284 = vmatpush.msra.mxu0 %v793_v25  ;;  %v937_v40 = vld [vmem:[#allocation4 + $0x1820] sm:$0xff]  ;;  %v998_v29 = vld [vmem:[#allocation4 + $0x1a08] sm:$0xff] }
 0x1f7   :  { %2304 = vmatpush.msra.mxu1 %v889_v42  ;;  %2324 = vmatpush.msra.mxu2 %v985_v43  ;;  %v1113_v61 = vld [vmem:[#allocation4 + $0x1da0] sm:$0xff]  ;;  %v986_v26 = vld [vmem:[#allocation4 + $0x19a8] sm:$0xff] }
 0x1f8   :  { %2344 = vmatpush.msra.mxu3 %v794_v22  ;;  %2285 = vmatpush.msra.mxu0 %v787_v7  ;;  %v1101_v4 = vld [vmem:[#allocation4 + $0x1d40] sm:$0xff] }
 0x1f9   :  { %2305 = vmatpush.msra.mxu1 %v883_v38  ;;  %2325 = vmatpush.msra.mxu2 %v979_v13 }
 0x1fa   :  { %2345 = vmatpush.msra.mxu3 %v788_v47  ;;  %2286 = vmatpush.msra.mxu0 %v781_v48  ;;  %v2787_v48 = vrot.slane %v1855_v35, 6 }
 0x1fb   :  { %2306 = vmatpush.msra.mxu1 %v877_v49  ;;  %2326 = vmatpush.msra.mxu2 %v973_v15  ;;  %v2788_v49 = vrot.slane %v1915_v21, 5  ;;  %v1215_v15 = vld [vmem:[#allocation4 + $0x20d0] sm:$0xff] }
 0x1fc   :  { %2346 = vmatpush.msra.mxu3 %v782_v50  ;;  %2287 = vmatpush.msra.mxu0 %v775_v52  ;;  %v926_v50 = vld [vmem:[#allocation4 + $0x17c8] sm:$0xff]  ;;  %v1179_v21 = vld [vmem:[#allocation4 + $0x1fb0] sm:$0xff] }
 0x1fd   :  { %2307 = vmatpush.msra.mxu1 %v871_v53  ;;  %2327 = vmatpush.msra.mxu2 %v967_v54  ;;  %v1974_v23 = vpop.f32.mrf.mxu0  ;;  %v1994_v25 = vpop.f32.mrf.mxu1  ;;  %v1022_v52 = vld [vmem:[#allocation4 + $0x1ac8] sm:$0xff]  ;;  %v2811_v54 = vsel %vm2801_vm8, %v1735_v57, %v2786_v46  ;;  %v884_v46 = vld [vmem:[#allocation4 + $0x1678] sm:$0xff] }
 0x1fe   :  { %2347 = vmatpush.msra.mxu3 %v776_v56  ;;  %2288 = vmatpush.msra.mxu0 %v769_v39  ;;  %v1975_v33 = vadd.f32 %v1974_v23, %v1955_v27  ;;  %v1209_v39 = vld [vmem:[#allocation4 + $0x20a0] sm:$0xff]  ;;  %v1095_v27 = vld [vmem:[#allocation4 + $0x1d10] sm:$0xff]  ;;  %v974_v57 = vld [vmem:[#allocation4 + $0x1948] sm:$0xff] }
 0x1ff   :  { %2308 = vmatpush.msra.mxu1 %v865_v60  ;;  %2328 = vmatpush.msra.mxu2 %v961_v62  ;;  %v2812_v60 = vsel %vm2803_vm10, %v2811_v54, %v2787_v48  ;;  %v1016_v62 = vld [vmem:[#allocation4 + $0x1a98] sm:$0xff]  ;;  %v1155_v54 = vld [vmem:[#allocation4 + $0x1ef0] sm:$0xff] }
 0x200   :  { %2348 = vmatpush.msra.mxu3 %v770_v63  ;;  %2289 = vmatpush.msra.mxu0 %v763_v0  ;;  %v2789_v38 = vrot.slane %v1975_v33, 4  ;;  %v1203_v0 = vld [vmem:[#allocation4 + $0x2070] sm:$0xff]  ;;  %v896_v33 = vld [vmem:[#allocation4 + $0x16d8] sm:$0xff] }
 0x201   :  { %2309 = vmatpush.msra.mxu1 %v859_v2  ;;  %2329 = vmatpush.msra.mxu2 %v955_v3  ;;  %v1010_v3 = vld [vmem:[#allocation4 + $0x1a68] sm:$0xff] }
 0x202   :  { %2349 = vmatpush.msra.mxu3 %v764_v5  ;;  %2290 = vmatpush.msra.mxu0 %v757_v11  ;;  %v2813_v56 = vsel %vm7239_vm7, %v2788_v49, %v2789_v38  ;;  %v1065_v49 = vld [vmem:[#allocation4 + $0x1c20] sm:$0xff] }
 0x203   :  { %2310 = vmatpush.msra.mxu1 %v853_v19  ;;  %2330 = vmatpush.msra.mxu2 %v949_v20  ;;  %v1197_v19 = vld [vmem:[#allocation4 + $0x2040] sm:$0xff]  ;;  %v908_v20 = vld [vmem:[#allocation4 + $0x1738] sm:$0xff] }
 0x204   :  { %2350 = vmatpush.msra.mxu3 %v758_v28  ;;  %2291 = vmatpush.msra.mxu0 %v751_v44  ;;  %v2014_v42 = vpop.f32.mrf.mxu2  ;;  %v2034_v7 = vpop.f32.mrf.mxu3  ;;  %v1191_v44 = vld [vmem:[#allocation4 + $0x2010] sm:$0xff] }
 0x205   :  { %2311 = vmatpush.msra.mxu1 %v847_v16  ;;  %2331 = vmatpush.msra.mxu2 %v943_v17  ;;  %v2015_v43 = vadd.f32 %v2014_v42, %v1994_v25  ;;  %v1293_v25 = vld [vmem:[#allocation4 + $0x2340] sm:$0xff] }
 0x206   :  { %2351 = vmatpush.msra.mxu3 %v752_v45  ;;  %2292 = vmatpush.msra.mxu0 %v745_v32  ;;  %v2870_v22 = vpop.permute.xlu2 %2869  ;;  %v1089_v45 = vld [vmem:[#allocation4 + $0x1ce0] sm:$0xff] }
 0x207   :  { %2312 = vmatpush.msra.mxu1 %v841_v36  ;;  %2332 = vmatpush.msra.mxu2 %v937_v40  ;;  %v6671_v13 = vperm.slane %v2870_v22, 0  ;;  %v2035_v47 = vadd.f32 %v2034_v7, %v2015_v43  ;;  %v1185_v32 = vld [vmem:[#allocation4 + $0x1fe0] sm:$0xff]  ;;  %v992_v36 = vld [vmem:[#allocation4 + $0x19d8] sm:$0xff]  ;;  %v1083_v40 = vld [vmem:[#allocation4 + $0x1cb0] sm:$0xff] }
 0x208   :  { %2352 = vmatpush.msra.mxu3 %v746_v37  ;;  %5150 = vmatmul.msk.f32.vlgmr.msra.gmra.mxu0 %vm6595_vm0, %v6291_v18  ;;  %v890_v37 = vld [vmem:[#allocation4 + $0x16a8] sm:$0xff]  ;;  %v1077_v22 = vld [vmem:[#allocation4 + $0x1c80] sm:$0xff] }
 0x209   :  { %5151 = vmatmul.msk.f32.vlgmr.msra.gmra.mxu1 %vm6600_vm1, %v6291_v18  ;;  %5152 = vmatmul.msk.f32.vlgmr.msra.gmra.mxu2 %vm6605_vm2, %v6291_v18  ;;  %6152 = vrcp.f32 %v6671_v13  ;;  %v2790_v53 = vrot.slane %v2035_v47, 3  ;;  %v2911_v28 = vand.u32 2147483648, %v6671_v13  ;;  %vm2905_vm3 = vweird.f32 %v6671_v13  ;;  %v1173_v7 = vld [vmem:[#allocation4 + $0x1f80] sm:$0xff]  ;;  %v1071_v47 = vld [vmem:[#allocation4 + $0x1c50] sm:$0xff] }
 0x20a   :  { %5153 = vmatmul.msk.f32.vlgmr.msra.gmra.mxu3 %vm6595_vm0, %v6291_v18  ;;  %2357 = vmatpush.msrb.mxu0 %v932_v41  ;;  %v2909_v17 = vand.u32 2147483647, %v6671_v13 }
 0x20b   :  { %2377 = vmatpush.msrb.mxu1 %v1028_v14  ;;  %2397 = vmatpush.msrb.mxu2 %v1119_v55  ;;  %v2814_v63 = vsel %vm7236_vm9, %v2813_v56, %v2790_v53  ;;  %v2912_v42 = vor.u32 1.1754944e-38, %v2911_v28  ;;  %v1167_v14 = vld [vmem:[#allocation4 + $0x1f50] sm:$0xff]  ;;  %v878_v55 = vld [vmem:[#allocation4 + $0x1648] sm:$0xff]  ;;  %v1029_v28 = vld [vmem:[#allocation4 + $0x1b00] sm:$0xff] }
 0x20c   :  { %2417 = vmatpush.msrb.mxu3 %v1215_v15  ;;  %2358 = vmatpush.msrb.mxu0 %v926_v50  ;;  %v2815_v2 = vsel %vm7227_vm11, %v2812_v60, %v2814_v63  ;;  %vm2910_vm12 = vcmp.eq.f32.partialorder %v2909_v17, 8.507059e+37  ;;  %v1161_v50 = vld [vmem:[#allocation4 + $0x1f20] sm:$0xff]  ;;  %v1059_v53 = vld [vmem:[#allocation4 + $0x1bf0] sm:$0xff]  ;;  %v866_v56 = vld [vmem:[#allocation4 + $0x15e8] sm:$0xff] }
 0x20d   :  { %2378 = vmatpush.msrb.mxu1 %v1022_v52  ;;  %2398 = vmatpush.msrb.mxu2 %v1113_v61  ;;  %v2831_v5 = vadd.f32 %v2815_v2, %v162_v59  ;;  %v872_v52 = vld [vmem:[#allocation4 + $0x1618] sm:$0xff]  ;;  %v1149_v59 = vld [vmem:[#allocation4 + $0x1ec0] sm:$0xff]  ;;  %v1143_v63 = vld [vmem:[#allocation4 + $0x1e90] sm:$0xff] }
 0x20e   :  { %2418 = vmatpush.msrb.mxu3 %v1209_v39  ;;  %2359 = vmatpush.msrb.mxu0 %v920_v58  ;;  %v968_v61 = vld [vmem:[#allocation4 + $0x1918] sm:$0xff]  ;;  %v962_v39 = vld [vmem:[#allocation4 + $0x18e8] sm:$0xff]  ;;  %v1053_v58 = vld [vmem:[#allocation4 + $0x1bc0] sm:$0xff] }
 0x20f   :  { %v6153_v11 = vpop.eup %6152  ;;  %2379 = vmatpush.msrb.mxu1 %v1016_v62  ;;  %2399 = vmatpush.msrb.mxu2 %v1107_v30  ;;  %2839 = vst.msk [vmem:[#allocation2 + $0x6] sm:$0x3f] %vm6520_vm6, %v2831_v5  ;;  %v860_v60 = vld [vmem:[#allocation4 + $0x15b8] sm:$0xff]  ;;  %v1047_v30 = vld [vmem:[#allocation4 + $0x1b90] sm:$0xff]  ;;  %v1041_v2 = vld [vmem:[#allocation4 + $0x1b60] sm:$0xff] }
 0x210   :  { %2419 = vmatpush.msrb.mxu3 %v1203_v0  ;;  %v2901_v23 = vmul.f32 %v6153_v11, %v6671_v13  ;;  %2360 = vmatpush.msrb.mxu0 %v914_v1  ;;  %vm2906_vm4 = vweird.f32 %v6153_v11  ;;  %v980_v13 = vld [vmem:[#allocation4 + $0x1978] sm:$0xff]  ;;  %v854_v0 = vld [vmem:[#allocation4 + $0x1588] sm:$0xff] }
 0x211   :  { %2380 = vmatpush.msrb.mxu1 %v1010_v3  ;;  %2400 = vmatpush.msrb.mxu2 %v1101_v4  ;;  %vm6701_vm5 = vmor %vm2905_vm3, %vm2906_vm4  ;;  %v956_v62 = vld [vmem:[#allocation4 + $0x18b8] sm:$0xff]  ;;  %v950_v1 = vld [vmem:[#allocation4 + $0x1888] sm:$0xff] }
 0x212   :  { %v2902_v16 = vsub.f32 1.0, %v2901_v23  ;;  %2420 = vmatpush.msrb.mxu3 %v1197_v19  ;;  %2361 = vmatpush.msrb.mxu0 %v908_v20  ;;  %v1137_v3 = vld [vmem:[#allocation4 + $0x1e60] sm:$0xff]  ;;  %v848_v4 = vld [vmem:[#allocation4 + $0x1558] sm:$0xff]  ;;  %v123_v19 = vpop.permute.xlu1 %122  ;;  %v1131_v20 = vld [vmem:[#allocation4 + $0x1e30] sm:$0xff] }
 0x213   :  { %2381 = vmatpush.msrb.mxu1 %v1004_v24  ;;  %2401 = vmatpush.msrb.mxu2 %v1095_v27  ;;  %v944_v5 = vld [vmem:[#allocation4 + $0x1858] sm:$0xff]  ;;  %v842_v23 = vld [vmem:[#allocation4 + $0x1528] sm:$0xff]  ;;  %v6710_v24 = vperm.slane %v123_v19, 0 }
 0x214   :  { %v2903_v35 = vmul.f32 %v6153_v11, %v2902_v16  ;;  %2421 = vmatpush.msrb.mxu3 %v1191_v44  ;;  %2362 = vmatpush.msrb.mxu0 %v902_v12  ;;  %v938_v27 = vld [vmem:[#allocation4 + $0x1828] sm:$0xff]  ;;  %v1125_v44 = vld [vmem:[#allocation4 + $0x1e00] sm:$0xff]  ;;  %v1311_v12 = vld [vmem:[#allocation4 + $0x23d0] sm:$0xff] }
 0x215   :  { %2382 = vmatpush.msrb.mxu1 %v998_v29  ;;  %2402 = vmatpush.msrb.mxu2 %v1089_v45  ;;  %vm6714_vm13 = vcmp.lt.s32.totalorder %v6354_v8, %v6710_v24  ;;  %v1120_v17 = vld [vmem:[#allocation4 + $0x1dd8] sm:$0xff]  ;;  %vm6723_vm14 = vcmp.lt.s32.totalorder %v6357_v9, %v6710_v24  ;;  %v1210_v9 = vld [vmem:[#allocation4 + $0x20a8] sm:$0xff]  ;;  %vm6738_vm15 = vcmp.lt.s32.totalorder %v6360_v10, %v6710_v24  ;;  %v1115_v24 = vld [vmem:[#allocation4 + $0x1db0] sm:$0xff] }
 0x216   :  { %v2904_v43 = vadd.f32 %v6153_v11, %v2903_v35  ;;  %2422 = vmatpush.msrb.mxu3 %v1185_v32  ;;  %2363 = vmatpush.msrb.mxu0 %v896_v33  ;;  %v2858_v41 = vld [vmem:[#allocation2 + $0x6] sm:$0x3f]  ;;  %v1216_v29 = vld [vmem:[#allocation4 + $0x20d8] sm:$0xff]  ;;  %v1305_v32 = vld [vmem:[#allocation4 + $0x23a0] sm:$0xff] }
 0x217   :  { %2383 = vmatpush.msrb.mxu1 %v992_v36  ;;  %2403 = vmatpush.msrb.mxu2 %v1083_v40  ;;  %v1312_v8 = vld [vmem:[#allocation4 + $0x23d8] sm:$0xff]  ;;  %v1306_v33 = vld [vmem:[#allocation4 + $0x23a8] sm:$0xff]  ;;  %v1299_v35 = vld [vmem:[#allocation4 + $0x2370] sm:$0xff] }
 0x218   :  { %v2908_v38 = vsel %vm6701_vm5, %v6153_v11, %v2904_v43  ;;  %2423 = vmatpush.msrb.mxu3 %v1179_v21  ;;  %2364 = vmatpush.msrb.mxu0 %v890_v37  ;;  %v1035_v11 = vld [vmem:[#allocation4 + $0x1b30] sm:$0xff]  ;;  %v1204_v36 = vld [vmem:[#allocation4 + $0x2078] sm:$0xff]  ;;  %v1198_v21 = vld [vmem:[#allocation4 + $0x2048] sm:$0xff] }
 0x219   :  { %v2913_v48 = vsel %vm2910_vm12, %v2912_v42, %v2908_v38  ;;  %2384 = vmatpush.msrb.mxu1 %v986_v26  ;;  %2404 = vmatpush.msrb.mxu2 %v1077_v22  ;;  %v1300_v40 = vld [vmem:[#allocation4 + $0x2378] sm:$0xff]  ;;  %v1102_v42 = vld [vmem:[#allocation4 + $0x1d48] sm:$0xff]  ;;  %v1287_v43 = vld [vmem:[#allocation4 + $0x2310] sm:$0xff] }
 0x21a   :  { %2424 = vmatpush.msrb.mxu3 %v1173_v7  ;;  %2365 = vmatpush.msrb.mxu0 %v884_v46  ;;  %v6707_v15 = vmul.f32 %v2913_v48, %v2858_v41  ;;  %v1294_v37 = vld [vmem:[#allocation4 + $0x2348] sm:$0xff]  ;;  %v1096_v26 = vld [vmem:[#allocation4 + $0x1d18] sm:$0xff]  ;;  %v1281_v46 = vld [vmem:[#allocation4 + $0x22e0] sm:$0xff] }
 0x21b   :  { %2385 = vmatpush.msrb.mxu1 %v980_v13  ;;  %2405 = vmatpush.msrb.mxu2 %v1071_v47  ;;  %v1192_v22 = vld [vmem:[#allocation4 + $0x2018] sm:$0xff]  ;;  %v1090_v41 = vld [vmem:[#allocation4 + $0x1ce8] sm:$0xff]  ;;  %v1275_v47 = vld [vmem:[#allocation4 + $0x22b0] sm:$0xff] }
 0x21c   :  { %2425 = vmatpush.msrb.mxu3 %v1167_v14  ;;  %2366 = vmatpush.msrb.mxu0 %v878_v55  ;;  %2951 = vst [vmem:[#allocation1 + $0x1] ss:$9 sm:$0xff] %v6707_v15  ;;  %v1288_v7 = vld [vmem:[#allocation4 + $0x2318] sm:$0xff]  ;;  %v1186_v38 = vld [vmem:[#allocation4 + $0x1fe8] sm:$0xff] }
 0x21d   :  { %2386 = vmatpush.msrb.mxu1 %v974_v57  ;;  %2406 = vmatpush.msrb.mxu2 %v1065_v49  ;;  %v1282_v13 = vld [vmem:[#allocation4 + $0x22e8] sm:$0xff]  ;;  %v1084_v48 = vld [vmem:[#allocation4 + $0x1cb8] sm:$0xff]  ;;  %v1269_v57 = vld [vmem:[#allocation4 + $0x2280] sm:$0xff] }
 0x21e   :  { %2426 = vmatpush.msrb.mxu3 %v1161_v50  ;;  %2367 = vmatpush.msrb.mxu0 %v872_v52  ;;  %v1180_v14 = vld [vmem:[#allocation4 + $0x1fb8] sm:$0xff]  ;;  %v1078_v49 = vld [vmem:[#allocation4 + $0x1c88] sm:$0xff] }
 0x21f   :  { %2387 = vmatpush.msrb.mxu1 %v968_v61  ;;  %2407 = vmatpush.msrb.mxu2 %v1059_v53  ;;  %v1276_v55 = vld [vmem:[#allocation4 + $0x22b8] sm:$0xff]  ;;  %v1174_v50 = vld [vmem:[#allocation4 + $0x1f88] sm:$0xff]  ;;  %v1263_v61 = vld [vmem:[#allocation4 + $0x2250] sm:$0xff] }
 0x220   :  { %2427 = vmatpush.msrb.mxu3 %v1155_v54  ;;  %2368 = vmatpush.msrb.mxu0 %v866_v56  ;;  %v1270_v52 = vld [vmem:[#allocation4 + $0x2288] sm:$0xff]  ;;  %v1072_v53 = vld [vmem:[#allocation4 + $0x1c58] sm:$0xff] }
 0x221   :  { %2388 = vmatpush.msrb.mxu1 %v962_v39  ;;  %2408 = vmatpush.msrb.mxu2 %v1053_v58  ;;  %v1168_v54 = vld [vmem:[#allocation4 + $0x1f58] sm:$0xff]  ;;  %v1257_v39 = vld [vmem:[#allocation4 + $0x2220] sm:$0xff]  ;;  %v1066_v58 = vld [vmem:[#allocation4 + $0x1c28] sm:$0xff] }
 0x222   :  { %2428 = vmatpush.msrb.mxu3 %v1149_v59  ;;  %2369 = vmatpush.msrb.mxu0 %v860_v60  ;;  %v1264_v56 = vld [vmem:[#allocation4 + $0x2258] sm:$0xff]  ;;  %v1162_v59 = vld [vmem:[#allocation4 + $0x1f28] sm:$0xff] }
 0x223   :  { %2389 = vmatpush.msrb.mxu1 %v956_v62  ;;  %2409 = vmatpush.msrb.mxu2 %v1047_v30  ;;  %v1258_v60 = vld [vmem:[#allocation4 + $0x2228] sm:$0xff]  ;;  %v1251_v62 = vld [vmem:[#allocation4 + $0x21f0] sm:$0xff]  ;;  %v1060_v30 = vld [vmem:[#allocation4 + $0x1bf8] sm:$0xff] }
 0x224   :  { %2429 = vmatpush.msrb.mxu3 %v1143_v63  ;;  %2370 = vmatpush.msrb.mxu0 %v854_v0  ;;  %v1156_v63 = vld [vmem:[#allocation4 + $0x1ef8] sm:$0xff]  ;;  %v1122_v10 = vld [vmem:[#allocation4 + $0x1de8] sm:$0xff] }
 0x225   :  { %2390 = vmatpush.msrb.mxu1 %v950_v1  ;;  %2410 = vmatpush.msrb.mxu2 %v1041_v2  ;;  %v1252_v0 = vld [vmem:[#allocation4 + $0x21f8] sm:$0xff]  ;;  %v1245_v1 = vld [vmem:[#allocation4 + $0x21c0] sm:$0xff]  ;;  %v1054_v2 = vld [vmem:[#allocation4 + $0x1bc8] sm:$0xff] }
 0x226   :  { %2430 = vmatpush.msrb.mxu3 %v1137_v3  ;;  %2371 = vmatpush.msrb.mxu0 %v848_v4  ;;  %v1150_v3 = vld [vmem:[#allocation4 + $0x1ec8] sm:$0xff]  ;;  %v1144_v19 = vld [vmem:[#allocation4 + $0x1e98] sm:$0xff] }
 0x227   :  { %2391 = vmatpush.msrb.mxu1 %v944_v5  ;;  %2411 = vmatpush.msrb.mxu2 %v1035_v11  ;;  %v1246_v4 = vld [vmem:[#allocation4 + $0x21c8] sm:$0xff]  ;;  %v1239_v5 = vld [vmem:[#allocation4 + $0x2190] sm:$0xff]  ;;  %v1048_v11 = vld [vmem:[#allocation4 + $0x1b98] sm:$0xff] }
 0x228   :  { %2431 = vmatpush.msrb.mxu3 %v1131_v20  ;;  %2372 = vmatpush.msrb.mxu0 %v842_v23  ;;  %v1240_v20 = vld [vmem:[#allocation4 + $0x2198] sm:$0xff]  ;;  %v1233_v23 = vld [vmem:[#allocation4 + $0x2160] sm:$0xff] }
 0x229   :  { %2392 = vmatpush.msrb.mxu1 %v938_v27  ;;  %2412 = vmatpush.msrb.mxu2 %v1029_v28  ;;  %v1042_v27 = vld [vmem:[#allocation4 + $0x1b68] sm:$0xff] }
 0x22a   :  { %2432 = vmatpush.msrb.mxu3 %v1125_v44  ;;  %5154 = vmatmul.msk.f32.vlgmr.msrb.gmra.mxu0 %vm6600_vm1, %v6291_v18  ;;  %v1138_v28 = vld [vmem:[#allocation4 + $0x1e68] sm:$0xff] }
 0x22b   :  { %5155 = vmatmul.msk.f32.vlgmr.msrb.gmra.mxu1 %vm6605_vm2, %v6291_v18  ;;  %5156 = vmatmul.msk.f32.vlgmr.msrb.gmra.mxu2 %vm6714_vm13, %v6291_v18  ;;  %v1234_v44 = vld [vmem:[#allocation4 + $0x2168] sm:$0xff] }
 0x22c   :  { %5157 = vmatmul.msk.f32.vlgmr.msrb.gmra.mxu3 %vm6723_vm14, %v6291_v18  ;;  %2437 = vmatpush.msra.mxu0 %v1311_v12  ;;  %v1227_v12 = vld [vmem:[#allocation4 + $0x2130] sm:$0xff] }
 0x22d   :  { %2457 = vmatpush.msra.mxu1 %v1120_v17  ;;  %2477 = vmatpush.msra.mxu2 %v1216_v29  ;;  %v1036_v17 = vld [vmem:[#allocation4 + $0x1b38] sm:$0xff] }
 0x22e   :  { %2497 = vmatpush.msra.mxu3 %v1312_v8  ;;  %2438 = vmatpush.msra.mxu0 %v1305_v32  ;;  %v1132_v29 = vld [vmem:[#allocation4 + $0x1e38] sm:$0xff]  ;;  %v1221_v32 = vld [vmem:[#allocation4 + $0x2100] sm:$0xff] }
 0x22f   :  { %2458 = vmatpush.msra.mxu1 %v1114_v31  ;;  %2478 = vmatpush.msra.mxu2 %v1210_v9  ;;  %v1228_v8 = vld [vmem:[#allocation4 + $0x2138] sm:$0xff]  ;;  %v1030_v31 = vld [vmem:[#allocation4 + $0x1b08] sm:$0xff] }
 0x230   :  { %2498 = vmatpush.msra.mxu3 %v1306_v33  ;;  %2439 = vmatpush.msra.mxu0 %v1299_v35  ;;  %v1126_v9 = vld [vmem:[#allocation4 + $0x1e08] sm:$0xff] }
 0x231   :  { %2459 = vmatpush.msra.mxu1 %v1108_v51  ;;  %2479 = vmatpush.msra.mxu2 %v1204_v36  ;;  %v1222_v33 = vld [vmem:[#allocation4 + $0x2108] sm:$0xff]  ;;  %v1121_v51 = vld [vmem:[#allocation4 + $0x1de0] sm:$0xff] }
 0x232   :  { %2499 = vmatpush.msra.mxu3 %v1300_v40  ;;  %2440 = vmatpush.msra.mxu0 %v1293_v25  ;;  %v1217_v36 = vld [vmem:[#allocation4 + $0x20e0] sm:$0xff]  ;;  %v1211_v25 = vld [vmem:[#allocation4 + $0x20b0] sm:$0xff] }
 0x233   :  { %2460 = vmatpush.msra.mxu1 %v1102_v42  ;;  %2480 = vmatpush.msra.mxu2 %v1198_v21  ;;  %v1313_v40 = vld [vmem:[#allocation4 + $0x23e0] sm:$0xff]  ;;  %v1307_v42 = vld [vmem:[#allocation4 + $0x23b0] sm:$0xff]  ;;  %v1116_v21 = vld [vmem:[#allocation4 + $0x1db8] sm:$0xff] }
 0x234   :  { %2500 = vmatpush.msra.mxu3 %v1294_v37  ;;  %2441 = vmatpush.msra.mxu0 %v1287_v43  ;;  %v1109_v37 = vld [vmem:[#allocation4 + $0x1d80] sm:$0xff] }
 0x235   :  { %2461 = vmatpush.msra.mxu1 %v1096_v26  ;;  %2481 = vmatpush.msra.mxu2 %v1192_v22  ;;  %v1205_v43 = vld [vmem:[#allocation4 + $0x2080] sm:$0xff]  ;;  %v1110_v22 = vld [vmem:[#allocation4 + $0x1d88] sm:$0xff] }
 0x236   :  { %2501 = vmatpush.msra.mxu3 %v1288_v7  ;;  %2442 = vmatpush.msra.mxu0 %v1281_v46  ;;  %v1301_v26 = vld [vmem:[#allocation4 + $0x2380] sm:$0xff]  ;;  %v1103_v7 = vld [vmem:[#allocation4 + $0x1d50] sm:$0xff] }
 0x237   :  { %2462 = vmatpush.msra.mxu1 %v1090_v41  ;;  %2482 = vmatpush.msra.mxu2 %v1186_v38  ;;  %v1199_v46 = vld [vmem:[#allocation4 + $0x2050] sm:$0xff]  ;;  %v1104_v38 = vld [vmem:[#allocation4 + $0x1d58] sm:$0xff] }
 0x238   :  { %2502 = vmatpush.msra.mxu3 %v1282_v13  ;;  %2443 = vmatpush.msra.mxu0 %v1275_v47  ;;  %v1295_v41 = vld [vmem:[#allocation4 + $0x2350] sm:$0xff]  ;;  %v1097_v13 = vld [vmem:[#allocation4 + $0x1d20] sm:$0xff] }
 0x239   :  { %2463 = vmatpush.msra.mxu1 %v1084_v48  ;;  %2483 = vmatpush.msra.mxu2 %v1180_v14  ;;  %v1193_v47 = vld [vmem:[#allocation4 + $0x2020] sm:$0xff]  ;;  %v1098_v14 = vld [vmem:[#allocation4 + $0x1d28] sm:$0xff] }
 0x23a   :  { %2503 = vmatpush.msra.mxu3 %v1276_v55  ;;  %2444 = vmatpush.msra.mxu0 %v1269_v57  ;;  %v1289_v48 = vld [vmem:[#allocation4 + $0x2320] sm:$0xff]  ;;  %v1091_v55 = vld [vmem:[#allocation4 + $0x1cf0] sm:$0xff] }
 0x23b   :  { %2464 = vmatpush.msra.mxu1 %v1078_v49  ;;  %2484 = vmatpush.msra.mxu2 %v1174_v50  ;;  %v1187_v57 = vld [vmem:[#allocation4 + $0x1ff0] sm:$0xff]  ;;  %v1092_v50 = vld [vmem:[#allocation4 + $0x1cf8] sm:$0xff] }
 0x23c   :  { %2504 = vmatpush.msra.mxu3 %v1270_v52  ;;  %2445 = vmatpush.msra.mxu0 %v1263_v61  ;;  %v1283_v49 = vld [vmem:[#allocation4 + $0x22f0] sm:$0xff]  ;;  %v1085_v52 = vld [vmem:[#allocation4 + $0x1cc0] sm:$0xff] }
 0x23d   :  { %2465 = vmatpush.msra.mxu1 %v1072_v53  ;;  %2485 = vmatpush.msra.mxu2 %v1168_v54  ;;  %v1181_v61 = vld [vmem:[#allocation4 + $0x1fc0] sm:$0xff]  ;;  %v1086_v54 = vld [vmem:[#allocation4 + $0x1cc8] sm:$0xff] }
 0x23e   :  { %2505 = vmatpush.msra.mxu3 %v1264_v56  ;;  %2446 = vmatpush.msra.mxu0 %v1257_v39  ;;  %v1277_v53 = vld [vmem:[#allocation4 + $0x22c0] sm:$0xff]  ;;  %v1079_v56 = vld [vmem:[#allocation4 + $0x1c90] sm:$0xff] }
 0x23f   :  { %2466 = vmatpush.msra.mxu1 %v1066_v58  ;;  %2486 = vmatpush.msra.mxu2 %v1162_v59  ;;  %v1175_v39 = vld [vmem:[#allocation4 + $0x1f90] sm:$0xff]  ;;  %v1080_v59 = vld [vmem:[#allocation4 + $0x1c98] sm:$0xff] }
 0x240   :  { %2506 = vmatpush.msra.mxu3 %v1258_v60  ;;  %2447 = vmatpush.msra.mxu0 %v1251_v62  ;;  %v1271_v58 = vld [vmem:[#allocation4 + $0x2290] sm:$0xff]  ;;  %v1073_v60 = vld [vmem:[#allocation4 + $0x1c60] sm:$0xff] }
 0x241   :  { %2467 = vmatpush.msra.mxu1 %v1060_v30  ;;  %2487 = vmatpush.msra.mxu2 %v1156_v63  ;;  %v1169_v62 = vld [vmem:[#allocation4 + $0x1f60] sm:$0xff]  ;;  %v1074_v63 = vld [vmem:[#allocation4 + $0x1c68] sm:$0xff] }
 0x242   :  { %2507 = vmatpush.msra.mxu3 %v1252_v0  ;;  %2448 = vmatpush.msra.mxu0 %v1245_v1  ;;  %v1265_v30 = vld [vmem:[#allocation4 + $0x2260] sm:$0xff]  ;;  %v1067_v0 = vld [vmem:[#allocation4 + $0x1c30] sm:$0xff] }
 0x243   :  { %2468 = vmatpush.msra.mxu1 %v1054_v2  ;;  %2488 = vmatpush.msra.mxu2 %v1150_v3  ;;  %v1163_v1 = vld [vmem:[#allocation4 + $0x1f30] sm:$0xff]  ;;  %v1068_v3 = vld [vmem:[#allocation4 + $0x1c38] sm:$0xff] }
 0x244   :  { %2508 = vmatpush.msra.mxu3 %v1246_v4  ;;  %2449 = vmatpush.msra.mxu0 %v1239_v5  ;;  %v1259_v2 = vld [vmem:[#allocation4 + $0x2230] sm:$0xff]  ;;  %v1061_v4 = vld [vmem:[#allocation4 + $0x1c00] sm:$0xff] }
 0x245   :  { %2469 = vmatpush.msra.mxu1 %v1048_v11  ;;  %2489 = vmatpush.msra.mxu2 %v1144_v19  ;;  %v1157_v5 = vld [vmem:[#allocation4 + $0x1f00] sm:$0xff]  ;;  %v1062_v19 = vld [vmem:[#allocation4 + $0x1c08] sm:$0xff] }
 0x246   :  { %2509 = vmatpush.msra.mxu3 %v1240_v20  ;;  %2450 = vmatpush.msra.mxu0 %v1233_v23  ;;  %v1253_v11 = vld [vmem:[#allocation4 + $0x2200] sm:$0xff]  ;;  %v1055_v20 = vld [vmem:[#allocation4 + $0x1bd0] sm:$0xff] }
 0x247   :  { %2470 = vmatpush.msra.mxu1 %v1042_v27  ;;  %2490 = vmatpush.msra.mxu2 %v1138_v28  ;;  %v1151_v23 = vld [vmem:[#allocation4 + $0x1ed0] sm:$0xff]  ;;  %v1056_v28 = vld [vmem:[#allocation4 + $0x1bd8] sm:$0xff] }
 0x248   :  { %2510 = vmatpush.msra.mxu3 %v1234_v44  ;;  %2451 = vmatpush.msra.mxu0 %v1227_v12  ;;  %v1247_v27 = vld [vmem:[#allocation4 + $0x21d0] sm:$0xff]  ;;  %v1049_v44 = vld [vmem:[#allocation4 + $0x1ba0] sm:$0xff] }
 0x249   :  { %2471 = vmatpush.msra.mxu1 %v1036_v17  ;;  %2491 = vmatpush.msra.mxu2 %v1132_v29  ;;  %v1145_v12 = vld [vmem:[#allocation4 + $0x1ea0] sm:$0xff]  ;;  %v1050_v29 = vld [vmem:[#allocation4 + $0x1ba8] sm:$0xff] }
 0x24a   :  { %2511 = vmatpush.msra.mxu3 %v1228_v8  ;;  %2452 = vmatpush.msra.mxu0 %v1221_v32  ;;  %v1241_v17 = vld [vmem:[#allocation4 + $0x21a0] sm:$0xff]  ;;  %v1043_v8 = vld [vmem:[#allocation4 + $0x1b70] sm:$0xff] }
 0x24b   :  { %2472 = vmatpush.msra.mxu1 %v1030_v31  ;;  %2492 = vmatpush.msra.mxu2 %v1126_v9  ;;  %v1139_v32 = vld [vmem:[#allocation4 + $0x1e70] sm:$0xff]  ;;  %v1044_v9 = vld [vmem:[#allocation4 + $0x1b78] sm:$0xff] }
 0x24c   :  { %2512 = vmatpush.msra.mxu3 %v1222_v33  ;;  %5158 = vmatmul.msk.f32.vlgmr.msra.gmra.mxu0 %vm6738_vm15, %v6291_v18  ;;  %v1235_v31 = vld [vmem:[#allocation4 + $0x2170] sm:$0xff]  ;;  %v1037_v33 = vld [vmem:[#allocation4 + $0x1b40] sm:$0xff] }
 0x24d   :  { %5159 = vmatmul.msk.f32.vlgmr.msra.gmra.mxu1 %vm6714_vm13, %v6291_v18  ;;  %5160 = vmatmul.msk.f32.vlgmr.msra.gmra.mxu2 %vm6723_vm14, %v6291_v18 }
 0x24e   :  { %5161 = vmatmul.msk.f32.vlgmr.msra.gmra.mxu3 %vm6738_vm15, %v6291_v18  ;;  %2517 = vmatpush.msrb.mxu0 %v1121_v51  ;;  %v1133_v51 = vld [vmem:[#allocation4 + $0x1e40] sm:$0xff] }
 0x24f   :  { %2537 = vmatpush.msrb.mxu1 %v1217_v36  ;;  %2557 = vmatpush.msrb.mxu2 %v1313_v40  ;;  %v1229_v36 = vld [vmem:[#allocation4 + $0x2140] sm:$0xff]  ;;  %v1038_v40 = vld [vmem:[#allocation4 + $0x1b48] sm:$0xff] }
 0x250   :  { %2577 = vmatpush.msrb.mxu3 %v1122_v10  ;;  %2518 = vmatpush.msrb.mxu0 %v1115_v24  ;;  %v1031_v10 = vld [vmem:[#allocation4 + $0x1b10] sm:$0xff] }
 0x251   :  { %2538 = vmatpush.msrb.mxu1 %v1211_v25  ;;  %2558 = vmatpush.msrb.mxu2 %v1307_v42  ;;  %v1127_v24 = vld [vmem:[#allocation4 + $0x1e10] sm:$0xff]  ;;  %v1032_v42 = vld [vmem:[#allocation4 + $0x1b18] sm:$0xff] }
 0x252   :  { %2578 = vmatpush.msrb.mxu3 %v1116_v21  ;;  %2519 = vmatpush.msrb.mxu0 %v1109_v37  ;;  %v1223_v25 = vld [vmem:[#allocation4 + $0x2110] sm:$0xff]  ;;  %v1218_v21 = vld [vmem:[#allocation4 + $0x20e8] sm:$0xff] }
 0x253   :  { %2539 = vmatpush.msrb.mxu1 %v1205_v43  ;;  %2559 = vmatpush.msrb.mxu2 %v1301_v26  ;;  %v1314_v37 = vld [vmem:[#allocation4 + $0x23e8] sm:$0xff]  ;;  %v1123_v43 = vld [vmem:[#allocation4 + $0x1df0] sm:$0xff] }
 0x254   :  { %2579 = vmatpush.msrb.mxu3 %v1110_v22  ;;  %2520 = vmatpush.msrb.mxu0 %v1103_v7  ;;  %v1219_v26 = vld [vmem:[#allocation4 + $0x20f0] sm:$0xff]  ;;  %v1212_v22 = vld [vmem:[#allocation4 + $0x20b8] sm:$0xff] }
 0x255   :  { %2540 = vmatpush.msrb.mxu1 %v1199_v46  ;;  %2560 = vmatpush.msrb.mxu2 %v1295_v41  ;;  %v1308_v7 = vld [vmem:[#allocation4 + $0x23b8] sm:$0xff]  ;;  %v1117_v46 = vld [vmem:[#allocation4 + $0x1dc0] sm:$0xff] }
 0x256   :  { %2580 = vmatpush.msrb.mxu3 %v1104_v38  ;;  %2521 = vmatpush.msrb.mxu0 %v1097_v13  ;;  %v1213_v41 = vld [vmem:[#allocation4 + $0x20c0] sm:$0xff]  ;;  %v1206_v38 = vld [vmem:[#allocation4 + $0x2088] sm:$0xff] }
 0x257   :  { %2541 = vmatpush.msrb.mxu1 %v1193_v47  ;;  %2561 = vmatpush.msrb.mxu2 %v1289_v48  ;;  %v1302_v13 = vld [vmem:[#allocation4 + $0x2388] sm:$0xff]  ;;  %v1111_v47 = vld [vmem:[#allocation4 + $0x1d90] sm:$0xff] }
 0x258   :  { %2581 = vmatpush.msrb.mxu3 %v1098_v14  ;;  %2522 = vmatpush.msrb.mxu0 %v1091_v55  ;;  %v1207_v48 = vld [vmem:[#allocation4 + $0x2090] sm:$0xff]  ;;  %v1200_v14 = vld [vmem:[#allocation4 + $0x2058] sm:$0xff] }
 0x259   :  { %2542 = vmatpush.msrb.mxu1 %v1187_v57  ;;  %2562 = vmatpush.msrb.mxu2 %v1283_v49  ;;  %v1296_v55 = vld [vmem:[#allocation4 + $0x2358] sm:$0xff]  ;;  %v1105_v57 = vld [vmem:[#allocation4 + $0x1d60] sm:$0xff] }
 0x25a   :  { %2582 = vmatpush.msrb.mxu3 %v1092_v50  ;;  %2523 = vmatpush.msrb.mxu0 %v1085_v52  ;;  %v1201_v49 = vld [vmem:[#allocation4 + $0x2060] sm:$0xff]  ;;  %v1194_v50 = vld [vmem:[#allocation4 + $0x2028] sm:$0xff] }
 0x25b   :  { %2543 = vmatpush.msrb.mxu1 %v1181_v61  ;;  %2563 = vmatpush.msrb.mxu2 %v1277_v53  ;;  %v1290_v52 = vld [vmem:[#allocation4 + $0x2328] sm:$0xff]  ;;  %v1099_v61 = vld [vmem:[#allocation4 + $0x1d30] sm:$0xff] }
 0x25c   :  { %2583 = vmatpush.msrb.mxu3 %v1086_v54  ;;  %2524 = vmatpush.msrb.mxu0 %v1079_v56  ;;  %v1195_v53 = vld [vmem:[#allocation4 + $0x2030] sm:$0xff]  ;;  %v1188_v54 = vld [vmem:[#allocation4 + $0x1ff8] sm:$0xff] }
 0x25d   :  { %2544 = vmatpush.msrb.mxu1 %v1175_v39  ;;  %2564 = vmatpush.msrb.mxu2 %v1271_v58  ;;  %v1284_v56 = vld [vmem:[#allocation4 + $0x22f8] sm:$0xff]  ;;  %v1093_v39 = vld [vmem:[#allocation4 + $0x1d00] sm:$0xff] }
 0x25e   :  { %2584 = vmatpush.msrb.mxu3 %v1080_v59  ;;  %2525 = vmatpush.msrb.mxu0 %v1073_v60  ;;  %v1189_v58 = vld [vmem:[#allocation4 + $0x2000] sm:$0xff]  ;;  %v1182_v59 = vld [vmem:[#allocation4 + $0x1fc8] sm:$0xff] }
 0x25f   :  { %2545 = vmatpush.msrb.mxu1 %v1169_v62  ;;  %2565 = vmatpush.msrb.mxu2 %v1265_v30  ;;  %v1278_v60 = vld [vmem:[#allocation4 + $0x22c8] sm:$0xff]  ;;  %v1087_v62 = vld [vmem:[#allocation4 + $0x1cd0] sm:$0xff] }
 0x260   :  { %2585 = vmatpush.msrb.mxu3 %v1074_v63  ;;  %2526 = vmatpush.msrb.mxu0 %v1067_v0  ;;  %v1183_v30 = vld [vmem:[#allocation4 + $0x1fd0] sm:$0xff]  ;;  %v1176_v63 = vld [vmem:[#allocation4 + $0x1f98] sm:$0xff] }
 0x261   :  { %2546 = vmatpush.msrb.mxu1 %v1163_v1  ;;  %2566 = vmatpush.msrb.mxu2 %v1259_v2  ;;  %v1272_v0 = vld [vmem:[#allocation4 + $0x2298] sm:$0xff]  ;;  %v1081_v1 = vld [vmem:[#allocation4 + $0x1ca0] sm:$0xff] }
 0x262   :  { %2586 = vmatpush.msrb.mxu3 %v1068_v3  ;;  %2527 = vmatpush.msrb.mxu0 %v1061_v4  ;;  %v1177_v2 = vld [vmem:[#allocation4 + $0x1fa0] sm:$0xff]  ;;  %v1170_v3 = vld [vmem:[#allocation4 + $0x1f68] sm:$0xff] }
 0x263   :  { %2547 = vmatpush.msrb.mxu1 %v1157_v5  ;;  %2567 = vmatpush.msrb.mxu2 %v1253_v11  ;;  %v1266_v4 = vld [vmem:[#allocation4 + $0x2268] sm:$0xff]  ;;  %v1075_v5 = vld [vmem:[#allocation4 + $0x1c70] sm:$0xff] }
 0x264   :  { %2587 = vmatpush.msrb.mxu3 %v1062_v19  ;;  %2528 = vmatpush.msrb.mxu0 %v1055_v20  ;;  %v1171_v11 = vld [vmem:[#allocation4 + $0x1f70] sm:$0xff]  ;;  %v1164_v19 = vld [vmem:[#allocation4 + $0x1f38] sm:$0xff] }
 0x265   :  { %2548 = vmatpush.msrb.mxu1 %v1151_v23  ;;  %2568 = vmatpush.msrb.mxu2 %v1247_v27  ;;  %v1260_v20 = vld [vmem:[#allocation4 + $0x2238] sm:$0xff]  ;;  %v1069_v23 = vld [vmem:[#allocation4 + $0x1c40] sm:$0xff] }
 0x266   :  { %2588 = vmatpush.msrb.mxu3 %v1056_v28  ;;  %2529 = vmatpush.msrb.mxu0 %v1049_v44  ;;  %v1165_v27 = vld [vmem:[#allocation4 + $0x1f40] sm:$0xff]  ;;  %v1158_v28 = vld [vmem:[#allocation4 + $0x1f08] sm:$0xff] }
 0x267   :  { %2549 = vmatpush.msrb.mxu1 %v1145_v12  ;;  %2569 = vmatpush.msrb.mxu2 %v1241_v17  ;;  %v1254_v44 = vld [vmem:[#allocation4 + $0x2208] sm:$0xff]  ;;  %v1063_v12 = vld [vmem:[#allocation4 + $0x1c10] sm:$0xff] }
 0x268   :  { %2589 = vmatpush.msrb.mxu3 %v1050_v29  ;;  %2530 = vmatpush.msrb.mxu0 %v1043_v8  ;;  %v1159_v17 = vld [vmem:[#allocation4 + $0x1f10] sm:$0xff]  ;;  %v1152_v29 = vld [vmem:[#allocation4 + $0x1ed8] sm:$0xff] }
 0x269   :  { %2550 = vmatpush.msrb.mxu1 %v1139_v32  ;;  %2570 = vmatpush.msrb.mxu2 %v1235_v31  ;;  %v1248_v8 = vld [vmem:[#allocation4 + $0x21d8] sm:$0xff]  ;;  %v1057_v32 = vld [vmem:[#allocation4 + $0x1be0] sm:$0xff]  ;;  %v6766_v31 = vpop.f32.mrf.mxu0 }
 0x26a   :  { %2590 = vmatpush.msrb.mxu3 %v1044_v9  ;;  %2531 = vmatpush.msrb.mxu0 %v1037_v33  ;;  %v1153_v9 = vld [vmem:[#allocation4 + $0x1ee0] sm:$0xff]  ;;  %v1146_v33 = vld [vmem:[#allocation4 + $0x1ea8] sm:$0xff] }
 0x26b   :  { %2551 = vmatpush.msrb.mxu1 %v1133_v51  ;;  %2571 = vmatpush.msrb.mxu2 %v1229_v36  ;;  %v6768_v51 = vpop.f32.mrf.mxu1  ;;  %v1242_v36 = vld [vmem:[#allocation4 + $0x21a8] sm:$0xff] }
 0x26c   :  { %2591 = vmatpush.msrb.mxu3 %v1038_v40  ;;  %2532 = vmatpush.msrb.mxu0 %v1031_v10  ;;  %v1051_v40 = vld [vmem:[#allocation4 + $0x1bb0] sm:$0xff] }
 0x26d   :  { %2552 = vmatpush.msrb.mxu1 %v1127_v24  ;;  %2572 = vmatpush.msrb.mxu2 %v1223_v25  ;;  %v1147_v10 = vld [vmem:[#allocation4 + $0x1eb0] sm:$0xff]  ;;  %v1140_v24 = vld [vmem:[#allocation4 + $0x1e78] sm:$0xff]  ;;  %v6770_v25 = vpop.f32.mrf.mxu2 }
 0x26e   :  { %2592 = vmatpush.msrb.mxu3 %v1032_v42  ;;  %5162 = vmatmul.msk.f32.vlgmr.msrb.gmra.mxu0 %vm6714_vm13, %v6291_v18  ;;  %v1236_v42 = vld [vmem:[#allocation4 + $0x2178] sm:$0xff] }
 0x26f   :  { %5163 = vmatmul.msk.f32.vlgmr.msrb.gmra.mxu1 %vm6723_vm14, %v6291_v18  ;;  %5164 = vmatmul.msk.f32.vlgmr.msrb.gmra.mxu2 %vm6738_vm15, %v6291_v18 }
 0x270   :  { %5165 = vmatmul.msk.f32.vlgmr.msrb.gmra.mxu3 %vm6714_vm13, %v6291_v18  ;;  %2597 = vmatpush.msra.mxu0 %v1218_v21  ;;  %v1045_v21 = vld [vmem:[#allocation4 + $0x1b80] sm:$0xff] }
 0x271   :  { %2617 = vmatpush.msra.mxu1 %v1314_v37  ;;  %2637 = vmatpush.msra.mxu2 %v1123_v43  ;;  %v1141_v37 = vld [vmem:[#allocation4 + $0x1e80] sm:$0xff]  ;;  %v1134_v43 = vld [vmem:[#allocation4 + $0x1e48] sm:$0xff] }
 0x272   :  { %2657 = vmatpush.msra.mxu3 %v1219_v26  ;;  %2598 = vmatpush.msra.mxu0 %v1212_v22  ;;  %v1230_v26 = vld [vmem:[#allocation4 + $0x2148] sm:$0xff]  ;;  %v1039_v22 = vld [vmem:[#allocation4 + $0x1b50] sm:$0xff] }
 0x273   :  { %2618 = vmatpush.msra.mxu1 %v1308_v7  ;;  %2638 = vmatpush.msra.mxu2 %v1117_v46  ;;  %v1135_v7 = vld [vmem:[#allocation4 + $0x1e50] sm:$0xff]  ;;  %v1128_v46 = vld [vmem:[#allocation4 + $0x1e18] sm:$0xff] }
 0x274   :  { %2658 = vmatpush.msra.mxu3 %v1213_v41  ;;  %2599 = vmatpush.msra.mxu0 %v1206_v38  ;;  %v1224_v41 = vld [vmem:[#allocation4 + $0x2118] sm:$0xff]  ;;  %v1033_v38 = vld [vmem:[#allocation4 + $0x1b20] sm:$0xff] }
 0x275   :  { %2619 = vmatpush.msra.mxu1 %v1302_v13  ;;  %2639 = vmatpush.msra.mxu2 %v1111_v47  ;;  %v6772_v13 = vpop.f32.mrf.mxu3  ;;  %v1129_v47 = vld [vmem:[#allocation4 + $0x1e20] sm:$0xff] }
 0x276   :  { %2659 = vmatpush.msra.mxu3 %v1207_v48  ;;  %2600 = vmatpush.msra.mxu0 %v1200_v14  ;;  %v6774_v48 = vpop.f32.mrf.mxu0  ;;  %v1315_v14 = vld [vmem:[#allocation4 + $0x23f0] sm:$0xff] }
 0x277   :  { %2620 = vmatpush.msra.mxu1 %v1296_v55  ;;  %2640 = vmatpush.msra.mxu2 %v1105_v57  ;;  %v6776_v55 = vpop.f32.mrf.mxu1  ;;  %v1124_v57 = vld [vmem:[#allocation4 + $0x1df8] sm:$0xff] }
 0x278   :  { %2660 = vmatpush.msra.mxu3 %v1201_v49  ;;  %2601 = vmatpush.msra.mxu0 %v1194_v50  ;;  %v1220_v49 = vld [vmem:[#allocation4 + $0x20f8] sm:$0xff] }
 0x279   :  { %2621 = vmatpush.msra.mxu1 %v1290_v52  ;;  %2641 = vmatpush.msra.mxu2 %v1099_v61  ;;  %v1316_v50 = vld [vmem:[#allocation4 + $0x23f8] sm:$0xff]  ;;  %v1309_v52 = vld [vmem:[#allocation4 + $0x23c0] sm:$0xff]  ;;  %v6787_v61 = vpop.f32.mrf.mxu2 }
 0x27a   :  { %2661 = vmatpush.msra.mxu3 %v1195_v53  ;;  %2602 = vmatpush.msra.mxu0 %v1188_v54  ;;  %v1118_v53 = vld [vmem:[#allocation4 + $0x1dc8] sm:$0xff] }
 0x27b   :  { %2622 = vmatpush.msra.mxu1 %v1284_v56  ;;  %2642 = vmatpush.msra.mxu2 %v1093_v39  ;;  %v1214_v54 = vld [vmem:[#allocation4 + $0x20c8] sm:$0xff]  ;;  %v1303_v39 = vld [vmem:[#allocation4 + $0x2390] sm:$0xff] }
 0x27c   :  { %2662 = vmatpush.msra.mxu3 %v1189_v58  ;;  %2603 = vmatpush.msra.mxu0 %v1182_v59  ;;  %v1310_v56 = vld [vmem:[#allocation4 + $0x23c8] sm:$0xff]  ;;  %v1112_v58 = vld [vmem:[#allocation4 + $0x1d98] sm:$0xff] }
 0x27d   :  { %2623 = vmatpush.msra.mxu1 %v1278_v60  ;;  %2643 = vmatpush.msra.mxu2 %v1087_v62  ;;  %v1208_v59 = vld [vmem:[#allocation4 + $0x2098] sm:$0xff]  ;;  %v1297_v62 = vld [vmem:[#allocation4 + $0x2360] sm:$0xff] }
 0x27e   :  { %2663 = vmatpush.msra.mxu3 %v1183_v30  ;;  %2604 = vmatpush.msra.mxu0 %v1176_v63  ;;  %v1304_v60 = vld [vmem:[#allocation4 + $0x2398] sm:$0xff]  ;;  %v2876_v30 = vpop.permute.xlu0 %2875  ;;  %v1106_v63 = vld [vmem:[#allocation4 + $0x1d68] sm:$0xff] }
 0x27f   :  { %2624 = vmatpush.msra.mxu1 %v1272_v0  ;;  %2644 = vmatpush.msra.mxu2 %v1081_v1  ;;  %v1202_v0 = vld [vmem:[#allocation4 + $0x2068] sm:$0xff]  ;;  %v6792_v1 = vpop.f32.mrf.mxu3 }
 0x280   :  { %2664 = vmatpush.msra.mxu3 %v1177_v2  ;;  %2605 = vmatpush.msra.mxu0 %v1170_v3  ;;  %v6794_v2 = vpop.f32.mrf.mxu0  ;;  %v1298_v3 = vld [vmem:[#allocation4 + $0x2368] sm:$0xff] }
 0x281   :  { %2625 = vmatpush.msra.mxu1 %v1266_v4  ;;  %2645 = vmatpush.msra.mxu2 %v1075_v5  ;;  %v1291_v4 = vld [vmem:[#allocation4 + $0x2330] sm:$0xff]  ;;  %v2234_v5 = vpop.f32.mrf.mxu1 }
 0x282   :  { %2665 = vmatpush.msra.mxu3 %v1171_v11  ;;  %2606 = vmatpush.msra.mxu0 %v1164_v19  ;;  %v1100_v11 = vld [vmem:[#allocation4 + $0x1d38] sm:$0xff] }
 0x283   :  { %2626 = vmatpush.msra.mxu1 %v1260_v20  ;;  %2646 = vmatpush.msra.mxu2 %v1069_v23  ;;  %v1196_v19 = vld [vmem:[#allocation4 + $0x2038] sm:$0xff]  ;;  %v6796_v20 = vperm.slane %v2876_v30, 0  ;;  %v2075_v30 = vadd.f32 %v6768_v51, %v6766_v31 }
 0x284   :  { %2666 = vmatpush.msra.mxu3 %v1165_v27  ;;  %2607 = vmatpush.msra.mxu0 %v1158_v28  ;;  %v1292_v23 = vld [vmem:[#allocation4 + $0x2338] sm:$0xff]  ;;  %v1285_v27 = vld [vmem:[#allocation4 + $0x2300] sm:$0xff]  ;;  %v2254_v28 = vpop.f32.mrf.mxu2 }
 0x285   :  { %2627 = vmatpush.msra.mxu1 %v1254_v44  ;;  %2647 = vmatpush.msra.mxu2 %v1063_v12  ;;  %v1094_v44 = vld [vmem:[#allocation4 + $0x1d08] sm:$0xff]  ;;  %6154 = vrcp.f32 %v6796_v20  ;;  %vm2920_vm1 = vweird.f32 %v6796_v20 }
 0x286   :  { %2667 = vmatpush.msra.mxu3 %v1159_v17  ;;  %2608 = vmatpush.msra.mxu0 %v1152_v29  ;;  %v1190_v12 = vld [vmem:[#allocation4 + $0x2008] sm:$0xff]  ;;  %v1279_v29 = vld [vmem:[#allocation4 + $0x22d0] sm:$0xff] }
 0x287   :  { %2628 = vmatpush.msra.mxu1 %v1248_v8  ;;  %2648 = vmatpush.msra.mxu2 %v1057_v32  ;;  %v1286_v17 = vld [vmem:[#allocation4 + $0x2308] sm:$0xff]  ;;  %v1088_v8 = vld [vmem:[#allocation4 + $0x1cd8] sm:$0xff] }
 0x288   :  { %2668 = vmatpush.msra.mxu3 %v1153_v9  ;;  %2609 = vmatpush.msra.mxu0 %v1146_v33  ;;  %v1184_v32 = vld [vmem:[#allocation4 + $0x1fd8] sm:$0xff]  ;;  %v1273_v33 = vld [vmem:[#allocation4 + $0x22a0] sm:$0xff] }
 0x289   :  { %2629 = vmatpush.msra.mxu1 %v1242_v36  ;;  %2649 = vmatpush.msra.mxu2 %v1051_v40  ;;  %v1280_v9 = vld [vmem:[#allocation4 + $0x22d8] sm:$0xff]  ;;  %v1082_v36 = vld [vmem:[#allocation4 + $0x1ca8] sm:$0xff] }
 0x28a   :  { %2669 = vmatpush.msra.mxu3 %v1147_v10  ;;  %2610 = vmatpush.msra.mxu0 %v1140_v24  ;;  %v1178_v40 = vld [vmem:[#allocation4 + $0x1fa8] sm:$0xff]  ;;  %v2274_v10 = vpop.f32.mrf.mxu3  ;;  %v2294_v24 = vpop.f32.mrf.mxu0 }
 0x28b   :  { %2630 = vmatpush.msra.mxu1 %v1236_v42  ;;  %2650 = vmatpush.msra.mxu2 %v1045_v21  ;;  %v1274_v42 = vld [vmem:[#allocation4 + $0x22a8] sm:$0xff]  ;;  %v1267_v21 = vld [vmem:[#allocation4 + $0x2270] sm:$0xff] }
 0x28c   :  { %2670 = vmatpush.msra.mxu3 %v1141_v37  ;;  %2611 = vmatpush.msra.mxu0 %v1134_v43  ;;  %v2314_v37 = vpop.f32.mrf.mxu1  ;;  %v1076_v43 = vld [vmem:[#allocation4 + $0x1c78] sm:$0xff] }
 0x28d   :  { %2631 = vmatpush.msra.mxu1 %v1230_v26  ;;  %2651 = vmatpush.msra.mxu2 %v1039_v22  ;;  %v1172_v26 = vld [vmem:[#allocation4 + $0x1f78] sm:$0xff]  ;;  %v2135_v22 = vadd.f32 %v6774_v48, %v6772_v13  ;;  %v2195_v13 = vadd.f32 %v6792_v1, %v6787_v61  ;;  %v1154_v61 = vld [vmem:[#allocation4 + $0x1ee8] sm:$0xff]  ;;  %v1243_v1 = vld [vmem:[#allocation4 + $0x21b0] sm:$0xff] }
 0x28e   :  { %2671 = vmatpush.msra.mxu3 %v1135_v7  ;;  %2612 = vmatpush.msra.mxu0 %v1128_v46  ;;  %v1268_v7 = vld [vmem:[#allocation4 + $0x2278] sm:$0xff]  ;;  %v1261_v46 = vld [vmem:[#allocation4 + $0x2240] sm:$0xff] }
 0x28f   :  { %2632 = vmatpush.msra.mxu1 %v1224_v41  ;;  %2652 = vmatpush.msra.mxu2 %v1033_v38  ;;  %v2334_v41 = vpop.f32.mrf.mxu2  ;;  %v1070_v38 = vld [vmem:[#allocation4 + $0x1c48] sm:$0xff]  ;;  %v1064_v48 = vld [vmem:[#allocation4 + $0x1c18] sm:$0xff] }
 0x290   :  { %2672 = vmatpush.msra.mxu3 %v1129_v47  ;;  %5166 = vmatmul.msk.f32.vlgmr.msra.gmra.mxu0 %vm6723_vm14, %v6291_v18  ;;  %v1166_v47 = vld [vmem:[#allocation4 + $0x1f48] sm:$0xff] }
 0x291   :  { %5167 = vmatmul.msk.f32.vlgmr.msra.gmra.mxu1 %vm6738_vm15, %v6291_v18  ;;  %5168 = vmatmul.msk.f32.vlgmr.msra.gmra.mxu2 %vm6714_vm13, %v6291_v18 }
 0x292   :  { %5169 = vmatmul.msk.f32.vlgmr.msra.gmra.mxu3 %vm6723_vm14, %v6291_v18  ;;  %2677 = vmatpush.msrb.mxu0 %v1315_v14  ;;  %v6801_v14 = vpop.eup %6154 }
 0x293   :  { %2697 = vmatpush.msrb.mxu1 %v1124_v57  ;;  %2717 = vmatpush.msrb.mxu2 %v1220_v49  ;;  %v2255_v57 = vadd.f32 %v2254_v28, %v2234_v5  ;;  %v2315_v49 = vadd.f32 %v2314_v37, %v2294_v24  ;;  %v1148_v5 = vld [vmem:[#allocation4 + $0x1eb8] sm:$0xff]  ;;  %vm2921_vm0 = vweird.f32 %v6801_v14 }
 0x294   :  { %2737 = vmatpush.msrb.mxu3 %v1316_v50  ;;  %2678 = vmatpush.msrb.mxu0 %v1309_v52  ;;  %v1262_v50 = vld [vmem:[#allocation4 + $0x2248] sm:$0xff]  ;;  %v1255_v52 = vld [vmem:[#allocation4 + $0x2210] sm:$0xff]  ;;  %vm2922_vm2 = vmor %vm2920_vm1, %vm2921_vm0  ;;  %vm7229_vm0 = vcmask 1042433   ;;  %vm7238_vm1 = vcmask 1044484  }
 0x295   :  { %2698 = vmatpush.msrb.mxu1 %v1118_v53  ;;  %2718 = vmatpush.msrb.mxu2 %v1214_v54  ;;  %v1160_v53 = vld [vmem:[#allocation4 + $0x1f18] sm:$0xff]  ;;  %v2155_v54 = vadd.f32 %v6776_v55, %v2135_v22  ;;  %v1250_v55 = vld [vmem:[#allocation4 + $0x21e8] sm:$0xff] }
 0x296   :  { %2738 = vmatpush.msrb.mxu3 %v1310_v56  ;;  %2679 = vmatpush.msrb.mxu0 %v1303_v39  ;;  %v2335_v56 = vadd.f32 %v2334_v41, %v2315_v49  ;;  %v1256_v39 = vld [vmem:[#allocation4 + $0x2218] sm:$0xff]  ;;  %v1130_v22 = vld [vmem:[#allocation4 + $0x1e28] sm:$0xff]  ;;  %v2924_v49 = vand.u32 2147483647, %v6796_v20 }
 0x297   :  { %2699 = vmatpush.msrb.mxu1 %v1112_v58  ;;  %2719 = vmatpush.msrb.mxu2 %v1208_v59  ;;  %v1249_v58 = vld [vmem:[#allocation4 + $0x21e0] sm:$0xff]  ;;  %v2916_v59 = vmul.f32 %v6801_v14, %v6796_v20  ;;  %v163_v37 = vld [vmem:[#allocation2 + $0xc] sm:$0x3f] }
 0x298   :  { %2739 = vmatpush.msrb.mxu3 %v1304_v60  ;;  %2680 = vmatpush.msrb.mxu0 %v1297_v62  ;;  %v2215_v60 = vadd.f32 %v6794_v2, %v2195_v13  ;;  %v1058_v62 = vld [vmem:[#allocation4 + $0x1be8] sm:$0xff]  ;;  %v2791_v2 = vrot.slane %v2155_v54, 7  ;;  %vm2925_vm3 = vcmp.eq.f32.partialorder %v2924_v49, 8.507059e+37  ;;  %v5624_v49 = vld [vmem:[#allocation6 + $0x380] sm:$0xf] }
 0x299   :  { %2700 = vmatpush.msrb.mxu1 %v1106_v63  ;;  %2720 = vmatpush.msrb.mxu2 %v1202_v0  ;;  %v2275_v63 = vadd.f32 %v2274_v10, %v2255_v57  ;;  %v2354_v0 = vpop.f32.mrf.mxu3  ;;  %v2917_v31 = vsub.f32 1.0, %v2916_v59  ;;  %v2926_v57 = vand.u32 2147483648, %v6796_v20 }
 0x29a   :  { %2740 = vmatpush.msrb.mxu3 %v1298_v3  ;;  %2681 = vmatpush.msrb.mxu0 %v1291_v4  ;;  %v1052_v4 = vld [vmem:[#allocation4 + $0x1bb8] sm:$0xff]  ;;  %v2792_v51 = vrot.slane %v2215_v60, 6  ;;  %v6004_v60 = vld [vmem:[#allocation6 + $0x1ec] sm:$0xf0] }
 0x29b   :  { %2701 = vmatpush.msrb.mxu1 %v1100_v11  ;;  %2721 = vmatpush.msrb.mxu2 %v1196_v19  ;;  %v2794_v19 = vrot.slane %v2335_v56, 4 }
 0x29c   :  { %2741 = vmatpush.msrb.mxu3 %v1292_v23  ;;  %2682 = vmatpush.msrb.mxu0 %v1285_v27  ;;  %v1244_v23 = vld [vmem:[#allocation4 + $0x21b8] sm:$0xff]  ;;  %v1237_v27 = vld [vmem:[#allocation4 + $0x2180] sm:$0xff] }
 0x29d   :  { %2702 = vmatpush.msrb.mxu1 %v1094_v44  ;;  %2722 = vmatpush.msrb.mxu2 %v1190_v12  ;;  %v1046_v44 = vld [vmem:[#allocation4 + $0x1b88] sm:$0xff] }
 0x29e   :  { %2742 = vmatpush.msrb.mxu3 %v1286_v17  ;;  %2683 = vmatpush.msrb.mxu0 %v1279_v29  ;;  %v1142_v12 = vld [vmem:[#allocation4 + $0x1e88] sm:$0xff]  ;;  %v2095_v29 = vadd.f32 %v6770_v25, %v2075_v30  ;;  %v2918_v25 = vmul.f32 %v6801_v14, %v2917_v31  ;;  %v5656_v31 = vld [vmem:[#allocation6 + $0x3c0] sm:$0xf] }
 0x29f   :  { %2703 = vmatpush.msrb.mxu1 %v1088_v8  ;;  %2723 = vmatpush.msrb.mxu2 %v1184_v32  ;;  %v2793_v8 = vrot.slane %v2275_v63, 5  ;;  %v1238_v32 = vld [vmem:[#allocation4 + $0x2188] sm:$0xff] }
 0x2a0   :  { %2743 = vmatpush.msrb.mxu3 %v1280_v9  ;;  %2684 = vmatpush.msrb.mxu0 %v1273_v33  ;;  %v1231_v9 = vld [vmem:[#allocation4 + $0x2150] sm:$0xff]  ;;  %v1040_v33 = vld [vmem:[#allocation4 + $0x1b58] sm:$0xff]  ;;  %v2816_v10 = vsel %vm2801_vm8, %v2095_v29, %v2791_v2  ;;  %v5256_v29 = vld [vmem:[#allocation6 + $0xa0] sm:$0xf] }
 0x2a1   :  { %2704 = vmatpush.msrb.mxu1 %v1082_v36  ;;  %2724 = vmatpush.msrb.mxu2 %v1178_v40  ;;  %v1136_v36 = vld [vmem:[#allocation4 + $0x1e58] sm:$0xff]  ;;  %v2818_v24 = vsel %vm7239_vm7, %v2793_v8, %v2794_v19  ;;  %v5964_v8 = vld [vmem:[#allocation6 + $0xac] sm:$0xf0] }
 0x2a2   :  { %2744 = vmatpush.msrb.mxu3 %v1274_v42  ;;  %2685 = vmatpush.msrb.mxu0 %v1267_v21  ;;  %v1232_v42 = vld [vmem:[#allocation4 + $0x2158] sm:$0xff]  ;;  %v1225_v21 = vld [vmem:[#allocation4 + $0x2120] sm:$0xff] }
 0x2a3   :  { %2705 = vmatpush.msrb.mxu1 %v1076_v43  ;;  %2725 = vmatpush.msrb.mxu2 %v1172_v26  ;;  %v2817_v43 = vsel %vm2803_vm10, %v2816_v10, %v2792_v51  ;;  %v1034_v26 = vld [vmem:[#allocation4 + $0x1b28] sm:$0xff] }
 0x2a4   :  { %2745 = vmatpush.msrb.mxu3 %v1268_v7  ;;  %2686 = vmatpush.msrb.mxu0 %v1261_v46  ;;  %v1226_v46 = vld [vmem:[#allocation4 + $0x2128] sm:$0xff] }
 0x2a5   :  { %2706 = vmatpush.msrb.mxu1 %v1070_v38  ;;  %2726 = vmatpush.msrb.mxu2 %v1166_v47  ;;  %v2919_v47 = vadd.f32 %v6801_v14, %v2918_v25 }
 0x2a6   :  { %2746 = vmatpush.msrb.mxu3 %v1262_v50  ;;  %2687 = vmatpush.msrb.mxu0 %v1255_v52  ;;  %v2927_v52 = vor.u32 1.1754944e-38, %v2926_v57 }
 0x2a7   :  { %2707 = vmatpush.msrb.mxu1 %v1064_v48  ;;  %2727 = vmatpush.msrb.mxu2 %v1160_v53  ;;  %v2374_v3 = vpop.f32.mrf.mxu0  ;;  %v2923_v50 = vsel %vm2922_vm2, %v6801_v14, %v2919_v47  ;;  %v5288_v14 = vld [vmem:[#allocation6 + $0xe0] sm:$0xf]  ;;  %v6024_v47 = vld [vmem:[#allocation6 + $0x28c] sm:$0xf0]  ;;  %vm7235_vm2 = vcmask 1045508  }
 0x2a8   :  { %2747 = vmatpush.msrb.mxu3 %v1256_v39  ;;  %2688 = vmatpush.msrb.mxu0 %v1249_v58  ;;  %v2375_v11 = vadd.f32 %v2374_v3, %v2354_v0  ;;  %v2394_v28 = vpop.f32.mrf.mxu1  ;;  %v2928_v13 = vsel %vm2925_vm3, %v2927_v52, %v2923_v50  ;;  %v5972_v39 = vld [vmem:[#allocation6 + $0xec] sm:$0xf0]  ;;  %v5416_v58 = vld [vmem:[#allocation6 + $0x1e0] sm:$0xf]  ;;  %vm7231_vm3 = vcmask 1045504  }
 0x2a9   :  { %2708 = vmatpush.msrb.mxu1 %v1058_v62  ;;  %2728 = vmatpush.msrb.mxu2 %v1154_v61  ;;  %v5289_v59 = vor.u32 %v5972_v39, %v5288_v14  ;;  %v5544_v62 = vld [vmem:[#allocation6 + $0x2e0] sm:$0xf]  ;;  %v6036_v61 = vld [vmem:[#allocation6 + $0x2ec] sm:$0xf0]  ;;  %v5417_v30 = vor.u32 %v6004_v60, %v5416_v58 }
 0x2aa   :  { %2748 = vmatpush.msrb.mxu3 %v1250_v55  ;;  %2689 = vmatpush.msrb.mxu0 %v1243_v1  ;;  %v2395_v17 = vadd.f32 %v2394_v28, %v2375_v11  ;;  %v5545_v63 = vor.u32 %v6036_v61, %v5544_v62  ;;  %v5672_v0 = vld [vmem:[#allocation6 + $0x3e0] sm:$0xf]  ;;  %v6068_v55 = vld [vmem:[#allocation6 + $0x3ec] sm:$0xf0] }
 0x2ab   :  { %2709 = vmatpush.msrb.mxu1 %v1052_v4  ;;  %2729 = vmatpush.msrb.mxu2 %v1148_v5  ;;  %v5272_v1 = vld [vmem:[#allocation6 + $0xc0] sm:$0xf]  ;;  %v5673_v3 = vor.u32 %v6068_v55, %v5672_v0  ;;  %v5968_v4 = vld [vmem:[#allocation6 + $0xcc] sm:$0xf0] }
 0x2ac   :  { %2749 = vmatpush.msrb.mxu3 %v1244_v23  ;;  %2690 = vmatpush.msrb.mxu0 %v1237_v27  ;;  %v2795_v40 = vrot.slane %v2395_v17, 3  ;;  %v5400_v5 = vld [vmem:[#allocation6 + $0x1c0] sm:$0xf]  ;;  %v6000_v11 = vld [vmem:[#allocation6 + $0x1cc] sm:$0xf0]  ;;  %v5273_v19 = vor.u32 %v5968_v4, %v5272_v1 }
 0x2ad   :  { %2710 = vmatpush.msrb.mxu1 %v1046_v44  ;;  %2730 = vmatpush.msrb.mxu2 %v1142_v12  ;;  %v5401_v23 = vor.u32 %v6000_v11, %v5400_v5  ;;  %v5528_v27 = vld [vmem:[#allocation6 + $0x2c0] sm:$0xf]  ;;  %v6032_v28 = vld [vmem:[#allocation6 + $0x2cc] sm:$0xf0] }
 0x2ae   :  { %2750 = vmatpush.msrb.mxu3 %v1238_v32  ;;  %2691 = vmatpush.msrb.mxu0 %v1231_v9  ;;  %v2819_v7 = vsel %vm7236_vm9, %v2818_v24, %v2795_v40  ;;  %v6841_v45 = vpop.f32.mrf.mxu2  ;;  %v5529_v12 = vor.u32 %v6032_v28, %v5528_v27  ;;  %v6064_v17 = vld [vmem:[#allocation6 + $0x3cc] sm:$0xf0]  ;;  %v5384_v9 = vld [vmem:[#allocation6 + $0x1a0] sm:$0xf]  ;;  %v2882_v40 = vpop.permute.xlu1 %2881  ;;  %v5257_v24 = vor.u32 %v5964_v8, %v5256_v29 }
 0x2af   :  { %2711 = vmatpush.msrb.mxu1 %v1040_v33  ;;  %2731 = vmatpush.msrb.mxu2 %v1136_v36  ;;  %v2820_v41 = vsel %vm7227_vm11, %v2817_v43, %v2819_v7  ;;  %v6843_v53 = vpop.f32.mrf.mxu3  ;;  %v5657_v32 = vor.u32 %v6064_v17, %v5656_v31  ;;  %v5996_v33 = vld [vmem:[#allocation6 + $0x1ac] sm:$0xf0]  ;;  %v5512_v36 = vld [vmem:[#allocation6 + $0x2a0] sm:$0xf]  ;;  %v6851_v57 = vperm.slane %v2882_v40, 0 }
 0x2b0   :  { %2751 = vmatpush.msrb.mxu3 %v1232_v42  ;;  %2692 = vmatpush.msrb.mxu0 %v1225_v21  ;;  %v2832_v38 = vadd.f32 %v2820_v41, %v163_v37  ;;  %v6028_v42 = vld [vmem:[#allocation6 + $0x2ac] sm:$0xf0]  ;;  %v5640_v21 = vld [vmem:[#allocation6 + $0x3a0] sm:$0xf]  ;;  %v5385_v25 = vor.u32 %v5996_v33, %v5384_v9 }
 0x2b1   :  { %2712 = vmatpush.msrb.mxu1 %v1034_v26  ;;  %2732 = vmatpush.msrb.mxu2 %v1130_v22  ;;  %v6060_v37 = vld [vmem:[#allocation6 + $0x3ac] sm:$0xf0]  ;;  %v5513_v43 = vor.u32 %v6028_v42, %v5512_v36  ;;  %v5240_v26 = vld [vmem:[#allocation6 + $0x80] sm:$0xf]  ;;  %6156 = vrcp.f32 %v6851_v57  ;;  %vm2935_vm4 = vweird.f32 %v6851_v57 }
 0x2b2   :  { %2752 = vmatpush.msrb.mxu3 %v1226_v46  ;;  %5170 = vmatmul.msk.f32.vlgmr.msrb.gmra.mxu0 %vm6738_vm15, %v6291_v18  ;;  %2840 = vst.msk [vmem:[#allocation2 + $0xc] sm:$0x3f] %vm6520_vm6, %v2832_v38  ;;  %v5960_v22 = vld [vmem:[#allocation6 + $0x8c] sm:$0xf0]  ;;  %v5368_v7 = vld [vmem:[#allocation6 + $0x180] sm:$0xf]  ;;  %v5641_v46 = vor.u32 %v6060_v37, %v5640_v21 }
 0x2b3   :  { %5171 = vmatmul.msk.f32.vlgmr.msrb.gmra.mxu1 %vm6714_vm13, %v6291_v18  ;;  %5172 = vmatmul.msk.f32.vlgmr.msrb.gmra.mxu2 %vm6723_vm14, %v6291_v18  ;;  %v5992_v41 = vld [vmem:[#allocation6 + $0x18c] sm:$0xf0]  ;;  %v5496_v38 = vld [vmem:[#allocation6 + $0x280] sm:$0xf]  ;;  %vm7226_vm13 = vcmask 1043456  }
 0x2b4   :  { %5173 = vmatmul.msk.f32.vlgmr.msrb.gmra.mxu3 %vm6738_vm15, %v6291_v18  ;;  %4612 = vmatpush.bf16.msra.mxu0 %v5289_v59  ;;  %v6056_v50 = vld [vmem:[#allocation6 + $0x38c] sm:$0xf0]  ;;  %v5369_v14 = vor.u32 %v5992_v41, %v5368_v7  ;;  %v5497_v39 = vor.u32 %v6024_v47, %v5496_v38  ;;  %v5224_v58 = vld [vmem:[#allocation6 + $0x60] sm:$0xf]  ;;  %vm3046_vm15 = vcmask 1041409  }
 0x2b5   :  { %4625 = vmatpush.bf16.msra.mxu1 %v5417_v30  ;;  %4638 = vmatpush.bf16.msra.mxu2 %v5545_v63  ;;  %v5956_v59 = vld [vmem:[#allocation6 + $0x6c] sm:$0xf0]  ;;  %v5352_v60 = vld [vmem:[#allocation6 + $0x160] sm:$0xf]  ;;  %v5625_v63 = vor.u32 %v6056_v50, %v5624_v49 }
 0x2b6   :  { %4651 = vmatpush.bf16.msra.mxu3 %v5673_v3  ;;  %v5988_v0 = vld [vmem:[#allocation6 + $0x16c] sm:$0xf0]  ;;  %v5480_v55 = vld [vmem:[#allocation6 + $0x260] sm:$0xf] }
 0x2b7   :  { %v6020_v1 = vld [vmem:[#allocation6 + $0x26c] sm:$0xf0]  ;;  %v5208_v27 = vld [vmem:[#allocation6 + $0x40] sm:$0xf]  ;;  %v6862_v40 = vpop.eup %6156 }
 0x2b8   :  { %4613 = vmatpush.bf16.msra.mxu0 %v5273_v19  ;;  %v6052_v3 = vld [vmem:[#allocation6 + $0x36c] sm:$0xf0]  ;;  %v5353_v19 = vor.u32 %v5988_v0, %v5352_v60  ;;  %v5336_v31 = vld [vmem:[#allocation6 + $0x140] sm:$0xf]  ;;  %v164_v0 = vld [vmem:[#allocation2 + $0x12] sm:$0x3f]  ;;  %vm2936_vm5 = vweird.f32 %v6862_v40 }
 0x2b9   :  { %v2859_v16 = vld [vmem:[#allocation2 + $0xc] sm:$0x3f]  ;;  %4626 = vmatpush.bf16.msra.mxu1 %v5401_v23  ;;  %4639 = vmatpush.bf16.msra.mxu2 %v5529_v12  ;;  %v5481_v23 = vor.u32 %v6020_v1, %v5480_v55  ;;  %v5464_v17 = vld [vmem:[#allocation6 + $0x240] sm:$0xf] }
 0x2ba   :  { %v6838_v48 = vmul.f32 %v2928_v13, %v2859_v16  ;;  %4652 = vmatpush.bf16.msra.mxu3 %v5657_v32  ;;  %v5241_v13 = vor.u32 %v5960_v22, %v5240_v26  ;;  %v5952_v28 = vld [vmem:[#allocation6 + $0x4c] sm:$0xf0]  ;;  %v5192_v42 = vld [vmem:[#allocation6 + $0x20] sm:$0xf] }
 0x2bb   :  { %v5984_v12 = vld [vmem:[#allocation6 + $0x14c] sm:$0xf0]  ;;  %v5209_v36 = vor.u32 %v5952_v28, %v5208_v27  ;;  %v5320_v37 = vld [vmem:[#allocation6 + $0x120] sm:$0xf]  ;;  %v5290_v27 = vld [vmem:[#allocation6 + $0xf0] sm:$0xf0] }
 0x2bc   :  { %2953 = vst [vmem:[#allocation1 + $0x2] ss:$9 sm:$0xff] %v6838_v48  ;;  %4614 = vmatpush.bf16.msra.mxu0 %v5257_v24  ;;  %v6016_v29 = vld [vmem:[#allocation6 + $0x24c] sm:$0xf0]  ;;  %v5576_v50 = vld [vmem:[#allocation6 + $0x320] sm:$0xf] }
 0x2bd   :  { %4627 = vmatpush.bf16.msra.mxu1 %v5385_v25  ;;  %4640 = vmatpush.bf16.msra.mxu2 %v5513_v43  ;;  %v6048_v32 = vld [vmem:[#allocation6 + $0x34c] sm:$0xf0]  ;;  %v5465_v24 = vor.u32 %v6016_v29, %v5464_v17  ;;  %v2435_v25 = vadd.f32 %v6843_v53, %v6841_v45  ;;  %v5176_v53 = vld [vmem:[#allocation6] sm:$0xf]  ;;  %v6002_v17 = vld [vmem:[#allocation6 + $0x1e4] sm:$0xf] }
 0x2be   :  { %4653 = vmatpush.bf16.msra.mxu3 %v5641_v46  ;;  %v5948_v21 = vld [vmem:[#allocation6 + $0x2c] sm:$0xf0]  ;;  %v5448_v46 = vld [vmem:[#allocation6 + $0x220] sm:$0xf]  ;;  %v5418_v29 = vld [vmem:[#allocation6 + $0x1f0] sm:$0xf0] }
 0x2bf   :  { %v5980_v7 = vld [vmem:[#allocation6 + $0x12c] sm:$0xf0]  ;;  %v5193_v45 = vor.u32 %v5948_v21, %v5192_v42  ;;  %v5560_v1 = vld [vmem:[#allocation6 + $0x300] sm:$0xf]  ;;  %v5421_v42 = vor.u32 %v6002_v17, %v5418_v29 }
 0x2c0   :  { %4615 = vmatpush.bf16.msra.mxu0 %v5241_v13  ;;  %v6012_v41 = vld [vmem:[#allocation6 + $0x22c] sm:$0xf0]  ;;  %v2931_v13 = vmul.f32 %v6862_v40, %v6851_v57  ;;  %v5321_v60 = vor.u32 %v5980_v7, %v5320_v37  ;;  %v5966_v37 = vld [vmem:[#allocation6 + $0xc4] sm:$0xf]  ;;  %v2941_v7 = vand.u32 2147483648, %v6851_v57 }
 0x2c1   :  { %4628 = vmatpush.bf16.msra.mxu1 %v5369_v14  ;;  %4641 = vmatpush.bf16.msra.mxu2 %v5497_v39  ;;  %v5944_v39 = vld [vmem:[#allocation6 + $0xc] sm:$0xf0]  ;;  %v5720_v29 = vld [vmem:[#allocation6 + $0x440] sm:$0xf] }
 0x2c2   :  { %4654 = vmatpush.bf16.msra.mxu3 %v5625_v63  ;;  %v6008_v63 = vld [vmem:[#allocation6 + $0x20c] sm:$0xf0]  ;;  %v2932_v28 = vsub.f32 1.0, %v2931_v13  ;;  %v5962_v13 = vld [vmem:[#allocation6 + $0xa4] sm:$0xf] }
 0x2c3   :  { %v6128_v21 = vld [vmem:[#allocation6 + $0x5cc] sm:$0xf0] }
 0x2c5   :  { %4629 = vmatpush.bf16.msra.mxu1 %v5353_v19  ;;  %4642 = vmatpush.bf16.msra.mxu2 %v5481_v23  ;;  %v6132_v19 = vld [vmem:[#allocation6 + $0x5ec] sm:$0xf0]  ;;  %v5970_v23 = vld [vmem:[#allocation6 + $0xe4] sm:$0xf] }
 0x2c9   :  { %v6845_v20 = vpop.f32.mrf.mxu0  ;;  %4643 = vmatpush.bf16.msra.mxu2 %v5465_v24  ;;  %v5912_v24 = vld [vmem:[#allocation6 + $0x5c0] sm:$0xf] }
 0x2ca   :  { %v2474_v54 = vpop.f32.mrf.mxu1 }
 0x2d0   :  { %v2494_v35 = vpop.f32.mrf.mxu2 }
 0x2d1   :  { %v6847_v18 = vpop.f32.mrf.mxu3  ;;  %v2495_v52 = vadd.f32 %v2494_v35, %v2474_v54  ;;  %v5608_v35 = vld [vmem:[#allocation6 + $0x360] sm:$0xf] }
 0x2d3   :  { %v6856_v4 = vadd.f32 %v6847_v18, %v2495_v52  ;;  %v6044_v52 = vld [vmem:[#allocation6 + $0x32c] sm:$0xf0] }
 0x2d4   :  { %v5577_v55 = vor.u32 %v6044_v52, %v5576_v50  ;;  %v6124_v52 = vld [vmem:[#allocation6 + $0x5ac] sm:$0xf0] }
 0x2d5   :  { %v2796_v9 = vrot.slane %v6856_v4, 7  ;;  %v6100_v4 = vld [vmem:[#allocation6 + $0x4ec] sm:$0xf0] }
 0x2eb   :  { %v6849_v56 = vpop.f32.mrf.mxu0 }
 0x2ec   :  { %v2554_v2 = vpop.f32.mrf.mxu1 }
 0x2ed   :  { %v2555_v62 = vadd.f32 %v2554_v2, %v6849_v56  ;;  %v5225_v56 = vor.u32 %v5956_v59, %v5224_v58  ;;  %v5304_v58 = vld [vmem:[#allocation6 + $0x100] sm:$0xf] }
 0x2ef   :  { %4616 = vmatpush.bf16.msra.mxu0 %v5225_v56 }
 0x2f2   :  { %v2574_v51 = vpop.f32.mrf.mxu2 }
 0x2f3   :  { %v2594_v44 = vpop.f32.mrf.mxu3  ;;  %v6858_v5 = vadd.f32 %v2574_v51, %v2555_v62  ;;  %v5592_v51 = vld [vmem:[#allocation6 + $0x340] sm:$0xf]  ;;  %4617 = vmatpush.bf16.msra.mxu0 %v5209_v36  ;;  %v5449_v62 = vor.u32 %v6012_v41, %v5448_v46  ;;  %v5913_v41 = vor.u32 %v6128_v21, %v5912_v24  ;;  %v5982_v21 = vld [vmem:[#allocation6 + $0x144] sm:$0xf] }
 0x2f4   :  { %v5593_v22 = vor.u32 %v6048_v32, %v5592_v51  ;;  %v5784_v36 = vld [vmem:[#allocation6 + $0x4c0] sm:$0xf] }
 0x2f5   :  { %v2797_v33 = vrot.slane %v6858_v5, 6  ;;  %v5928_v5 = vld [vmem:[#allocation6 + $0x5e0] sm:$0xf]  ;;  %4644 = vmatpush.bf16.msra.mxu2 %v5449_v62 }
 0x2f7   :  { %4618 = vmatpush.bf16.msra.mxu0 %v5193_v45  ;;  %v2939_v45 = vand.u32 2147483647, %v6851_v57 }
 0x2f9   :  { %vm2940_vm12 = vcmp.eq.f32.partialorder %v2939_v45, 8.507059e+37 }
 0x30d   :  { %v2614_v10 = vpop.f32.mrf.mxu0 }
 0x30e   :  { %v2634_v16 = vpop.f32.mrf.mxu1  ;;  %v2615_v54 = vadd.f32 %v2614_v10, %v2594_v44  ;;  %v5609_v44 = vor.u32 %v6052_v3, %v5608_v35  ;;  %v5337_v10 = vor.u32 %v5984_v12, %v5336_v31 }
 0x310   :  { %v2635_v18 = vadd.f32 %v2634_v16, %v2615_v54  ;;  %4655 = vmatpush.bf16.msra.mxu3 %v5609_v44  ;;  %v2455_v16 = vadd.f32 %v6845_v20, %v2435_v25  ;;  %4630 = vmatpush.bf16.msra.mxu1 %v5337_v10  ;;  %v6040_v54 = vld [vmem:[#allocation6 + $0x30c] sm:$0xf0]  ;;  %v5800_v20 = vld [vmem:[#allocation6 + $0x4e0] sm:$0xf]  ;;  %v5274_v25 = vld [vmem:[#allocation6 + $0xd0] sm:$0xf0] }
 0x311   :  { %v5801_v51 = vor.u32 %v6100_v4, %v5800_v20  ;;  %v6096_v10 = vld [vmem:[#allocation6 + $0x4cc] sm:$0xf0]  ;;  %v5242_v20 = vld [vmem:[#allocation6 + $0x90] sm:$0xf0] }
 0x312   :  { %v2798_v38 = vrot.slane %v2635_v18, 5  ;;  %v2821_v35 = vsel %vm2801_vm8, %v2455_v16, %v2796_v9  ;;  %v5929_v9 = vor.u32 %v6132_v19, %v5928_v5  ;;  %v5785_v46 = vor.u32 %v6096_v10, %v5784_v36  ;;  %v5258_v16 = vld [vmem:[#allocation6 + $0xb0] sm:$0xf0]  ;;  %v5736_v5 = vld [vmem:[#allocation6 + $0x460] sm:$0xf] }
 0x313   :  { %v5210_v36 = vld [vmem:[#allocation6 + $0x50] sm:$0xf0]  ;;  %v6293_v10 = vmov 4.0  }
 0x314   :  { %v2654_v61 = vpop.f32.mrf.mxu2  ;;  %4656 = vmatpush.bf16.msra.mxu3 %v5593_v22  ;;  %4631 = vmatpush.bf16.msra.mxu1 %v5321_v60  ;;  %v5402_v22 = vld [vmem:[#allocation6 + $0x1d0] sm:$0xf0]  ;;  %6158 = vrcp.f32 %v6293_v10 }
 0x315   :  { %v2674_v30 = vpop.f32.mrf.mxu3 }
 0x316   :  { %v2675_v2 = vadd.f32 %v2674_v30, %v2654_v61  ;;  %v5976_v61 = vld [vmem:[#allocation6 + $0x10c] sm:$0xf0]  ;;  %v5432_v30 = vld [vmem:[#allocation6 + $0x200] sm:$0xf] }
 0x317   :  { %v5305_v44 = vor.u32 %v5976_v61, %v5304_v58  ;;  %v5433_v12 = vor.u32 %v6008_v63, %v5432_v30  ;;  %v5261_v61 = vor.u32 %v5962_v13, %v5258_v16  ;;  %v5752_v30 = vld [vmem:[#allocation6 + $0x480] sm:$0xf]  ;;  %v6088_v63 = vld [vmem:[#allocation6 + $0x48c] sm:$0xf0]  ;;  %v5178_v58 = vld [vmem:[#allocation6 + $0x10] sm:$0xf0] }
 0x318   :  { %4657 = vmatpush.bf16.msra.mxu3 %v5577_v55  ;;  %v5753_v4 = vor.u32 %v6088_v63, %v5752_v30  ;;  %v6072_v13 = vld [vmem:[#allocation6 + $0x40c] sm:$0xf0]  ;;  %v6898_v16 = vld [vmem:[#allocation6 + $0x500] sm:$0xf] }
 0x319   :  { %4632 = vmatpush.bf16.msra.mxu1 %v5305_v44  ;;  %4645 = vmatpush.bf16.msra.mxu2 %v5433_v12  ;;  %v5986_v12 = vld [vmem:[#allocation6 + $0x164] sm:$0xf] }
 0x31a   :  { %v6902_v45 = vpop.eup %6158 }
 0x31b   :  { %vm3016_vm14 = vweird.f32 %v6902_v45 }
 0x31d   :  { %4677 = vmatpush.bf16.msrb.mxu1 %v5929_v9  ;;  %v6112_v9 = vld [vmem:[#allocation6 + $0x54c] sm:$0xf0] }
 0x321   :  { %4678 = vmatpush.bf16.msrb.mxu1 %v5913_v41  ;;  %v5194_v41 = vld [vmem:[#allocation6 + $0x30] sm:$0xf0] }
 0x32f   :  { %v2694_v11 = vpop.f32.mrf.mxu0 }
 0x330   :  { %v2695_v8 = vadd.f32 %v2694_v11, %v2675_v2  ;;  %v2714_v43 = vpop.f32.mrf.mxu1  ;;  %v2822_v11 = vsel %vm2803_vm10, %v2821_v35, %v2797_v33  ;;  %v5177_v2 = vor.u32 %v5944_v39, %v5176_v53  ;;  %v5293_v33 = vor.u32 %v5970_v23, %v5290_v27  ;;  %v5994_v53 = vld [vmem:[#allocation6 + $0x1a4] sm:$0xf]  ;;  %v5386_v39 = vld [vmem:[#allocation6 + $0x1b0] sm:$0xf0]  ;;  %v6116_v23 = vld [vmem:[#allocation6 + $0x56c] sm:$0xf0] }
 0x331   :  { %v5389_v55 = vor.u32 %v5994_v53, %v5386_v39  ;;  %v5990_v35 = vld [vmem:[#allocation6 + $0x184] sm:$0xf] }
 0x332   :  { %v2799_v47 = vrot.slane %v2695_v8, 4  ;;  %v5561_v8 = vor.u32 %v6040_v54, %v5560_v1  ;;  %4619 = vmatpush.bf16.msra.mxu0 %v5177_v2  ;;  %4690 = vmatpush.bf16.msrb.mxu2 %v5293_v33  ;;  %v6120_v1 = vld [vmem:[#allocation6 + $0x58c] sm:$0xf0]  ;;  %v5958_v54 = vld [vmem:[#allocation6 + $0x84] sm:$0xf] }
 0x333   :  { %v5245_v19 = vor.u32 %v5958_v54, %v5242_v20  ;;  %v5954_v27 = vld [vmem:[#allocation6 + $0x64] sm:$0xf] }
 0x334   :  { %v2823_v56 = vsel %vm7239_vm7, %v2798_v38, %v2799_v47  ;;  %4658 = vmatpush.bf16.msra.mxu3 %v5561_v8  ;;  %v5277_v38 = vor.u32 %v5966_v37, %v5274_v25  ;;  %v5768_v47 = vld [vmem:[#allocation6 + $0x4a0] sm:$0xf]  ;;  %v5950_v33 = vld [vmem:[#allocation6 + $0x44] sm:$0xf]  ;;  %v5338_v37 = vld [vmem:[#allocation6 + $0x150] sm:$0xf0] }
 0x335   :  { %v5769_v60 = vor.u32 %v6092_v34, %v5768_v47  ;;  %v5978_v47 = vld [vmem:[#allocation6 + $0x124] sm:$0xf]  ;;  %v5322_v34 = vld [vmem:[#allocation6 + $0x130] sm:$0xf0]  ;;  %v5341_v53 = vor.u32 %v5982_v21, %v5338_v37 }
 0x336   :  { %v2734_v26 = vpop.f32.mrf.mxu2  ;;  %4664 = vmatpush.bf16.msrb.mxu0 %v5801_v51  ;;  %4691 = vmatpush.bf16.msrb.mxu2 %v5277_v38  ;;  %v5942_v39 = vld [vmem:[#allocation6 + $0x4] sm:$0xf]  ;;  %v5325_v30 = vor.u32 %v5978_v47, %v5322_v34 }
 0x337   :  { %v2735_v49 = vadd.f32 %v2734_v26, %v2714_v43  ;;  %v2754_v14 = vpop.f32.mrf.mxu3  ;;  %v2933_v43 = vmul.f32 %v6862_v40, %v2932_v28  ;;  %v5998_v26 = vld [vmem:[#allocation6 + $0x1c4] sm:$0xf]  ;;  %v5226_v28 = vld [vmem:[#allocation6 + $0x70] sm:$0xf0] }
 0x338   :  { %4703 = vmatpush.bf16.msrb.mxu3 %v5421_v42  ;;  %v5405_v50 = vor.u32 %v5998_v26, %v5402_v22  ;;  %v5229_v42 = vor.u32 %v5954_v27, %v5226_v28  ;;  %v6076_v26 = vld [vmem:[#allocation6 + $0x42c] sm:$0xf0]  ;;  %v5832_v22 = vld [vmem:[#allocation6 + $0x520] sm:$0xf] }
 0x339   :  { %v2755_v59 = vadd.f32 %v2754_v14, %v2735_v49  ;;  %v5896_v49 = vld [vmem:[#allocation6 + $0x5a0] sm:$0xf]  ;;  %v2934_v14 = vadd.f32 %v6862_v40, %v2933_v43 }
 0x33a   :  { %4665 = vmatpush.bf16.msrb.mxu0 %v5785_v46  ;;  %v5897_v62 = vor.u32 %v6124_v52, %v5896_v49  ;;  %4692 = vmatpush.bf16.msrb.mxu2 %v5261_v61  ;;  %v5704_v43 = vld [vmem:[#allocation6 + $0x420] sm:$0xf]  ;;  %v5946_v46 = vld [vmem:[#allocation6 + $0x24] sm:$0xf]  ;;  %v5213_v52 = vor.u32 %v5950_v33, %v5210_v36 }
 0x33b   :  { %v2800_v3 = vrot.slane %v2755_v59, 3  ;;  %v2942_v59 = vor.u32 1.1754944e-38, %v2941_v7  ;;  %v6108_v7 = vld [vmem:[#allocation6 + $0x52c] sm:$0xf0]  ;;  %v6896_v49 = vld [vmem:[#allocation6 + $0x400] sm:$0xf]  ;;  %v5197_v61 = vor.u32 %v5946_v46, %v5194_v41 }
 0x33c   :  { %4704 = vmatpush.bf16.msrb.mxu3 %v5405_v50  ;;  %4679 = vmatpush.bf16.msrb.mxu1 %v5897_v62  ;;  %v3012_v62 = vmul.f32 4.0, %v6902_v45  ;;  %v5689_v63 = vor.u32 %v6072_v13, %v6896_v49 }
 0x33d   :  { %v2824_v31 = vsel %vm7236_vm9, %v2823_v56, %v2800_v3  ;;  %v5370_v3 = vld [vmem:[#allocation6 + $0x190] sm:$0xf0]  ;;  %v5864_v56 = vld [vmem:[#allocation6 + $0x560] sm:$0xf] }
 0x33e   :  { %v2825_v18 = vsel %vm7227_vm11, %v2822_v11, %v2824_v31  ;;  %4666 = vmatpush.bf16.msrb.mxu0 %v5769_v60  ;;  %v6084_v11 = vld [vmem:[#allocation6 + $0x46c] sm:$0xf0]  ;;  %v5373_v44 = vor.u32 %v5990_v35, %v5370_v3  ;;  %4693 = vmatpush.bf16.msrb.mxu2 %v5245_v19  ;;  %v5865_v24 = vor.u32 %v6116_v23, %v5864_v56  ;;  %vm7230_vm11 = vcmask 1045507  }
 0x33f   :  { %v2833_v32 = vadd.f32 %v2825_v18, %v164_v0  ;;  %v5880_v0 = vld [vmem:[#allocation6 + $0x580] sm:$0xf]  ;;  %v6080_v18 = vld [vmem:[#allocation6 + $0x44c] sm:$0xf0]  ;;  %v5737_v51 = vor.u32 %v6084_v11, %v5736_v5  ;;  %v5833_v60 = vor.u32 %v6108_v7, %v5832_v22 }
 0x340   :  { %v5881_v2 = vor.u32 %v6120_v1, %v5880_v0  ;;  %4705 = vmatpush.bf16.msrb.mxu3 %v5389_v55  ;;  %v5721_v38 = vor.u32 %v6080_v18, %v5720_v29  ;;  %v5974_v55 = vld [vmem:[#allocation6 + $0x104] sm:$0xf] }
 0x341   :  { %2841 = vst.msk [vmem:[#allocation2 + $0x12] sm:$0x3f] %vm6520_vm6, %v2833_v32  ;;  %vm6886_vm6 = vmor %vm2935_vm4, %vm2936_vm5  ;;  %v5848_v32 = vld [vmem:[#allocation6 + $0x540] sm:$0xf]  ;;  %vm7228_vm4 = vcmask 1042434   ;;  %vm7240_vm5 = vcmask 1043458  }
 0x342   :  { %v2938_v57 = vsel %vm6886_vm6, %v6862_v40, %v2934_v14  ;;  %v5354_v40 = vld [vmem:[#allocation6 + $0x170] sm:$0xf0]  ;;  %4667 = vmatpush.bf16.msrb.mxu0 %v5753_v4  ;;  %4680 = vmatpush.bf16.msrb.mxu1 %v5881_v2  ;;  %v5849_v50 = vor.u32 %v6112_v9, %v5848_v32  ;;  %v6900_v14 = vld [vmem:[#allocation6 + $0x50c] sm:$0xf0]  ;;  %vm7237_vm6 = vcmask 1045509  }
 0x343   :  { %v2943_v31 = vsel %vm2940_vm12, %v2942_v59, %v2938_v57  ;;  %v5357_v25 = vor.u32 %v5986_v12, %v5354_v40  ;;  %4694 = vmatpush.bf16.msrb.mxu2 %v5229_v42  ;;  %v5705_v59 = vor.u32 %v6076_v26, %v5704_v43  ;;  %v5817_v0 = vor.u32 %v6900_v14, %v6898_v16  ;;  %v5306_v2 = vld [vmem:[#allocation6 + $0x110] sm:$0xf0] }
 0x344   :  { %4706 = vmatpush.bf16.msrb.mxu3 %v5373_v44  ;;  %v5181_v57 = vor.u32 %v5942_v39, %v5178_v58  ;;  %v3013_v40 = vsub.f32 1.0, %v3012_v62  ;;  %v5309_v32 = vor.u32 %v5974_v55, %v5306_v2  ;;  %vm7234_vm12 = vcmask 1046533  }
 0x346   :  { %4668 = vmatpush.bf16.msrb.mxu0 %v5737_v51  ;;  %4681 = vmatpush.bf16.msrb.mxu1 %v5865_v24  ;;  %v3014_v36 = vmul.f32 %v6902_v45, %v3013_v40 }
 0x347   :  { %4695 = vmatpush.bf16.msrb.mxu2 %v5213_v52 }
 0x348   :  { %v2860_v17 = vld [vmem:[#allocation2 + $0x12] sm:$0x3f]  ;;  %4707 = vmatpush.bf16.msrb.mxu3 %v5357_v25  ;;  %v3015_v43 = vadd.f32 %v6902_v45, %v3014_v36 }
 0x349   :  { %v6893_v8 = vmul.f32 %v2943_v31, %v2860_v17 }
 0x34a   :  { %4669 = vmatpush.bf16.msrb.mxu0 %v5721_v38  ;;  %4682 = vmatpush.bf16.msrb.mxu1 %v5849_v50  ;;  %v6920_v16 = vsel %vm3016_vm14, %v6902_v45, %v3015_v43  ;;  %vm7232_vm14 = vcmask 1044482  }
 0x34b   :  { %2955 = vst [vmem:[#allocation1 + $0x3] ss:$9 sm:$0xff] %v6893_v8  ;;  %4696 = vmatpush.bf16.msrb.mxu2 %v5197_v61 }
 0x34c   :  { %4708 = vmatpush.bf16.msrb.mxu3 %v5341_v53 }
 0x34e   :  { %4670 = vmatpush.bf16.msrb.mxu0 %v5705_v59  ;;  %4683 = vmatpush.bf16.msrb.mxu1 %v5833_v60 }
 0x34f   :  { %4697 = vmatpush.bf16.msrb.mxu2 %v5181_v57 }
 0x350   :  { %4709 = vmatpush.bf16.msrb.mxu3 %v5325_v30 }
 0x352   :  { %v2956_v1 = vld [vmem:[#allocation1] sm:$0xff]  ;;  %v2957_v54 = vld [vmem:[#allocation1 + $0x9] sm:$0xff]  ;;  %v2958_v20 = vld [vmem:[#allocation1 + $0x12] sm:$0xff]  ;;  %4671 = vmatpush.bf16.msrb.mxu0 %v5689_v63  ;;  %4684 = vmatpush.bf16.msrb.mxu1 %v5817_v0 }
 0x353   :  { %v2959_v35 = vld [vmem:[#allocation1 + $0x1b] sm:$0xff]  ;;  %v2960_v3 = vld [vmem:[#allocation1 + $0x24] sm:$0xff]  ;;  %v2961_v4 = vld [vmem:[#allocation1 + $0x2d] sm:$0xff]  ;;  %v2969_v5 = vsel %vm7226_vm13, %v2956_v1, 0.0  ;;  %v2976_v11 = vsel %vm7226_vm13, %v2957_v54, 0.0  ;;  %v2983_v56 = vsel %vm7226_vm13, %v2958_v20, 0.0 }
 0x354   :  { %v2970_v19 = vrot.slane %v2969_v5, 4  ;;  %v2977_v23 = vrot.slane %v2976_v11, 4  ;;  %v2984_v27 = vrot.slane %v2983_v56, 4  ;;  %v2990_v28 = vsel %vm7226_vm13, %v2959_v35, 0.0  ;;  %4710 = vmatpush.bf16.msrb.mxu3 %v5309_v32 }
 0x355   :  { %v2991_v31 = vrot.slane %v2990_v28, 4  ;;  %v2997_v44 = vsel %vm7226_vm13, %v2960_v3, 0.0  ;;  %v3004_v12 = vsel %vm7226_vm13, %v2961_v4, 0.0  ;;  %vm7233_vm13 = vcmask 1046534  }
 0x356   :  { %v2971_v17 = vadd.f32 %v2970_v19, %v2969_v5  ;;  %v2978_v29 = vadd.f32 %v2977_v23, %v2976_v11  ;;  %v2985_v18 = vadd.f32 %v2984_v27, %v2983_v56  ;;  %v2998_v51 = vrot.slane %v2997_v44, 4 }
 0x357   :  { %v2992_v9 = vadd.f32 %v2991_v31, %v2990_v28  ;;  %v3005_v33 = vrot.slane %v3004_v12, 4 }
 0x358   :  { %v2972_v10 = vrot.slane %v2971_v17, 2  ;;  %v2979_v24 = vrot.slane %v2978_v29, 2  ;;  %v2986_v42 = vrot.slane %v2985_v18, 2  ;;  %v2999_v21 = vadd.f32 %v2998_v51, %v2997_v44 }
 0x359   :  { %v2993_v37 = vrot.slane %v2992_v9, 2  ;;  %v3006_v25 = vadd.f32 %v3005_v33, %v3004_v12 }
 0x35a   :  { %v2973_v26 = vadd.f32 %v2972_v10, %v2971_v17  ;;  %v2980_v22 = vadd.f32 %v2979_v24, %v2978_v29  ;;  %v2987_v7 = vadd.f32 %v2986_v42, %v2985_v18  ;;  %v3000_v46 = vrot.slane %v2999_v21, 2 }
 0x35b   :  { %v2994_v41 = vadd.f32 %v2993_v37, %v2992_v9  ;;  %v3007_v38 = vrot.slane %v3006_v25, 2 }
 0x35c   :  { %v2974_v47 = vrot.slane %v2973_v26, 1  ;;  %v2981_v34 = vrot.slane %v2980_v22, 1  ;;  %v2988_v49 = vrot.slane %v2987_v7, 1  ;;  %v3001_v50 = vadd.f32 %v3000_v46, %v2999_v21 }
 0x35d   :  { %v2995_v52 = vrot.slane %v2994_v41, 1  ;;  %v3008_v13 = vadd.f32 %v3007_v38, %v3006_v25 }
 0x35e   :  { %v2975_v14 = vadd.f32 %v2974_v47, %v2973_v26  ;;  %v2982_v53 = vadd.f32 %v2981_v34, %v2980_v22  ;;  %v2989_v39 = vadd.f32 %v2988_v49, %v2987_v7  ;;  %v3002_v58 = vrot.slane %v3001_v50, 1 }
 0x35f   :  { %v2996_v59 = vadd.f32 %v2995_v52, %v2994_v41  ;;  %v3009_v60 = vrot.slane %v3008_v13, 1 }
 0x360   :  { %v3003_v62 = vadd.f32 %v3002_v58, %v3001_v50  ;;  %v3018_v61 = vmul.f32 %v6920_v16, %v2975_v14  ;;  %v3019_v30 = vmul.f32 %v6920_v16, %v2982_v53  ;;  %v3020_v63 = vmul.f32 %v6920_v16, %v2989_v39 }
 0x361   :  { %v3010_v0 = vadd.f32 %v3009_v60, %v3008_v13  ;;  %v3021_v45 = vmul.f32 %v6920_v16, %v2996_v59 }
 0x362   :  { %v3022_v55 = vmul.f32 %v6920_v16, %v3003_v62  ;;  %v3025_v1 = vperm.slane %v3019_v30, 0  ;;  %v3026_v54 = vperm.slane %v3020_v63, 0  ;;  %v3024_v35 = vperm.slane %v3018_v61, 0 }
 0x363   :  { %v3023_v20 = vmul.f32 %v6920_v16, %v3010_v0  ;;  %v3027_v57 = vperm.slane %v3021_v45, 0 }
 0x364   :  { %v3028_v3 = vperm.slane %v3022_v55, 0  ;;  %v3036_v4 = vrot.slane %v3025_v1, 7  ;;  %v3037_v5 = vrot.slane %v3026_v54, 6 }
 0x365   :  { %v3029_v11 = vperm.slane %v3023_v20, 0  ;;  %v3038_v56 = vrot.slane %v3027_v57, 5 }
 0x366   :  { %v3039_v2 = vrot.slane %v3028_v3, 4  ;;  %v3041_v19 = vsel %vm2801_vm8, %v3024_v35, %v3036_v4  ;;  %v3047_v23 = vsel %vm3046_vm15, %v3024_v35, %v3036_v4  ;;  %v3058_v27 = vsel %vm7228_vm4, %v3024_v35, %v3036_v4 }
 0x367   :  { %v3040_v28 = vrot.slane %v3029_v11, 3  ;;  %v3042_v31 = vsel %vm2803_vm10, %v3041_v19, %v3037_v5  ;;  %v3049_v44 = vsel %vm7229_vm0, %v3047_v23, %v3037_v5  ;;  %v3060_v12 = vsel %vm7240_vm5, %v3058_v27, %v3037_v5 }
 0x368   :  { %v3043_v40 = vsel %vm7239_vm7, %v3038_v56, %v3039_v2  ;;  %v3051_v17 = vsel %vm7238_vm1, %v3038_v56, %v3039_v2  ;;  %v3062_v29 = vsel %vm7237_vm6, %v3038_v56, %v3039_v2  ;;  %v3068_v18 = vsel %vm7239_vm7, %v3024_v35, %v3036_v4 }
 0x369   :  { %v3044_v51 = vsel %vm7236_vm9, %v3043_v40, %v3040_v28  ;;  %v3053_v32 = vsel %vm7235_vm2, %v3051_v17, %v3040_v28  ;;  %v3064_v9 = vsel %vm7234_vm12, %v3062_v29, %v3040_v28  ;;  %v3069_v33 = vsel %vm7236_vm9, %v3068_v18, %v3037_v5 }
 0x36a   :  { %vm7273_vm4 = vcmask 1042432   ;;  %vm7274_vm0 = vcmask 1043457   ;;  %v3066_v24 = vsel %vm7232_vm14, %v3060_v12, %v3064_v9  ;;  %v3071_v42 = vsel %vm7233_vm13, %v3038_v56, %v3039_v2 }
 0x36b   :  { %v3045_v36 = vsel %vm7273_vm4, %v3042_v31, %v3044_v51  ;;  %v3055_v10 = vsel %vm7274_vm0, %v3049_v44, %v3053_v32  ;;  %v3067_v37 = vrot.slane %v3066_v24, 2  ;;  %v3073_v25 = vsel %vm7231_vm3, %v3040_v28, %v3071_v42 }
 0x36c   :  { %v3056_v21 = vrot.slane %v3055_v10, 1  ;;  %v6948_v43 = vsub.f32 %v6588_v6, %v3045_v36  ;;  %v3075_v26 = vsel %vm7230_vm11, %v3069_v33, %v3073_v25  ;;  %vm7275_vm0 = vcmask 1043456  }
 0x36d   :  { %v3076_v22 = vrot.slane %v3075_v26, 3  ;;  %v6955_v46 = vsub.f32 %v6838_v48, %v3067_v37  ;;  %vm7276_vm4 = vmmov %vm7275_vm0 }
 0x36e   :  { %v6952_v7 = vsub.f32 %v6707_v15, %v3056_v21  ;;  %v3085_v41 = vmul.f32 %v6948_v43, %v6948_v43  ;;  %vm7277_vm11 = vmmov %vm7275_vm0 }
 0x36f   :  { %v6960_v38 = vsub.f32 %v6893_v8, %v3076_v22  ;;  %v3087_v6 = vmul.f32 %v6955_v46, %v6955_v46  ;;  %vm7278_vm3 = vmmov %vm7275_vm0 }
 0x370   :  { %v3086_v47 = vmul.f32 %v6952_v7, %v6952_v7  ;;  %3093 = vst [vmem:[#allocation1] ss:$9 sm:$0xff] %v3085_v41  ;;  %vm7279_vm14 = vmmov %vm7275_vm0 }
 0x371   :  { %v3088_v15 = vmul.f32 %v6960_v38, %v6960_v38  ;;  %3097 = vst [vmem:[#allocation1 + $0x2] ss:$9 sm:$0xff] %v3087_v6  ;;  %vm7280_vm13 = vmmov %vm7275_vm0 }
 0x372   :  { %3095 = vst [vmem:[#allocation1 + $0x1] ss:$9 sm:$0xff] %v3086_v47 }
 0x373   :  { %3099 = vst [vmem:[#allocation1 + $0x3] ss:$9 sm:$0xff] %v3088_v15 }
 0x37a   :  { %v3100_v48 = vld [vmem:[#allocation1] sm:$0xff]  ;;  %v3101_v34 = vld [vmem:[#allocation1 + $0x9] sm:$0xff]  ;;  %v3102_v49 = vld [vmem:[#allocation1 + $0x12] sm:$0xff] }
 0x37b   :  { %v3103_v50 = vld [vmem:[#allocation1 + $0x1b] sm:$0xff]  ;;  %v3104_v52 = vld [vmem:[#allocation1 + $0x24] sm:$0xff]  ;;  %v3105_v8 = vld [vmem:[#allocation1 + $0x2d] sm:$0xff]  ;;  %v3112_v13 = vsel %vm7275_vm0, %v3100_v48, 0.0  ;;  %v3119_v14 = vsel %vm7276_vm4, %v3101_v34, 0.0  ;;  %v3126_v53 = vsel %vm7277_vm11, %v3102_v49, 0.0 }
 0x37c   :  { %v3113_v39 = vrot.slane %v3112_v13, 4  ;;  %v3120_v58 = vrot.slane %v3119_v14, 4  ;;  %v3127_v59 = vrot.slane %v3126_v53, 4  ;;  %v3133_v60 = vsel %vm7278_vm3, %v3103_v50, 0.0 }
 0x37d   :  { %v3134_v62 = vrot.slane %v3133_v60, 4  ;;  %v3140_v61 = vsel %vm7279_vm14, %v3104_v52, 0.0  ;;  %v3147_v30 = vsel %vm7280_vm13, %v3105_v8, 0.0 }
 0x37e   :  { %v3114_v63 = vadd.f32 %v3113_v39, %v3112_v13  ;;  %v3121_v0 = vadd.f32 %v3120_v58, %v3119_v14  ;;  %v3128_v45 = vadd.f32 %v3127_v59, %v3126_v53  ;;  %v3141_v55 = vrot.slane %v3140_v61, 4 }
 0x37f   :  { %v3135_v1 = vadd.f32 %v3134_v62, %v3133_v60  ;;  %v3148_v54 = vrot.slane %v3147_v30, 4 }
 0x380   :  { %v3115_v20 = vrot.slane %v3114_v63, 2  ;;  %v3122_v57 = vrot.slane %v3121_v0, 2  ;;  %v3129_v35 = vrot.slane %v3128_v45, 2  ;;  %v3142_v3 = vadd.f32 %v3141_v55, %v3140_v61 }
 0x381   :  { %v3136_v4 = vrot.slane %v3135_v1, 2  ;;  %v3149_v5 = vadd.f32 %v3148_v54, %v3147_v30 }
 0x382   :  { %v3116_v11 = vadd.f32 %v3115_v20, %v3114_v63  ;;  %v3123_v56 = vadd.f32 %v3122_v57, %v3121_v0  ;;  %v3130_v2 = vadd.f32 %v3129_v35, %v3128_v45  ;;  %v3143_v19 = vrot.slane %v3142_v3, 2 }
 0x383   :  { %v3137_v23 = vadd.f32 %v3136_v4, %v3135_v1  ;;  %v3150_v27 = vrot.slane %v3149_v5, 2 }
 0x384   :  { %v3117_v28 = vrot.slane %v3116_v11, 1  ;;  %v3124_v31 = vrot.slane %v3123_v56, 1  ;;  %v3131_v44 = vrot.slane %v3130_v2, 1  ;;  %v3144_v12 = vadd.f32 %v3143_v19, %v3142_v3 }
 0x385   :  { %v3138_v40 = vrot.slane %v3137_v23, 1  ;;  %v3151_v17 = vadd.f32 %v3150_v27, %v3149_v5 }
 0x386   :  { %v3118_v29 = vadd.f32 %v3117_v28, %v3116_v11  ;;  %v3125_v18 = vadd.f32 %v3124_v31, %v3123_v56  ;;  %v3132_v51 = vadd.f32 %v3131_v44, %v3130_v2  ;;  %v3145_v32 = vrot.slane %v3144_v12, 1 }
 0x387   :  { %v3139_v9 = vadd.f32 %v3138_v40, %v3137_v23  ;;  %v3152_v33 = vrot.slane %v3151_v17, 1 }
 0x388   :  { %v3146_v36 = vadd.f32 %v3145_v32, %v3144_v12  ;;  %v3154_v10 = vmul.f32 %v3118_v29, %v6920_v16  ;;  %v3155_v24 = vmul.f32 %v3125_v18, %v6920_v16  ;;  %v3156_v42 = vmul.f32 %v3132_v51, %v6920_v16 }
 0x389   :  { %v3153_v21 = vadd.f32 %v3152_v33, %v3151_v17  ;;  %v3157_v37 = vmul.f32 %v3139_v9, %v6920_v16 }
 0x38a   :  { %v3158_v25 = vmul.f32 %v3146_v36, %v6920_v16  ;;  %v3160_v26 = vadd.f32 1e-05, %v3154_v10  ;;  %v3161_v22 = vadd.f32 1e-05, %v3155_v24  ;;  %v3162_v41 = vadd.f32 1e-05, %v3156_v42 }
 0x38b   :  { %v3159_v47 = vmul.f32 %v3153_v21, %v6920_v16  ;;  %v3163_v6 = vadd.f32 1e-05, %v3157_v37 }
 0x38c   :  { %v6980_v15 = vadd.f32 1e-05, %v3158_v25  ;;  %6160 = vrsqrt.f32 %v3160_v26  ;;  %vm3172_vm11 = vweird.f32 %v3160_v26  ;;  %vm3182_vm13 = vweird.f32 %v3161_v22 }
 0x38d   :  { %v6982_v48 = vadd.f32 1e-05, %v3159_v47  ;;  %6162 = vrsqrt.f32 %v3161_v22  ;;  %vm3192_vm3 = vweird.f32 %v3162_v41  ;;  %vm3202_vm14 = vweird.f32 %v3163_v6 }
 0x38e   :  { %6164 = vrsqrt.f32 %v3162_v41 }
 0x38f   :  { %6166 = vrsqrt.f32 %v3163_v6 }
 0x390   :  { %6168 = vrsqrt.f32 %v6980_v15 }
 0x391   :  { %6170 = vrsqrt.f32 %v6982_v48 }
 0x392   :  { %v6161_v34 = vpop.eup %6160 }
 0x393   :  { %v6163_v49 = vpop.eup %6162  ;;  %v3167_v50 = vmul.f32 %v6161_v34, %v3160_v26  ;;  %vm3173_vm0 = vweird.f32 %v6161_v34 }
 0x394   :  { %v6165_v52 = vpop.eup %6164  ;;  %v3177_v8 = vmul.f32 %v6163_v49, %v3161_v22  ;;  %vm3183_vm4 = vweird.f32 %v6163_v49  ;;  %vm6989_vm2 = vmor %vm3172_vm11, %vm3173_vm0  ;;  %vm3212_vm0 = vweird.f32 %v6980_v15 }
 0x395   :  { %v6167_v13 = vpop.eup %6166  ;;  %v3168_v14 = vmul.f32 %v6161_v34, %v3167_v50  ;;  %v3187_v53 = vmul.f32 %v6165_v52, %v3162_v41  ;;  %vm3193_vm12 = vweird.f32 %v6165_v52  ;;  %vm3184_vm6 = vmor %vm3182_vm13, %vm3183_vm4  ;;  %vm3222_vm4 = vweird.f32 %v6982_v48 }
 0x396   :  { %v6169_v39 = vpop.eup %6168  ;;  %v3178_v58 = vmul.f32 %v6163_v49, %v3177_v8  ;;  %v3197_v59 = vmul.f32 %v6167_v13, %v3163_v6  ;;  %vm3203_vm9 = vweird.f32 %v6167_v13  ;;  %vm3194_vm5 = vmor %vm3192_vm3, %vm3193_vm12  ;;  %vm7288_vm12 = vcmask 1044484  }
 0x397   :  { %v6171_v60 = vpop.eup %6170  ;;  %v3169_v62 = vmul.f32 0.5, %v3168_v14  ;;  %v3188_v61 = vmul.f32 %v6165_v52, %v3187_v53  ;;  %v3207_v30 = vmul.f32 %v6169_v39, %v6980_v15  ;;  %vm3213_vm1 = vweird.f32 %v6169_v39  ;;  %vm3204_vm11 = vmor %vm3202_vm14, %vm3203_vm9 }
 0x398   :  { %v3179_v63 = vmul.f32 0.5, %v3178_v58  ;;  %v3198_v0 = vmul.f32 %v6167_v13, %v3197_v59  ;;  %v3217_v45 = vmul.f32 %v6171_v60, %v6982_v48  ;;  %vm3223_vm7 = vweird.f32 %v6171_v60  ;;  %vm3214_vm13 = vmor %vm3212_vm0, %vm3213_vm1  ;;  %v7016_v59 = vld [vmem:[#allocation6 + $0x2e4] sm:$0xf] }
 0x399   :  { %v3170_v55 = vsub.f32 1.5, %v3169_v62  ;;  %v3189_v1 = vmul.f32 0.5, %v3188_v61  ;;  %v3208_v54 = vmul.f32 %v6169_v39, %v3207_v30  ;;  %vm7283_vm9 = vcmask 1042434  }
 0x39a   :  { %v3180_v20 = vsub.f32 1.5, %v3179_v63  ;;  %v3199_v57 = vmul.f32 0.5, %v3198_v0  ;;  %v3218_v35 = vmul.f32 %v6171_v60, %v3217_v45  ;;  %vm7284_vm1 = vcmask 1042433   ;;  %v7022_v63 = vld [vmem:[#allocation6 + $0x2f0] sm:$0xf0] }
 0x39b   :  { %v3171_v3 = vmul.f32 %v6161_v34, %v3170_v55  ;;  %v3190_v4 = vsub.f32 1.5, %v3189_v1  ;;  %v3209_v5 = vmul.f32 0.5, %v3208_v54  ;;  %vm7289_vm3 = vcmask 1045509   ;;  %v7024_v0 = vld [vmem:[#allocation6 + $0x3e4] sm:$0xf] }
 0x39c   :  { %v3181_v56 = vmul.f32 %v6163_v49, %v3180_v20  ;;  %v3200_v2 = vsub.f32 1.5, %v3199_v57  ;;  %v3219_v19 = vmul.f32 0.5, %v3218_v35  ;;  %vm7294_vm0 = vcmask 1046534   ;;  %v7026_v45 = vld [vmem:[#allocation6 + $0x3f0] sm:$0xf0] }
 0x39d   :  { %v3191_v23 = vmul.f32 %v6165_v52, %v3190_v4  ;;  %v3210_v27 = vsub.f32 1.5, %v3209_v5  ;;  %v3175_v28 = vsel %vm6989_vm2, %v6161_v34, %v3171_v3  ;;  %vm3224_vm2 = vmor %vm3222_vm4, %vm3223_vm7  ;;  %vm7285_vm7 = vcmask 1043458   ;;  %v7030_v57 = vld [vmem:[#allocation6 + $0x4e4] sm:$0xf]  ;;  %v7032_v35 = vld [vmem:[#allocation6 + $0x4f0] sm:$0xf0] }
 0x39e   :  { %v3185_v31 = vsel %vm3184_vm6, %v6163_v49, %v3181_v56  ;;  %v3201_v44 = vmul.f32 %v6167_v13, %v3200_v2  ;;  %v3220_v12 = vsub.f32 1.5, %v3219_v19  ;;  %v3226_v33 = vperm.slane %v3175_v28, 0  ;;  %v7038_v56 = vld [vmem:[#allocation6 + $0x2c4] sm:$0xf]  ;;  %v7040_v2 = vld [vmem:[#allocation6 + $0x2d0] sm:$0xf0] }
 0x39f   :  { %v3195_v40 = vsel %vm3194_vm5, %v6165_v52, %v3191_v23  ;;  %v3211_v17 = vmul.f32 %v6169_v39, %v3210_v27  ;;  %v3227_v29 = vperm.slane %v3185_v31, 0  ;;  %vm7286_vm5 = vcmask 1043459  }
 0x3a0   :  { %v3205_v18 = vsel %vm3204_vm11, %v6167_v13, %v3201_v44  ;;  %v3221_v51 = vmul.f32 %v6171_v60, %v3220_v12  ;;  %v3228_v32 = vperm.slane %v3195_v40, 0  ;;  %vm7287_vm6 = vmmov %vm7286_vm5  ;;  %vm7293_vm11 = vcmask 1046533  }
 0x3a1   :  { %v3215_v9 = vsel %vm3214_vm13, %v6169_v39, %v3211_v17  ;;  %v3229_v36 = vperm.slane %v3205_v18, 0  ;;  %v3238_v10 = vrot.slane %v3227_v29, 7  ;;  %vm7295_vm13 = vcmask 1042432  }
 0x3a2   :  { %v3225_v24 = vsel %vm3224_vm2, %v6171_v60, %v3221_v51  ;;  %v3230_v42 = vperm.slane %v3215_v9, 0  ;;  %v3239_v21 = vrot.slane %v3228_v32, 6  ;;  %vm7296_vm4 = vcmask 1043457  }
 0x3a3   :  { %v3231_v37 = vperm.slane %v3225_v24, 0  ;;  %v3240_v25 = vrot.slane %v3229_v36, 5  ;;  %v3243_v26 = vsel %vm2801_vm8, %v3226_v33, %v3238_v10  ;;  %v3248_v22 = vsel %vm3046_vm15, %v3226_v33, %v3238_v10 }
 0x3a4   :  { %v3241_v41 = vrot.slane %v3230_v42, 4  ;;  %v3244_v47 = vsel %vm2803_vm10, %v3243_v26, %v3239_v21  ;;  %v3254_v6 = vsel %vm7283_vm9, %v3226_v33, %v3238_v10  ;;  %v3249_v48 = vsel %vm7284_vm1, %v3248_v22, %v3239_v21 }
 0x3a5   :  { %v3242_v15 = vrot.slane %v3231_v37, 3  ;;  %v3255_v34 = vsel %vm7285_vm7, %v3254_v6, %v3239_v21  ;;  %v3260_v49 = vsel %vm7286_vm5, %v3226_v33, %v3238_v10  ;;  %vm7290_vm8 = vcmask 1044483  }
 0x3a6   :  { %v3245_v50 = vsel %vm7287_vm6, %v3240_v25, %v3241_v41  ;;  %v3250_v52 = vsel %vm7288_vm12, %v3240_v25, %v3241_v41  ;;  %v3256_v8 = vsel %vm7289_vm3, %v3240_v25, %v3241_v41  ;;  %v3261_v13 = vsel %vm7290_vm8, %v3260_v49, %v3239_v21  ;;  %vm7291_vm14 = vmmov %vm7290_vm8 }
 0x3a7   :  { %v3246_v14 = vsel %vm7291_vm14, %v3245_v50, %v3242_v15  ;;  %vm7292_vm10 = vcmask 1045508   ;;  %v3257_v39 = vsel %vm7293_vm11, %v3256_v8, %v3242_v15  ;;  %v3262_v58 = vsel %vm7294_vm0, %v3240_v25, %v3241_v41  ;;  %vm7302_vm12 = vmmov %vm7287_vm6 }
 0x3a8   :  { %v3251_v53 = vsel %vm7292_vm10, %v3250_v52, %v3242_v15  ;;  %v3247_v60 = vsel %vm7295_vm13, %v3244_v47, %v3246_v14  ;;  %vm7297_vm2 = vcmask 1044482   ;;  %vm7298_vm9 = vcmask 1045504   ;;  %vm7304_vm8 = vmmov %vm7287_vm6 }
 0x3a9   :  { %v3252_v62 = vsel %vm7296_vm4, %v3249_v48, %v3251_v53  ;;  %v3258_v61 = vsel %vm7297_vm2, %v3255_v34, %v3257_v39  ;;  %v3263_v30 = vsel %vm7298_vm9, %v3242_v15, %v3262_v58  ;;  %vm7299_vm1 = vcmask 1045507   ;;  %vm7306_vm10 = vmmov %vm7287_vm6 }
 0x3aa   :  { %v3253_v55 = vrot.slane %v3252_v62, 1  ;;  %v3259_v1 = vrot.slane %v3258_v61, 2  ;;  %v3264_v54 = vsel %vm7299_vm1, %v3261_v13, %v3263_v30  ;;  %v3270_v20 = vmul.f32 %v3247_v60, %v6948_v43  ;;  %vm7308_vm0 = vmmov %vm7287_vm6 }
 0x3ab   :  { %v3265_v3 = vrot.slane %v3264_v54, 3  ;;  %v5549_v43 = vor.u32 %v7016_v59, %v7022_v63  ;;  %v5677_v23 = vor.u32 %v7024_v0, %v7026_v45  ;;  %v5805_v27 = vor.u32 %v7030_v57, %v7032_v35  ;;  %v5498_v59 = vld [vmem:[#allocation6 + $0x290] sm:$0xf0]  ;;  %vm7310_vm4 = vmmov %vm7308_vm0 }
 0x3ac   :  { %v3271_v4 = vmul.f32 %v3253_v55, %v6952_v7  ;;  %v3272_v5 = vmul.f32 %v3259_v1, %v6955_v46  ;;  %v7036_v11 = vmax.f32 %v3270_v20, 0.0  ;;  %v5533_v40 = vor.u32 %v7038_v56, %v7040_v2  ;;  %v6090_v56 = vld [vmem:[#allocation6 + $0x4a4] sm:$0xf]  ;;  %v5770_v2 = vld [vmem:[#allocation6 + $0x4b0] sm:$0xf0] }
 0x3ad   :  { %v3273_v19 = vmul.f32 %v3265_v3, %v6960_v38  ;;  %vm7300_vm7 = vcmask 1042434  }
 0x3ae   :  { %v7049_v7 = vmax.f32 %v3271_v4, 0.0  ;;  %v7051_v46 = vmax.f32 %v3272_v5, 0.0  ;;  %v3282_v28 = vperm.slane %v7036_v11, 0  ;;  %v3283_v31 = vperm.slane %v7036_v11, 1  ;;  %vm7301_vm5 = vmmov %vm7300_vm7 }
 0x3af   :  { %v7055_v44 = vmax.f32 %v3273_v19, 0.0  ;;  %v3284_v38 = vperm.slane %v7036_v11, 2  ;;  %v3285_v12 = vperm.slane %v7036_v11, 3  ;;  %vm7303_vm3 = vmmov %vm7301_vm5  ;;  %v3286_v45 = vperm.slane %v7036_v11, 4 }
 0x3b0   :  { %v3288_v17 = vperm.slane %v7049_v7, 0  ;;  %v3294_v29 = vperm.slane %v7051_v46, 0  ;;  %v3330_v18 = vpack.c.bf16 %v3282_v28, %v3282_v28  ;;  %v3289_v51 = vperm.slane %v7049_v7, 1  ;;  %vm7305_vm14 = vmmov %vm7303_vm3 }
 0x3b1   :  { %v3300_v32 = vperm.slane %v7055_v44, 0  ;;  %v3295_v9 = vperm.slane %v7051_v46, 1  ;;  %v3301_v33 = vperm.slane %v7055_v44, 1  ;;  %v3331_v36 = vpack.c.bf16 %v3283_v31, %v3283_v31  ;;  %v7076_v31 = vld [vmem:[#allocation6 + $0x5e4] sm:$0xf]  ;;  %vm7307_vm11 = vmmov %vm7303_vm3 }
 0x3b2   :  { %v3336_v10 = vpack.c.bf16 %v3288_v17, %v3288_v17  ;;  %v3342_v24 = vpack.c.bf16 %v3294_v29, %v3294_v29  ;;  %v3580_v42 = vunpack.c.l.b16 %v3330_v18  ;;  %v3337_v21 = vpack.c.bf16 %v3289_v51, %v3289_v51  ;;  %v5658_v17 = vld [vmem:[#allocation6 + $0x3d0] sm:$0xf0]  ;;  %vm7309_vm13 = vmmov %vm7303_vm3 }
 0x3b3   :  { %v3348_v37 = vpack.c.bf16 %v3300_v32, %v3300_v32  ;;  %v3343_v25 = vpack.c.bf16 %v3295_v9, %v3295_v9  ;;  %v3349_v26 = vpack.c.bf16 %v3301_v33, %v3301_v33  ;;  %v3581_v22 = vunpack.c.l.b16 %v3331_v36  ;;  %v7083_v9 = vld [vmem:[#allocation6 + $0x5f0] sm:$0xf0]  ;;  %v7085_v33 = vld [vmem:[#allocation6 + $0x4c4] sm:$0xf] }
 0x3b4   :  { %v3586_v41 = vunpack.c.l.b16 %v3336_v10  ;;  %v3592_v47 = vunpack.c.l.b16 %v3342_v24  ;;  %v3587_v6 = vunpack.c.l.b16 %v3337_v21  ;;  %v3290_v15 = vperm.slane %v7049_v7, 2  ;;  %v7089_v21 = vld [vmem:[#allocation6 + $0x4d0] sm:$0xf0] }
 0x3b5   :  { %v3598_v48 = vunpack.c.l.b16 %v3348_v37  ;;  %v3593_v34 = vunpack.c.l.b16 %v3343_v25  ;;  %v3599_v49 = vunpack.c.l.b16 %v3349_v26  ;;  %v3296_v50 = vperm.slane %v7051_v46, 2 }
 0x3b6   :  { %v3604_v52 = vrot.slane %v3586_v41, 7  ;;  %v3606_v8 = vrot.slane %v3592_v47, 6  ;;  %v3610_v13 = vrot.slane %v3587_v6, 7  ;;  %v3302_v14 = vperm.slane %v7055_v44, 2  ;;  %v7095_v41 = vld [vmem:[#allocation6 + $0x5d0] sm:$0xf0] }
 0x3b7   :  { %v3608_v53 = vrot.slane %v3598_v48, 5  ;;  %v3612_v39 = vrot.slane %v3593_v34, 6  ;;  %v3614_v58 = vrot.slane %v3599_v49, 5  ;;  %v3332_v60 = vpack.c.bf16 %v3284_v38, %v3284_v38  ;;  %v6062_v38 = vld [vmem:[#allocation6 + $0x3c4] sm:$0xf] }
 0x3b8   :  { %v3605_v62 = vsel %vm3046_vm15, %v3604_v52, %v3580_v42  ;;  %v3611_v61 = vsel %vm3046_vm15, %v3610_v13, %v3581_v22  ;;  %v3338_v30 = vpack.c.bf16 %v3290_v15, %v3290_v15  ;;  %v3344_v55 = vpack.c.bf16 %v3296_v50, %v3296_v50  ;;  %v7093_v22 = vld [vmem:[#allocation6 + $0x5c4] sm:$0xf] }
 0x3b9   :  { %v3607_v1 = vsel %vm7300_vm7, %v3606_v8, %v3605_v62  ;;  %v3613_v54 = vsel %vm7301_vm5, %v3612_v39, %v3611_v61  ;;  %v3350_v20 = vpack.c.bf16 %v3302_v14, %v3302_v14  ;;  %v3582_v3 = vunpack.c.l.b16 %v3332_v60  ;;  %v6026_v47 = vld [vmem:[#allocation6 + $0x2a4] sm:$0xf]  ;;  %v5642_v14 = vld [vmem:[#allocation6 + $0x3b0] sm:$0xf0] }
 0x3ba   :  { %v3609_v4 = vsel %vm7287_vm6, %v3608_v53, %v3607_v1  ;;  %v3615_v5 = vsel %vm7302_vm12, %v3614_v58, %v3613_v54  ;;  %v3588_v19 = vunpack.c.l.b16 %v3338_v30  ;;  %v3594_v28 = vunpack.c.l.b16 %v3344_v55  ;;  %v6058_v49 = vld [vmem:[#allocation6 + $0x3a4] sm:$0xf] }
 0x3bb   :  { %v7078_v29 = vpack.c.b16 %v3609_v4, %v3609_v4  ;;  %v7080_v18 = vpack.c.b16 %v3615_v5, %v3615_v5  ;;  %v3600_v51 = vunpack.c.l.b16 %v3350_v20  ;;  %v3291_v32 = vperm.slane %v7049_v7, 3  ;;  %v7109_v53 = vld [vmem:[#allocation6 + $0x284] sm:$0xf] }
 0x3bc   :  { %v3616_v36 = vrot.slane %v3588_v19, 7  ;;  %v3618_v10 = vrot.slane %v3594_v28, 6  ;;  %v3297_v24 = vperm.slane %v7051_v46, 3  ;;  %v3303_v42 = vperm.slane %v7055_v44, 3  ;;  %v6054_v1 = vld [vmem:[#allocation6 + $0x384] sm:$0xf] }
 0x3bd   :  { %4620 = vmatmul.bf16.vlgmr.msra.gmra.mxu0 %v7078_v29  ;;  %4633 = vmatmul.bf16.vlgmr.msra.gmra.mxu1 %v7080_v18  ;;  %v3333_v37 = vpack.c.bf16 %v3285_v12, %v3285_v12  ;;  %v3339_v25 = vpack.c.bf16 %v3291_v32, %v3291_v32  ;;  %v5661_v26 = vor.u32 %v6062_v38, %v5658_v17  ;;  %v3620_v15 = vrot.slane %v3600_v51, 5  ;;  %v5514_v12 = vld [vmem:[#allocation6 + $0x2b0] sm:$0xf0] }
 0x3be   :  { %v3617_v6 = vsel %vm3046_vm15, %v3616_v36, %v3582_v3  ;;  %v3345_v48 = vpack.c.bf16 %v3297_v24, %v3297_v24  ;;  %v3351_v34 = vpack.c.bf16 %v3303_v42, %v3303_v42  ;;  %4716 = vmatpush.bf16.msra.mxu0 %v5549_v43  ;;  %4729 = vmatpush.bf16.msra.mxu1 %v5677_v23  ;;  %v5626_v3 = vld [vmem:[#allocation6 + $0x390] sm:$0xf0]  ;;  %v3292_v4 = vperm.slane %v7049_v7, 4 }
 0x3bf   :  { %v3619_v50 = vsel %vm7303_vm3, %v3618_v10, %v3617_v6  ;;  %v3589_v52 = vunpack.c.l.b16 %v3339_v25  ;;  %v5933_v8 = vor.u32 %v7076_v31, %v7083_v9  ;;  %v5789_v13 = vor.u32 %v7085_v33, %v7089_v21  ;;  %v5482_v36 = vld [vmem:[#allocation6 + $0x270] sm:$0xf0]  ;;  %v6050_v21 = vld [vmem:[#allocation6 + $0x364] sm:$0xf] }
 0x3c0   :  { %v3621_v63 = vsel %vm7304_vm8, %v3620_v15, %v3619_v50  ;;  %v3595_v43 = vunpack.c.l.b16 %v3345_v48  ;;  %v3601_v0 = vunpack.c.l.b16 %v3351_v34  ;;  %v3583_v39 = vunpack.c.l.b16 %v3333_v37  ;;  %v5610_v37 = vld [vmem:[#allocation6 + $0x370] sm:$0xf0] }
 0x3c1   :  { %v7113_v23 = vpack.c.b16 %v3621_v63, %v3621_v63  ;;  %v3622_v58 = vrot.slane %v3589_v52, 7  ;;  %v5917_v60 = vor.u32 %v7093_v22, %v7095_v41  ;;  %v5517_v61 = vor.u32 %v6026_v47, %v5514_v12  ;;  %v5754_v25 = vld [vmem:[#allocation6 + $0x490] sm:$0xf0] }
 0x3c2   :  { %v3624_v62 = vrot.slane %v3595_v43, 6  ;;  %4717 = vmatpush.bf16.msra.mxu0 %v5533_v40  ;;  %4730 = vmatpush.bf16.msra.mxu1 %v5661_v26  ;;  %v5645_v30 = vor.u32 %v6058_v49, %v5642_v14  ;;  %v5501_v55 = vor.u32 %v7109_v53, %v5498_v59  ;;  %v3626_v20 = vrot.slane %v3601_v0, 5  ;;  %v5898_v50 = vld [vmem:[#allocation6 + $0x5b0] sm:$0xf0] }
 0x3c3   :  { %4646 = vmatmul.bf16.vlgmr.msra.gmra.mxu2 %v7113_v23  ;;  %v3623_v54 = vsel %vm3046_vm15, %v3622_v58, %v3583_v39  ;;  %v3298_v5 = vperm.slane %v7051_v46, 4  ;;  %v3304_v40 = vperm.slane %v7055_v44, 4  ;;  %v3334_v28 = vpack.c.bf16 %v3286_v45, %v3286_v45  ;;  %v5466_v59 = vld [vmem:[#allocation6 + $0x250] sm:$0xf0] }
 0x3c4   :  { %v3625_v19 = vsel %vm7305_vm14, %v3624_v62, %v3623_v54  ;;  %4742 = vmatpush.bf16.msra.mxu2 %v5805_v27  ;;  %v3287_v31 = vperm.slane %v7036_v11, 5  ;;  %v3340_v17 = vpack.c.bf16 %v3292_v4, %v3292_v4  ;;  %v3293_v32 = vperm.slane %v7049_v7, 5  ;;  %v6018_v27 = vld [vmem:[#allocation6 + $0x264] sm:$0xf]  ;;  %v5594_v39 = vld [vmem:[#allocation6 + $0x350] sm:$0xf0] }
 0x3c5   :  { %v3627_v38 = vsel %vm7306_vm10, %v3626_v20, %v3625_v19  ;;  %v3346_v51 = vpack.c.bf16 %v3298_v5, %v3298_v5  ;;  %v5629_v33 = vor.u32 %v6054_v1, %v5626_v3  ;;  %v3352_v57 = vpack.c.bf16 %v3304_v40, %v3304_v40  ;;  %v6086_v7 = vld [vmem:[#allocation6 + $0x484] sm:$0xf]  ;;  %v5738_v3 = vld [vmem:[#allocation6 + $0x470] sm:$0xf0] }
 0x3c6   :  { %v7133_v9 = vpack.c.b16 %v3627_v38, %v3627_v38  ;;  %4718 = vmatpush.bf16.msra.mxu0 %v5517_v61  ;;  %4731 = vmatpush.bf16.msra.mxu1 %v5645_v30  ;;  %v3299_v35 = vperm.slane %v7051_v46, 5  ;;  %v5773_v10 = vor.u32 %v6090_v56, %v5770_v2  ;;  %v3590_v24 = vunpack.c.l.b16 %v3340_v17  ;;  %v6122_v46 = vld [vmem:[#allocation6 + $0x5a4] sm:$0xf]  ;;  %v5882_v5 = vld [vmem:[#allocation6 + $0x590] sm:$0xf0] }
 0x3c7   :  { %v3596_v42 = vunpack.c.l.b16 %v3346_v51  ;;  %v3305_v11 = vperm.slane %v7055_v44, 5  ;;  %v3602_v26 = vunpack.c.l.b16 %v3352_v57  ;;  %v3335_v47 = vpack.c.bf16 %v3287_v31, %v3287_v31  ;;  %v6118_v1 = vld [vmem:[#allocation6 + $0x584] sm:$0xf]  ;;  %v5450_v41 = vld [vmem:[#allocation6 + $0x230] sm:$0xf0] }
 0x3c8   :  { %4659 = vmatmul.bf16.vlgmr.msra.gmra.mxu3 %v7133_v9  ;;  %4743 = vmatpush.bf16.msra.mxu2 %v5789_v13  ;;  %v3341_v6 = vpack.c.bf16 %v3293_v32, %v3293_v32  ;;  %v3347_v15 = vpack.c.bf16 %v3299_v35, %v3299_v35  ;;  %v3584_v48 = vunpack.c.l.b16 %v3334_v28  ;;  %v3628_v34 = vrot.slane %v3590_v24, 7  ;;  %v6014_v13 = vld [vmem:[#allocation6 + $0x244] sm:$0xf]  ;;  %v5578_v31 = vld [vmem:[#allocation6 + $0x330] sm:$0xf0] }
 0x3c9   :  { %4755 = vmatpush.bf16.msra.mxu3 %v5933_v8  ;;  %v3630_v12 = vrot.slane %v3596_v42, 6  ;;  %v3353_v49 = vpack.c.bf16 %v3305_v11, %v3305_v11  ;;  %v5485_v14 = vor.u32 %v6018_v27, %v5482_v36  ;;  %v5613_v53 = vor.u32 %v6050_v21, %v5610_v37  ;;  %v6046_v8 = vld [vmem:[#allocation6 + $0x344] sm:$0xf]  ;;  %v5722_v35 = vld [vmem:[#allocation6 + $0x450] sm:$0xf0] }
 0x3ca   :  { %4719 = vmatpush.bf16.msra.mxu0 %v5501_v55  ;;  %4732 = vmatpush.bf16.msra.mxu1 %v5629_v33  ;;  %v3591_v44 = vunpack.c.l.b16 %v3341_v6  ;;  %v3597_v52 = vunpack.c.l.b16 %v3347_v15  ;;  %v5757_v63 = vor.u32 %v6086_v7, %v5754_v25  ;;  %v3629_v43 = vsel %vm3046_vm15, %v3628_v34, %v3584_v48  ;;  %v6082_v20 = vld [vmem:[#allocation6 + $0x464] sm:$0xf]  ;;  %v5866_v27 = vld [vmem:[#allocation6 + $0x570] sm:$0xf0]  ;;  %v5296_v37 = vld [vmem:[#allocation6 + $0xe8] sm:$0xf] }
 0x3cb   :  { %v3632_v0 = vrot.slane %v3602_v26, 5  ;;  %v3603_v45 = vunpack.c.l.b16 %v3353_v49  ;;  %v3631_v58 = vsel %vm7307_vm11, %v3630_v12, %v3629_v43  ;;  %v3585_v62 = vunpack.c.l.b16 %v3335_v47  ;;  %v6010_v28 = vld [vmem:[#allocation6 + $0x224] sm:$0xf]  ;;  %v5434_v42 = vld [vmem:[#allocation6 + $0x210] sm:$0xf0] }
 0x3cc   :  { %4744 = vmatpush.bf16.msra.mxu2 %v5773_v10  ;;  %v3634_v61 = vrot.slane %v3591_v44, 7  ;;  %v3636_v30 = vrot.slane %v3597_v52, 6  ;;  %v5901_v55 = vor.u32 %v6122_v46, %v5898_v50  ;;  %v5469_v4 = vor.u32 %v6014_v13, %v5466_v59  ;;  %v6114_v33 = vld [vmem:[#allocation6 + $0x564] sm:$0xf]  ;;  %v5562_v21 = vld [vmem:[#allocation6 + $0x310] sm:$0xf0] }
 0x3cd   :  { %4756 = vmatpush.bf16.msra.mxu3 %v5917_v60  ;;  %v3633_v54 = vsel %vm7308_vm0, %v3632_v0, %v3631_v58  ;;  %v3638_v2 = vrot.slane %v3603_v45, 5  ;;  %v5597_v40 = vor.u32 %v6046_v8, %v5594_v39  ;;  %v6042_v60 = vld [vmem:[#allocation6 + $0x324] sm:$0xf]  ;;  %v5741_v17 = vor.u32 %v6082_v20, %v5738_v3  ;;  %v5973_v25 = vld [vmem:[#allocation6 + $0xf4] sm:$0xf0] }
 0x3ce   :  { %v7144_v19 = vpack.c.b16 %v3633_v54, %v3633_v54  ;;  %v3635_v56 = vsel %vm3046_vm15, %v3634_v61, %v3585_v62  ;;  %4720 = vmatpush.bf16.msra.mxu0 %v5485_v14  ;;  %4733 = vmatpush.bf16.msra.mxu1 %v5613_v53  ;;  %v5885_v51 = vor.u32 %v6118_v1, %v5882_v5  ;;  %v6078_v57 = vld [vmem:[#allocation6 + $0x444] sm:$0xf]  ;;  %v5424_v26 = vld [vmem:[#allocation6 + $0x1e8] sm:$0xf]  ;;  %v6005_v47 = vld [vmem:[#allocation6 + $0x1f4] sm:$0xf0] }
 0x3cf   :  { %v3637_v22 = vsel %vm7309_vm13, %v3636_v30, %v3635_v56  ;;  %v5453_v36 = vor.u32 %v6010_v28, %v5450_v41  ;;  %v5581_v10 = vor.u32 %v6042_v60, %v5578_v31  ;;  %v6006_v24 = vld [vmem:[#allocation6 + $0x204] sm:$0xf]  ;;  %v5725_v7 = vor.u32 %v6078_v57, %v5722_v35  ;;  %v5706_v46 = vld [vmem:[#allocation6 + $0x430] sm:$0xf0]  ;;  %v5280_v52 = vld [vmem:[#allocation6 + $0xc8] sm:$0xf] }
 0x3d0   :  { %4745 = vmatpush.bf16.msra.mxu2 %v5757_v63  ;;  %4672 = vmatmul.bf16.vlgmr.msrb.gmra.mxu0 %v7144_v19  ;;  %v3639_v38 = vsel %vm7310_vm4, %v3638_v2, %v3637_v22  ;;  %v6038_v11 = vld [vmem:[#allocation6 + $0x304] sm:$0xf]  ;;  %v5869_v6 = vor.u32 %v6114_v33, %v5866_v27  ;;  %v5850_v34 = vld [vmem:[#allocation6 + $0x550] sm:$0xf0]  ;;  %v5437_v12 = vor.u32 %v6006_v24, %v5434_v42  ;;  %v5969_v53 = vld [vmem:[#allocation6 + $0xd4] sm:$0xf0] }
 0x3d1   :  { %4757 = vmatpush.bf16.msra.mxu3 %v5901_v55  ;;  %v7150_v32 = vpack.c.b16 %v3639_v38, %v3639_v38  ;;  %v6074_v15 = vld [vmem:[#allocation6 + $0x424] sm:$0xf]  ;;  %v5565_v49 = vor.u32 %v6038_v11, %v5562_v21  ;;  %v5297_v50 = vor.u32 %v5973_v25, %v5296_v37  ;;  %v5425_v44 = vor.u32 %v6005_v47, %v5424_v26  ;;  %v5408_v13 = vld [vmem:[#allocation6 + $0x1c8] sm:$0xf]  ;;  %v6001_v59 = vld [vmem:[#allocation6 + $0x1d4] sm:$0xf0] }
 0x3d2   :  { %4721 = vmatpush.bf16.msra.mxu0 %v5469_v4  ;;  %4734 = vmatpush.bf16.msra.mxu1 %v5597_v40  ;;  %v6110_v48 = vld [vmem:[#allocation6 + $0x544] sm:$0xf]  ;;  %v5709_v14 = vor.u32 %v6074_v15, %v5706_v46  ;;  %v5690_v45 = vld [vmem:[#allocation6 + $0x410] sm:$0xf0]  ;;  %v5552_v39 = vld [vmem:[#allocation6 + $0x2e8] sm:$0xf]  ;;  %v5281_v62 = vor.u32 %v5969_v53, %v5280_v52  ;;  %v5409_v61 = vor.u32 %v6001_v59, %v5408_v13 }
 0x3d3   :  { %4685 = vmatmul.bf16.vlgmr.msrb.gmra.mxu1 %v7150_v32  ;;  %4698 = vmatmul.bf16.vlgmr.msrb.gmra.mxu2 %v7078_v29  ;;  %v5853_v63 = vor.u32 %v6110_v48, %v5850_v34  ;;  %v6106_v43 = vld [vmem:[#allocation6 + $0x524] sm:$0xf]  ;;  %v5834_v8 = vld [vmem:[#allocation6 + $0x530] sm:$0xf0]  ;;  %v6037_v58 = vld [vmem:[#allocation6 + $0x2f4] sm:$0xf0] }
 0x3d4   :  { %4746 = vmatpush.bf16.msra.mxu2 %v5741_v17  ;;  %v6070_v0 = vld [vmem:[#allocation6 + $0x404] sm:$0xf]  ;;  %v5264_v1 = vld [vmem:[#allocation6 + $0xa8] sm:$0xf]  ;;  %v5837_v54 = vor.u32 %v6106_v43, %v5834_v8  ;;  %v5553_v20 = vor.u32 %v6037_v58, %v5552_v39  ;;  %v5965_v3 = vld [vmem:[#allocation6 + $0xb4] sm:$0xf0] }
 0x3d5   :  { %4758 = vmatpush.bf16.msra.mxu3 %v5885_v51  ;;  %v5693_v30 = vor.u32 %v6070_v0, %v5690_v45  ;;  %v6102_v55 = vld [vmem:[#allocation6 + $0x504] sm:$0xf]  ;;  %v5392_v4 = vld [vmem:[#allocation6 + $0x1a8] sm:$0xf]  ;;  %v5997_v5 = vld [vmem:[#allocation6 + $0x1b4] sm:$0xf0]  ;;  %v5265_v41 = vor.u32 %v5965_v3, %v5264_v1 }
 0x3d6   :  { %4722 = vmatpush.bf16.msra.mxu0 %v5453_v36  ;;  %4735 = vmatpush.bf16.msra.mxu1 %v5581_v10  ;;  %v5818_v56 = vld [vmem:[#allocation6 + $0x510] sm:$0xf0]  ;;  %v5536_v2 = vld [vmem:[#allocation6 + $0x2c8] sm:$0xf]  ;;  %v6033_v40 = vld [vmem:[#allocation6 + $0x2d4] sm:$0xf0]  ;;  %v5393_v60 = vor.u32 %v5997_v5, %v5392_v4 }
 0x3d7   :  { %v5680_v28 = vld [vmem:[#allocation6 + $0x3e8] sm:$0xf]  ;;  %v6069_v22 = vld [vmem:[#allocation6 + $0x3f4] sm:$0xf0]  ;;  %v5821_v31 = vor.u32 %v6102_v55, %v5818_v56  ;;  %v5537_v38 = vor.u32 %v6033_v40, %v5536_v2  ;;  %vm7311_vm15 = vcmask 1043456  }
 0x3d8   :  { %4711 = vmatmul.bf16.vlgmr.msrb.gmra.mxu3 %v7080_v18  ;;  %4747 = vmatpush.bf16.msra.mxu2 %v5725_v7  ;;  %v5520_v17 = vld [vmem:[#allocation6 + $0x2a8] sm:$0xf]  ;;  %v5961_v33 = vld [vmem:[#allocation6 + $0x94] sm:$0xf0]  ;;  %v5681_v57 = vor.u32 %v6069_v22, %v5680_v28  ;;  %vm7312_vm2 = vmmov %vm7311_vm15 }
 0x3d9   :  { %4759 = vmatpush.bf16.msra.mxu3 %v5869_v6  ;;  %v5248_v51 = vld [vmem:[#allocation6 + $0x88] sm:$0xf]  ;;  %v6029_v35 = vld [vmem:[#allocation6 + $0x2b4] sm:$0xf0]  ;;  %vm7313_vm9 = vmmov %vm7312_vm2 }
 0x3da   :  { %4723 = vmatpush.bf16.msra.mxu0 %v5437_v12  ;;  %4736 = vmatpush.bf16.msra.mxu1 %v5565_v49  ;;  %v5376_v27 = vld [vmem:[#allocation6 + $0x188] sm:$0xf]  ;;  %v5993_v36 = vld [vmem:[#allocation6 + $0x194] sm:$0xf0]  ;;  %v5249_v42 = vor.u32 %v5961_v33, %v5248_v51  ;;  %v5521_v11 = vor.u32 %v6029_v35, %v5520_v17  ;;  %vm7314_vm1 = vmmov %vm7312_vm2 }
 0x3db   :  { %v5664_v10 = vld [vmem:[#allocation6 + $0x3c8] sm:$0xf]  ;;  %v6065_v24 = vld [vmem:[#allocation6 + $0x3d4] sm:$0xf0]  ;;  %v5377_v21 = vor.u32 %v5993_v36, %v5376_v27  ;;  %vm7315_vm12 = vmmov %vm7314_vm1 }
 0x3dc   :  { %4748 = vmatpush.bf16.msra.mxu2 %v5709_v14  ;;  %v5504_v37 = vld [vmem:[#allocation6 + $0x288] sm:$0xf]  ;;  %v5957_v25 = vld [vmem:[#allocation6 + $0x74] sm:$0xf0]  ;;  %v5665_v26 = vor.u32 %v6065_v24, %v5664_v10  ;;  %vm7316_vm10 = vmmov %vm7314_vm1 }
 0x3dd   :  { %4760 = vmatpush.bf16.msra.mxu3 %v5853_v63  ;;  %v5232_v7 = vld [vmem:[#allocation6 + $0x68] sm:$0xf]  ;;  %v6025_v47 = vld [vmem:[#allocation6 + $0x294] sm:$0xf0]  ;;  %vm7317_vm11 = vmmov %vm7314_vm1 }
 0x3de   :  { %4768 = vmatpush.bf16.msrb.mxu0 %v5297_v50  ;;  %4781 = vmatpush.bf16.msrb.mxu1 %v5425_v44  ;;  %v5360_v6 = vld [vmem:[#allocation6 + $0x168] sm:$0xf]  ;;  %v5989_v15 = vld [vmem:[#allocation6 + $0x174] sm:$0xf0]  ;;  %v5233_v34 = vor.u32 %v5957_v25, %v5232_v7  ;;  %v5505_v12 = vor.u32 %v6025_v47, %v5504_v37  ;;  %v5971_v25 = vld [vmem:[#allocation6 + $0xec] sm:$0xf] }
 0x3df   :  { %v5648_v46 = vld [vmem:[#allocation6 + $0x3a8] sm:$0xf]  ;;  %v6061_v48 = vld [vmem:[#allocation6 + $0x3b4] sm:$0xf0]  ;;  %v5361_v49 = vor.u32 %v5989_v15, %v5360_v6  ;;  %vm7318_vm0 = vmmov %vm7314_vm1 }
 0x3e0   :  { %4749 = vmatpush.bf16.msra.mxu2 %v5693_v30  ;;  %4724 = vmatmul.bf16.vlgmr.msra.gmra.mxu0 %v7113_v23  ;;  %v5488_v50 = vld [vmem:[#allocation6 + $0x268] sm:$0xf]  ;;  %v5953_v52 = vld [vmem:[#allocation6 + $0x54] sm:$0xf0]  ;;  %v5649_v14 = vor.u32 %v6061_v48, %v5648_v46  ;;  %vm7319_vm13 = vmmov %vm7318_vm0 }
 0x3e1   :  { %4761 = vmatpush.bf16.msra.mxu3 %v5837_v54  ;;  %v5216_v44 = vld [vmem:[#allocation6 + $0x48] sm:$0xf]  ;;  %v6021_v53 = vld [vmem:[#allocation6 + $0x274] sm:$0xf0]  ;;  %vm7320_vm4 = vmmov %vm7318_vm0 }
 0x3e2   :  { %4769 = vmatpush.bf16.msrb.mxu0 %v5281_v62  ;;  %4782 = vmatpush.bf16.msrb.mxu1 %v5409_v61  ;;  %v5344_v13 = vld [vmem:[#allocation6 + $0x148] sm:$0xf]  ;;  %v5985_v59 = vld [vmem:[#allocation6 + $0x154] sm:$0xf0]  ;;  %v5217_v0 = vor.u32 %v5953_v52, %v5216_v44  ;;  %v5489_v45 = vor.u32 %v6021_v53, %v5488_v50  ;;  %v6003_v44 = vld [vmem:[#allocation6 + $0x1ec] sm:$0xf] }
 0x3e3   :  { %4737 = vmatmul.bf16.vlgmr.msra.gmra.mxu1 %v7133_v9  ;;  %4750 = vmatmul.bf16.vlgmr.msra.gmra.mxu2 %v7144_v19  ;;  %v5632_v63 = vld [vmem:[#allocation6 + $0x388] sm:$0xf]  ;;  %v6057_v43 = vld [vmem:[#allocation6 + $0x394] sm:$0xf0]  ;;  %v5345_v8 = vor.u32 %v5985_v59, %v5344_v13  ;;  %v5967_v53 = vld [vmem:[#allocation6 + $0xcc] sm:$0xf] }
 0x3e4   :  { %4794 = vmatpush.bf16.msrb.mxu2 %v5553_v20  ;;  %v5472_v39 = vld [vmem:[#allocation6 + $0x248] sm:$0xf]  ;;  %v5949_v62 = vld [vmem:[#allocation6 + $0x34] sm:$0xf0]  ;;  %v5633_v61 = vor.u32 %v6057_v43, %v5632_v63  ;;  %v5282_v13 = vld [vmem:[#allocation6 + $0xd8] sm:$0xf0] }
 0x3e5   :  { %4762 = vmatpush.bf16.msra.mxu3 %v5821_v31  ;;  %v5200_v58 = vld [vmem:[#allocation6 + $0x28] sm:$0xf]  ;;  %v6017_v30 = vld [vmem:[#allocation6 + $0x254] sm:$0xf0]  ;;  %v5426_v59 = vld [vmem:[#allocation6 + $0x1f8] sm:$0xf0] }
 0x3e6   :  { %4770 = vmatpush.bf16.msrb.mxu0 %v5265_v41  ;;  %4783 = vmatpush.bf16.msrb.mxu1 %v5393_v60  ;;  %v5328_v55 = vld [vmem:[#allocation6 + $0x128] sm:$0xf]  ;;  %v5981_v1 = vld [vmem:[#allocation6 + $0x134] sm:$0xf0]  ;;  %v5201_v3 = vor.u32 %v5949_v62, %v5200_v58  ;;  %v5473_v4 = vor.u32 %v6017_v30, %v5472_v39  ;;  %v5285_v39 = vor.u32 %v5967_v53, %v5282_v13  ;;  %v5999_v62 = vld [vmem:[#allocation6 + $0x1cc] sm:$0xf] }
 0x3e7   :  { %v5616_v54 = vld [vmem:[#allocation6 + $0x368] sm:$0xf]  ;;  %v6053_v20 = vld [vmem:[#allocation6 + $0x374] sm:$0xf0]  ;;  %v5329_v56 = vor.u32 %v5981_v1, %v5328_v55  ;;  %v5429_v58 = vor.u32 %v6003_v44, %v5426_v59  ;;  %v5963_v30 = vld [vmem:[#allocation6 + $0xac] sm:$0xf] }
 0x3e8   :  { %4795 = vmatpush.bf16.msrb.mxu2 %v5537_v38  ;;  %4763 = vmatmul.bf16.vlgmr.msra.gmra.mxu3 %v7150_v32  ;;  %v5600_v5 = vld [vmem:[#allocation6 + $0x348] sm:$0xf]  ;;  %v5945_v28 = vld [vmem:[#allocation6 + $0x14] sm:$0xf0]  ;;  %v5617_v22 = vor.u32 %v6053_v20, %v5616_v54  ;;  %v5266_v55 = vld [vmem:[#allocation6 + $0xb8] sm:$0xf0] }
 0x3e9   :  { %4807 = vmatpush.bf16.msrb.mxu3 %v5681_v57  ;;  %v5456_v2 = vld [vmem:[#allocation6 + $0x228] sm:$0xf]  ;;  %v6013_v41 = vld [vmem:[#allocation6 + $0x234] sm:$0xf0]  ;;  %v5410_v1 = vld [vmem:[#allocation6 + $0x1d8] sm:$0xf0] }
 0x3ea   :  { %4771 = vmatpush.bf16.msrb.mxu0 %v5249_v42  ;;  %4784 = vmatpush.bf16.msrb.mxu1 %v5377_v21  ;;  %v5184_v40 = vld [vmem:[#allocation6 + $0x8] sm:$0xf]  ;;  %v5977_v31 = vld [vmem:[#allocation6 + $0x114] sm:$0xf0]  ;;  %v5457_v27 = vor.u32 %v6013_v41, %v5456_v2  ;;  %v5413_v2 = vor.u32 %v5999_v62, %v5410_v1  ;;  %v5250_v41 = vld [vmem:[#allocation6 + $0x98] sm:$0xf0] }
 0x3eb   :  { %v5312_v60 = vld [vmem:[#allocation6 + $0x108] sm:$0xf]  ;;  %v6049_v38 = vld [vmem:[#allocation6 + $0x354] sm:$0xf0]  ;;  %v5185_v33 = vor.u32 %v5945_v28, %v5184_v40  ;;  %v5995_v40 = vld [vmem:[#allocation6 + $0x1ac] sm:$0xf] }
 0x3ec   :  { %4796 = vmatpush.bf16.msrb.mxu2 %v5521_v11  ;;  %v5808_v17 = vld [vmem:[#allocation6 + $0x4e8] sm:$0xf]  ;;  %v6101_v51 = vld [vmem:[#allocation6 + $0x4f4] sm:$0xf0]  ;;  %v5313_v10 = vor.u32 %v5977_v31, %v5312_v60  ;;  %v5601_v24 = vor.u32 %v6049_v38, %v5600_v5  ;;  %v5394_v60 = vld [vmem:[#allocation6 + $0x1b8] sm:$0xf0] }
 0x3ed   :  { %4808 = vmatpush.bf16.msrb.mxu3 %v5665_v26  ;;  %v5936_v57 = vld [vmem:[#allocation6 + $0x5e8] sm:$0xf]  ;;  %v6133_v35 = vld [vmem:[#allocation6 + $0x5f4] sm:$0xf0]  ;;  %v5809_v37 = vor.u32 %v6101_v51, %v5808_v17  ;;  %v5298_v26 = vld [vmem:[#allocation6 + $0xf8] sm:$0xf0] }
 0x3ee   :  { %4772 = vmatpush.bf16.msrb.mxu0 %v5233_v34  ;;  %4785 = vmatpush.bf16.msrb.mxu1 %v5361_v49  ;;  %v5584_v36 = vld [vmem:[#allocation6 + $0x328] sm:$0xf]  ;;  %v6045_v42 = vld [vmem:[#allocation6 + $0x334] sm:$0xf0]  ;;  %v5937_v7 = vor.u32 %v6133_v35, %v5936_v57  ;;  %v5301_v50 = vor.u32 %v5971_v25, %v5298_v26  ;;  %v5397_v35 = vor.u32 %v5995_v40, %v5394_v60  ;;  %v5983_v53 = vld [vmem:[#allocation6 + $0x14c] sm:$0xf] }
 0x3ef   :  { %v5440_v11 = vld [vmem:[#allocation6 + $0x208] sm:$0xf]  ;;  %v6009_v21 = vld [vmem:[#allocation6 + $0x214] sm:$0xf0]  ;;  %v5585_v34 = vor.u32 %v6045_v42, %v5584_v36  ;;  %v5378_v42 = vld [vmem:[#allocation6 + $0x198] sm:$0xf0] }
 0x3f0   :  { %4797 = vmatpush.bf16.msrb.mxu2 %v5505_v12  ;;  %v5792_v47 = vld [vmem:[#allocation6 + $0x4c8] sm:$0xf]  ;;  %v6097_v6 = vld [vmem:[#allocation6 + $0x4d4] sm:$0xf0]  ;;  %v5441_v48 = vor.u32 %v6009_v21, %v5440_v11  ;;  %v5346_v59 = vld [vmem:[#allocation6 + $0x158] sm:$0xf0] }
 0x3f1   :  { %4809 = vmatpush.bf16.msrb.mxu3 %v5649_v14  ;;  %v5920_v15 = vld [vmem:[#allocation6 + $0x5c8] sm:$0xf]  ;;  %v6129_v46 = vld [vmem:[#allocation6 + $0x5d4] sm:$0xf0]  ;;  %v5793_v52 = vor.u32 %v6097_v6, %v5792_v47  ;;  %v5987_v6 = vld [vmem:[#allocation6 + $0x16c] sm:$0xf] }
 0x3f2   :  { %4773 = vmatpush.bf16.msrb.mxu0 %v5217_v0  ;;  %4786 = vmatpush.bf16.msrb.mxu1 %v5345_v8  ;;  %v5568_v12 = vld [vmem:[#allocation6 + $0x308] sm:$0xf]  ;;  %v6041_v49 = vld [vmem:[#allocation6 + $0x314] sm:$0xf0]  ;;  %v5921_v14 = vor.u32 %v6129_v46, %v5920_v15  ;;  %v5951_v46 = vld [vmem:[#allocation6 + $0x4c] sm:$0xf] }
 0x3f3   :  { %v5776_v63 = vld [vmem:[#allocation6 + $0x4a8] sm:$0xf]  ;;  %v6093_v43 = vld [vmem:[#allocation6 + $0x4b4] sm:$0xf0]  ;;  %v5569_v8 = vor.u32 %v6041_v49, %v5568_v12  ;;  %v6067_v1 = vld [vmem:[#allocation6 + $0x3ec] sm:$0xf] }
 0x3f4   :  { %4798 = vmatpush.bf16.msrb.mxu2 %v5489_v45  ;;  %v5904_v0 = vld [vmem:[#allocation6 + $0x5a8] sm:$0xf]  ;;  %v6125_v45 = vld [vmem:[#allocation6 + $0x5b4] sm:$0xf0] }
 0x3f5   :  { %4810 = vmatpush.bf16.msrb.mxu3 %v5633_v61  ;;  %v5777_v61 = vor.u32 %v6093_v43, %v5776_v63  ;;  %v5905_v54 = vor.u32 %v6125_v45, %v5904_v0  ;;  %v5760_v20 = vld [vmem:[#allocation6 + $0x488] sm:$0xf]  ;;  %v6121_v5 = vld [vmem:[#allocation6 + $0x594] sm:$0xf0]  ;;  %v5947_v43 = vld [vmem:[#allocation6 + $0x2c] sm:$0xf] }
 0x3f6   :  { %4774 = vmatpush.bf16.msrb.mxu0 %v5201_v3  ;;  %4787 = vmatpush.bf16.msrb.mxu1 %v5329_v56  ;;  %v6089_v3 = vld [vmem:[#allocation6 + $0x494] sm:$0xf0]  ;;  %v5269_v56 = vor.u32 %v5963_v30, %v5266_v55  ;;  %v5744_v38 = vld [vmem:[#allocation6 + $0x468] sm:$0xf]  ;;  %v5202_v0 = vld [vmem:[#allocation6 + $0x38] sm:$0xf0] }
 0x3f7   :  { %v5761_v28 = vor.u32 %v6089_v3, %v5760_v20  ;;  %v6085_v17 = vld [vmem:[#allocation6 + $0x474] sm:$0xf0]  ;;  %v5872_v51 = vld [vmem:[#allocation6 + $0x568] sm:$0xf]  ;;  %v5554_v30 = vld [vmem:[#allocation6 + $0x2f8] sm:$0xf0]  ;;  %v5205_v55 = vor.u32 %v5947_v43, %v5202_v0  ;;  %v5349_v20 = vor.u32 %v5983_v53, %v5346_v59 }
 0x3f8   :  { %4799 = vmatpush.bf16.msrb.mxu2 %v5473_v4  ;;  %v5888_v4 = vld [vmem:[#allocation6 + $0x588] sm:$0xf]  ;;  %v5745_v36 = vor.u32 %v6085_v17, %v5744_v38  ;;  %v6113_v25 = vld [vmem:[#allocation6 + $0x554] sm:$0xf0]  ;;  %v5979_v3 = vld [vmem:[#allocation6 + $0x12c] sm:$0xf] }
 0x3f9   :  { %4811 = vmatpush.bf16.msrb.mxu3 %v5617_v22  ;;  %v5959_v22 = vld [vmem:[#allocation6 + $0x8c] sm:$0xf]  ;;  %v5889_v31 = vor.u32 %v6121_v5, %v5888_v4  ;;  %v5728_v21 = vld [vmem:[#allocation6 + $0x448] sm:$0xf]  ;;  %v6105_v62 = vld [vmem:[#allocation6 + $0x514] sm:$0xf0] }
 0x3fa   :  { %4775 = vmatpush.bf16.msrb.mxu0 %v5185_v33  ;;  %4788 = vmatpush.bf16.msrb.mxu1 %v5313_v10  ;;  %v6117_v33 = vld [vmem:[#allocation6 + $0x574] sm:$0xf0]  ;;  %v5253_v57 = vor.u32 %v5959_v22, %v5250_v41  ;;  %v5955_v10 = vld [vmem:[#allocation6 + $0x6c] sm:$0xf]  ;;  %v5712_v49 = vld [vmem:[#allocation6 + $0x428] sm:$0xf] }
 0x3fb   :  { %v5873_v11 = vor.u32 %v6117_v33, %v5872_v51  ;;  %v5840_v44 = vld [vmem:[#allocation6 + $0x528] sm:$0xf]  ;;  %v5943_v5 = vld [vmem:[#allocation6 + $0xc] sm:$0xf]  ;;  %v5810_v41 = vld [vmem:[#allocation6 + $0x4f8] sm:$0xf0] }
 0x3fc   :  { %4800 = vmatpush.bf16.msrb.mxu2 %v5457_v27  ;;  %v5991_v27 = vld [vmem:[#allocation6 + $0x18c] sm:$0xf]  ;;  %v5538_v38 = vld [vmem:[#allocation6 + $0x2d8] sm:$0xf0] }
 0x3fd   :  { %4812 = vmatpush.bf16.msrb.mxu3 %v5601_v24  ;;  %4776 = vmatmul.bf16.vlgmr.msrb.gmra.mxu0 %v7078_v29  ;;  %v5234_v24 = vld [vmem:[#allocation6 + $0x78] sm:$0xf0]  ;;  %v5381_v47 = vor.u32 %v5991_v27, %v5378_v42  ;;  %v6099_v22 = vld [vmem:[#allocation6 + $0x4ec] sm:$0xf] }
 0x3fe   :  { %4820 = vmatpush.bf16.msra.mxu0 %v5809_v37  ;;  %4833 = vmatpush.bf16.msra.mxu1 %v5937_v7  ;;  %v6081_v37 = vld [vmem:[#allocation6 + $0x454] sm:$0xf0]  ;;  %v5856_v7 = vld [vmem:[#allocation6 + $0x548] sm:$0xf]  ;;  %v5237_v26 = vor.u32 %v5955_v10, %v5234_v24  ;;  %v6063_v51 = vld [vmem:[#allocation6 + $0x3cc] sm:$0xf] }
 0x3ff   :  { %4789 = vmatmul.bf16.vlgmr.msrb.gmra.mxu1 %v7080_v18  ;;  %v5729_v15 = vor.u32 %v6081_v37, %v5728_v21  ;;  %v5857_v12 = vor.u32 %v6113_v25, %v5856_v7  ;;  %v5666_v33 = vld [vmem:[#allocation6 + $0x3d8] sm:$0xf0]  ;;  %v6131_v10 = vld [vmem:[#allocation6 + $0x5ec] sm:$0xf] }
 0x400   :  { %4801 = vmatpush.bf16.msrb.mxu2 %v5441_v48  ;;  %v5218_v48 = vld [vmem:[#allocation6 + $0x58] sm:$0xf0]  ;;  %v6095_v42 = vld [vmem:[#allocation6 + $0x4cc] sm:$0xf]  ;;  %v5669_v37 = vor.u32 %v6063_v51, %v5666_v33 }
 0x401   :  { %4813 = vmatpush.bf16.msrb.mxu3 %v5585_v34  ;;  %v5362_v34 = vld [vmem:[#allocation6 + $0x178] sm:$0xf0]  ;;  %v6027_v7 = vld [vmem:[#allocation6 + $0x2ac] sm:$0xf] }
 0x402   :  { %4821 = vmatpush.bf16.msra.mxu0 %v5793_v52  ;;  %4834 = vmatpush.bf16.msra.mxu1 %v5921_v14  ;;  %v6109_v52 = vld [vmem:[#allocation6 + $0x534] sm:$0xf0]  ;;  %v5221_v14 = vor.u32 %v5951_v46, %v5218_v48  ;;  %v5365_v13 = vor.u32 %v5987_v6, %v5362_v34  ;;  %v5314_v27 = vld [vmem:[#allocation6 + $0x118] sm:$0xf0]  ;;  %v6127_v48 = vld [vmem:[#allocation6 + $0x5cc] sm:$0xf] }
 0x403   :  { %4802 = vmatmul.bf16.vlgmr.msrb.gmra.mxu2 %v7113_v23  ;;  %v5841_v45 = vor.u32 %v6109_v52, %v5840_v44  ;;  %v5938_v21 = vld [vmem:[#allocation6 + $0x5f8] sm:$0xf0]  ;;  %v6023_v52 = vld [vmem:[#allocation6 + $0x28c] sm:$0xf] }
 0x404   :  { %4846 = vmatpush.bf16.msra.mxu2 %v5301_v50  ;;  %v6077_v50 = vld [vmem:[#allocation6 + $0x434] sm:$0xf0]  ;;  %v5522_v25 = vld [vmem:[#allocation6 + $0x2b8] sm:$0xf0]  ;;  %v5941_v46 = vor.u32 %v6131_v10, %v5938_v21  ;;  %v6055_v53 = vld [vmem:[#allocation6 + $0x38c] sm:$0xf] }
 0x405   :  { %4814 = vmatpush.bf16.msrb.mxu3 %v5569_v8  ;;  %v5713_v63 = vor.u32 %v6077_v50, %v5712_v49  ;;  %v5696_v8 = vld [vmem:[#allocation6 + $0x408] sm:$0xf]  ;;  %v5525_v34 = vor.u32 %v6027_v7, %v5522_v25  ;;  %v5778_v49 = vld [vmem:[#allocation6 + $0x4b8] sm:$0xf0]  ;;  %v6123_v43 = vld [vmem:[#allocation6 + $0x5ac] sm:$0xf] }
 0x406   :  { %4822 = vmatpush.bf16.msra.mxu0 %v5777_v61  ;;  %4835 = vmatpush.bf16.msra.mxu1 %v5905_v54  ;;  %v6035_v61 = vld [vmem:[#allocation6 + $0x2ec] sm:$0xf]  ;;  %v5682_v54 = vld [vmem:[#allocation6 + $0x3f8] sm:$0xf0] }
 0x407   :  { %v5685_v60 = vor.u32 %v6067_v1, %v5682_v54  ;;  %v5922_v50 = vld [vmem:[#allocation6 + $0x5d8] sm:$0xf0]  ;;  %v6119_v54 = vld [vmem:[#allocation6 + $0x58c] sm:$0xf] }
 0x408   :  { %4847 = vmatpush.bf16.msra.mxu2 %v5285_v39  ;;  %4815 = vmatmul.bf16.vlgmr.msrb.gmra.mxu3 %v7133_v9  ;;  %v6073_v39 = vld [vmem:[#allocation6 + $0x414] sm:$0xf0]  ;;  %v5874_v51 = vld [vmem:[#allocation6 + $0x578] sm:$0xf0]  ;;  %v6075_v21 = vld [vmem:[#allocation6 + $0x42c] sm:$0xf] }
 0x409   :  { %4859 = vmatpush.bf16.msra.mxu3 %v5429_v58  ;;  %v5824_v58 = vld [vmem:[#allocation6 + $0x508] sm:$0xf]  ;;  %v5697_v4 = vor.u32 %v6073_v39, %v5696_v8  ;;  %v5762_v8 = vld [vmem:[#allocation6 + $0x498] sm:$0xf0] }
 0x40a   :  { %4823 = vmatpush.bf16.msra.mxu0 %v5761_v28  ;;  %4836 = vmatpush.bf16.msra.mxu1 %v5889_v31  ;;  %v5825_v40 = vor.u32 %v6105_v62, %v5824_v58  ;;  %v5557_v28 = vor.u32 %v6035_v61, %v5554_v30  ;;  %v6031_v31 = vld [vmem:[#allocation6 + $0x2cc] sm:$0xf]  ;;  %v5906_v39 = vld [vmem:[#allocation6 + $0x5b8] sm:$0xf0] }
 0x40b   :  { %v5541_v24 = vor.u32 %v6031_v31, %v5538_v38  ;;  %v6019_v58 = vld [vmem:[#allocation6 + $0x26c] sm:$0xf]  ;;  %v5490_v62 = vld [vmem:[#allocation6 + $0x278] sm:$0xf0]  ;;  %v5909_v1 = vor.u32 %v6123_v43, %v5906_v39 }
 0x40c   :  { %4848 = vmatpush.bf16.msra.mxu2 %v5269_v56  ;;  %v5186_v56 = vld [vmem:[#allocation6 + $0x18] sm:$0xf0]  ;;  %v6051_v61 = vld [vmem:[#allocation6 + $0x36c] sm:$0xf] }
 0x40d   :  { %4860 = vmatpush.bf16.msra.mxu3 %v5413_v2  ;;  %v5330_v2 = vld [vmem:[#allocation6 + $0x138] sm:$0xf0]  ;;  %v5189_v17 = vor.u32 %v5943_v5, %v5186_v56  ;;  %v6079_v38 = vld [vmem:[#allocation6 + $0x44c] sm:$0xf] }
 0x40e   :  { %4824 = vmatpush.bf16.msra.mxu0 %v5745_v36  ;;  %4837 = vmatpush.bf16.msra.mxu1 %v5873_v11  ;;  %v5813_v36 = vor.u32 %v6099_v22, %v5810_v41  ;;  %v5794_v11 = vld [vmem:[#allocation6 + $0x4d8] sm:$0xf0] }
 0x40f   :  { %v5618_v30 = vld [vmem:[#allocation6 + $0x378] sm:$0xf0] }
 0x410   :  { %4849 = vmatpush.bf16.msra.mxu2 %v5253_v57  ;;  %v5333_v57 = vor.u32 %v5979_v3, %v5330_v2  ;;  %v6083_v3 = vld [vmem:[#allocation6 + $0x46c] sm:$0xf]  ;;  %v5890_v5 = vld [vmem:[#allocation6 + $0x598] sm:$0xf0]  ;;  %v5621_v56 = vor.u32 %v6051_v61, %v5618_v30 }
 0x411   :  { %4861 = vmatpush.bf16.msra.mxu3 %v5397_v35  ;;  %v5975_v35 = vld [vmem:[#allocation6 + $0x10c] sm:$0xf]  ;;  %v5602_v22 = vld [vmem:[#allocation6 + $0x358] sm:$0xf0]  ;;  %v5893_v41 = vor.u32 %v6119_v54, %v5890_v5 }
 0x412   :  { %4825 = vmatpush.bf16.msra.mxu0 %v5729_v15  ;;  %4838 = vmatpush.bf16.msra.mxu1 %v5857_v12  ;;  %v5317_v6 = vor.u32 %v5975_v35, %v5314_v27  ;;  %v5797_v15 = vor.u32 %v6095_v42, %v5794_v11  ;;  %v6091_v12 = vld [vmem:[#allocation6 + $0x4ac] sm:$0xf]  ;;  %v5458_v35 = vld [vmem:[#allocation6 + $0x238] sm:$0xf0] }
 0x413   :  { %v5781_v59 = vor.u32 %v6091_v12, %v5778_v49  ;;  %v6015_v2 = vld [vmem:[#allocation6 + $0x24c] sm:$0xf]  ;;  %v5858_v7 = vld [vmem:[#allocation6 + $0x558] sm:$0xf0] }
 0x414   :  { %4850 = vmatpush.bf16.msra.mxu2 %v5237_v26  ;;  %v6059_v26 = vld [vmem:[#allocation6 + $0x3ac] sm:$0xf]  ;;  %v5698_v49 = vld [vmem:[#allocation6 + $0x418] sm:$0xf0] }
 0x415   :  { %4862 = vmatpush.bf16.msra.mxu3 %v5381_v47  ;;  %v5650_v47 = vld [vmem:[#allocation6 + $0x3b8] sm:$0xf0]  ;;  %v6043_v27 = vld [vmem:[#allocation6 + $0x32c] sm:$0xf] }
 0x416   :  { %4826 = vmatpush.bf16.msra.mxu0 %v5713_v63  ;;  %4839 = vmatpush.bf16.msra.mxu1 %v5841_v45  ;;  %v5653_v44 = vor.u32 %v6059_v26, %v5650_v47  ;;  %v5925_v63 = vor.u32 %v6127_v48, %v5922_v50  ;;  %v6087_v45 = vld [vmem:[#allocation6 + $0x48c] sm:$0xf]  ;;  %v5442_v47 = vld [vmem:[#allocation6 + $0x218] sm:$0xf0] }
 0x417   :  { %v6111_v42 = vld [vmem:[#allocation6 + $0x54c] sm:$0xf] }
 0x418   :  { %4851 = vmatpush.bf16.msra.mxu2 %v5221_v14  ;;  %v5506_v14 = vld [vmem:[#allocation6 + $0x298] sm:$0xf0]  ;;  %v6007_v26 = vld [vmem:[#allocation6 + $0x20c] sm:$0xf]  ;;  %v5861_v48 = vor.u32 %v6111_v42, %v5858_v7 }
 0x419   :  { %4863 = vmatpush.bf16.msra.mxu3 %v5365_v13  ;;  %v5634_v13 = vld [vmem:[#allocation6 + $0x398] sm:$0xf0]  ;;  %v5509_v0 = vor.u32 %v6023_v52, %v5506_v14  ;;  %v6071_v12 = vld [vmem:[#allocation6 + $0x40c] sm:$0xf] }
 0x41a   :  { %4827 = vmatpush.bf16.msra.mxu0 %v5697_v4  ;;  %4840 = vmatpush.bf16.msra.mxu1 %v5825_v40  ;;  %v5746_v4 = vld [vmem:[#allocation6 + $0x478] sm:$0xf0]  ;;  %v6107_v50 = vld [vmem:[#allocation6 + $0x52c] sm:$0xf]  ;;  %v5701_v14 = vor.u32 %v6071_v12, %v5698_v49 }
 0x41b   :  { %v5474_v40 = vld [vmem:[#allocation6 + $0x258] sm:$0xf0] }
 0x41c   :  { %4852 = vmatpush.bf16.msra.mxu2 %v5205_v55  ;;  %v5765_v55 = vor.u32 %v6087_v45, %v5762_v8  ;;  %v5477_v31 = vor.u32 %v6015_v2, %v5474_v40 }
 0x41d   :  { %4864 = vmatpush.bf16.msra.mxu3 %v5349_v20  ;;  %4828 = vmatmul.bf16.vlgmr.msra.gmra.mxu0 %v7144_v19  ;;  %v5493_v20 = vor.u32 %v6019_v58, %v5490_v62 }
 0x41e   :  { %4872 = vmatpush.bf16.msrb.mxu0 %v5557_v28  ;;  %4885 = vmatpush.bf16.msrb.mxu1 %v5685_v60  ;;  %v6047_v28 = vld [vmem:[#allocation6 + $0x34c] sm:$0xf] }
 0x41f   :  { %4841 = vmatmul.bf16.vlgmr.msra.gmra.mxu1 %v7150_v32  ;;  %v6115_v60 = vld [vmem:[#allocation6 + $0x56c] sm:$0xf]  ;;  %v5605_v33 = vor.u32 %v6047_v28, %v5602_v22 }
 0x420   :  { %4853 = vmatpush.bf16.msra.mxu2 %v5189_v17  ;;  %v5730_v17 = vld [vmem:[#allocation6 + $0x458] sm:$0xf0] }
 0x421   :  { %4865 = vmatpush.bf16.msra.mxu3 %v5333_v57  ;;  %v6011_v57 = vld [vmem:[#allocation6 + $0x22c] sm:$0xf]  ;;  %v5733_v10 = vor.u32 %v6079_v38, %v5730_v17 }
 0x422   :  { %4873 = vmatpush.bf16.msrb.mxu0 %v5541_v24  ;;  %4886 = vmatpush.bf16.msrb.mxu1 %v5669_v37  ;;  %v5877_v24 = vor.u32 %v6115_v60, %v5874_v51  ;;  %v5461_v11 = vor.u32 %v6011_v57, %v5458_v35  ;;  %v5714_v37 = vld [vmem:[#allocation6 + $0x438] sm:$0xf0] }
 0x423   :  { %4854 = vmatmul.bf16.vlgmr.msra.gmra.mxu2 %v7078_v29  ;;  %v5637_v29 = vor.u32 %v6055_v53, %v5634_v13  ;;  %v7167_v13 = vld [vmem:[#allocation8] sm:$0xf] }
 0x424   :  { %4898 = vmatpush.bf16.msrb.mxu2 %v5813_v36  ;;  %v5586_v36 = vld [vmem:[#allocation6 + $0x338] sm:$0xf0]  ;;  %v3548_v43 = vperm.slane %v7167_v13, 0 }
 0x425   :  { %4866 = vmatpush.bf16.msra.mxu3 %v5317_v6  ;;  %v5589_v25 = vor.u32 %v6043_v27, %v5586_v36  ;;  %v6039_v6 = vld [vmem:[#allocation6 + $0x30c] sm:$0xf] }
 0x426   :  { %4874 = vmatpush.bf16.msrb.mxu0 %v5525_v34  ;;  %4887 = vmatpush.bf16.msrb.mxu1 %v5653_v44  ;;  %v5445_v34 = vor.u32 %v6007_v26, %v5442_v47  ;;  %v5842_v44 = vld [vmem:[#allocation6 + $0x538] sm:$0xf0] }
 0x427   :  { %v5845_v53 = vor.u32 %v6107_v50, %v5842_v44 }
 0x428   :  { %4899 = vmatpush.bf16.msrb.mxu2 %v5797_v15  ;;  %4867 = vmatmul.bf16.vlgmr.msra.gmra.mxu3 %v7080_v18  ;;  %v5749_v18 = vor.u32 %v6083_v3, %v5746_v4  ;;  %v5570_v15 = vld [vmem:[#allocation6 + $0x318] sm:$0xf0] }
 0x429   :  { %4911 = vmatpush.bf16.msrb.mxu3 %v5941_v46  ;;  %v5717_v46 = vor.u32 %v6075_v21, %v5714_v37  ;;  %v5573_v52 = vor.u32 %v6039_v6, %v5570_v15 }
 0x42a   :  { %4875 = vmatpush.bf16.msrb.mxu0 %v5509_v0  ;;  %4888 = vmatpush.bf16.msrb.mxu1 %v5637_v29 }
 0x42c   :  { %4900 = vmatpush.bf16.msrb.mxu2 %v5781_v59  ;;  %v6103_v59 = vld [vmem:[#allocation6 + $0x50c] sm:$0xf] }
 0x42d   :  { %4912 = vmatpush.bf16.msrb.mxu3 %v5925_v63  ;;  %v5826_v63 = vld [vmem:[#allocation6 + $0x518] sm:$0xf0] }
 0x42e   :  { %4876 = vmatpush.bf16.msrb.mxu0 %v5493_v20  ;;  %4889 = vmatpush.bf16.msrb.mxu1 %v5621_v56  ;;  %v5829_v0 = vor.u32 %v6103_v59, %v5826_v63  ;;  %v3549_v56 = vperm.slane %v7167_v13, 1 }
 0x430   :  { %4901 = vmatpush.bf16.msrb.mxu2 %v5765_v55 }
 0x431   :  { %4913 = vmatpush.bf16.msrb.mxu3 %v5909_v1 }
 0x432   :  { %4877 = vmatpush.bf16.msrb.mxu0 %v5477_v31  ;;  %4890 = vmatpush.bf16.msrb.mxu1 %v5605_v33 }
 0x434   :  { %4902 = vmatpush.bf16.msrb.mxu2 %v5749_v18 }
 0x435   :  { %4914 = vmatpush.bf16.msrb.mxu3 %v5893_v41 }
 0x436   :  { %4878 = vmatpush.bf16.msrb.mxu0 %v5461_v11  ;;  %4891 = vmatpush.bf16.msrb.mxu1 %v5589_v25 }
 0x438   :  { %4903 = vmatpush.bf16.msrb.mxu2 %v5733_v10 }
 0x439   :  { %4915 = vmatpush.bf16.msrb.mxu3 %v5877_v24 }
 0x43a   :  { %4879 = vmatpush.bf16.msrb.mxu0 %v5445_v34  ;;  %4892 = vmatpush.bf16.msrb.mxu1 %v5573_v52  ;;  %v4621_v45 = vpop.f32.mrf.mxu0  ;;  %v4634_v8 = vpop.f32.mrf.mxu1 }
 0x43b   :  { %v4622_v39 = vadd.f32 %v4621_v45, %v3548_v43 }
 0x43c   :  { %4904 = vmatpush.bf16.msrb.mxu2 %v5717_v46 }
 0x43d   :  { %4916 = vmatpush.bf16.msrb.mxu3 %v5861_v48  ;;  %4880 = vmatmul.bf16.vlgmr.msrb.gmra.mxu0 %v7113_v23  ;;  %v4635_v29 = vadd.f32 %v4634_v8, %v4622_v39 }
 0x43e   :  { %4893 = vmatmul.bf16.vlgmr.msrb.gmra.mxu1 %v7133_v9 }
 0x440   :  { %4905 = vmatpush.bf16.msrb.mxu2 %v5701_v14 }
 0x441   :  { %4917 = vmatpush.bf16.msrb.mxu3 %v5845_v53 }
 0x442   :  { %v4623_v58 = vpop.f32.mrf.mxu0  ;;  %v4636_v62 = vpop.f32.mrf.mxu1 }
 0x443   :  { %4906 = vmatmul.bf16.vlgmr.msrb.gmra.mxu2 %v7144_v19 }
 0x445   :  { %4918 = vmatpush.bf16.msrb.mxu3 %v5829_v0 }
 0x446   :  { %v4647_v61 = vpop.f32.mrf.mxu2 }
 0x447   :  { %v4648_v30 = vadd.f32 %v4647_v61, %v4635_v29 }
 0x448   :  { %4919 = vmatmul.bf16.vlgmr.msrb.gmra.mxu3 %v7150_v32 }
 0x44b   :  { %v4660_v23 = vpop.f32.mrf.mxu3 }
 0x44c   :  { %v4661_v55 = vadd.f32 %v4660_v23, %v4648_v30 }
 0x44d   :  { %v4673_v1 = vpop.f32.mrf.mxu0 }
 0x44e   :  { %v4649_v54 = vpop.f32.mrf.mxu2  ;;  %v4674_v20 = vadd.f32 %v4673_v1, %v4661_v55 }
 0x450   :  { %v4686_v3 = vpop.f32.mrf.mxu1 }
 0x451   :  { %v4687_v9 = vadd.f32 %v4686_v3, %v4674_v20 }
 0x453   :  { %v4662_v4 = vpop.f32.mrf.mxu3  ;;  %v4924_v19 = vsel %vm7311_vm15, %v4687_v9, 0.0 }
 0x454   :  { %v4925_v5 = vrot.slane %v4924_v19, 4 }
 0x455   :  { %v4675_v2 = vpop.f32.mrf.mxu0 }
 0x456   :  { %v4926_v40 = vadd.f32 %v4925_v5, %v4924_v19  ;;  %v4699_v32 = vpop.f32.mrf.mxu2  ;;  %v3550_v19 = vperm.slane %v7167_v13, 2 }
 0x457   :  { %v4700_v22 = vadd.f32 %v4699_v32, %v3549_v56 }
 0x458   :  { %v4927_v28 = vrot.slane %v4926_v40, 2  ;;  %v4688_v18 = vpop.f32.mrf.mxu1 }
 0x45a   :  { %v4928_v41 = vadd.f32 %v4927_v28, %v4926_v40 }
 0x45b   :  { %v4712_v60 = vpop.f32.mrf.mxu3 }
 0x45c   :  { %v4929_v31 = vrot.slane %v4928_v41, 1  ;;  %v4713_v38 = vadd.f32 %v4712_v60, %v4700_v22 }
 0x45d   :  { %v4725_v17 = vpop.f32.mrf.mxu0 }
 0x45e   :  { %v4930_v51 = vadd.f32 %v4929_v31, %v4928_v41  ;;  %v4701_v33 = vpop.f32.mrf.mxu2  ;;  %v4726_v57 = vadd.f32 %v4725_v17, %v4713_v38 }
 0x460   :  { %v4952_v35 = vmul.f32 %v4930_v51, %v6920_v16  ;;  %v4738_v27 = vpop.f32.mrf.mxu1 }
 0x461   :  { %v4739_v36 = vadd.f32 %v4738_v27, %v4726_v57  ;;  %v5048_v57 = vld [vmem:[#allocation9] sm:$0xf] }
 0x462   :  { %v7177_v10 = vsub.f32 %v4687_v9, %v4952_v35 }
 0x463   :  { %v4714_v24 = vpop.f32.mrf.mxu3 }
 0x464   :  { %v4960_v42 = vmul.f32 %v7177_v10, %v7177_v10 }
 0x465   :  { %v4727_v11 = vpop.f32.mrf.mxu0 }
 0x466   :  { %v4964_v21 = vsel %vm7312_vm2, %v4960_v42, 0.0  ;;  %v4751_v37 = vpop.f32.mrf.mxu2  ;;  %v7192_v11 = vunpack.c.l.bf16 %v5048_v57 }
 0x467   :  { %v4965_v7 = vrot.slane %v4964_v21, 4  ;;  %v4752_v25 = vadd.f32 %v4751_v37, %v4739_v36 }
 0x468   :  { %v4740_v26 = vpop.f32.mrf.mxu1 }
 0x469   :  { %v4966_v47 = vadd.f32 %v4965_v7, %v4964_v21 }
 0x46b   :  { %v4967_v6 = vrot.slane %v4966_v47, 2  ;;  %v4764_v15 = vpop.f32.mrf.mxu3 }
 0x46c   :  { %v4765_v46 = vadd.f32 %v4764_v15, %v4752_v25  ;;  %v5051_v15 = vperm.slane %v7192_v11, 0 }
 0x46d   :  { %v4968_v48 = vadd.f32 %v4967_v6, %v4966_v47 }
 0x46e   :  { %v4931_v34 = vsel %vm7313_vm9, %v4765_v46, 0.0  ;;  %v4753_v12 = vpop.f32.mrf.mxu2 }
 0x46f   :  { %v4969_v49 = vrot.slane %v4968_v48, 1  ;;  %v4932_v50 = vrot.slane %v4931_v34, 4  ;;  %v5052_v12 = vperm.slane %v7192_v11, 2 }
 0x471   :  { %v4933_v44 = vadd.f32 %v4932_v50, %v4931_v34  ;;  %v4970_v52 = vadd.f32 %v4969_v49, %v4968_v48 }
 0x473   :  { %v4934_v14 = vrot.slane %v4933_v44, 2  ;;  %v4766_v53 = vpop.f32.mrf.mxu3  ;;  %v4992_v63 = vmul.f32 %v4970_v52, %v6920_v16 }
 0x474   :  { %v5059_v53 = vperm.slane %v5051_v15, 0 }
 0x475   :  { %v4935_v59 = vadd.f32 %v4934_v14, %v4933_v44  ;;  %v4996_v39 = vadd.f32 1e-05, %v4992_v63 }
 0x477   :  { %v4936_v43 = vrot.slane %v4935_v59, 1  ;;  %6172 = vrsqrt.f32 %v4996_v39  ;;  %vm5006_vm5 = vweird.f32 %v4996_v39 }
 0x479   :  { %v4937_v45 = vadd.f32 %v4936_v43, %v4935_v59  ;;  %v5060_v43 = vperm.slane %v5052_v12, 0 }
 0x47a   :  { %v4777_v0 = vpop.f32.mrf.mxu0 }
 0x47b   :  { %v4953_v29 = vmul.f32 %v4937_v45, %v6920_v16  ;;  %v4778_v28 = vadd.f32 %v4777_v0, %v3550_v19 }
 0x47c   :  { %v4790_v8 = vpop.f32.mrf.mxu1 }
 0x47d   :  { %v7185_v58 = vsub.f32 %v4765_v46, %v4953_v29  ;;  %v6173_v54 = vpop.eup %6172  ;;  %v4791_v60 = vadd.f32 %v4790_v8, %v4778_v28 }
 0x47e   :  { %v5001_v9 = vmul.f32 %v6173_v54, %v4996_v39  ;;  %vm5007_vm7 = vweird.f32 %v6173_v54 }
 0x47f   :  { %v4961_v62 = vmul.f32 %v7185_v58, %v7185_v58  ;;  %vm5008_vm6 = vmor %vm5006_vm5, %vm5007_vm7 }
 0x480   :  { %v5002_v2 = vmul.f32 %v6173_v54, %v5001_v9  ;;  %v3551_v9 = vperm.slane %v7167_v13, 3 }
 0x481   :  { %v4971_v30 = vsel %vm7314_vm1, %v4961_v62, 0.0 }
 0x482   :  { %v4779_v61 = vpop.f32.mrf.mxu0  ;;  %v4972_v55 = vrot.slane %v4971_v30, 4  ;;  %v5003_v18 = vmul.f32 0.5, %v5002_v2 }
 0x484   :  { %v4792_v23 = vpop.f32.mrf.mxu1  ;;  %v4973_v20 = vadd.f32 %v4972_v55, %v4971_v30  ;;  %v5004_v17 = vsub.f32 1.5, %v5003_v18 }
 0x486   :  { %v4803_v1 = vpop.f32.mrf.mxu2  ;;  %v4974_v3 = vrot.slane %v4973_v20, 2  ;;  %v5005_v33 = vmul.f32 %v6173_v54, %v5004_v17 }
 0x487   :  { %v4804_v38 = vadd.f32 %v4803_v1, %v4791_v60 }
 0x488   :  { %v4975_v4 = vadd.f32 %v4974_v3, %v4973_v20  ;;  %v5009_v37 = vsel %vm5008_vm6, %v6173_v54, %v5005_v33  ;;  %vm7321_vm6 = vmmov %vm7318_vm0 }
 0x489   :  { %v5040_v6 = vmul.f32 %v5009_v37, %v7177_v10 }
 0x48a   :  { %v4976_v56 = vrot.slane %v4975_v4, 1 }
 0x48b   :  { %v4816_v5 = vpop.f32.mrf.mxu3  ;;  %v5044_v14 = vmax.f32 %v5040_v6, 0.0 }
 0x48c   :  { %v4977_v32 = vadd.f32 %v4976_v56, %v4975_v4  ;;  %v4817_v51 = vadd.f32 %v4816_v5, %v4804_v38 }
 0x48d   :  { %v5063_v8 = vmul.f32 %v5059_v53, %v5044_v14 }
 0x48e   :  { %v4805_v40 = vpop.f32.mrf.mxu2  ;;  %v4993_v22 = vmul.f32 %v4977_v32, %v6920_v16 }
 0x48f   :  { %v5067_v23 = vsel %vm7316_vm10, %v5063_v8, 0.0 }
 0x490   :  { %v4997_v41 = vadd.f32 1e-05, %v4993_v22 }
 0x492   :  { %6174 = vrsqrt.f32 %v4997_v41  ;;  %vm5016_vm8 = vweird.f32 %v4997_v41 }
 0x493   :  { %v4818_v31 = vpop.f32.mrf.mxu3 }
 0x498   :  { %v6175_v27 = vpop.eup %6174 }
 0x499   :  { %v5011_v24 = vmul.f32 %v6175_v27, %v4997_v41  ;;  %vm5017_vm3 = vweird.f32 %v6175_v27 }
 0x49a   :  { %v4829_v35 = vpop.f32.mrf.mxu0  ;;  %vm5018_vm14 = vmor %vm5016_vm8, %vm5017_vm3  ;;  %vm5081_vm3 = vcmask 3072  }
 0x49b   :  { %v4830_v36 = vadd.f32 %v4829_v35, %v4817_v51  ;;  %v5012_v7 = vmul.f32 %v6175_v27, %v5011_v24 }
 0x49c   :  { %v4842_v42 = vpop.f32.mrf.mxu1 }
 0x49d   :  { %v4843_v21 = vadd.f32 %v4842_v42, %v4830_v36  ;;  %v5013_v26 = vmul.f32 0.5, %v5012_v7 }
 0x49f   :  { %v4938_v25 = vsel %vm7315_vm12, %v4843_v21, 0.0  ;;  %v5014_v46 = vsub.f32 1.5, %v5013_v26  ;;  %vm7322_vm12 = vmmov %vm7318_vm0 }
 0x4a0   :  { %v4939_v47 = vrot.slane %v4938_v25, 4 }
 0x4a1   :  { %v5015_v50 = vmul.f32 %v6175_v27, %v5014_v46 }
 0x4a2   :  { %v4940_v48 = vadd.f32 %v4939_v47, %v4938_v25  ;;  %v4831_v34 = vpop.f32.mrf.mxu0 }
 0x4a3   :  { %v5019_v59 = vsel %vm5018_vm14, %v6175_v27, %v5015_v50 }
 0x4a4   :  { %v4941_v44 = vrot.slane %v4940_v48, 2  ;;  %v4844_v52 = vpop.f32.mrf.mxu1  ;;  %v5041_v10 = vmul.f32 %v5019_v59, %v7185_v58 }
 0x4a6   :  { %v4855_v49 = vpop.f32.mrf.mxu2  ;;  %v4942_v63 = vadd.f32 %v4941_v44, %v4940_v48  ;;  %v5045_v39 = vmax.f32 %v5041_v10, 0.0 }
 0x4a7   :  { %v4856_v19 = vadd.f32 %v4855_v49, %v3551_v9 }
 0x4a8   :  { %v4943_v0 = vrot.slane %v4942_v63, 1  ;;  %v5064_v62 = vmul.f32 %v5060_v43, %v5045_v39 }
 0x4aa   :  { %v4944_v29 = vadd.f32 %v4943_v0, %v4942_v63  ;;  %v5068_v55 = vsel %vm7317_vm11, %v5064_v62, 0.0  ;;  %v5053_v62 = vperm.slane %v7192_v11, 4 }
 0x4ab   :  { %v4868_v45 = vpop.f32.mrf.mxu3  ;;  %v7202_v54 = vadd.f32 %v5068_v55, %v5067_v23 }
 0x4ac   :  { %v4954_v30 = vmul.f32 %v4944_v29, %v6920_v16  ;;  %v4869_v40 = vadd.f32 %v4868_v45, %v4856_v19  ;;  %v5061_v55 = vperm.slane %v5053_v62, 0 }
 0x4ae   :  { %v4857_v61 = vpop.f32.mrf.mxu2  ;;  %v4958_v1 = vsub.f32 %v4843_v21, %v4954_v30 }
 0x4b0   :  { %v4962_v20 = vmul.f32 %v4958_v1, %v4958_v1 }
 0x4b2   :  { %v4978_v58 = vsel %vm7318_vm0, %v4962_v20, 0.0 }
 0x4b3   :  { %v4870_v3 = vpop.f32.mrf.mxu3  ;;  %v4979_v4 = vrot.slane %v4978_v58, 4 }
 0x4b5   :  { %v4980_v56 = vadd.f32 %v4979_v4, %v4978_v58 }
 0x4b7   :  { %v4981_v32 = vrot.slane %v4980_v56, 2 }
 0x4b9   :  { %v4982_v18 = vadd.f32 %v4981_v32, %v4980_v56 }
 0x4ba   :  { %v4881_v5 = vpop.f32.mrf.mxu0 }
 0x4bb   :  { %v4894_v2 = vpop.f32.mrf.mxu1  ;;  %v4882_v28 = vadd.f32 %v4881_v5, %v4869_v40  ;;  %v4983_v17 = vrot.slane %v4982_v18, 1 }
 0x4bd   :  { %v4895_v41 = vadd.f32 %v4894_v2, %v4882_v28  ;;  %v4984_v57 = vadd.f32 %v4983_v17, %v4982_v18  ;;  %v6149_v28 = vld [vmem:[#allocation3] ss:$0 sm:$0xff] }
 0x4bf   :  { %v4994_v24 = vmul.f32 %v4984_v57, %v6920_v16 }
 0x4c1   :  { %v4998_v7 = vadd.f32 1e-05, %v4994_v24 }
 0x4c2   :  { %v4883_v22 = vpop.f32.mrf.mxu0 }
 0x4c3   :  { %v4896_v31 = vpop.f32.mrf.mxu1  ;;  %6176 = vrsqrt.f32 %v4998_v7  ;;  %vm5026_vm2 = vweird.f32 %v4998_v7 }
 0x4c6   :  { %v4907_v60 = vpop.f32.mrf.mxu2 }
 0x4c7   :  { %v4908_v38 = vadd.f32 %v4907_v60, %v4895_v41 }
 0x4c9   :  { %v6177_v46 = vpop.eup %6176 }
 0x4ca   :  { %v5021_v12 = vmul.f32 %v6177_v46, %v4998_v7  ;;  %vm5027_vm15 = vweird.f32 %v6177_v46 }
 0x4cb   :  { %v4920_v51 = vpop.f32.mrf.mxu3  ;;  %vm5028_vm9 = vmor %vm5026_vm2, %vm5027_vm15 }
 0x4cc   :  { %v4921_v33 = vadd.f32 %v4920_v51, %v4908_v38  ;;  %v5022_v44 = vmul.f32 %v6177_v46, %v5021_v12 }
 0x4ce   :  { %v4945_v13 = vsel %vm7319_vm13, %v4921_v33, 0.0  ;;  %v4909_v35 = vpop.f32.mrf.mxu2  ;;  %v5023_v53 = vmul.f32 0.5, %v5022_v44 }
 0x4cf   :  { %v4946_v27 = vrot.slane %v4945_v13, 4 }
 0x4d0   :  { %v5024_v10 = vsub.f32 1.5, %v5023_v53 }
 0x4d1   :  { %v4947_v36 = vadd.f32 %v4946_v27, %v4945_v13 }
 0x4d2   :  { %v5025_v0 = vmul.f32 %v6177_v46, %v5024_v10 }
 0x4d3   :  { %v4948_v42 = vrot.slane %v4947_v36, 2  ;;  %v4922_v21 = vpop.f32.mrf.mxu3 }
 0x4d4   :  { %v5029_v45 = vsel %vm5028_vm9, %v6177_v46, %v5025_v0 }
 0x4d5   :  { %v4949_v37 = vadd.f32 %v4948_v42, %v4947_v36  ;;  %v5042_v29 = vmul.f32 %v5029_v45, %v4958_v1 }
 0x4d7   :  { %v4950_v25 = vrot.slane %v4949_v37, 1  ;;  %v5046_v23 = vmax.f32 %v5042_v29, 0.0 }
 0x4d9   :  { %v4951_v26 = vadd.f32 %v4950_v25, %v4949_v37  ;;  %v5065_v58 = vmul.f32 %v5061_v55, %v5046_v23 }
 0x4db   :  { %v4955_v47 = vmul.f32 %v4951_v26, %v6920_v16  ;;  %v5070_v1 = vsel %vm7321_vm6, %v5065_v58, 0.0 }
 0x4dc   :  { %v5071_v2 = vadd.f32 %v5070_v1, %v7202_v54 }
 0x4dd   :  { %v4959_v6 = vsub.f32 %v4921_v33, %v4955_v47 }
 0x4df   :  { %v4963_v15 = vmul.f32 %v4959_v6, %v4959_v6 }
 0x4e1   :  { %v4985_v48 = vsel %vm7320_vm4, %v4963_v15, 0.0 }
 0x4e2   :  { %v4986_v34 = vrot.slane %v4985_v48, 4 }
 0x4e4   :  { %v4987_v49 = vadd.f32 %v4986_v34, %v4985_v48 }
 0x4e6   :  { %v4988_v50 = vrot.slane %v4987_v49, 2 }
 0x4e8   :  { %v4989_v52 = vadd.f32 %v4988_v50, %v4987_v49 }
 0x4ea   :  { %v4990_v14 = vrot.slane %v4989_v52, 1 }
 0x4ec   :  { %v4991_v59 = vadd.f32 %v4990_v14, %v4989_v52 }
 0x4ee   :  { %v4995_v63 = vmul.f32 %v4991_v59, %v6920_v16  ;;  %v5054_v16 = vperm.slane %v7192_v11, 6 }
 0x4f0   :  { %v4999_v43 = vadd.f32 1e-05, %v4995_v63  ;;  %v5062_v19 = vperm.slane %v5054_v16, 0 }
 0x4f2   :  { %6178 = vrsqrt.f32 %v4999_v43  ;;  %vm5036_vm7 = vweird.f32 %v4999_v43 }
 0x4f8   :  { %v6179_v8 = vpop.eup %6178 }
 0x4f9   :  { %v5031_v39 = vmul.f32 %v6179_v8, %v4999_v43  ;;  %vm5037_vm1 = vweird.f32 %v6179_v8 }
 0x4fa   :  { %vm5038_vm5 = vmor %vm5036_vm7, %vm5037_vm1 }
 0x4fb   :  { %v5032_v61 = vmul.f32 %v6179_v8, %v5031_v39 }
 0x4fd   :  { %v5033_v30 = vmul.f32 0.5, %v5032_v61 }
 0x4ff   :  { %v5034_v20 = vsub.f32 1.5, %v5033_v30 }
 0x501   :  { %v5035_v3 = vmul.f32 %v6179_v8, %v5034_v20 }
 0x503   :  { %v5039_v9 = vsel %vm5038_vm5, %v6179_v8, %v5035_v3 }
 0x504   :  { %v5043_v4 = vmul.f32 %v5039_v9, %v4959_v6 }
 0x506   :  { %v5047_v5 = vmax.f32 %v5043_v4, 0.0 }
 0x508   :  { %v5066_v56 = vmul.f32 %v5062_v19, %v5047_v5 }
 0x50a   :  { %v5072_v40 = vsel %vm7322_vm12, %v5066_v56, 0.0 }
 0x50b   :  { %v5073_v32 = vadd.f32 %v5072_v40, %v5071_v2 }
 0x50d   :  { %5074 = vadd.xlane.f32.xlu2 %v5073_v32 }
 0x580   :  { %v5075_v11 = vpop.xlane.xlu2 %5074 }
 0x581   :  { %v5080_v22 = vadd.f32 %v6149_v28, %v5075_v11 }
 0x583   :  { %5082 = vst.msk [vmem:[%s7225_s6] sm:$0xf] %vm5081_vm3, %v5080_v22 }
 0x584   :  { %5087 = vsyncpa [#allocation5], 1 }
 0x585   :  { %5088 = vsyncpa [#allocation7], 1 }
 0x586   :  { %5089 = vsyncpa [#allocation10], 1 }

</bundles_post_ra>
